<compile_context>
chip_gen: v6e
topology: v6e:2x2x1
jax: 0.10.0
libtpu: 0.0.40
codegen_flags: <defaults>
</compile_context>

<pallas_src>
import jax
import jax.numpy as jnp
from jax import lax
from jax.experimental import pallas as pl
from jax.experimental.pallas import tpu as pltpu

P_VALUE = 1e-8   # GumbelSigmoid.p_value
TAU = 0.1        # GumbelSigmoid tau used in Separation.forward
BN_EPS = 1e-5


def _separation_kernel(xp_ref, gx_ref, gr_ref, w1_ref, w2_ref, w3_ref,
                       s1_ref, t1_ref, s2_ref, t2_ref,
                       hf_ref, lf_ref, mask_ref, pad_ref):
    _, Hp, Wp, _ = xp_ref.shape
    H, W = Hp - 2, Wp - 2
    HW = H * W
    MID = w1_ref.shape[-1]

    def conv3x3(src, w_ref):
        """3x3 conv via 9 MXU tap-matmuls.  src: (H+2, W+2, Cin) value or ref,
        w_ref: (3, 3, Cin, Cout).  Returns (H*W, Cout) f32."""
        cin, cout = w_ref.shape[-2], w_ref.shape[-1]
        acc = jnp.zeros((HW, cout), jnp.float32)
        for ky in range(3):
            for kx in range(3):
                win = src[ky:ky + H, kx:kx + W, :].reshape(HW, cin)
                acc = acc + jnp.dot(win, w_ref[ky, kx],
                                    preferred_element_type=jnp.float32)
        return acc

    # ---- conv1 (C -> MID) + folded eval-mode BN1 + ReLU ----------------------
    f = conv3x3(xp_ref[0], w1_ref)                         # (HW, MID)
    f = jnp.maximum(f * s1_ref[...] + t1_ref[...], 0.0)    # (1,MID) broadcasts

    # ---- conv2 (MID -> MID) + BN2 + ReLU (re-pad via reused VMEM scratch) ----
    pad_ref[...] = jnp.zeros_like(pad_ref)
    pad_ref[1:H + 1, 1:W + 1, :] = f.reshape(H, W, MID)
    f = conv3x3(pad_ref, w2_ref)
    f = jnp.maximum(f * s2_ref[...] + t2_ref[...], 0.0)

    # ---- conv3 (MID -> C) -----------------------------------------------------
    pad_ref[1:H + 1, 1:W + 1, :] = f.reshape(H, W, MID)    # borders stay zero
    feat = conv3x3(pad_ref, w3_ref)                        # (HW, C)
    feat = jnp.transpose(feat)                             # (C, HW) lane-dense

    # ---- Sigmoid + GumbelSigmoid(tau=0.1), 2-way softmax collapsed -----------
    p = 1.0 / (1.0 + jnp.exp(-feat))                       # Sigmoid(feature)
    lx = jnp.log(p + P_VALUE)
    lr = jnp.log((1.0 - p) + P_VALUE)
    d = (lx - lr + gx_ref[0] - gr_ref[0]) / (TAU + P_VALUE)
    d = jnp.clip(d, -30.0, 30.0)                           # keep exp finite
    mask = pl.reciprocal(1.0 + jnp.exp(-d), approx=True)   # softmax slot 0

    hf = feat * mask
    hf_ref[0] = hf
    lf_ref[0] = feat - hf                                  # feature * (1-mask)
    mask_ref[0] = mask


def separation_forward(x, w1, w2, w3,
                       bn1_g, bn1_b, bn1_m, bn1_v,
                       bn2_g, bn2_b, bn2_m, bn2_v,
                       ux, ur):
    B, C, H, W = x.shape
    MID = w1.shape[0]
    HW = H * W

    # glue (layout only): channels-last + zero pad for conv1's halo.
    xp = jnp.pad(jnp.transpose(x, (0, 2, 3, 1)),
                 ((0, 0), (1, 1), (1, 1), (0, 0)))
    # glue (layout only): conv weights OIHW -> (ky, kx, cin, cout).
    w1t = jnp.transpose(w1, (2, 3, 1, 0))
    w2t = jnp.transpose(w2, (2, 3, 1, 0))
    w3t = jnp.transpose(w3, (2, 3, 1, 0))
    # glue: fold eval-mode BN into per-channel scale/shift row vectors.
    s1v = bn1_g / jnp.sqrt(bn1_v + BN_EPS)
    t1v = bn1_b - bn1_m * s1v
    s2v = bn2_g / jnp.sqrt(bn2_v + BN_EPS)
    t2v = bn2_b - bn2_m * s2v
    s1, t1 = s1v.reshape(1, MID), t1v.reshape(1, MID)
    s2, t2 = s2v.reshape(1, MID), t2v.reshape(1, MID)
    # glue: precompute Gumbel noise transform, lane-dense (B, C, H*W).
    gx = (-jnp.log(-jnp.log(ux + P_VALUE) + P_VALUE)).reshape(B, C, HW)
    gr = (-jnp.log(-jnp.log(ur + P_VALUE) + P_VALUE)).reshape(B, C, HW)

    out_sds = jax.ShapeDtypeStruct((B, C, HW), jnp.float32)

    def batch3():
        return pl.BlockSpec((1, C, HW), lambda b: (b, 0, 0))

    def const(shape):
        n = len(shape)
        return pl.BlockSpec(shape, lambda b, _n=n: (0,) * _n)

    hf, lf, mask = pl.pallas_call(
        _separation_kernel,
        out_shape=(out_sds, out_sds, out_sds),
        grid=(B,),
        in_specs=[
            pl.BlockSpec((1, H + 2, W + 2, C), lambda b: (b, 0, 0, 0)),  # xp
            batch3(), batch3(),                                          # gx, gr
            const((3, 3, C, MID)),                                       # w1t
            const((3, 3, MID, MID)),                                     # w2t
            const((3, 3, MID, C)),                                       # w3t
            const((1, MID)), const((1, MID)),                            # s1, t1
            const((1, MID)), const((1, MID)),                            # s2, t2
        ],
        out_specs=(batch3(), batch3(), batch3()),
        scratch_shapes=[pltpu.VMEM((H + 2, W + 2, MID), jnp.float32)],
        compiler_params=pltpu.CompilerParams(
            dimension_semantics=("parallel",)),
    )(xp, gx, gr, w1t, w2t, w3t, s1, t1, s2, t2)

    return (hf.reshape(B, C, H, W),
            lf.reshape(B, C, H, W),
            mask.reshape(B, C, H, W))


def _reference_forward(x, w1, w2, w3,
                       bn1_g, bn1_b, bn1_m, bn1_v,
                       bn2_g, bn2_b, bn2_m, bn2_v,
                       ux, ur):
    """Pure-JAX reference mirroring the PyTorch forward (eval-mode BN)."""
    def conv(h, w):
        return lax.conv_general_dilated(
            h, w, (1, 1), ((1, 1), (1, 1)),
            dimension_numbers=("NCHW", "OIHW", "NCHW"),
            precision=lax.Precision.HIGHEST)

    def bn_relu(h, g, b, m, v):
        s = g / jnp.sqrt(v + BN_EPS)
        t = b - m * s
        return jnp.maximum(h * s[None, :, None, None]
                           + t[None, :, None, None], 0.0)

    f = bn_relu(conv(x, w1), bn1_g, bn1_b, bn1_m, bn1_v)
    f = bn_relu(conv(f, w2), bn2_g, bn2_b, bn2_m, bn2_v)
    feature = conv(f, w3)

    p = jax.nn.sigmoid(feature)
    gx = -jnp.log(-jnp.log(ux + P_VALUE) + P_VALUE)
    gr = -jnp.log(-jnp.log(ur + P_VALUE) + P_VALUE)
    a = (jnp.log(p + P_VALUE) + gx) / (TAU + P_VALUE)
    b = (jnp.log(1.0 - p + P_VALUE) + gr) / (TAU + P_VALUE)
    mask = jax.nn.softmax(jnp.stack([a, b], axis=-1), axis=-1)[..., 0]
    return feature * mask, feature * (1.0 - mask), mask


if __name__ == "__main__":
    B, C, H, W, MID = 2, 4, 16, 16, 64
    key = jax.random.PRNGKey(0)
    (kx, k1, k2, k3, kg1, kb1, km1, kv1,
     kg2, kb2, km2, kv2, kux, kur) = jax.random.split(key, 14)

    x = jax.random.normal(kx, (B, C, H, W), jnp.float32)
    # Conv2d weights (OIHW, no bias), ~Kaiming scale.
    w1 = jax.random.normal(k1, (MID, C, 3, 3), jnp.float32) / (9 * C) ** 0.5
    w2 = jax.random.normal(k2, (MID, MID, 3, 3), jnp.float32) / (9 * MID) ** 0.5
    w3 = jax.random.normal(k3, (C, MID, 3, 3), jnp.float32) / (9 * MID) ** 0.5
    # Non-trivial BatchNorm2d params / running stats (eval-mode fold).
    bn1_g = jax.random.uniform(kg1, (MID,), jnp.float32, 0.5, 1.5)
    bn1_b = 0.1 * jax.random.normal(kb1, (MID,), jnp.float32)
    bn1_m = 0.1 * jax.random.normal(km1, (MID,), jnp.float32)
    bn1_v = jax.random.uniform(kv1, (MID,), jnp.float32, 0.5, 1.5)
    bn2_g = jax.random.uniform(kg2, (MID,), jnp.float32, 0.5, 1.5)
    bn2_b = 0.1 * jax.random.normal(kb2, (MID,), jnp.float32)
    bn2_m = 0.1 * jax.random.normal(km2, (MID,), jnp.float32)
    bn2_v = jax.random.uniform(kv2, (MID,), jnp.float32, 0.5, 1.5)
    # GumbelSigmoid train-mode uniform noise (torch.rand_like equivalent).
    ux = jax.random.uniform(kux, (B, C, H, W), jnp.float32)
    ur = jax.random.uniform(kur, (B, C, H, W), jnp.float32)

    hf, lf, mask = separation_forward(
        x, w1, w2, w3,
        bn1_g, bn1_b, bn1_m, bn1_v,
        bn2_g, bn2_b, bn2_m, bn2_v, ux, ur)
    jax.block_until_ready((hf, lf, mask))

    hf_r, lf_r, m_r = _reference_forward(
        x, w1, w2, w3,
        bn1_g, bn1_b, bn1_m, bn1_v,
        bn2_g, bn2_b, bn2_m, bn2_v, ux, ur)

    # feature = HF + LF : checks the conv/BN/ReLU stack directly.
    assert jnp.allclose(hf + lf, hf_r + lf_r, rtol=2e-2, atol=2e-2)
    assert jnp.allclose(mask, m_r, rtol=3e-2, atol=3e-2)
    assert jnp.allclose(hf, hf_r, rtol=3e-2, atol=3e-2)
    assert jnp.allclose(lf, lf_r, rtol=3e-2, atol=3e-2)
    assert bool(jnp.all((mask >= 0.0) & (mask <= 1.0)))
    print("KERNEL_OK")
</pallas_src>

<mosaic_0001>
module attributes {stable_mosaic.version = 11 : i64} {
  func.func @_separation_kernel(%arg0: i32, %arg1: memref<1x18x18x4xf32, #tpu.memory_space<vmem>>, %arg2: memref<1x4x256xf32, #tpu.memory_space<vmem>>, %arg3: memref<1x4x256xf32, #tpu.memory_space<vmem>>, %arg4: memref<3x3x4x64xf32, #tpu.memory_space<vmem>>, %arg5: memref<3x3x64x64xf32, #tpu.memory_space<vmem>>, %arg6: memref<3x3x64x4xf32, #tpu.memory_space<vmem>>, %arg7: memref<1x64xf32, #tpu.memory_space<vmem>>, %arg8: memref<1x64xf32, #tpu.memory_space<vmem>>, %arg9: memref<1x64xf32, #tpu.memory_space<vmem>>, %arg10: memref<1x64xf32, #tpu.memory_space<vmem>>, %arg11: memref<1x4x256xf32, #tpu.memory_space<vmem>>, %arg12: memref<1x4x256xf32, #tpu.memory_space<vmem>>, %arg13: memref<1x4x256xf32, #tpu.memory_space<vmem>>, %arg14: memref<18x18x64xf32, #tpu.memory_space<vmem>>) attributes {dimension_semantics = [#tpu.dimension_semantics<parallel>], iteration_bounds = array<i64: 2>, scalar_prefetch = 0 : i64, scratch_operands = 1 : i64, tpu.core_type = #tpu.core_type<tc>, window_params = [{transform_indices = @transform_0, window_bounds = array<i64: 1, 18, 18, 4>}, {transform_indices = @transform_1, window_bounds = array<i64: 1, 4, 256>}, {transform_indices = @transform_2, window_bounds = array<i64: 1, 4, 256>}, {pipeline_mode = #tpu.pipeline_mode<synchronous>, transform_indices = @transform_3, window_bounds = array<i64: 3, 3, 4, 64>}, {pipeline_mode = #tpu.pipeline_mode<synchronous>, transform_indices = @transform_4, window_bounds = array<i64: 3, 3, 64, 64>}, {pipeline_mode = #tpu.pipeline_mode<synchronous>, transform_indices = @transform_5, window_bounds = array<i64: 3, 3, 64, 4>}, {pipeline_mode = #tpu.pipeline_mode<synchronous>, transform_indices = @transform_6, window_bounds = array<i64: 1, 64>}, {pipeline_mode = #tpu.pipeline_mode<synchronous>, transform_indices = @transform_7, window_bounds = array<i64: 1, 64>}, {pipeline_mode = #tpu.pipeline_mode<synchronous>, transform_indices = @transform_8, window_bounds = array<i64: 1, 64>}, {pipeline_mode = #tpu.pipeline_mode<synchronous>, transform_indices = @transform_9, window_bounds = array<i64: 1, 64>}, {transform_indices = @transform_10, window_bounds = array<i64: 1, 4, 256>}, {transform_indices = @transform_11, window_bounds = array<i64: 1, 4, 256>}, {transform_indices = @transform_12, window_bounds = array<i64: 1, 4, 256>}]} {
    %c0 = arith.constant 0 : index
    %c0_0 = arith.constant 0 : index
    %c0_1 = arith.constant 0 : index
    %c0_2 = arith.constant 0 : index
    %0 = vector.load %arg1[%c0, %c0_0, %c0_1, %c0_2] : memref<1x18x18x4xf32, #tpu.memory_space<vmem>>, vector<1x18x18x4xf32>
    %1 = vector.shape_cast %0 : vector<1x18x18x4xf32> to vector<18x18x4xf32>
    %cst = arith.constant 0.000000e+00 : f32
    %2 = vector.broadcast %cst : f32 to vector<256x64xf32>
    %3 = vector.extract_strided_slice %1 {offsets = [0, 0, 0], sizes = [16, 16, 4], strides = [1, 1, 1]} : vector<18x18x4xf32> to vector<16x16x4xf32>
    %4 = vector.shape_cast %3 : vector<16x16x4xf32> to vector<256x4xf32>
    %c0_3 = arith.constant 0 : index
    %c0_4 = arith.constant 0 : index
    %c0_5 = arith.constant 0 : index
    %c0_6 = arith.constant 0 : index
    %5 = vector.load %arg4[%c0_3, %c0_4, %c0_5, %c0_6] : memref<3x3x4x64xf32, #tpu.memory_space<vmem>>, vector<1x1x4x64xf32>
    %6 = vector.shape_cast %5 : vector<1x1x4x64xf32> to vector<4x64xf32>
    %cst_7 = arith.constant dense<0.000000e+00> : vector<256x64xf32>
    %7 = tpu.matmul %4, %6, %cst_7 {dimension_numbers = #tpu.dot_dimension_numbers<[1], [0], [0], [1], [0, 0, 1, 1], [], []>} : vector<256x4xf32>, vector<4x64xf32>, vector<256x64xf32> -> vector<256x64xf32>
    %8 = arith.addf %2, %7 : vector<256x64xf32>
    %9 = vector.extract_strided_slice %1 {offsets = [0, 1, 0], sizes = [16, 16, 4], strides = [1, 1, 1]} : vector<18x18x4xf32> to vector<16x16x4xf32>
    %10 = vector.shape_cast %9 : vector<16x16x4xf32> to vector<256x4xf32>
    %c0_8 = arith.constant 0 : index
    %c1 = arith.constant 1 : index
    %c0_9 = arith.constant 0 : index
    %c0_10 = arith.constant 0 : index
    %11 = vector.load %arg4[%c0_8, %c1, %c0_9, %c0_10] : memref<3x3x4x64xf32, #tpu.memory_space<vmem>>, vector<1x1x4x64xf32>
    %12 = vector.shape_cast %11 : vector<1x1x4x64xf32> to vector<4x64xf32>
    %cst_11 = arith.constant dense<0.000000e+00> : vector<256x64xf32>
    %13 = tpu.matmul %10, %12, %cst_11 {dimension_numbers = #tpu.dot_dimension_numbers<[1], [0], [0], [1], [0, 0, 1, 1], [], []>} : vector<256x4xf32>, vector<4x64xf32>, vector<256x64xf32> -> vector<256x64xf32>
    %14 = arith.addf %8, %13 : vector<256x64xf32>
    %15 = vector.extract_strided_slice %1 {offsets = [0, 2, 0], sizes = [16, 16, 4], strides = [1, 1, 1]} : vector<18x18x4xf32> to vector<16x16x4xf32>
    %16 = vector.shape_cast %15 : vector<16x16x4xf32> to vector<256x4xf32>
    %c0_12 = arith.constant 0 : index
    %c2 = arith.constant 2 : index
    %c0_13 = arith.constant 0 : index
    %c0_14 = arith.constant 0 : index
    %17 = vector.load %arg4[%c0_12, %c2, %c0_13, %c0_14] : memref<3x3x4x64xf32, #tpu.memory_space<vmem>>, vector<1x1x4x64xf32>
    %18 = vector.shape_cast %17 : vector<1x1x4x64xf32> to vector<4x64xf32>
    %cst_15 = arith.constant dense<0.000000e+00> : vector<256x64xf32>
    %19 = tpu.matmul %16, %18, %cst_15 {dimension_numbers = #tpu.dot_dimension_numbers<[1], [0], [0], [1], [0, 0, 1, 1], [], []>} : vector<256x4xf32>, vector<4x64xf32>, vector<256x64xf32> -> vector<256x64xf32>
    %20 = arith.addf %14, %19 : vector<256x64xf32>
    %21 = vector.extract_strided_slice %1 {offsets = [1, 0, 0], sizes = [16, 16, 4], strides = [1, 1, 1]} : vector<18x18x4xf32> to vector<16x16x4xf32>
    %22 = vector.shape_cast %21 : vector<16x16x4xf32> to vector<256x4xf32>
    %c1_16 = arith.constant 1 : index
    %c0_17 = arith.constant 0 : index
    %c0_18 = arith.constant 0 : index
    %c0_19 = arith.constant 0 : index
    %23 = vector.load %arg4[%c1_16, %c0_17, %c0_18, %c0_19] : memref<3x3x4x64xf32, #tpu.memory_space<vmem>>, vector<1x1x4x64xf32>
    %24 = vector.shape_cast %23 : vector<1x1x4x64xf32> to vector<4x64xf32>
    %cst_20 = arith.constant dense<0.000000e+00> : vector<256x64xf32>
    %25 = tpu.matmul %22, %24, %cst_20 {dimension_numbers = #tpu.dot_dimension_numbers<[1], [0], [0], [1], [0, 0, 1, 1], [], []>} : vector<256x4xf32>, vector<4x64xf32>, vector<256x64xf32> -> vector<256x64xf32>
    %26 = arith.addf %20, %25 : vector<256x64xf32>
    %27 = vector.extract_strided_slice %1 {offsets = [1, 1, 0], sizes = [16, 16, 4], strides = [1, 1, 1]} : vector<18x18x4xf32> to vector<16x16x4xf32>
    %28 = vector.shape_cast %27 : vector<16x16x4xf32> to vector<256x4xf32>
    %c1_21 = arith.constant 1 : index
    %c1_22 = arith.constant 1 : index
    %c0_23 = arith.constant 0 : index
    %c0_24 = arith.constant 0 : index
    %29 = vector.load %arg4[%c1_21, %c1_22, %c0_23, %c0_24] : memref<3x3x4x64xf32, #tpu.memory_space<vmem>>, vector<1x1x4x64xf32>
    %30 = vector.shape_cast %29 : vector<1x1x4x64xf32> to vector<4x64xf32>
    %cst_25 = arith.constant dense<0.000000e+00> : vector<256x64xf32>
    %31 = tpu.matmul %28, %30, %cst_25 {dimension_numbers = #tpu.dot_dimension_numbers<[1], [0], [0], [1], [0, 0, 1, 1], [], []>} : vector<256x4xf32>, vector<4x64xf32>, vector<256x64xf32> -> vector<256x64xf32>
    %32 = arith.addf %26, %31 : vector<256x64xf32>
    %33 = vector.extract_strided_slice %1 {offsets = [1, 2, 0], sizes = [16, 16, 4], strides = [1, 1, 1]} : vector<18x18x4xf32> to vector<16x16x4xf32>
    %34 = vector.shape_cast %33 : vector<16x16x4xf32> to vector<256x4xf32>
    %c1_26 = arith.constant 1 : index
    %c2_27 = arith.constant 2 : index
    %c0_28 = arith.constant 0 : index
    %c0_29 = arith.constant 0 : index
    %35 = vector.load %arg4[%c1_26, %c2_27, %c0_28, %c0_29] : memref<3x3x4x64xf32, #tpu.memory_space<vmem>>, vector<1x1x4x64xf32>
    %36 = vector.shape_cast %35 : vector<1x1x4x64xf32> to vector<4x64xf32>
    %cst_30 = arith.constant dense<0.000000e+00> : vector<256x64xf32>
    %37 = tpu.matmul %34, %36, %cst_30 {dimension_numbers = #tpu.dot_dimension_numbers<[1], [0], [0], [1], [0, 0, 1, 1], [], []>} : vector<256x4xf32>, vector<4x64xf32>, vector<256x64xf32> -> vector<256x64xf32>
    %38 = arith.addf %32, %37 : vector<256x64xf32>
    %39 = vector.extract_strided_slice %1 {offsets = [2, 0, 0], sizes = [16, 16, 4], strides = [1, 1, 1]} : vector<18x18x4xf32> to vector<16x16x4xf32>
    %40 = vector.shape_cast %39 : vector<16x16x4xf32> to vector<256x4xf32>
    %c2_31 = arith.constant 2 : index
    %c0_32 = arith.constant 0 : index
    %c0_33 = arith.constant 0 : index
    %c0_34 = arith.constant 0 : index
    %41 = vector.load %arg4[%c2_31, %c0_32, %c0_33, %c0_34] : memref<3x3x4x64xf32, #tpu.memory_space<vmem>>, vector<1x1x4x64xf32>
    %42 = vector.shape_cast %41 : vector<1x1x4x64xf32> to vector<4x64xf32>
    %cst_35 = arith.constant dense<0.000000e+00> : vector<256x64xf32>
    %43 = tpu.matmul %40, %42, %cst_35 {dimension_numbers = #tpu.dot_dimension_numbers<[1], [0], [0], [1], [0, 0, 1, 1], [], []>} : vector<256x4xf32>, vector<4x64xf32>, vector<256x64xf32> -> vector<256x64xf32>
    %44 = arith.addf %38, %43 : vector<256x64xf32>
    %45 = vector.extract_strided_slice %1 {offsets = [2, 1, 0], sizes = [16, 16, 4], strides = [1, 1, 1]} : vector<18x18x4xf32> to vector<16x16x4xf32>
    %46 = vector.shape_cast %45 : vector<16x16x4xf32> to vector<256x4xf32>
    %c2_36 = arith.constant 2 : index
    %c1_37 = arith.constant 1 : index
    %c0_38 = arith.constant 0 : index
    %c0_39 = arith.constant 0 : index
    %47 = vector.load %arg4[%c2_36, %c1_37, %c0_38, %c0_39] : memref<3x3x4x64xf32, #tpu.memory_space<vmem>>, vector<1x1x4x64xf32>
    %48 = vector.shape_cast %47 : vector<1x1x4x64xf32> to vector<4x64xf32>
    %cst_40 = arith.constant dense<0.000000e+00> : vector<256x64xf32>
    %49 = tpu.matmul %46, %48, %cst_40 {dimension_numbers = #tpu.dot_dimension_numbers<[1], [0], [0], [1], [0, 0, 1, 1], [], []>} : vector<256x4xf32>, vector<4x64xf32>, vector<256x64xf32> -> vector<256x64xf32>
    %50 = arith.addf %44, %49 : vector<256x64xf32>
    %51 = vector.extract_strided_slice %1 {offsets = [2, 2, 0], sizes = [16, 16, 4], strides = [1, 1, 1]} : vector<18x18x4xf32> to vector<16x16x4xf32>
    %52 = vector.shape_cast %51 : vector<16x16x4xf32> to vector<256x4xf32>
    %c2_41 = arith.constant 2 : index
    %c2_42 = arith.constant 2 : index
    %c0_43 = arith.constant 0 : index
    %c0_44 = arith.constant 0 : index
    %53 = vector.load %arg4[%c2_41, %c2_42, %c0_43, %c0_44] : memref<3x3x4x64xf32, #tpu.memory_space<vmem>>, vector<1x1x4x64xf32>
    %54 = vector.shape_cast %53 : vector<1x1x4x64xf32> to vector<4x64xf32>
    %cst_45 = arith.constant dense<0.000000e+00> : vector<256x64xf32>
    %55 = tpu.matmul %52, %54, %cst_45 {dimension_numbers = #tpu.dot_dimension_numbers<[1], [0], [0], [1], [0, 0, 1, 1], [], []>} : vector<256x4xf32>, vector<4x64xf32>, vector<256x64xf32> -> vector<256x64xf32>
    %56 = arith.addf %50, %55 : vector<256x64xf32>
    %c0_46 = arith.constant 0 : index
    %c0_47 = arith.constant 0 : index
    %57 = vector.load %arg7[%c0_46, %c0_47] : memref<1x64xf32, #tpu.memory_space<vmem>>, vector<1x64xf32>
    %58 = vector.broadcast %57 : vector<1x64xf32> to vector<256x64xf32>
    %59 = arith.mulf %56, %58 : vector<256x64xf32>
    %c0_48 = arith.constant 0 : index
    %c0_49 = arith.constant 0 : index
    %60 = vector.load %arg8[%c0_48, %c0_49] : memref<1x64xf32, #tpu.memory_space<vmem>>, vector<1x64xf32>
    %61 = vector.broadcast %60 : vector<1x64xf32> to vector<256x64xf32>
    %62 = arith.addf %59, %61 : vector<256x64xf32>
    %cst_50 = arith.constant 0.000000e+00 : f32
    %63 = vector.broadcast %cst_50 : f32 to vector<256x64xf32>
    %64 = arith.maximumf %62, %63 : vector<256x64xf32>
    %cst_51 = arith.constant 0.000000e+00 : f32
    %65 = vector.broadcast %cst_51 : f32 to vector<18x18x64xf32>
    %c0_52 = arith.constant 0 : index
    %c0_53 = arith.constant 0 : index
    %c0_54 = arith.constant 0 : index
    %66 = vector.load %arg14[%c0_52, %c0_53, %c0_54] : memref<18x18x64xf32, #tpu.memory_space<vmem>>, vector<18x18x64xf32>
    tpu.vector_store %arg14[%c0_52, %c0_53, %c0_54], %65 {strides = array<i32>} : memref<18x18x64xf32, #tpu.memory_space<vmem>>, vector<18x18x64xf32>,
    %67 = vector.shape_cast %64 : vector<256x64xf32> to vector<16x16x64xf32>
    %c1_55 = arith.constant 1 : index
    %c1_56 = arith.constant 1 : index
    %c0_57 = arith.constant 0 : index
    %68 = vector.load %arg14[%c1_55, %c1_56, %c0_57] : memref<18x18x64xf32, #tpu.memory_space<vmem>>, vector<16x16x64xf32>
    tpu.vector_store %arg14[%c1_55, %c1_56, %c0_57], %67 {strides = array<i32>} : memref<18x18x64xf32, #tpu.memory_space<vmem>>, vector<16x16x64xf32>,
    %cst_58 = arith.constant 0.000000e+00 : f32
    %69 = vector.broadcast %cst_58 : f32 to vector<256x64xf32>
    %c0_59 = arith.constant 0 : index
    %c0_60 = arith.constant 0 : index
    %c0_61 = arith.constant 0 : index
    %70 = vector.load %arg14[%c0_59, %c0_60, %c0_61] : memref<18x18x64xf32, #tpu.memory_space<vmem>>, vector<16x16x64xf32>
    %71 = vector.shape_cast %70 : vector<16x16x64xf32> to vector<256x64xf32>
    %c0_62 = arith.constant 0 : index
    %c0_63 = arith.constant 0 : index
    %c0_64 = arith.constant 0 : index
    %c0_65 = arith.constant 0 : index
    %72 = vector.load %arg5[%c0_62, %c0_63, %c0_64, %c0_65] : memref<3x3x64x64xf32, #tpu.memory_space<vmem>>, vector<1x1x64x64xf32>
    %73 = vector.shape_cast %72 : vector<1x1x64x64xf32> to vector<64x64xf32>
    %cst_66 = arith.constant dense<0.000000e+00> : vector<256x64xf32>
    %74 = tpu.matmul %71, %73, %cst_66 {dimension_numbers = #tpu.dot_dimension_numbers<[1], [0], [0], [1], [0, 0, 1, 1], [], []>} : vector<256x64xf32>, vector<64x64xf32>, vector<256x64xf32> -> vector<256x64xf32>
    %75 = arith.addf %69, %74 : vector<256x64xf32>
    %c0_67 = arith.constant 0 : index
    %c1_68 = arith.constant 1 : index
    %c0_69 = arith.constant 0 : index
    %76 = vector.load %arg14[%c0_67, %c1_68, %c0_69] : memref<18x18x64xf32, #tpu.memory_space<vmem>>, vector<16x16x64xf32>
    %77 = vector.shape_cast %76 : vector<16x16x64xf32> to vector<256x64xf32>
    %c0_70 = arith.constant 0 : index
    %c1_71 = arith.constant 1 : index
    %c0_72 = arith.constant 0 : index
    %c0_73 = arith.constant 0 : index
    %78 = vector.load %arg5[%c0_70, %c1_71, %c0_72, %c0_73] : memref<3x3x64x64xf32, #tpu.memory_space<vmem>>, vector<1x1x64x64xf32>
    %79 = vector.shape_cast %78 : vector<1x1x64x64xf32> to vector<64x64xf32>
    %cst_74 = arith.constant dense<0.000000e+00> : vector<256x64xf32>
    %80 = tpu.matmul %77, %79, %cst_74 {dimension_numbers = #tpu.dot_dimension_numbers<[1], [0], [0], [1], [0, 0, 1, 1], [], []>} : vector<256x64xf32>, vector<64x64xf32>, vector<256x64xf32> -> vector<256x64xf32>
    %81 = arith.addf %75, %80 : vector<256x64xf32>
    %c0_75 = arith.constant 0 : index
    %c2_76 = arith.constant 2 : index
    %c0_77 = arith.constant 0 : index
    %82 = vector.load %arg14[%c0_75, %c2_76, %c0_77] : memref<18x18x64xf32, #tpu.memory_space<vmem>>, vector<16x16x64xf32>
    %83 = vector.shape_cast %82 : vector<16x16x64xf32> to vector<256x64xf32>
    %c0_78 = arith.constant 0 : index
    %c2_79 = arith.constant 2 : index
    %c0_80 = arith.constant 0 : index
    %c0_81 = arith.constant 0 : index
    %84 = vector.load %arg5[%c0_78, %c2_79, %c0_80, %c0_81] : memref<3x3x64x64xf32, #tpu.memory_space<vmem>>, vector<1x1x64x64xf32>
    %85 = vector.shape_cast %84 : vector<1x1x64x64xf32> to vector<64x64xf32>
    %cst_82 = arith.constant dense<0.000000e+00> : vector<256x64xf32>
    %86 = tpu.matmul %83, %85, %cst_82 {dimension_numbers = #tpu.dot_dimension_numbers<[1], [0], [0], [1], [0, 0, 1, 1], [], []>} : vector<256x64xf32>, vector<64x64xf32>, vector<256x64xf32> -> vector<256x64xf32>
    %87 = arith.addf %81, %86 : vector<256x64xf32>
    %c1_83 = arith.constant 1 : index
    %c0_84 = arith.constant 0 : index
    %c0_85 = arith.constant 0 : index
    %88 = vector.load %arg14[%c1_83, %c0_84, %c0_85] : memref<18x18x64xf32, #tpu.memory_space<vmem>>, vector<16x16x64xf32>
    %89 = vector.shape_cast %88 : vector<16x16x64xf32> to vector<256x64xf32>
    %c1_86 = arith.constant 1 : index
    %c0_87 = arith.constant 0 : index
    %c0_88 = arith.constant 0 : index
    %c0_89 = arith.constant 0 : index
    %90 = vector.load %arg5[%c1_86, %c0_87, %c0_88, %c0_89] : memref<3x3x64x64xf32, #tpu.memory_space<vmem>>, vector<1x1x64x64xf32>
    %91 = vector.shape_cast %90 : vector<1x1x64x64xf32> to vector<64x64xf32>
    %cst_90 = arith.constant dense<0.000000e+00> : vector<256x64xf32>
    %92 = tpu.matmul %89, %91, %cst_90 {dimension_numbers = #tpu.dot_dimension_numbers<[1], [0], [0], [1], [0, 0, 1, 1], [], []>} : vector<256x64xf32>, vector<64x64xf32>, vector<256x64xf32> -> vector<256x64xf32>
    %93 = arith.addf %87, %92 : vector<256x64xf32>
    %c1_91 = arith.constant 1 : index
    %c1_92 = arith.constant 1 : index
    %c0_93 = arith.constant 0 : index
    %94 = vector.load %arg14[%c1_91, %c1_92, %c0_93] : memref<18x18x64xf32, #tpu.memory_space<vmem>>, vector<16x16x64xf32>
    %95 = vector.shape_cast %94 : vector<16x16x64xf32> to vector<256x64xf32>
    %c1_94 = arith.constant 1 : index
    %c1_95 = arith.constant 1 : index
    %c0_96 = arith.constant 0 : index
    %c0_97 = arith.constant 0 : index
    %96 = vector.load %arg5[%c1_94, %c1_95, %c0_96, %c0_97] : memref<3x3x64x64xf32, #tpu.memory_space<vmem>>, vector<1x1x64x64xf32>
    %97 = vector.shape_cast %96 : vector<1x1x64x64xf32> to vector<64x64xf32>
    %cst_98 = arith.constant dense<0.000000e+00> : vector<256x64xf32>
    %98 = tpu.matmul %95, %97, %cst_98 {dimension_numbers = #tpu.dot_dimension_numbers<[1], [0], [0], [1], [0, 0, 1, 1], [], []>} : vector<256x64xf32>, vector<64x64xf32>, vector<256x64xf32> -> vector<256x64xf32>
    %99 = arith.addf %93, %98 : vector<256x64xf32>
    %c1_99 = arith.constant 1 : index
    %c2_100 = arith.constant 2 : index
    %c0_101 = arith.constant 0 : index
    %100 = vector.load %arg14[%c1_99, %c2_100, %c0_101] : memref<18x18x64xf32, #tpu.memory_space<vmem>>, vector<16x16x64xf32>
    %101 = vector.shape_cast %100 : vector<16x16x64xf32> to vector<256x64xf32>
    %c1_102 = arith.constant 1 : index
    %c2_103 = arith.constant 2 : index
    %c0_104 = arith.constant 0 : index
    %c0_105 = arith.constant 0 : index
    %102 = vector.load %arg5[%c1_102, %c2_103, %c0_104, %c0_105] : memref<3x3x64x64xf32, #tpu.memory_space<vmem>>, vector<1x1x64x64xf32>
    %103 = vector.shape_cast %102 : vector<1x1x64x64xf32> to vector<64x64xf32>
    %cst_106 = arith.constant dense<0.000000e+00> : vector<256x64xf32>
    %104 = tpu.matmul %101, %103, %cst_106 {dimension_numbers = #tpu.dot_dimension_numbers<[1], [0], [0], [1], [0, 0, 1, 1], [], []>} : vector<256x64xf32>, vector<64x64xf32>, vector<256x64xf32> -> vector<256x64xf32>
    %105 = arith.addf %99, %104 : vector<256x64xf32>
    %c2_107 = arith.constant 2 : index
    %c0_108 = arith.constant 0 : index
    %c0_109 = arith.constant 0 : index
    %106 = vector.load %arg14[%c2_107, %c0_108, %c0_109] : memref<18x18x64xf32, #tpu.memory_space<vmem>>, vector<16x16x64xf32>
    %107 = vector.shape_cast %106 : vector<16x16x64xf32> to vector<256x64xf32>
    %c2_110 = arith.constant 2 : index
    %c0_111 = arith.constant 0 : index
    %c0_112 = arith.constant 0 : index
    %c0_113 = arith.constant 0 : index
    %108 = vector.load %arg5[%c2_110, %c0_111, %c0_112, %c0_113] : memref<3x3x64x64xf32, #tpu.memory_space<vmem>>, vector<1x1x64x64xf32>
    %109 = vector.shape_cast %108 : vector<1x1x64x64xf32> to vector<64x64xf32>
    %cst_114 = arith.constant dense<0.000000e+00> : vector<256x64xf32>
    %110 = tpu.matmul %107, %109, %cst_114 {dimension_numbers = #tpu.dot_dimension_numbers<[1], [0], [0], [1], [0, 0, 1, 1], [], []>} : vector<256x64xf32>, vector<64x64xf32>, vector<256x64xf32> -> vector<256x64xf32>
    %111 = arith.addf %105, %110 : vector<256x64xf32>
    %c2_115 = arith.constant 2 : index
    %c1_116 = arith.constant 1 : index
    %c0_117 = arith.constant 0 : index
    %112 = vector.load %arg14[%c2_115, %c1_116, %c0_117] : memref<18x18x64xf32, #tpu.memory_space<vmem>>, vector<16x16x64xf32>
    %113 = vector.shape_cast %112 : vector<16x16x64xf32> to vector<256x64xf32>
    %c2_118 = arith.constant 2 : index
    %c1_119 = arith.constant 1 : index
    %c0_120 = arith.constant 0 : index
    %c0_121 = arith.constant 0 : index
    %114 = vector.load %arg5[%c2_118, %c1_119, %c0_120, %c0_121] : memref<3x3x64x64xf32, #tpu.memory_space<vmem>>, vector<1x1x64x64xf32>
    %115 = vector.shape_cast %114 : vector<1x1x64x64xf32> to vector<64x64xf32>
    %cst_122 = arith.constant dense<0.000000e+00> : vector<256x64xf32>
    %116 = tpu.matmul %113, %115, %cst_122 {dimension_numbers = #tpu.dot_dimension_numbers<[1], [0], [0], [1], [0, 0, 1, 1], [], []>} : vector<256x64xf32>, vector<64x64xf32>, vector<256x64xf32> -> vector<256x64xf32>
    %117 = arith.addf %111, %116 : vector<256x64xf32>
    %c2_123 = arith.constant 2 : index
    %c2_124 = arith.constant 2 : index
    %c0_125 = arith.constant 0 : index
    %118 = vector.load %arg14[%c2_123, %c2_124, %c0_125] : memref<18x18x64xf32, #tpu.memory_space<vmem>>, vector<16x16x64xf32>
    %119 = vector.shape_cast %118 : vector<16x16x64xf32> to vector<256x64xf32>
    %c2_126 = arith.constant 2 : index
    %c2_127 = arith.constant 2 : index
    %c0_128 = arith.constant 0 : index
    %c0_129 = arith.constant 0 : index
    %120 = vector.load %arg5[%c2_126, %c2_127, %c0_128, %c0_129] : memref<3x3x64x64xf32, #tpu.memory_space<vmem>>, vector<1x1x64x64xf32>
    %121 = vector.shape_cast %120 : vector<1x1x64x64xf32> to vector<64x64xf32>
    %cst_130 = arith.constant dense<0.000000e+00> : vector<256x64xf32>
    %122 = tpu.matmul %119, %121, %cst_130 {dimension_numbers = #tpu.dot_dimension_numbers<[1], [0], [0], [1], [0, 0, 1, 1], [], []>} : vector<256x64xf32>, vector<64x64xf32>, vector<256x64xf32> -> vector<256x64xf32>
    %123 = arith.addf %117, %122 : vector<256x64xf32>
    %c0_131 = arith.constant 0 : index
    %c0_132 = arith.constant 0 : index
    %124 = vector.load %arg9[%c0_131, %c0_132] : memref<1x64xf32, #tpu.memory_space<vmem>>, vector<1x64xf32>
    %125 = vector.broadcast %124 : vector<1x64xf32> to vector<256x64xf32>
    %126 = arith.mulf %123, %125 : vector<256x64xf32>
    %c0_133 = arith.constant 0 : index
    %c0_134 = arith.constant 0 : index
    %127 = vector.load %arg10[%c0_133, %c0_134] : memref<1x64xf32, #tpu.memory_space<vmem>>, vector<1x64xf32>
    %128 = vector.broadcast %127 : vector<1x64xf32> to vector<256x64xf32>
    %129 = arith.addf %126, %128 : vector<256x64xf32>
    %cst_135 = arith.constant 0.000000e+00 : f32
    %130 = vector.broadcast %cst_135 : f32 to vector<256x64xf32>
    %131 = arith.maximumf %129, %130 : vector<256x64xf32>
    %132 = vector.shape_cast %131 : vector<256x64xf32> to vector<16x16x64xf32>
    %c1_136 = arith.constant 1 : index
    %c1_137 = arith.constant 1 : index
    %c0_138 = arith.constant 0 : index
    %133 = vector.load %arg14[%c1_136, %c1_137, %c0_138] : memref<18x18x64xf32, #tpu.memory_space<vmem>>, vector<16x16x64xf32>
    tpu.vector_store %arg14[%c1_136, %c1_137, %c0_138], %132 {strides = array<i32>} : memref<18x18x64xf32, #tpu.memory_space<vmem>>, vector<16x16x64xf32>,
    %cst_139 = arith.constant 0.000000e+00 : f32
    %134 = vector.broadcast %cst_139 : f32 to vector<256x4xf32>
    %c0_140 = arith.constant 0 : index
    %c0_141 = arith.constant 0 : index
    %c0_142 = arith.constant 0 : index
    %135 = vector.load %arg14[%c0_140, %c0_141, %c0_142] : memref<18x18x64xf32, #tpu.memory_space<vmem>>, vector<16x16x64xf32>
    %136 = vector.shape_cast %135 : vector<16x16x64xf32> to vector<256x64xf32>
    %c0_143 = arith.constant 0 : index
    %c0_144 = arith.constant 0 : index
    %c0_145 = arith.constant 0 : index
    %c0_146 = arith.constant 0 : index
    %137 = vector.load %arg6[%c0_143, %c0_144, %c0_145, %c0_146] : memref<3x3x64x4xf32, #tpu.memory_space<vmem>>, vector<1x1x64x4xf32>
    %138 = vector.shape_cast %137 : vector<1x1x64x4xf32> to vector<64x4xf32>
    %cst_147 = arith.constant dense<0.000000e+00> : vector<256x4xf32>
    %139 = tpu.matmul %136, %138, %cst_147 {dimension_numbers = #tpu.dot_dimension_numbers<[1], [0], [0], [1], [0, 0, 1, 1], [], []>} : vector<256x64xf32>, vector<64x4xf32>, vector<256x4xf32> -> vector<256x4xf32>
    %140 = arith.addf %134, %139 : vector<256x4xf32>
    %c0_148 = arith.constant 0 : index
    %c1_149 = arith.constant 1 : index
    %c0_150 = arith.constant 0 : index
    %141 = vector.load %arg14[%c0_148, %c1_149, %c0_150] : memref<18x18x64xf32, #tpu.memory_space<vmem>>, vector<16x16x64xf32>
    %142 = vector.shape_cast %141 : vector<16x16x64xf32> to vector<256x64xf32>
    %c0_151 = arith.constant 0 : index
    %c1_152 = arith.constant 1 : index
    %c0_153 = arith.constant 0 : index
    %c0_154 = arith.constant 0 : index
    %143 = vector.load %arg6[%c0_151, %c1_152, %c0_153, %c0_154] : memref<3x3x64x4xf32, #tpu.memory_space<vmem>>, vector<1x1x64x4xf32>
    %144 = vector.shape_cast %143 : vector<1x1x64x4xf32> to vector<64x4xf32>
    %cst_155 = arith.constant dense<0.000000e+00> : vector<256x4xf32>
    %145 = tpu.matmul %142, %144, %cst_155 {dimension_numbers = #tpu.dot_dimension_numbers<[1], [0], [0], [1], [0, 0, 1, 1], [], []>} : vector<256x64xf32>, vector<64x4xf32>, vector<256x4xf32> -> vector<256x4xf32>
    %146 = arith.addf %140, %145 : vector<256x4xf32>
    %c0_156 = arith.constant 0 : index
    %c2_157 = arith.constant 2 : index
    %c0_158 = arith.constant 0 : index
    %147 = vector.load %arg14[%c0_156, %c2_157, %c0_158] : memref<18x18x64xf32, #tpu.memory_space<vmem>>, vector<16x16x64xf32>
    %148 = vector.shape_cast %147 : vector<16x16x64xf32> to vector<256x64xf32>
    %c0_159 = arith.constant 0 : index
    %c2_160 = arith.constant 2 : index
    %c0_161 = arith.constant 0 : index
    %c0_162 = arith.constant 0 : index
    %149 = vector.load %arg6[%c0_159, %c2_160, %c0_161, %c0_162] : memref<3x3x64x4xf32, #tpu.memory_space<vmem>>, vector<1x1x64x4xf32>
    %150 = vector.shape_cast %149 : vector<1x1x64x4xf32> to vector<64x4xf32>
    %cst_163 = arith.constant dense<0.000000e+00> : vector<256x4xf32>
    %151 = tpu.matmul %148, %150, %cst_163 {dimension_numbers = #tpu.dot_dimension_numbers<[1], [0], [0], [1], [0, 0, 1, 1], [], []>} : vector<256x64xf32>, vector<64x4xf32>, vector<256x4xf32> -> vector<256x4xf32>
    %152 = arith.addf %146, %151 : vector<256x4xf32>
    %c1_164 = arith.constant 1 : index
    %c0_165 = arith.constant 0 : index
    %c0_166 = arith.constant 0 : index
    %153 = vector.load %arg14[%c1_164, %c0_165, %c0_166] : memref<18x18x64xf32, #tpu.memory_space<vmem>>, vector<16x16x64xf32>
    %154 = vector.shape_cast %153 : vector<16x16x64xf32> to vector<256x64xf32>
    %c1_167 = arith.constant 1 : index
    %c0_168 = arith.constant 0 : index
    %c0_169 = arith.constant 0 : index
    %c0_170 = arith.constant 0 : index
    %155 = vector.load %arg6[%c1_167, %c0_168, %c0_169, %c0_170] : memref<3x3x64x4xf32, #tpu.memory_space<vmem>>, vector<1x1x64x4xf32>
    %156 = vector.shape_cast %155 : vector<1x1x64x4xf32> to vector<64x4xf32>
    %cst_171 = arith.constant dense<0.000000e+00> : vector<256x4xf32>
    %157 = tpu.matmul %154, %156, %cst_171 {dimension_numbers = #tpu.dot_dimension_numbers<[1], [0], [0], [1], [0, 0, 1, 1], [], []>} : vector<256x64xf32>, vector<64x4xf32>, vector<256x4xf32> -> vector<256x4xf32>
    %158 = arith.addf %152, %157 : vector<256x4xf32>
    %c1_172 = arith.constant 1 : index
    %c1_173 = arith.constant 1 : index
    %c0_174 = arith.constant 0 : index
    %159 = vector.load %arg14[%c1_172, %c1_173, %c0_174] : memref<18x18x64xf32, #tpu.memory_space<vmem>>, vector<16x16x64xf32>
    %160 = vector.shape_cast %159 : vector<16x16x64xf32> to vector<256x64xf32>
    %c1_175 = arith.constant 1 : index
    %c1_176 = arith.constant 1 : index
    %c0_177 = arith.constant 0 : index
    %c0_178 = arith.constant 0 : index
    %161 = vector.load %arg6[%c1_175, %c1_176, %c0_177, %c0_178] : memref<3x3x64x4xf32, #tpu.memory_space<vmem>>, vector<1x1x64x4xf32>
    %162 = vector.shape_cast %161 : vector<1x1x64x4xf32> to vector<64x4xf32>
    %cst_179 = arith.constant dense<0.000000e+00> : vector<256x4xf32>
    %163 = tpu.matmul %160, %162, %cst_179 {dimension_numbers = #tpu.dot_dimension_numbers<[1], [0], [0], [1], [0, 0, 1, 1], [], []>} : vector<256x64xf32>, vector<64x4xf32>, vector<256x4xf32> -> vector<256x4xf32>
    %164 = arith.addf %158, %163 : vector<256x4xf32>
    %c1_180 = arith.constant 1 : index
    %c2_181 = arith.constant 2 : index
    %c0_182 = arith.constant 0 : index
    %165 = vector.load %arg14[%c1_180, %c2_181, %c0_182] : memref<18x18x64xf32, #tpu.memory_space<vmem>>, vector<16x16x64xf32>
    %166 = vector.shape_cast %165 : vector<16x16x64xf32> to vector<256x64xf32>
    %c1_183 = arith.constant 1 : index
    %c2_184 = arith.constant 2 : index
    %c0_185 = arith.constant 0 : index
    %c0_186 = arith.constant 0 : index
    %167 = vector.load %arg6[%c1_183, %c2_184, %c0_185, %c0_186] : memref<3x3x64x4xf32, #tpu.memory_space<vmem>>, vector<1x1x64x4xf32>
    %168 = vector.shape_cast %167 : vector<1x1x64x4xf32> to vector<64x4xf32>
    %cst_187 = arith.constant dense<0.000000e+00> : vector<256x4xf32>
    %169 = tpu.matmul %166, %168, %cst_187 {dimension_numbers = #tpu.dot_dimension_numbers<[1], [0], [0], [1], [0, 0, 1, 1], [], []>} : vector<256x64xf32>, vector<64x4xf32>, vector<256x4xf32> -> vector<256x4xf32>
    %170 = arith.addf %164, %169 : vector<256x4xf32>
    %c2_188 = arith.constant 2 : index
    %c0_189 = arith.constant 0 : index
    %c0_190 = arith.constant 0 : index
    %171 = vector.load %arg14[%c2_188, %c0_189, %c0_190] : memref<18x18x64xf32, #tpu.memory_space<vmem>>, vector<16x16x64xf32>
    %172 = vector.shape_cast %171 : vector<16x16x64xf32> to vector<256x64xf32>
    %c2_191 = arith.constant 2 : index
    %c0_192 = arith.constant 0 : index
    %c0_193 = arith.constant 0 : index
    %c0_194 = arith.constant 0 : index
    %173 = vector.load %arg6[%c2_191, %c0_192, %c0_193, %c0_194] : memref<3x3x64x4xf32, #tpu.memory_space<vmem>>, vector<1x1x64x4xf32>
    %174 = vector.shape_cast %173 : vector<1x1x64x4xf32> to vector<64x4xf32>
    %cst_195 = arith.constant dense<0.000000e+00> : vector<256x4xf32>
    %175 = tpu.matmul %172, %174, %cst_195 {dimension_numbers = #tpu.dot_dimension_numbers<[1], [0], [0], [1], [0, 0, 1, 1], [], []>} : vector<256x64xf32>, vector<64x4xf32>, vector<256x4xf32> -> vector<256x4xf32>
    %176 = arith.addf %170, %175 : vector<256x4xf32>
    %c2_196 = arith.constant 2 : index
    %c1_197 = arith.constant 1 : index
    %c0_198 = arith.constant 0 : index
    %177 = vector.load %arg14[%c2_196, %c1_197, %c0_198] : memref<18x18x64xf32, #tpu.memory_space<vmem>>, vector<16x16x64xf32>
    %178 = vector.shape_cast %177 : vector<16x16x64xf32> to vector<256x64xf32>
    %c2_199 = arith.constant 2 : index
    %c1_200 = arith.constant 1 : index
    %c0_201 = arith.constant 0 : index
    %c0_202 = arith.constant 0 : index
    %179 = vector.load %arg6[%c2_199, %c1_200, %c0_201, %c0_202] : memref<3x3x64x4xf32, #tpu.memory_space<vmem>>, vector<1x1x64x4xf32>
    %180 = vector.shape_cast %179 : vector<1x1x64x4xf32> to vector<64x4xf32>
    %cst_203 = arith.constant dense<0.000000e+00> : vector<256x4xf32>
    %181 = tpu.matmul %178, %180, %cst_203 {dimension_numbers = #tpu.dot_dimension_numbers<[1], [0], [0], [1], [0, 0, 1, 1], [], []>} : vector<256x64xf32>, vector<64x4xf32>, vector<256x4xf32> -> vector<256x4xf32>
    %182 = arith.addf %176, %181 : vector<256x4xf32>
    %c2_204 = arith.constant 2 : index
    %c2_205 = arith.constant 2 : index
    %c0_206 = arith.constant 0 : index
    %183 = vector.load %arg14[%c2_204, %c2_205, %c0_206] : memref<18x18x64xf32, #tpu.memory_space<vmem>>, vector<16x16x64xf32>
    %184 = vector.shape_cast %183 : vector<16x16x64xf32> to vector<256x64xf32>
    %c2_207 = arith.constant 2 : index
    %c2_208 = arith.constant 2 : index
    %c0_209 = arith.constant 0 : index
    %c0_210 = arith.constant 0 : index
    %185 = vector.load %arg6[%c2_207, %c2_208, %c0_209, %c0_210] : memref<3x3x64x4xf32, #tpu.memory_space<vmem>>, vector<1x1x64x4xf32>
    %186 = vector.shape_cast %185 : vector<1x1x64x4xf32> to vector<64x4xf32>
    %cst_211 = arith.constant dense<0.000000e+00> : vector<256x4xf32>
    %187 = tpu.matmul %184, %186, %cst_211 {dimension_numbers = #tpu.dot_dimension_numbers<[1], [0], [0], [1], [0, 0, 1, 1], [], []>} : vector<256x64xf32>, vector<64x4xf32>, vector<256x4xf32> -> vector<256x4xf32>
    %188 = arith.addf %182, %187 : vector<256x4xf32>
    %189 = tpu.transpose %188, [1, 0] : vector<256x4xf32> -> vector<4x256xf32>
    %cst_212 = arith.constant 0.000000e+00 : f32
    %190 = vector.broadcast %cst_212 : f32 to vector<4x256xf32>
    %191 = arith.subf %190, %189 : vector<4x256xf32>
    %192 = math.exp %191 : vector<4x256xf32>
    %cst_213 = arith.constant 1.000000e+00 : f32
    %193 = vector.broadcast %cst_213 : f32 to vector<4x256xf32>
    %194 = arith.addf %193, %192 : vector<4x256xf32>
    %cst_214 = arith.constant 1.000000e+00 : f32
    %195 = vector.broadcast %cst_214 : f32 to vector<4x256xf32>
    %196 = arith.divf %195, %194 : vector<4x256xf32>
    %cst_215 = arith.constant 9.99999993E-9 : f32
    %197 = vector.broadcast %cst_215 : f32 to vector<4x256xf32>
    %198 = arith.addf %196, %197 : vector<4x256xf32>
    %199 = math.log %198 : vector<4x256xf32>
    %cst_216 = arith.constant 1.000000e+00 : f32
    %200 = vector.broadcast %cst_216 : f32 to vector<4x256xf32>
    %201 = arith.subf %200, %196 : vector<4x256xf32>
    %cst_217 = arith.constant 9.99999993E-9 : f32
    %202 = vector.broadcast %cst_217 : f32 to vector<4x256xf32>
    %203 = arith.addf %201, %202 : vector<4x256xf32>
    %204 = math.log %203 : vector<4x256xf32>
    %205 = arith.subf %199, %204 : vector<4x256xf32>
    %c0_218 = arith.constant 0 : index
    %c0_219 = arith.constant 0 : index
    %c0_220 = arith.constant 0 : index
    %206 = vector.load %arg2[%c0_218, %c0_219, %c0_220] : memref<1x4x256xf32, #tpu.memory_space<vmem>>, vector<1x4x256xf32>
    %207 = vector.shape_cast %206 : vector<1x4x256xf32> to vector<4x256xf32>
    %208 = arith.addf %205, %207 : vector<4x256xf32>
    %c0_221 = arith.constant 0 : index
    %c0_222 = arith.constant 0 : index
    %c0_223 = arith.constant 0 : index
    %209 = vector.load %arg3[%c0_221, %c0_222, %c0_223] : memref<1x4x256xf32, #tpu.memory_space<vmem>>, vector<1x4x256xf32>
    %210 = vector.shape_cast %209 : vector<1x4x256xf32> to vector<4x256xf32>
    %211 = arith.subf %208, %210 : vector<4x256xf32>
    %cst_224 = arith.constant 0.100000009 : f32
    %212 = vector.broadcast %cst_224 : f32 to vector<4x256xf32>
    %213 = arith.divf %211, %212 : vector<4x256xf32>
    %cst_225 = arith.constant -3.000000e+01 : f32
    %cst_226 = arith.constant 3.000000e+01 : f32
    %214 = vector.broadcast %cst_225 : f32 to vector<4x256xf32>
    %215 = arith.maximumf %214, %213 : vector<4x256xf32>
    %216 = vector.broadcast %cst_226 : f32 to vector<4x256xf32>
    %217 = arith.minimumf %216, %215 : vector<4x256xf32>
    %cst_227 = arith.constant 0.000000e+00 : f32
    %218 = vector.broadcast %cst_227 : f32 to vector<4x256xf32>
    %219 = arith.subf %218, %217 : vector<4x256xf32>
    %220 = math.exp %219 : vector<4x256xf32>
    %cst_228 = arith.constant 1.000000e+00 : f32
    %221 = vector.broadcast %cst_228 : f32 to vector<4x256xf32>
    %222 = arith.addf %221, %220 : vector<4x256xf32>
    %223 = tpu.reciprocal %222 {approx = true} : vector<4x256xf32> -> vector<4x256xf32>
    %224 = arith.mulf %189, %223 : vector<4x256xf32>
    %c0_229 = arith.constant 0 : index
    %c0_230 = arith.constant 0 : index
    %c0_231 = arith.constant 0 : index
    %225 = vector.load %arg11[%c0_229, %c0_230, %c0_231] : memref<1x4x256xf32, #tpu.memory_space<vmem>>, vector<1x4x256xf32>
    %226 = vector.shape_cast %225 : vector<1x4x256xf32> to vector<4x256xf32>
    %227 = vector.shape_cast %224 : vector<4x256xf32> to vector<1x4x256xf32>
    tpu.vector_store %arg11[%c0_229, %c0_230, %c0_231], %227 {strides = array<i32>} : memref<1x4x256xf32, #tpu.memory_space<vmem>>, vector<1x4x256xf32>,
    %228 = arith.subf %189, %224 : vector<4x256xf32>
    %c0_232 = arith.constant 0 : index
    %c0_233 = arith.constant 0 : index
    %c0_234 = arith.constant 0 : index
    %229 = vector.load %arg12[%c0_232, %c0_233, %c0_234] : memref<1x4x256xf32, #tpu.memory_space<vmem>>, vector<1x4x256xf32>
    %230 = vector.shape_cast %229 : vector<1x4x256xf32> to vector<4x256xf32>
    %231 = vector.shape_cast %228 : vector<4x256xf32> to vector<1x4x256xf32>
    tpu.vector_store %arg12[%c0_232, %c0_233, %c0_234], %231 {strides = array<i32>} : memref<1x4x256xf32, #tpu.memory_space<vmem>>, vector<1x4x256xf32>,
    %c0_235 = arith.constant 0 : index
    %c0_236 = arith.constant 0 : index
    %c0_237 = arith.constant 0 : index
    %232 = vector.load %arg13[%c0_235, %c0_236, %c0_237] : memref<1x4x256xf32, #tpu.memory_space<vmem>>, vector<1x4x256xf32>
    %233 = vector.shape_cast %232 : vector<1x4x256xf32> to vector<4x256xf32>
    %234 = vector.shape_cast %223 : vector<4x256xf32> to vector<1x4x256xf32>
    tpu.vector_store %arg13[%c0_235, %c0_236, %c0_237], %234 {strides = array<i32>} : memref<1x4x256xf32, #tpu.memory_space<vmem>>, vector<1x4x256xf32>,
    return
  }
  func.func @transform_0(%arg0: i32) -> (i32, i32, i32, i32) {
    %c0_i32 = arith.constant 0 : i32
    %c0_i32_0 = arith.constant 0 : i32
    %c0_i32_1 = arith.constant 0 : i32
    %c0_i32_2 = arith.constant 0 : i32
    return %arg0, %c0_i32, %c0_i32_0, %c0_i32_1 : i32, i32, i32, i32
  }
  func.func @transform_1(%arg0: i32) -> (i32, i32, i32) {
    %c0_i32 = arith.constant 0 : i32
    %c0_i32_0 = arith.constant 0 : i32
    %c0_i32_1 = arith.constant 0 : i32
    return %arg0, %c0_i32, %c0_i32_0 : i32, i32, i32
  }
  func.func @transform_2(%arg0: i32) -> (i32, i32, i32) {
    %c0_i32 = arith.constant 0 : i32
    %c0_i32_0 = arith.constant 0 : i32
    %c0_i32_1 = arith.constant 0 : i32
    return %arg0, %c0_i32, %c0_i32_0 : i32, i32, i32
  }
  func.func @transform_3(%arg0: i32) -> (i32, i32, i32, i32) {
    %c0_i32 = arith.constant 0 : i32
    %c0_i32_0 = arith.constant 0 : i32
    %c0_i32_1 = arith.constant 0 : i32
    %c0_i32_2 = arith.constant 0 : i32
    %c0_i32_3 = arith.constant 0 : i32
    return %c0_i32, %c0_i32_0, %c0_i32_1, %c0_i32_2 : i32, i32, i32, i32
  }
  func.func @transform_4(%arg0: i32) -> (i32, i32, i32, i32) {
    %c0_i32 = arith.constant 0 : i32
    %c0_i32_0 = arith.constant 0 : i32
    %c0_i32_1 = arith.constant 0 : i32
    %c0_i32_2 = arith.constant 0 : i32
    %c0_i32_3 = arith.constant 0 : i32
    return %c0_i32, %c0_i32_0, %c0_i32_1, %c0_i32_2 : i32, i32, i32, i32
  }
  func.func @transform_5(%arg0: i32) -> (i32, i32, i32, i32) {
    %c0_i32 = arith.constant 0 : i32
    %c0_i32_0 = arith.constant 0 : i32
    %c0_i32_1 = arith.constant 0 : i32
    %c0_i32_2 = arith.constant 0 : i32
    %c0_i32_3 = arith.constant 0 : i32
    return %c0_i32, %c0_i32_0, %c0_i32_1, %c0_i32_2 : i32, i32, i32, i32
  }
  func.func @transform_6(%arg0: i32) -> (i32, i32) {
    %c0_i32 = arith.constant 0 : i32
    %c0_i32_0 = arith.constant 0 : i32
    %c0_i32_1 = arith.constant 0 : i32
    return %c0_i32, %c0_i32_0 : i32, i32
  }
  func.func @transform_7(%arg0: i32) -> (i32, i32) {
    %c0_i32 = arith.constant 0 : i32
    %c0_i32_0 = arith.constant 0 : i32
    %c0_i32_1 = arith.constant 0 : i32
    return %c0_i32, %c0_i32_0 : i32, i32
  }
  func.func @transform_8(%arg0: i32) -> (i32, i32) {
    %c0_i32 = arith.constant 0 : i32
    %c0_i32_0 = arith.constant 0 : i32
    %c0_i32_1 = arith.constant 0 : i32
    return %c0_i32, %c0_i32_0 : i32, i32
  }
  func.func @transform_9(%arg0: i32) -> (i32, i32) {
    %c0_i32 = arith.constant 0 : i32
    %c0_i32_0 = arith.constant 0 : i32
    %c0_i32_1 = arith.constant 0 : i32
    return %c0_i32, %c0_i32_0 : i32, i32
  }
  func.func @transform_10(%arg0: i32) -> (i32, i32, i32) {
    %c0_i32 = arith.constant 0 : i32
    %c0_i32_0 = arith.constant 0 : i32
    %c0_i32_1 = arith.constant 0 : i32
    return %arg0, %c0_i32, %c0_i32_0 : i32, i32, i32
  }
  func.func @transform_11(%arg0: i32) -> (i32, i32, i32) {
    %c0_i32 = arith.constant 0 : i32
    %c0_i32_0 = arith.constant 0 : i32
    %c0_i32_1 = arith.constant 0 : i32
    return %arg0, %c0_i32, %c0_i32_0 : i32, i32, i32
  }
  func.func @transform_12(%arg0: i32) -> (i32, i32, i32) {
    %c0_i32 = arith.constant 0 : i32
    %c0_i32_0 = arith.constant 0 : i32
    %c0_i32_1 = arith.constant 0 : i32
    return %arg0, %c0_i32, %c0_i32_0 : i32, i32, i32
  }
}

</mosaic_0001>

<bundles_post_ra>
// kernel: tpu_custom_call.1
= control target key start
LH: loop header
LB: loop body
LE: loop exit
PB: predicated region body
PF: predicated region fallthrough
CT: control target
= control target key end

     0   :  { %s19876_s0 = inlined_call_operand.vmem [shape: f32[2,18,18,4], index: 0, kind: input, shape index: {}]   ;;  %s19877_s1 = inlined_call_operand.vmem [shape: f32[2,4,256], index: 1, kind: input, shape index: {}]   ;;  %s19878_s2 = inlined_call_operand.vmem [shape: f32[2,4,256], index: 2, kind: input, shape index: {}]   ;;  %s19879_s3 = inlined_call_operand.vmem [shape: f32[3,3,4,64], index: 3, kind: input, shape index: {}]   ;;  %s19880_s4 = inlined_call_operand.vmem [shape: f32[3,3,64,64], index: 4, kind: input, shape index: {}]   ;;  %s19881_s5 = inlined_call_operand.vmem [shape: f32[3,3,64,4], index: 5, kind: input, shape index: {}]   ;;  %s19882_s6 = inlined_call_operand.vmem [shape: f32[1,64], index: 6, kind: input, shape index: {}]   ;;  %s19883_s7 = inlined_call_operand.vmem [shape: f32[1,64], index: 7, kind: input, shape index: {}]   ;;  %s19884_s8 = inlined_call_operand.vmem [shape: f32[1,64], index: 8, kind: input, shape index: {}]   ;;  %s19885_s9 = inlined_call_operand.vmem [shape: f32[1,64], index: 9, kind: input, shape index: {}]   ;;  %s19886_s10 = inlined_call_operand.hbm [shape: f32[2,4,256], index: 10, kind: output, shape index: {0}]   ;;  %s19887_s11 = inlined_call_operand.hbm [shape: f32[2,4,256], index: 11, kind: output, shape index: {1}]   ;;  %s19888_s12 = inlined_call_operand.hbm [shape: f32[2,4,256], index: 12, kind: output, shape index: {2}]  }
   0x1   :  { %19978 = sst [smem:[#allocation105_spill]] %s19876_s0 }
   0x2   :  { %19979 = sst [smem:[#allocation106_spill]] %s19877_s1 }
   0x3   :  { %19980 = sst [smem:[#allocation107_spill]] %s19878_s2 }
   0x4   :  { %19981 = sst [smem:[#allocation108_spill]] %s19879_s3 }
   0x5   :  { %19982 = sst [smem:[#allocation109_spill]] %s19880_s4 }
   0x6   :  { %19983 = sst [smem:[#allocation110_spill]] %s19881_s5 }
   0x7   :  { %19984 = sst [smem:[#allocation111_spill]] %s19882_s6 }
   0x8   :  { %19985 = sst [smem:[#allocation112_spill]] %s19883_s7 }
   0x9   :  { %18 = vsyncpa [#allocation4], 0 }
   0xa   :  { %20 = vsyncpa [#allocation4 + $0x1], 0 }
   0xb   :  { %21 = vsyncpa [#allocation6], 0 }
   0xc   :  { %23 = vsyncpa [#allocation6 + $0x1], 0  ;;  %s14842_s21 = smov 0   ;;  %s14844_s22 = smov 0  }
   0xd   :  { %s14846_s23 = smov 0   ;;  %s14848_s24 = smov 0  }
   0xe LB: > { %s14863_s25 = sadd.s32 4294967295, %s14771_s24   ;;  %s19969_s26 = sadd.s32 4294967294, %s14771_s24   ;;  %s14771_s24 = sphi %s14848_s24, %s20490_s24   ;;  %s14767_s23 = sphi %s14846_s23, %s20489_s23   ;;  %s14763_s22 = sphi %s14844_s22, %s20488_s22   ;;  %s14759_s21 = sphi %s14842_s21, %s20487_s21  }
   0xf   : > { %s14867_s27 = sadd.s32 1, %s14771_s24   ;;  %s261_s28 = sadd.s32 1, %s14767_s23 }
  0x10   : > { %s258_s29 = ssub.s32 %s14771_s24, %s14867_s27  ;;  %p271_p0 = scmp.ne.s32.totalorder %s14767_s23, %s14763_s22 }
  0x11   : > { %p259_p1 = scmp.eq.s32.totalorder %s258_s29, 0  ;;  %p272_p2 = scmp.eq.s32.totalorder %s14863_s25, 1 }
  0x12   : > { %p277_p3 = scmp.ne.s32.totalorder %s14763_s22, %s14759_s21  ;;  %p278_p4 = scmp.eq.s32.totalorder %s19969_s26, 1 }
  0x13   : > { %s14880_s30 = scalar_select %p259_p1, %s14767_s23, %s261_s28  }
  0x14   : > { %p14882_p5 = por %p272_p2, %p271_p0  ;;  %p14886_p6 = por %p278_p4, %p277_p3 }
  0x15   : > { %p10915_p7 = scmp.ge.s32.totalorder %s14771_s24, 1  ;;  %p393_p8 = scmp.lt.s32.totalorder %s14771_s24, 3 }
  0x17   : > { %p394_p9 = pnand %p10915_p7, %p393_p8 }
  0x19   : > { %397 = sbr.rel (%p394_p9) target bundleno = 1720 (0x6b8), region = 60 }
  0x1e   : > { %s19988_s3 = sld [smem:[#allocation108_spill]]  ;;  %vm721_vm0 = vcmask 1043456   ;;  %p455_p10 = scmp.lt.s32.totalorder %s14863_s25, 1  ;;  %vm573_vm1 = vcmask 1046528   ;;  %vm656_vm2 = vcmask 31744   ;;  %vm1242_vm3 = vcmask 1045504  }
  0x1f   : > { %s19989_s0 = sld [smem:[#allocation105_spill]]  ;;  %vm3381_vm4 = vcmask 523264   ;;  %vm3384_vm5 = vcmask 517120  }
  0x20   : > { %s14907_s28 = scalar_select %p455_p10, %s14863_s25, 1 }
  0x21   : > { %s20088_s4 = sld [smem:[#allocation109_spill]] }
  0x22   : > { %s14576_s29 = smul.u32 432, %s14907_s28  ;;  %s20196_s6 = sld [smem:[#allocation111_spill]] }
  0x23   : > { %s20198_s7 = sld [smem:[#allocation112_spill]]  ;;  %s11950_s26 = sshll.u32 %s14907_s28, 3 }
  0x24   : > { %v10924_v0 = vld [vmem:[%s19988_s3 + $0x4] sm:$0xf]  ;;  %v524_v1 = vld [vmem:[%s19988_s3] sm:$0xf]  ;;  %v10991_v2 = vld [vmem:[%s19988_s3 + $0x8] sm:$0xf] }
  0x25   : > { %14574 = vmatprep.subr.msk.mxu1 %vm721_vm0, %v10924_v0  ;;  %12972 = vmatprep.subr.msk.mxu0 %vm721_vm0, %v10924_v0  ;;  %s14915_s17 = scalar_lea.vmem %s19989_s0, %s14576_s29  ;;  %v14958_v21 = vld [vmem:[%s19988_s3 + $0xc] sm:$0xf]  ;;  %v14976_v28 = vld [vmem:[%s19988_s3 + $0x10] sm:$0xf]  ;;  %s20285_s5 = sld [smem:[#allocation110_spill]] }
  0x26   : > { %14575 = vmatpush3.msk.msra.mxu1 %vm721_vm0, %v10924_v0  ;;  %12973 = vmatpush3.msk.msra.mxu0 %vm721_vm0, %v10924_v0  ;;  %v14918_v3 = vld [vmem:[%s14915_s17] sm:$0xff]  ;;  %v14921_v4 = vld [vmem:[%s14915_s17 + $0x8] sm:$0xff]  ;;  %v14933_v10 = vld [vmem:[%s14915_s17 + $0x10] sm:$0x3]  ;;  %s20482_s1 = sld [smem:[#allocation106_spill]]  ;;  %s438_s28 = sand.u32 1, %s14763_s22  }
  0x27   : > { %13022 = vmatprep.subr.msk.mxu1 %vm721_vm0, %v524_v1  ;;  %13072 = vmatprep.subr.msk.mxu0 %vm721_vm0, %v10991_v2  ;;  %v14924_v5 = vld [vmem:[%s14915_s17 + $0xc0] sm:$0xff]  ;;  %v574_v6 = vrot.slane %v14918_v3, 1  ;;  %v575_v7 = vrot.slane %v14921_v4, 1  ;;  %v14929_v8 = vld [vmem:[%s14915_s17 + $0xc8] sm:$0xff]  ;;  %v577_v12 = vrot.slane %v14933_v10, 1  ;;  %v14941_v14 = vld [vmem:[%s14915_s17 + $0x18] sm:$0xff] }
  0x28   : > { %v614_v9 = vrot.slane %v14924_v5, 1  ;;  %v615_v11 = vrot.slane %v14929_v8, 1  ;;  %v14938_v13 = vld [vmem:[%s14915_s17 + $0xd0] sm:$0x3]  ;;  %v14946_v17 = vld [vmem:[%s14915_s17 + $0x20] sm:$0xff]  ;;  %v579_v18 = vrot.slane %v14941_v14, 1 }
  0x29   : > { %v576_v15 = vsel %vm573_vm1, %v574_v6, %v575_v7  ;;  %v617_v16 = vrot.slane %v14938_v13, 1  ;;  %v14950_v19 = vld [vmem:[%s14915_s17 + $0xd8] sm:$0xff]  ;;  %v14953_v20 = vld [vmem:[%s14915_s17 + $0xe0] sm:$0xff]  ;;  %v578_v23 = vsel %vm573_vm1, %v575_v7, %v577_v12  ;;  %v580_v24 = vrot.slane %v14946_v17, 1  ;;  %v14968_v26 = vld [vmem:[%s14915_s17 + $0x28] sm:$0x3] }
  0x2a   : > { %12974 = vmatprep.mubr.msk.f32.mxu0 %vm656_vm2, %v576_v15  ;;  %v14962_v22 = vsel %vm573_vm1, %v614_v9, %v615_v11  ;;  %v619_v25 = vrot.slane %v14950_v19, 1  ;;  %v14971_v27 = vld [vmem:[%s14915_s17 + $0xe8] sm:$0x3]  ;;  %v620_v30 = vrot.slane %v14953_v20, 1  ;;  %v582_v31 = vrot.slane %v14968_v26, 1  ;;  %v14988_v33 = vld [vmem:[%s14915_s17 + $0x30] sm:$0xff] }
  0x2b   : > { %19990 = vst [vmem:[#allocation10_spill] sm:$0xff] %v14962_v22  ;;  %12998 = vmatprep.mubr.msk.f32.mxu1 %vm656_vm2, %v14962_v22  ;;  %12975 = vmatmul.mubr.msk.f32.vlgmr.msra.gmra.mxu0 %vm656_vm2, %v578_v23  ;;  %v14982_v29 = vsel %vm573_vm1, %v615_v11, %v617_v16  ;;  %v622_v32 = vrot.slane %v14971_v27, 1  ;;  %v14991_v34 = vld [vmem:[%s14915_s17 + $0x38] sm:$0xff]  ;;  %v14994_v35 = vld [vmem:[%s14915_s17 + $0xf0] sm:$0xff]  ;;  %v15000_v36 = vsel %vm573_vm1, %v579_v18, %v580_v24  ;;  %v584_v37 = vrot.slane %v14988_v33, 1  ;;  %v15028_v47 = vld [vmem:[%s14915_s17 + $0x48] sm:$0xff] }
  0x2c   : > { %19991 = vst [vmem:[#allocation11_spill] sm:$0xff] %v14982_v29  ;;  %12999 = vmatmul.mubr.msk.f32.vlgmr.msra.gmra.mxu1 %vm656_vm2, %v14982_v29  ;;  %13073 = vmatpush3.msk.msra.mxu0 %vm721_vm0, %v10991_v2  ;;  %19992 = vst [vmem:[#allocation12_spill] sm:$0xff] %v15000_v36  ;;  %v585_v38 = vrot.slane %v14991_v34, 1  ;;  %v15005_v39 = vld [vmem:[%s14915_s17 + $0xf8] sm:$0xff]  ;;  %v624_v40 = vrot.slane %v14994_v35, 1  ;;  %v15015_v42 = vsel %vm573_vm1, %v619_v25, %v620_v30  ;;  %v15031_v48 = vld [vmem:[%s14915_s17 + $0x50] sm:$0xff]  ;;  %s464_s16 = scalar_lea.vmem %s20482_s1, %s11950_s26 }
  0x2d   : > { %v15009_v41 = vld [vmem:[%s14915_s17 + $0x40] sm:$0x3]  ;;  %13023 = vmatpush3.msk.msra.mxu1 %vm721_vm0, %v524_v1  ;;  %12977 = vmatprep.mubr.msk.f32.mxu0 %vm656_vm2, %v15000_v36  ;;  %19993 = vst [vmem:[#allocation13_spill] sm:$0xff] %v15015_v42  ;;  %v15018_v43 = vsel %vm573_vm1, %v580_v24, %v582_v31  ;;  %v15021_v44 = vsel %vm573_vm1, %v620_v30, %v622_v32  ;;  %v625_v45 = vrot.slane %v15005_v39, 1  ;;  %v589_v52 = vrot.slane %v15028_v47, 1  ;;  %v15042_v53 = vld [vmem:[%s14915_s17 + $0x108] sm:$0xff] }
  0x2e   : > { %19994 = vst [vmem:[#allocation14_spill] sm:$0xff] %v15018_v43  ;;  %19995 = vst [vmem:[#allocation15_spill] sm:$0xff] %v15021_v44  ;;  %v15025_v46 = vld [vmem:[%s14915_s17 + $0x100] sm:$0x3]  ;;  %13001 = vmatprep.mubr.msk.f32.mxu1 %vm656_vm2, %v15015_v42  ;;  %v15036_v49 = vsel %vm573_vm1, %v584_v37, %v585_v38  ;;  %v587_v50 = vrot.slane %v15009_v41, 1  ;;  %v15045_v54 = vld [vmem:[%s14915_s17 + $0x110] sm:$0xff]  ;;  %13122 = vmatprep.subr.msk.mxu1 %vm721_vm0, %v14958_v21 }
  0x2f   : > { %19996 = vst [vmem:[#allocation16_spill] sm:$0xff] %v15036_v49  ;;  %v627_v51 = vrot.slane %v15025_v46, 1  ;;  %v15048_v55 = vld [vmem:[%s14915_s17 + $0x60] sm:$0xff]  ;;  %12978 = vmatmul.mubr.msk.f32.gmra.mxu0 %vm656_vm2, %v15018_v43  ;;  %v15055_v56 = vsel %vm573_vm1, %v624_v40, %v625_v45  ;;  %v590_v57 = vrot.slane %v15031_v48, 1  ;;  %v629_v58 = vrot.slane %v15042_v53, 1  ;;  %v15064_v61 = vld [vmem:[%s14915_s17 + $0x68] sm:$0xff]  ;;  %13172 = vmatprep.subr.msk.mxu0 %vm721_vm0, %v14976_v28 }
  0x30   : > { %19997 = vst [vmem:[#allocation17_spill] sm:$0xff] %v15055_v56  ;;  %v630_v59 = vrot.slane %v15045_v54, 1  ;;  %v15061_v60 = vld [vmem:[%s14915_s17 + $0x58] sm:$0x3]  ;;  %13002 = vmatmul.mubr.msk.f32.gmra.mxu1 %vm656_vm2, %v15021_v44  ;;  %12980 = vmatprep.mubr.msk.f32.mxu0 %vm656_vm2, %v15036_v49  ;;  %v15073_v62 = vsel %vm573_vm1, %v585_v38, %v587_v50  ;;  %v594_v1 = vrot.slane %v15048_v55, 1  ;;  %v15081_v2 = vld [vmem:[%s14915_s17 + $0x120] sm:$0xff] }
  0x31   : > { %19998 = vst [vmem:[#allocation18_spill] sm:$0xff] %v15073_v62  ;;  %v592_v63 = vrot.slane %v15061_v60, 1  ;;  %v15077_v0 = vld [vmem:[%s14915_s17 + $0x118] sm:$0x3]  ;;  %v15084_v6 = vld [vmem:[%s14915_s17 + $0x128] sm:$0xff]  ;;  %13004 = vmatprep.mubr.msk.f32.mxu1 %vm656_vm2, %v15055_v56  ;;  %v15089_v7 = vsel %vm573_vm1, %v625_v45, %v627_v51  ;;  %v15092_v9 = vsel %vm573_vm1, %v589_v52, %v590_v57  ;;  %v595_v12 = vrot.slane %v15064_v61, 1 }
  0x32   : > { %19999 = vst [vmem:[#allocation19_spill] sm:$0xff] %v15089_v7  ;;  %20000 = vst [vmem:[#allocation20_spill] sm:$0xff] %v15092_v9  ;;  %v632_v11 = vrot.slane %v15077_v0, 1  ;;  %v15097_v15 = vld [vmem:[%s14915_s17 + $0x70] sm:$0x3]  ;;  %v15103_v18 = vsel %vm573_vm1, %v629_v58, %v630_v59  ;;  %v634_v23 = vrot.slane %v15081_v2, 1 }
  0x33   : > { %v15100_v16 = vld [vmem:[%s14915_s17 + $0x130] sm:$0x3]  ;;  %20001 = vst [vmem:[#allocation21_spill] sm:$0xff] %v15103_v18  ;;  %v635_v24 = vrot.slane %v15084_v6, 1  ;;  %v15108_v25 = vld [vmem:[%s14915_s17 + $0x78] sm:$0xff]  ;;  %v15111_v30 = vld [vmem:[%s14915_s17 + $0x80] sm:$0xff]  ;;  %12981 = vmatmul.mubr.msk.f32.gmra.mxu0 %vm656_vm2, %v15073_v62  ;;  %v15126_v37 = vsel %vm573_vm1, %v590_v57, %v592_v63  ;;  %v15136_v50 = vsel %vm573_vm1, %v594_v1, %v595_v12 }
  0x34   : > { %v15116_v31 = vld [vmem:[%s14915_s17 + $0x138] sm:$0xff]  ;;  %v15119_v32 = vld [vmem:[%s14915_s17 + $0x140] sm:$0xff]  ;;  %13005 = vmatmul.mubr.msk.f32.gmra.mxu1 %vm656_vm2, %v15089_v7  ;;  %12983 = vmatprep.mubr.msk.f32.mxu0 %vm656_vm2, %v15092_v9  ;;  %20002 = vst [vmem:[#allocation22_spill] sm:$0xff] %v15126_v37  ;;  %v597_v38 = vrot.slane %v15097_v15, 1  ;;  %v637_v40 = vrot.slane %v15100_v16, 1  ;;  %v15133_v45 = vsel %vm573_vm1, %v630_v59, %v632_v11  ;;  %20004 = vst [vmem:[#allocation24_spill] sm:$0xff] %v15136_v50 }
  0x35   : > { %13007 = vmatprep.mubr.msk.f32.mxu1 %vm656_vm2, %v15103_v18  ;;  %20003 = vst [vmem:[#allocation23_spill] sm:$0xff] %v15133_v45  ;;  %v599_v51 = vrot.slane %v15108_v25, 1  ;;  %v600_v52 = vrot.slane %v15111_v30, 1  ;;  %v15141_v57 = vld [vmem:[%s14915_s17 + $0x88] sm:$0x3]  ;;  %v15147_v63 = vsel %vm573_vm1, %v634_v23, %v635_v24  ;;  %v639_v7 = vrot.slane %v15116_v31, 1 }
  0x36   : > { %v15144_v58 = vld [vmem:[%s14915_s17 + $0x148] sm:$0x3]  ;;  %20005 = vst [vmem:[#allocation25_spill] sm:$0xff] %v15147_v63  ;;  %v640_v18 = vrot.slane %v15119_v32, 1  ;;  %v15152_v59 = vld [vmem:[%s14915_s17 + $0x90] sm:$0xff]  ;;  %v15155_v1 = vld [vmem:[%s14915_s17 + $0x98] sm:$0xff]  ;;  %v15170_v23 = vsel %vm573_vm1, %v595_v12, %v597_v38  ;;  %v15177_v29 = vsel %vm573_vm1, %v635_v24, %v637_v40 }
  0x37   : > { %12984 = vmatmul.mubr.msk.f32.gmra.mxu0 %vm656_vm2, %v15126_v37  ;;  %v15160_v11 = vld [vmem:[%s14915_s17 + $0x150] sm:$0xff]  ;;  %v15163_v56 = vld [vmem:[%s14915_s17 + $0x158] sm:$0xff]  ;;  %20007 = vst [vmem:[#allocation27_spill] sm:$0xff] %v15170_v23  ;;  %v602_v44 = vrot.slane %v15141_v57, 1  ;;  %v642_v42 = vrot.slane %v15144_v58, 1  ;;  %20008 = vst [vmem:[#allocation28_spill] sm:$0xff] %v15177_v29 }
  0x38   : > { %20006 = vst [vmem:[#allocation26_spill] sm:$0xff] %v15163_v56  ;;  %13008 = vmatmul.mubr.msk.f32.gmra.mxu1 %vm656_vm2, %v15133_v45  ;;  %12986 = vmatprep.mubr.msk.f32.mxu0 %vm656_vm2, %v15136_v50  ;;  %v15180_v45 = vsel %vm573_vm1, %v599_v51, %v600_v52  ;;  %v604_v22 = vrot.slane %v15152_v59, 1  ;;  %v605_v12 = vrot.slane %v15155_v1, 1  ;;  %v15185_v38 = vld [vmem:[%s14915_s17 + $0xa0] sm:$0x3]  ;;  %v15188_v50 = vsel %vm573_vm1, %v639_v7, %v640_v18  ;;  %v15196_v24 = vld [vmem:[%s14915_s17 + $0xa8] sm:$0xff] }
  0x39   : > { %13010 = vmatprep.mubr.msk.f32.mxu1 %vm656_vm2, %v15147_v63  ;;  %20009 = vst [vmem:[#allocation29_spill] sm:$0xff] %v15180_v45  ;;  %20010 = vst [vmem:[#allocation30_spill] sm:$0xff] %v15188_v50  ;;  %v644_v37 = vrot.slane %v15160_v11, 1  ;;  %v645_v9 = vrot.slane %v15163_v56, 1  ;;  %v15193_v63 = vld [vmem:[%s14915_s17 + $0x160] sm:$0x3]  ;;  %v15214_v7 = vsel %vm573_vm1, %v600_v52, %v602_v44  ;;  %v15217_v49 = vsel %vm573_vm1, %v640_v18, %v642_v42 }
  0x3a   : > { %v15199_v40 = vld [vmem:[%s14915_s17 + $0xb0] sm:$0xff]  ;;  %v15204_v51 = vld [vmem:[%s14915_s17 + $0x168] sm:$0xff]  ;;  %20012 = vst [vmem:[#allocation32_spill] sm:$0xff] %v15214_v7  ;;  %20013 = vst [vmem:[#allocation33_spill] sm:$0xff] %v15217_v49  ;;  %v607_v43 = vrot.slane %v15185_v38, 1  ;;  %v647_v36 = vrot.slane %v15193_v63, 1 }
  0x3b   : > { %12987 = vmatmul.mubr.msk.f32.gmra.mxu0 %vm656_vm2, %v15170_v23  ;;  %v15207_v62 = vld [vmem:[%s14915_s17 + $0x170] sm:$0xff]  ;;  %v15223_v23 = vsel %vm573_vm1, %v604_v22, %v605_v12  ;;  %v15229_v56 = vld [vmem:[%s14915_s17 + $0xb8] sm:$0x3]  ;;  %v15232_v44 = vsel %vm573_vm1, %v644_v37, %v645_v9  ;;  %v649_v42 = vrot.slane %v15204_v51, 1  ;;  %s20483_s2 = sld [smem:[#allocation107_spill]]  ;;  %s19755_s29 = sshll.u32 %s438_s28, 3 }
  0x3c   : > { %20011 = vst [vmem:[#allocation31_spill] sm:$0xff] %v15207_v62  ;;  %13011 = vmatmul.mubr.msk.f32.gmra.mxu1 %vm656_vm2, %v15177_v29  ;;  %12989 = vmatprep.mubr.msk.f32.mxu0 %vm656_vm2, %v15180_v45  ;;  %20014 = vst [vmem:[#allocation34_spill] sm:$0xff] %v15223_v23  ;;  %v609_v29 = vrot.slane %v15196_v24, 1  ;;  %v610_v45 = vrot.slane %v15199_v40, 1  ;;  %v650_v18 = vrot.slane %v15207_v62, 1  ;;  %v15246_v22 = vsel %vm573_vm1, %v605_v12, %v607_v43  ;;  %s440_s15 = scalar_lea.vmem [#allocation3], %s19755_s29 }
  0x3d   : > { %13013 = vmatprep.mubr.msk.f32.mxu1 %vm656_vm2, %v15188_v50  ;;  %20015 = vst [vmem:[#allocation35_spill] sm:$0xff] %v15232_v44  ;;  %v15237_v52 = vld [vmem:[%s14915_s17 + $0x178] sm:$0x3]  ;;  %20016 = vst [vmem:[#allocation36_spill] sm:$0xff] %v15246_v22  ;;  %v612_v37 = vrot.slane %v15229_v56, 1  ;;  %v1243_v50 = vrot.slane %v14918_v3, 2  ;;  %v15253_v62 = vsel %vm573_vm1, %v645_v9, %v647_v36 }
  0x3e   : > { %20017 = vst [vmem:[#allocation37_spill] sm:$0xff] %v15253_v62  ;;  %v15261_v43 = vsel %vm573_vm1, %v649_v42, %v650_v18  ;;  %v1246_v12 = vrot.slane %v14933_v10, 2  ;;  %v1248_v10 = vrot.slane %v14941_v14, 2  ;;  %v1249_v42 = vrot.slane %v14946_v17, 2  ;;  %s19977_s18 = scalar_lea.vmem [#allocation5], %s19755_s29 }
  0x3f   : > { %12990 = vmatmul.mubr.msk.f32.gmra.mxu0 %vm656_vm2, %v15214_v7  ;;  %v15256_v7 = vsel %vm573_vm1, %v609_v29, %v610_v45  ;;  %v15271_v29 = vsel %vm573_vm1, %v610_v45, %v612_v37  ;;  %v1251_v37 = vrot.slane %v14968_v26, 2  ;;  %v1256_v26 = vrot.slane %v15009_v41, 2  ;;  %s10754_s19 = sshll.u32 %s19977_s18, 4  ;;  %s19780_s19 = int_to_ptr.vmem [resolvable:$true] %s10754_s19 }
  0x40   : > { %13014 = vmatmul.mubr.msk.f32.gmra.mxu1 %vm656_vm2, %v15217_v49  ;;  %12992 = vmatprep.mubr.msk.f32.mxu0 %vm656_vm2, %v15223_v23  ;;  %20018 = vst [vmem:[#allocation38_spill] sm:$0xff] %v15256_v7  ;;  %v652_v49 = vrot.slane %v15237_v52, 1  ;;  %v1244_v23 = vrot.slane %v14921_v4, 2  ;;  %20019 = vst [vmem:[#allocation39_spill] sm:$0xff] %v15271_v29  ;;  %v1261_v41 = vrot.slane %v15061_v60, 2 }
  0x41   : > { %13016 = vmatprep.mubr.msk.f32.mxu1 %vm656_vm2, %v15232_v44  ;;  %s469_s20 = scalar_lea.vmem %s20483_s2, %s11950_s26  ;;  %s10716_s26 = scalar_lea.sflag [#allocation4], %s438_s28 }
  0x42   : > { %v15276_v36 = vsel %vm573_vm1, %v650_v18, %v652_v49  ;;  %v1245_v9 = vsel %vm1242_vm3, %v1243_v50, %v1244_v23  ;;  %v1247_v45 = vsel %vm1242_vm3, %v1244_v23, %v1246_v12  ;;  %v1253_v49 = vrot.slane %v14988_v33, 2  ;;  %v15312_v23 = vld [vmem:[%s19988_s3 + $0x18] sm:$0xf] }
  0x43   : > { %12993 = vmatmul.mubr.msk.f32.gmra.mxu0 %vm656_vm2, %v15246_v22  ;;  %20020 = vst [vmem:[#allocation40_spill] sm:$0xff] %v15276_v36  ;;  %v1254_v50 = vrot.slane %v14991_v34, 2  ;;  %v15294_v18 = vsel %vm1242_vm3, %v1248_v10, %v1249_v42  ;;  %v1259_v12 = vrot.slane %v15031_v48, 2 }
  0x44   : > { %13017 = vmatmul.mubr.msk.f32.gmra.mxu1 %vm656_vm2, %v15253_v62  ;;  %12995 = vmatprep.mubr.msk.f32.mxu0 %vm656_vm2, %v15256_v7 }
  0x45   : > { %13019 = vmatprep.mubr.msk.f32.mxu1 %vm656_vm2, %v15261_v43  ;;  %v15353_v60 = vsel %vm1242_vm3, %v1259_v12, %v1261_v41  ;;  %v1273_v41 = vrot.slane %v15152_v59, 2 }
  0x47   : > { %12996 = vmatmul.mubr.msk.f32.gmra.mxu0 %vm656_vm2, %v15271_v29 }
  0x48   : > { %13020 = vmatmul.mubr.msk.f32.gmra.mxu1 %vm656_vm2, %v15276_v36  ;;  %13074 = vmatprep.mubr.msk.f32.mxu0 %vm656_vm2, %v1245_v9  ;;  %v15299_v9 = vld [vmem:[%s19988_s3 + $0x14] sm:$0xf] }
  0x49   : > { %13024 = vmatprep.mubr.msk.f32.mxu1 %vm656_vm2, %v14918_v3  ;;  %v15306_v3 = vsel %vm1242_vm3, %v1249_v42, %v1251_v37  ;;  %v1263_v42 = vrot.slane %v15048_v55, 2  ;;  %v1266_v37 = vrot.slane %v15097_v15, 2 }
  0x4b   : > { %13075 = vmatmul.mubr.msk.f32.vlgmr.msra.gmra.mxu0 %vm656_vm2, %v1247_v45  ;;  %v1264_v45 = vrot.slane %v15064_v61, 2 }
  0x4c   : > { %13025 = vmatmul.mubr.msk.f32.vlgmr.msra.gmra.mxu1 %vm656_vm2, %v14921_v4  ;;  %13173 = vmatpush3.msk.msra.mxu0 %vm721_vm0, %v14976_v28  ;;  %v15319_v4 = vsel %vm1242_vm3, %v1253_v49, %v1254_v50  ;;  %v1258_v28 = vrot.slane %v15028_v47, 2 }
  0x4d   : > { %13123 = vmatpush3.msk.msra.mxu1 %vm721_vm0, %v14958_v21  ;;  %13027 = vmatprep.mubr.msk.f32.mxu1 %vm656_vm2, %v14941_v14  ;;  %v15336_v21 = vsel %vm1242_vm3, %v1254_v50, %v1256_v26  ;;  %v15359_v49 = vsel %vm1242_vm3, %v1263_v42, %v1264_v45  ;;  %v1268_v50 = vrot.slane %v15108_v25, 2  ;;  %v1269_v26 = vrot.slane %v15111_v30, 2 }
  0x4e   : > { %13077 = vmatprep.mubr.msk.f32.mxu0 %vm656_vm2, %v15294_v18  ;;  %13222 = vmatprep.subr.msk.mxu1 %vm721_vm0, %v15299_v9  ;;  %v15342_v10 = vsel %vm1242_vm3, %v1258_v28, %v1259_v12  ;;  %v15370_v15 = vsel %vm1242_vm3, %v1264_v45, %v1266_v37  ;;  %v1271_v28 = vrot.slane %v15141_v57, 2  ;;  %v1274_v42 = vrot.slane %v15155_v1, 2 }
  0x4f   : > { %13078 = vmatmul.mubr.msk.f32.gmra.mxu0 %vm656_vm2, %v15306_v3  ;;  %13272 = vmatprep.subr.msk.mxu0 %vm721_vm0, %v15312_v23  ;;  %20021 = vst [vmem:[#allocation41_spill] sm:$0xff] %v15370_v15  ;;  %v15376_v12 = vsel %vm1242_vm3, %v1268_v50, %v1269_v26  ;;  %v1276_v45 = vrot.slane %v15185_v38, 2  ;;  %v1278_v50 = vrot.slane %v15196_v24, 2 }
  0x50   : > { %13028 = vmatmul.mubr.msk.f32.gmra.mxu1 %vm656_vm2, %v14946_v17  ;;  %13080 = vmatprep.mubr.msk.f32.mxu0 %vm656_vm2, %v15319_v4  ;;  %v15387_v57 = vsel %vm1242_vm3, %v1269_v26, %v1271_v28  ;;  %v15393_v37 = vsel %vm1242_vm3, %v1273_v41, %v1274_v42  ;;  %v1281_v26 = vrot.slane %v15229_v56, 2  ;;  %v1283_v41 = vrot.slane %v14924_v5, 2 }
  0x51   : > { %13030 = vmatprep.mubr.msk.f32.mxu1 %vm656_vm2, %v14988_v33  ;;  %20022 = vst [vmem:[#allocation42_spill] sm:$0xff] %v15387_v57  ;;  %v15404_v38 = vsel %vm1242_vm3, %v1274_v42, %v1276_v45  ;;  %v1286_v42 = vrot.slane %v14938_v13, 2 }
  0x52   : > { %20023 = vst [vmem:[#allocation43_spill] sm:$0xff] %v15404_v38 }
  0x53   : > { %13081 = vmatmul.mubr.msk.f32.gmra.mxu0 %vm656_vm2, %v15336_v21 }
  0x54   : > { %13031 = vmatmul.mubr.msk.f32.gmra.mxu1 %vm656_vm2, %v14991_v34  ;;  %13083 = vmatprep.mubr.msk.f32.mxu0 %vm656_vm2, %v15342_v10 }
  0x55   : > { %13033 = vmatprep.mubr.msk.f32.mxu1 %vm656_vm2, %v15028_v47 }
  0x57   : > { %13084 = vmatmul.mubr.msk.f32.gmra.mxu0 %vm656_vm2, %v15353_v60 }
  0x58   : > { %13034 = vmatmul.mubr.msk.f32.gmra.mxu1 %vm656_vm2, %v15031_v48  ;;  %13086 = vmatprep.mubr.msk.f32.mxu0 %vm656_vm2, %v15359_v49 }
  0x59   : > { %13036 = vmatprep.mubr.msk.f32.mxu1 %vm656_vm2, %v15048_v55 }
  0x5b   : > { %13087 = vmatmul.mubr.msk.f32.gmra.mxu0 %vm656_vm2, %v15370_v15  ;;  %v1279_v15 = vrot.slane %v15199_v40, 2 }
  0x5c   : > { %13037 = vmatmul.mubr.msk.f32.gmra.mxu1 %vm656_vm2, %v15064_v61  ;;  %13089 = vmatprep.mubr.msk.f32.mxu0 %vm656_vm2, %v15376_v12 }
  0x5d   : > { %13039 = vmatprep.mubr.msk.f32.mxu1 %vm656_vm2, %v15108_v25  ;;  %v15410_v28 = vsel %vm1242_vm3, %v1278_v50, %v1279_v15  ;;  %v15421_v56 = vsel %vm1242_vm3, %v1279_v15, %v1281_v26  ;;  %v1288_v50 = vrot.slane %v14950_v19, 2  ;;  %v1291_v15 = vrot.slane %v14971_v27, 2 }
  0x5e   : > { %20024 = vst [vmem:[#allocation44_spill] sm:$0xff] %v15421_v56 }
  0x5f   : > { %13090 = vmatmul.mubr.msk.f32.gmra.mxu0 %vm656_vm2, %v15387_v57  ;;  %v1284_v57 = vrot.slane %v14929_v8, 2 }
  0x60   : > { %13040 = vmatmul.mubr.msk.f32.gmra.mxu1 %vm656_vm2, %v15111_v30  ;;  %13092 = vmatprep.mubr.msk.f32.mxu0 %vm656_vm2, %v15393_v37 }
  0x61   : > { %13042 = vmatprep.mubr.msk.f32.mxu1 %vm656_vm2, %v15152_v59  ;;  %v15427_v45 = vsel %vm1242_vm3, %v1283_v41, %v1284_v57  ;;  %v15438_v13 = vsel %vm1242_vm3, %v1284_v57, %v1286_v42  ;;  %v1293_v41 = vrot.slane %v14994_v35, 2  ;;  %v1296_v57 = vrot.slane %v15025_v46, 2 }
  0x62   : > { %20025 = vst [vmem:[#allocation45_spill] sm:$0xff] %v15438_v13 }
  0x63   : > { %13093 = vmatmul.mubr.msk.f32.gmra.mxu0 %vm656_vm2, %v15404_v38  ;;  %v1289_v38 = vrot.slane %v14953_v20, 2 }
  0x64   : > { %13043 = vmatmul.mubr.msk.f32.gmra.mxu1 %vm656_vm2, %v15155_v1  ;;  %13095 = vmatprep.mubr.msk.f32.mxu0 %vm656_vm2, %v15410_v28 }
  0x65   : > { %13045 = vmatprep.mubr.msk.f32.mxu1 %vm656_vm2, %v15196_v24  ;;  %v15444_v26 = vsel %vm1242_vm3, %v1288_v50, %v1289_v38  ;;  %v15455_v27 = vsel %vm1242_vm3, %v1289_v38, %v1291_v15  ;;  %v1298_v50 = vrot.slane %v15042_v53, 2  ;;  %v1301_v38 = vrot.slane %v15077_v0, 2 }
  0x66   : > { %20026 = vst [vmem:[#allocation46_spill] sm:$0xff] %v15455_v27 }
  0x67   : > { %13096 = vmatmul.mubr.msk.f32.gmra.mxu0 %vm656_vm2, %v15421_v56  ;;  %v1294_v56 = vrot.slane %v15005_v39, 2 }
  0x68   : > { %13046 = vmatmul.mubr.msk.f32.gmra.mxu1 %vm656_vm2, %v15199_v40  ;;  %13098 = vmatprep.mubr.msk.f32.mxu0 %vm656_vm2, %v15427_v45 }
  0x69   : > { %13048 = vmatprep.mubr.msk.f32.mxu1 %vm656_vm2, %v14924_v5  ;;  %v15461_v42 = vsel %vm1242_vm3, %v1293_v41, %v1294_v56  ;;  %v15472_v46 = vsel %vm1242_vm3, %v1294_v56, %v1296_v57  ;;  %v1303_v41 = vrot.slane %v15081_v2, 2  ;;  %v1306_v56 = vrot.slane %v15100_v16, 2 }
  0x6a   : > { %20027 = vst [vmem:[#allocation47_spill] sm:$0xff] %v15472_v46 }
  0x6b   : > { %13099 = vmatmul.mubr.msk.f32.gmra.mxu0 %vm656_vm2, %v15438_v13  ;;  %v1299_v13 = vrot.slane %v15045_v54, 2 }
  0x6c   : > { %13049 = vmatmul.mubr.msk.f32.gmra.mxu1 %vm656_vm2, %v14929_v8  ;;  %13101 = vmatprep.mubr.msk.f32.mxu0 %vm656_vm2, %v15444_v26 }
  0x6d   : > { %13051 = vmatprep.mubr.msk.f32.mxu1 %vm656_vm2, %v14950_v19  ;;  %v15478_v15 = vsel %vm1242_vm3, %v1298_v50, %v1299_v13  ;;  %v15489_v0 = vsel %vm1242_vm3, %v1299_v13, %v1301_v38  ;;  %v1308_v50 = vrot.slane %v15116_v31, 2  ;;  %v1311_v13 = vrot.slane %v15144_v58, 2 }
  0x6e   : > { %20028 = vst [vmem:[#allocation48_spill] sm:$0xff] %v15478_v15  ;;  %20029 = vst [vmem:[#allocation49_spill] sm:$0xff] %v15489_v0 }
  0x6f   : > { %13102 = vmatmul.mubr.msk.f32.gmra.mxu0 %vm656_vm2, %v15455_v27  ;;  %v1304_v27 = vrot.slane %v15084_v6, 2 }
  0x70   : > { %13052 = vmatmul.mubr.msk.f32.gmra.mxu1 %vm656_vm2, %v14953_v20  ;;  %13104 = vmatprep.mubr.msk.f32.mxu0 %vm656_vm2, %v15461_v42 }
  0x71   : > { %13054 = vmatprep.mubr.msk.f32.mxu1 %vm656_vm2, %v14994_v35  ;;  %v15495_v57 = vsel %vm1242_vm3, %v1303_v41, %v1304_v27  ;;  %v15506_v16 = vsel %vm1242_vm3, %v1304_v27, %v1306_v56  ;;  %v1313_v41 = vrot.slane %v15160_v11, 2  ;;  %v1316_v27 = vrot.slane %v15193_v63, 2 }
  0x72   : > { %20030 = vst [vmem:[#allocation50_spill] sm:$0xff] %v15495_v57  ;;  %20031 = vst [vmem:[#allocation51_spill] sm:$0xff] %v15506_v16 }
  0x73   : > { %13105 = vmatmul.mubr.msk.f32.gmra.mxu0 %vm656_vm2, %v15472_v46  ;;  %v1309_v46 = vrot.slane %v15119_v32, 2 }
  0x74   : > { %13055 = vmatmul.mubr.msk.f32.gmra.mxu1 %vm656_vm2, %v15005_v39  ;;  %13107 = vmatprep.mubr.msk.f32.mxu0 %vm656_vm2, %v15478_v15 }
  0x75   : > { %13057 = vmatprep.mubr.msk.f32.mxu1 %vm656_vm2, %v15042_v53  ;;  %v15512_v38 = vsel %vm1242_vm3, %v1308_v50, %v1309_v46  ;;  %v15523_v58 = vsel %vm1242_vm3, %v1309_v46, %v1311_v13  ;;  %v1318_v50 = vrot.slane %v15204_v51, 2  ;;  %v1321_v46 = vrot.slane %v15237_v52, 2  ;;  %v20034_v52 = vld [vmem:[#allocation12_spill] sm:$0xff] }
  0x77   : > { %13108 = vmatmul.mubr.msk.f32.gmra.mxu0 %vm656_vm2, %v15489_v0  ;;  %v20032_v0 = vld [vmem:[#allocation26_spill] sm:$0xff] }
  0x78   : > { %13058 = vmatmul.mubr.msk.f32.gmra.mxu1 %vm656_vm2, %v15045_v54  ;;  %13110 = vmatprep.mubr.msk.f32.mxu0 %vm656_vm2, %v15495_v57  ;;  %v1314_v15 = vrot.slane %v20032_v0, 2 }
  0x79   : > { %13060 = vmatprep.mubr.msk.f32.mxu1 %vm656_vm2, %v15081_v2 }
  0x7a   : > { %v15529_v56 = vsel %vm1242_vm3, %v1313_v41, %v1314_v15  ;;  %v15540_v63 = vsel %vm1242_vm3, %v1314_v15, %v1316_v27  ;;  %v20035_v41 = vld [vmem:[#allocation14_spill] sm:$0xff] }
  0x7b   : > { %13111 = vmatmul.mubr.msk.f32.gmra.mxu0 %vm656_vm2, %v15506_v16  ;;  %v20033_v16 = vld [vmem:[#allocation31_spill] sm:$0xff]  ;;  %v15581_v27 = vld [vmem:[%s19988_s3 + $0x20] sm:$0xf] }
  0x7c   : > { %13061 = vmatmul.mubr.msk.f32.gmra.mxu1 %vm656_vm2, %v15084_v6  ;;  %13113 = vmatprep.mubr.msk.f32.mxu0 %vm656_vm2, %v15512_v38  ;;  %v1319_v57 = vrot.slane %v20033_v16, 2 }
  0x7d   : > { %13063 = vmatprep.mubr.msk.f32.mxu1 %vm656_vm2, %v15116_v31 }
  0x7e   : > { %v15546_v13 = vsel %vm1242_vm3, %v1318_v50, %v1319_v57  ;;  %v15555_v15 = vsel %vm1242_vm3, %v1319_v57, %v1321_v46  ;;  %v15572_v57 = vld [vmem:[%s19988_s3 + $0x1c] sm:$0xf]  ;;  %v20040_v50 = vld [vmem:[#allocation24_spill] sm:$0xff]  ;;  %v20041_v46 = vld [vmem:[#allocation27_spill] sm:$0xff]  ;;  %s14774_s3 = smov [#allocation3]  }
  0x7f   : > { %13114 = vmatmul.mubr.msk.f32.gmra.mxu0 %vm656_vm2, %v15523_v58  ;;  %s14659_s18 = sshll.u32 %s14774_s3, 4  ;;  %s14660_s18 = int_to_ptr.vmem [resolvable:$false] %s14659_s18 }
  0x80   : > { %13064 = vmatmul.mubr.msk.f32.gmra.mxu1 %vm656_vm2, %v15119_v32  ;;  %13116 = vmatprep.mubr.msk.f32.mxu0 %vm656_vm2, %v15529_v56 }
  0x81   : > { %13066 = vmatprep.mubr.msk.f32.mxu1 %vm656_vm2, %v15160_v11 }
  0x83   : > { %13117 = vmatmul.mubr.msk.f32.gmra.mxu0 %vm656_vm2, %v15540_v63 }
  0x84   : > { %13067 = vmatmul.mubr.msk.f32.gmra.mxu1 %vm656_vm2, %v20032_v0  ;;  %13119 = vmatprep.mubr.msk.f32.mxu0 %vm656_vm2, %v15546_v13 }
  0x85   : > { %13069 = vmatprep.mubr.msk.f32.mxu1 %vm656_vm2, %v15204_v51 }
  0x87   : > { %13120 = vmatmul.mubr.msk.f32.gmra.mxu0 %vm656_vm2, %v15555_v15 }
  0x88   : > { %13070 = vmatmul.mubr.msk.f32.gmra.mxu1 %vm656_vm2, %v20033_v16  ;;  %13174 = vmatprep.mubr.msk.f32.mxu0 %vm656_vm2, %v20034_v52  ;;  %v20042_v52 = vld [vmem:[#allocation29_spill] sm:$0xff] }
  0x89   : > { %13124 = vmatprep.mubr.msk.f32.mxu1 %vm656_vm2, %v14941_v14  ;;  %v20036_v14 = vld [vmem:[#allocation16_spill] sm:$0xff] }
  0x8b   : > { %13175 = vmatmul.mubr.msk.f32.vlgmr.msra.gmra.mxu0 %vm656_vm2, %v20035_v41  ;;  %v20043_v41 = vld [vmem:[#allocation32_spill] sm:$0xff] }
  0x8c   : > { %13125 = vmatmul.mubr.msk.f32.vlgmr.msra.gmra.mxu1 %vm656_vm2, %v14946_v17  ;;  %13273 = vmatpush3.msk.msra.mxu0 %vm721_vm0, %v15312_v23  ;;  %v20037_v17 = vld [vmem:[#allocation18_spill] sm:$0xff]  ;;  %v20038_v23 = vld [vmem:[#allocation20_spill] sm:$0xff] }
  0x8d   : > { %13223 = vmatpush3.msk.msra.mxu1 %vm721_vm0, %v15299_v9  ;;  %13127 = vmatprep.mubr.msk.f32.mxu1 %vm656_vm2, %v14988_v33  ;;  %v20039_v9 = vld [vmem:[#allocation22_spill] sm:$0xff] }
  0x8e   : > { %13177 = vmatprep.mubr.msk.f32.mxu0 %vm656_vm2, %v20036_v14  ;;  %13322 = vmatprep.subr.msk.mxu1 %vm721_vm0, %v15572_v57 }
  0x8f   : > { %13178 = vmatmul.mubr.msk.f32.gmra.mxu0 %vm656_vm2, %v20037_v17  ;;  %13372 = vmatprep.subr.msk.mxu0 %vm721_vm0, %v15581_v27 }
  0x90   : > { %13128 = vmatmul.mubr.msk.f32.gmra.mxu1 %vm656_vm2, %v14991_v34  ;;  %13180 = vmatprep.mubr.msk.f32.mxu0 %vm656_vm2, %v20038_v23 }
  0x91   : > { %13130 = vmatprep.mubr.msk.f32.mxu1 %vm656_vm2, %v15028_v47 }
  0x93   : > { %13181 = vmatmul.mubr.msk.f32.gmra.mxu0 %vm656_vm2, %v20039_v9 }
  0x94   : > { %13131 = vmatmul.mubr.msk.f32.gmra.mxu1 %vm656_vm2, %v15031_v48  ;;  %13183 = vmatprep.mubr.msk.f32.mxu0 %vm656_vm2, %v20040_v50  ;;  %v20044_v50 = vld [vmem:[#allocation34_spill] sm:$0xff] }
  0x95   : > { %13133 = vmatprep.mubr.msk.f32.mxu1 %vm656_vm2, %v15048_v55 }
  0x97   : > { %13184 = vmatmul.mubr.msk.f32.gmra.mxu0 %vm656_vm2, %v20041_v46 }
  0x98   : > { %13134 = vmatmul.mubr.msk.f32.gmra.mxu1 %vm656_vm2, %v15064_v61  ;;  %13186 = vmatprep.mubr.msk.f32.mxu0 %vm656_vm2, %v20042_v52  ;;  %v15698_v52 = vld [vmem:[%s14915_s17 + $0x190] sm:$0x3] }
  0x99   : > { %13136 = vmatprep.mubr.msk.f32.mxu1 %vm656_vm2, %v15108_v25 }
  0x9b   : > { %13187 = vmatmul.mubr.msk.f32.gmra.mxu0 %vm656_vm2, %v20043_v41  ;;  %v15685_v41 = vld [vmem:[%s14915_s17 + $0x188] sm:$0xff] }
  0x9c   : > { %13137 = vmatmul.mubr.msk.f32.gmra.mxu1 %vm656_vm2, %v15111_v30  ;;  %13189 = vmatprep.mubr.msk.f32.mxu0 %vm656_vm2, %v20044_v50  ;;  %v20045_v50 = vld [vmem:[#allocation10_spill] sm:$0xff] }
  0x9d   : > { %13139 = vmatprep.mubr.msk.f32.mxu1 %vm656_vm2, %v15152_v59 }
  0x9f   : > { %13190 = vmatmul.mubr.msk.f32.gmra.mxu0 %vm656_vm2, %v15246_v22  ;;  %v20046_v22 = vld [vmem:[#allocation11_spill] sm:$0xff] }
  0xa0   : > { %13140 = vmatmul.mubr.msk.f32.gmra.mxu1 %vm656_vm2, %v15155_v1  ;;  %13192 = vmatprep.mubr.msk.f32.mxu0 %vm656_vm2, %v15256_v7  ;;  %v20047_v7 = vld [vmem:[#allocation13_spill] sm:$0xff] }
  0xa1   : > { %13142 = vmatprep.mubr.msk.f32.mxu1 %vm656_vm2, %v15196_v24 }
  0xa3   : > { %13193 = vmatmul.mubr.msk.f32.gmra.mxu0 %vm656_vm2, %v15271_v29  ;;  %v20048_v29 = vld [vmem:[#allocation15_spill] sm:$0xff] }
  0xa4   : > { %13143 = vmatmul.mubr.msk.f32.gmra.mxu1 %vm656_vm2, %v15199_v40  ;;  %13195 = vmatprep.mubr.msk.f32.mxu0 %vm656_vm2, %v20045_v50  ;;  %v20049_v50 = vld [vmem:[#allocation17_spill] sm:$0xff] }
  0xa5   : > { %13145 = vmatprep.mubr.msk.f32.mxu1 %vm656_vm2, %v14924_v5 }
  0xa7   : > { %13196 = vmatmul.mubr.msk.f32.gmra.mxu0 %vm656_vm2, %v20046_v22  ;;  %v20050_v22 = vld [vmem:[#allocation19_spill] sm:$0xff] }
  0xa8   : > { %13146 = vmatmul.mubr.msk.f32.gmra.mxu1 %vm656_vm2, %v14929_v8  ;;  %13198 = vmatprep.mubr.msk.f32.mxu0 %vm656_vm2, %v20047_v7  ;;  %v20051_v7 = vld [vmem:[#allocation21_spill] sm:$0xff] }
  0xa9   : > { %13148 = vmatprep.mubr.msk.f32.mxu1 %vm656_vm2, %v14950_v19 }
  0xab   : > { %13199 = vmatmul.mubr.msk.f32.gmra.mxu0 %vm656_vm2, %v20048_v29  ;;  %v20052_v29 = vld [vmem:[#allocation23_spill] sm:$0xff] }
  0xac   : > { %13149 = vmatmul.mubr.msk.f32.gmra.mxu1 %vm656_vm2, %v14953_v20  ;;  %13201 = vmatprep.mubr.msk.f32.mxu0 %vm656_vm2, %v20049_v50  ;;  %v20053_v50 = vld [vmem:[#allocation25_spill] sm:$0xff] }
  0xad   : > { %13151 = vmatprep.mubr.msk.f32.mxu1 %vm656_vm2, %v14994_v35 }
  0xaf   : > { %13202 = vmatmul.mubr.msk.f32.gmra.mxu0 %vm656_vm2, %v20050_v22  ;;  %v20054_v22 = vld [vmem:[#allocation28_spill] sm:$0xff] }
  0xb0   : > { %13152 = vmatmul.mubr.msk.f32.gmra.mxu1 %vm656_vm2, %v15005_v39  ;;  %13204 = vmatprep.mubr.msk.f32.mxu0 %vm656_vm2, %v20051_v7  ;;  %v20055_v7 = vld [vmem:[#allocation30_spill] sm:$0xff] }
  0xb1   : > { %13154 = vmatprep.mubr.msk.f32.mxu1 %vm656_vm2, %v15042_v53 }
  0xb3   : > { %13205 = vmatmul.mubr.msk.f32.gmra.mxu0 %vm656_vm2, %v20052_v29  ;;  %v15682_v29 = vld [vmem:[%s14915_s17 + $0x180] sm:$0xff] }
  0xb4   : > { %13155 = vmatmul.mubr.msk.f32.gmra.mxu1 %vm656_vm2, %v15045_v54  ;;  %13207 = vmatprep.mubr.msk.f32.mxu0 %vm656_vm2, %v20053_v50  ;;  %v20056_v50 = vld [vmem:[#allocation33_spill] sm:$0xff] }
  0xb5   : > { %13157 = vmatprep.mubr.msk.f32.mxu1 %vm656_vm2, %v15081_v2 }
  0xb7   : > { %13208 = vmatmul.mubr.msk.f32.gmra.mxu0 %vm656_vm2, %v20054_v22  ;;  %v1919_v22 = vrot.slane %v15685_v41, 1 }
  0xb8   : > { %13158 = vmatmul.mubr.msk.f32.gmra.mxu1 %vm656_vm2, %v15084_v6  ;;  %13210 = vmatprep.mubr.msk.f32.mxu0 %vm656_vm2, %v20055_v7  ;;  %v1918_v7 = vrot.slane %v15682_v29, 1 }
  0xb9   : > { %13160 = vmatprep.mubr.msk.f32.mxu1 %vm656_vm2, %v15116_v31 }
  0xbb   : > { %13211 = vmatmul.mubr.msk.f32.gmra.mxu0 %vm656_vm2, %v20056_v50  ;;  %v15710_v50 = vsel %vm573_vm1, %v1918_v7, %v1919_v22 }
  0xbc   : > { %13161 = vmatmul.mubr.msk.f32.gmra.mxu1 %vm656_vm2, %v15119_v32  ;;  %13213 = vmatprep.mubr.msk.f32.mxu0 %vm656_vm2, %v15232_v44  ;;  %v1921_v44 = vrot.slane %v15698_v52, 1  ;;  %20057 = vst [vmem:[#allocation26_spill] sm:$0xff] %v15710_v50 }
  0xbd   : > { %13163 = vmatprep.mubr.msk.f32.mxu1 %vm656_vm2, %v15160_v11 }
  0xbf   : > { %13214 = vmatmul.mubr.msk.f32.gmra.mxu0 %vm656_vm2, %v15253_v62  ;;  %v15719_v62 = vsel %vm573_vm1, %v1919_v22, %v1921_v44  ;;  %v20071_v22 = vld [vmem:[#allocation51_spill] sm:$0xff] }
  0xc0   : > { %13164 = vmatmul.mubr.msk.f32.gmra.mxu1 %vm656_vm2, %v20032_v0  ;;  %13216 = vmatprep.mubr.msk.f32.mxu0 %vm656_vm2, %v15261_v43  ;;  %20058 = vst [vmem:[#allocation31_spill] sm:$0xff] %v15719_v62 }
  0xc1   : > { %13166 = vmatprep.mubr.msk.f32.mxu1 %vm656_vm2, %v15204_v51 }
  0xc3   : > { %13217 = vmatmul.mubr.msk.f32.gmra.mxu0 %vm656_vm2, %v15276_v36 }
  0xc4   : > { %13167 = vmatmul.mubr.msk.f32.gmra.mxu1 %vm656_vm2, %v20033_v16  ;;  %13219 = vmatprep.mubr.msk.f32.mxu0 %vm656_vm2, %v15710_v50 }
  0xc5   : > { %13169 = vmatprep.mubr.msk.f32.mxu1 %vm656_vm2, %v15682_v29 }
  0xc7   : > { %13220 = vmatmul.mubr.msk.f32.gmra.mxu0 %vm656_vm2, %v15719_v62 }
  0xc8   : > { %13170 = vmatmul.mubr.msk.f32.gmra.mxu1 %vm656_vm2, %v15685_v41  ;;  %13274 = vmatprep.mubr.msk.f32.mxu0 %vm656_vm2, %v14988_v33  ;;  %v20059_v33 = vld [vmem:[#allocation41_spill] sm:$0xff] }
  0xc9   : > { %13224 = vmatprep.mubr.msk.f32.mxu1 %vm656_vm2, %v15294_v18 }
  0xcb   : > { %13275 = vmatmul.mubr.msk.f32.vlgmr.msra.gmra.mxu0 %vm656_vm2, %v14991_v34  ;;  %v20060_v34 = vld [vmem:[#allocation42_spill] sm:$0xff] }
  0xcc   : > { %13225 = vmatmul.mubr.msk.f32.vlgmr.msra.gmra.mxu1 %vm656_vm2, %v15306_v3  ;;  %13373 = vmatpush3.msk.msra.mxu0 %vm721_vm0, %v15581_v27 }
  0xcd   : > { %13323 = vmatpush3.msk.msra.mxu1 %vm721_vm0, %v15572_v57  ;;  %13227 = vmatprep.mubr.msk.f32.mxu1 %vm656_vm2, %v15319_v4  ;;  %v2189_v57 = vrot.slane %v15682_v29, 2 }
  0xce   : > { %13277 = vmatprep.mubr.msk.f32.mxu0 %vm656_vm2, %v15028_v47  ;;  %v20061_v47 = vld [vmem:[#allocation43_spill] sm:$0xff] }
  0xcf   : > { %13278 = vmatmul.mubr.msk.f32.gmra.mxu0 %vm656_vm2, %v15031_v48  ;;  %v20062_v48 = vld [vmem:[#allocation44_spill] sm:$0xff] }
  0xd0   : > { %13228 = vmatmul.mubr.msk.f32.gmra.mxu1 %vm656_vm2, %v15336_v21  ;;  %13280 = vmatprep.mubr.msk.f32.mxu0 %vm656_vm2, %v15048_v55  ;;  %v20063_v55 = vld [vmem:[#allocation45_spill] sm:$0xff] }
  0xd1   : > { %13230 = vmatprep.mubr.msk.f32.mxu1 %vm656_vm2, %v15342_v10 }
  0xd3   : > { %13281 = vmatmul.mubr.msk.f32.gmra.mxu0 %vm656_vm2, %v15064_v61 }
  0xd4   : > { %13231 = vmatmul.mubr.msk.f32.gmra.mxu1 %vm656_vm2, %v15353_v60  ;;  %13283 = vmatprep.mubr.msk.f32.mxu0 %vm656_vm2, %v15108_v25  ;;  %v20065_v25 = vld [vmem:[#allocation47_spill] sm:$0xff] }
  0xd5   : > { %13233 = vmatprep.mubr.msk.f32.mxu1 %vm656_vm2, %v15359_v49 }
  0xd7   : > { %13284 = vmatmul.mubr.msk.f32.gmra.mxu0 %vm656_vm2, %v15111_v30  ;;  %v20066_v30 = vld [vmem:[#allocation48_spill] sm:$0xff] }
  0xd8   : > { %13234 = vmatmul.mubr.msk.f32.gmra.mxu1 %vm656_vm2, %v20059_v33  ;;  %13286 = vmatprep.mubr.msk.f32.mxu0 %vm656_vm2, %v15152_v59 }
  0xd9   : > { %13236 = vmatprep.mubr.msk.f32.mxu1 %vm656_vm2, %v15376_v12 }
  0xdb   : > { %13287 = vmatmul.mubr.msk.f32.gmra.mxu0 %vm656_vm2, %v15155_v1 }
  0xdc   : > { %13237 = vmatmul.mubr.msk.f32.gmra.mxu1 %vm656_vm2, %v20060_v34  ;;  %13289 = vmatprep.mubr.msk.f32.mxu0 %vm656_vm2, %v15196_v24  ;;  %v20068_v24 = vld [vmem:[#allocation49_spill] sm:$0xff] }
  0xdd   : > { %13239 = vmatprep.mubr.msk.f32.mxu1 %vm656_vm2, %v15393_v37 }
  0xdf   : > { %13290 = vmatmul.mubr.msk.f32.gmra.mxu0 %vm656_vm2, %v15199_v40  ;;  %v20069_v40 = vld [vmem:[#allocation50_spill] sm:$0xff] }
  0xe0   : > { %13240 = vmatmul.mubr.msk.f32.gmra.mxu1 %vm656_vm2, %v20061_v47  ;;  %13292 = vmatprep.mubr.msk.f32.mxu0 %vm656_vm2, %v14924_v5 }
  0xe1   : > { %13242 = vmatprep.mubr.msk.f32.mxu1 %vm656_vm2, %v15410_v28 }
  0xe3   : > { %13293 = vmatmul.mubr.msk.f32.gmra.mxu0 %vm656_vm2, %v14929_v8 }
  0xe4   : > { %13243 = vmatmul.mubr.msk.f32.gmra.mxu1 %vm656_vm2, %v20062_v48  ;;  %13295 = vmatprep.mubr.msk.f32.mxu0 %vm656_vm2, %v14950_v19  ;;  %v20064_v19 = vld [vmem:[#allocation46_spill] sm:$0xff] }
  0xe5   : > { %13245 = vmatprep.mubr.msk.f32.mxu1 %vm656_vm2, %v15427_v45 }
  0xe7   : > { %13296 = vmatmul.mubr.msk.f32.gmra.mxu0 %vm656_vm2, %v14953_v20 }
  0xe8   : > { %13246 = vmatmul.mubr.msk.f32.gmra.mxu1 %vm656_vm2, %v20063_v55  ;;  %13298 = vmatprep.mubr.msk.f32.mxu0 %vm656_vm2, %v14994_v35 }
  0xe9   : > { %13248 = vmatprep.mubr.msk.f32.mxu1 %vm656_vm2, %v15444_v26 }
  0xeb   : > { %v15799_v5 = vpop.f32.mrf.mxu0  ;;  %13299 = vmatmul.mubr.msk.f32.gmra.mxu0 %vm656_vm2, %v15005_v39 }
  0xec   : > { %v15803_v8 = vpop.f32.mrf.mxu1  ;;  %13249 = vmatmul.mubr.msk.f32.gmra.mxu1 %vm656_vm2, %v20064_v19  ;;  %13301 = vmatprep.mubr.msk.f32.mxu0 %vm656_vm2, %v15042_v53 }
  0xed   : > { %v15809_v20 = vpop.f32.mrf.mxu0  ;;  %13251 = vmatprep.mubr.msk.f32.mxu1 %vm656_vm2, %v15461_v42 }
  0xee   : > { %v15813_v35 = vpop.f32.mrf.mxu1 }
  0xef   : > { %v15815_v61 = vpop.f32.mrf.mxu0  ;;  %13302 = vmatmul.mubr.msk.f32.gmra.mxu0 %vm656_vm2, %v15045_v54 }
  0xf0   : > { %v15819_v39 = vpop.f32.mrf.mxu1  ;;  %13252 = vmatmul.mubr.msk.f32.gmra.mxu1 %vm656_vm2, %v20065_v25  ;;  %13304 = vmatprep.mubr.msk.f32.mxu0 %vm656_vm2, %v15081_v2 }
  0xf1   : > { %v15825_v53 = vpop.f32.mrf.mxu0  ;;  %13254 = vmatprep.mubr.msk.f32.mxu1 %vm656_vm2, %v20066_v30 }
  0xf2   : > { %v15829_v59 = vpop.f32.mrf.mxu1 }
  0xf3   : > { %20067 = vst [vmem:[#allocation12_spill] sm:$0xff] %v15829_v59  ;;  %v15831_v1 = vpop.f32.mrf.mxu0  ;;  %13305 = vmatmul.mubr.msk.f32.gmra.mxu0 %vm656_vm2, %v15084_v6  ;;  %v2192_v59 = vrot.slane %v15698_v52, 2 }
  0xf4   : > { %v15835_v54 = vpop.f32.mrf.mxu1  ;;  %13255 = vmatmul.mubr.msk.f32.gmra.mxu1 %vm656_vm2, %v20068_v24  ;;  %13307 = vmatprep.mubr.msk.f32.mxu0 %vm656_vm2, %v15116_v31 }
  0xf5   : > { %v15841_v2 = vpop.f32.mrf.mxu0  ;;  %13257 = vmatprep.mubr.msk.f32.mxu1 %vm656_vm2, %v20069_v40 }
  0xf6   : > { %v15845_v7 = vpop.f32.mrf.mxu1 }
  0xf7   : > { %20070 = vst [vmem:[#allocation14_spill] sm:$0xff] %v15845_v7  ;;  %v15847_v44 = vpop.f32.mrf.mxu0  ;;  %13308 = vmatmul.mubr.msk.f32.gmra.mxu0 %vm656_vm2, %v15119_v32 }
  0xf8   : > { %v15851_v6 = vpop.f32.mrf.mxu1  ;;  %13258 = vmatmul.mubr.msk.f32.gmra.mxu1 %vm656_vm2, %v20071_v22  ;;  %13310 = vmatprep.mubr.msk.f32.mxu0 %vm656_vm2, %v15160_v11 }
  0xf9   : > { %v15857_v31 = vpop.f32.mrf.mxu0  ;;  %13260 = vmatprep.mubr.msk.f32.mxu1 %vm656_vm2, %v15512_v38 }
  0xfa   : > { %v15861_v18 = vpop.f32.mrf.mxu1 }
  0xfb   : > { %20072 = vst [vmem:[#allocation16_spill] sm:$0xff] %v15861_v18  ;;  %v15863_v3 = vpop.f32.mrf.mxu0  ;;  %13311 = vmatmul.mubr.msk.f32.gmra.mxu0 %vm656_vm2, %v20032_v0  ;;  %v2190_v0 = vrot.slane %v15685_v41, 2 }
  0xfc   : > { %v15867_v32 = vpop.f32.mrf.mxu1  ;;  %13261 = vmatmul.mubr.msk.f32.gmra.mxu1 %vm656_vm2, %v15523_v58  ;;  %13313 = vmatprep.mubr.msk.f32.mxu0 %vm656_vm2, %v15204_v51 }
  0xfd   : > { %v15873_v11 = vpop.f32.mrf.mxu0  ;;  %13263 = vmatprep.mubr.msk.f32.mxu1 %vm656_vm2, %v15529_v56 }
  0xfe   : > { %v15878_v27 = vpop.f32.mrf.mxu1 }
  0xff   : > { %20073 = vst [vmem:[#allocation18_spill] sm:$0xff] %v15878_v27  ;;  %v15881_v18 = vpop.f32.mrf.mxu0  ;;  %13314 = vmatmul.mubr.msk.f32.gmra.mxu0 %vm656_vm2, %v20033_v16  ;;  %v15896_v27 = vld [vmem:[%s14915_s17 + $0x198] sm:$0xff]  ;;  %v15902_v16 = vsel %vm1242_vm3, %v2189_v57, %v2190_v0  ;;  %v15922_v57 = vsel %vm1242_vm3, %v2190_v0, %v2192_v59 }
 0x100   : > { %v15885_v7 = vpop.f32.mrf.mxu1  ;;  %13264 = vmatmul.mubr.msk.f32.gmra.mxu1 %vm656_vm2, %v15540_v63  ;;  %13316 = vmatprep.mubr.msk.f32.mxu0 %vm656_vm2, %v15682_v29  ;;  %20076 = vst [vmem:[#allocation27_spill] sm:$0xff] %v15902_v16  ;;  %20078 = vst [vmem:[#allocation42_spill] sm:$0xff] %v15922_v57 }
 0x101   : > { %20074 = vst [vmem:[#allocation20_spill] sm:$0xff] %v15885_v7  ;;  %v15891_v51 = vpop.f32.mrf.mxu0  ;;  %13266 = vmatprep.mubr.msk.f32.mxu1 %vm656_vm2, %v15546_v13  ;;  %v15915_v7 = vld [vmem:[%s14915_s17 + $0x1a0] sm:$0xff] }
 0x102   : > { %v15899_v62 = vpop.f32.mrf.mxu1 }
 0x103   : > { %20075 = vst [vmem:[#allocation22_spill] sm:$0xff] %v15899_v62  ;;  %v15904_v50 = vpop.f32.mrf.mxu0  ;;  %13317 = vmatmul.mubr.msk.f32.gmra.mxu0 %vm656_vm2, %v15685_v41 }
 0x104   : > { %v15908_v29 = vpop.f32.mrf.mxu1  ;;  %13267 = vmatmul.mubr.msk.f32.gmra.mxu1 %vm656_vm2, %v15555_v15  ;;  %13319 = vmatprep.mubr.msk.f32.mxu0 %vm656_vm2, %v15896_v27 }
 0x105   : > { %20077 = vst [vmem:[#allocation41_spill] sm:$0xff] %v15908_v29  ;;  %v15917_v52 = vpop.f32.mrf.mxu0  ;;  %13269 = vmatprep.mubr.msk.f32.mxu1 %vm656_vm2, %v15902_v16 }
 0x106   : > { %v15924_v62 = vpop.f32.mrf.mxu1 }
 0x107   : > { %20079 = vst [vmem:[#allocation43_spill] sm:$0xff] %v15924_v62  ;;  %v15926_v41 = vpop.f32.mrf.mxu0  ;;  %13320 = vmatmul.mubr.msk.f32.gmra.mxu0 %vm656_vm2, %v15915_v7 }
 0x108   : > { %v15930_v29 = vpop.f32.mrf.mxu1  ;;  %13270 = vmatmul.mubr.msk.f32.gmra.mxu1 %vm656_vm2, %v15922_v57  ;;  %13374 = vmatprep.mubr.msk.f32.mxu0 %vm656_vm2, %v15319_v4 }
 0x109   : > { %20080 = vst [vmem:[#allocation44_spill] sm:$0xff] %v15930_v29  ;;  %v15936_v36 = vpop.f32.mrf.mxu0  ;;  %13324 = vmatprep.mubr.msk.f32.mxu1 %vm656_vm2, %v20036_v14 }
 0x10a   : > { %v15940_v59 = vpop.f32.mrf.mxu1 }
 0x10b   : > { %20081 = vst [vmem:[#allocation45_spill] sm:$0xff] %v15940_v59  ;;  %v13076_v0 = vpop.f32.mrf.mxu0  ;;  %13375 = vmatmul.mubr.msk.f32.vlgmr.msra.gmra.mxu0 %vm656_vm2, %v15336_v21 }
 0x10c   : > { %v13026_v62 = vpop.f32.mrf.mxu1  ;;  %13325 = vmatmul.mubr.msk.f32.vlgmr.msra.gmra.mxu1 %vm656_vm2, %v20037_v17  ;;  %13377 = vmatprep.mubr.msk.f32.mxu0 %vm656_vm2, %v15342_v10 }
 0x10d   : > { %v1089_v4 = vadd.f32 %v13026_v62, %v15799_v5  ;;  %v1458_v29 = vpop.f32.mrf.mxu0  ;;  %13327 = vmatprep.mubr.msk.f32.mxu1 %vm656_vm2, %v20038_v23  ;;  %v20082_v23 = vld [vmem:[#allocation24_spill] sm:$0xff] }
 0x10e   : > { %v1083_v14 = vpop.f32.mrf.mxu1 }
 0x10f   : > { %v15951_v57 = vadd.f32 %v13076_v0, %v1089_v4  ;;  %v1084_v59 = vadd.f32 %v1083_v14, %v15809_v20  ;;  %v13079_v16 = vpop.f32.mrf.mxu0  ;;  %13378 = vmatmul.mubr.msk.f32.gmra.mxu0 %vm656_vm2, %v15353_v60  ;;  %v20084_v14 = vld [vmem:[#allocation32_spill] sm:$0xff] }
 0x110   : > { %v13029_v21 = vpop.f32.mrf.mxu1  ;;  %13328 = vmatmul.mubr.msk.f32.gmra.mxu1 %vm656_vm2, %v20039_v9  ;;  %13380 = vmatprep.mubr.msk.f32.mxu0 %vm656_vm2, %v15359_v49 }
 0x111   : > { %v15960_v62 = vadd.f32 %v1458_v29, %v1084_v59  ;;  %v1099_v10 = vadd.f32 %v13029_v21, %v15815_v61  ;;  %v1468_v17 = vpop.f32.mrf.mxu0  ;;  %13330 = vmatprep.mubr.msk.f32.mxu1 %vm656_vm2, %v20082_v23 }
 0x112   : > { %v1093_v5 = vpop.f32.mrf.mxu1 }
 0x113   : > { %v15965_v20 = vadd.f32 %v13079_v16, %v1099_v10  ;;  %v1094_v60 = vadd.f32 %v1093_v5, %v15825_v53  ;;  %v13082_v0 = vpop.f32.mrf.mxu0  ;;  %13381 = vmatmul.mubr.msk.f32.gmra.mxu0 %vm656_vm2, %v20059_v33  ;;  %v20083_v16 = vld [vmem:[#allocation29_spill] sm:$0xff]  ;;  %v20085_v10 = vld [vmem:[#allocation34_spill] sm:$0xff] }
 0x114   : > { %v13032_v9 = vpop.f32.mrf.mxu1  ;;  %13331 = vmatmul.mubr.msk.f32.gmra.mxu1 %vm656_vm2, %v20041_v46  ;;  %13383 = vmatprep.mubr.msk.f32.mxu0 %vm656_vm2, %v15376_v12 }
 0x115   : > { %v15974_v49 = vadd.f32 %v1468_v17, %v1094_v60  ;;  %v1109_v61 = vadd.f32 %v13032_v9, %v15831_v1  ;;  %v1478_v29 = vpop.f32.mrf.mxu0  ;;  %13333 = vmatprep.mubr.msk.f32.mxu1 %vm656_vm2, %v20083_v16  ;;  %v20086_v60 = vld [vmem:[#allocation36_spill] sm:$0xff]  ;;  %v20087_v9 = vld [vmem:[#allocation38_spill] sm:$0xff] }
 0x116   : > { %v1103_v53 = vpop.f32.mrf.mxu1 }
 0x117   : > { %v15979_v59 = vadd.f32 %v13082_v0, %v1109_v61  ;;  %v1104_v33 = vadd.f32 %v1103_v53, %v15841_v2  ;;  %v13085_v4 = vpop.f32.mrf.mxu0  ;;  %13384 = vmatmul.mubr.msk.f32.gmra.mxu0 %vm656_vm2, %v20060_v34  ;;  %v20089_v53 = vld [vmem:[#allocation39_spill] sm:$0xff] }
 0x118   : > { %v13035_v46 = vpop.f32.mrf.mxu1  ;;  %13334 = vmatmul.mubr.msk.f32.gmra.mxu1 %vm656_vm2, %v20084_v14  ;;  %13386 = vmatprep.mubr.msk.f32.mxu0 %vm656_vm2, %v15393_v37 }
 0x119   : > { %v15988_v12 = vadd.f32 %v1478_v29, %v1104_v33  ;;  %v1119_v1 = vadd.f32 %v13035_v46, %v15847_v44  ;;  %v1488_v21 = vpop.f32.mrf.mxu0  ;;  %13336 = vmatprep.mubr.msk.f32.mxu1 %vm656_vm2, %v20085_v10 }
 0x11a   : > { %v1113_v2 = vpop.f32.mrf.mxu1 }
 0x11b   : > { %v15993_v17 = vadd.f32 %v13085_v4, %v1119_v1  ;;  %v1114_v34 = vadd.f32 %v1113_v2, %v15857_v31  ;;  %v13088_v23 = vpop.f32.mrf.mxu0  ;;  %13387 = vmatmul.mubr.msk.f32.gmra.mxu0 %vm656_vm2, %v20061_v47  ;;  %v20090_v4 = vld [vmem:[#allocation10_spill] sm:$0xff] }
 0x11c   : > { %v13038_v5 = vpop.f32.mrf.mxu1  ;;  %13337 = vmatmul.mubr.msk.f32.gmra.mxu1 %vm656_vm2, %v20086_v60  ;;  %13389 = vmatprep.mubr.msk.f32.mxu0 %vm656_vm2, %v15410_v28  ;;  %v11238_v28 = vld [vmem:[%s20088_s4 + $0x78] sm:$0xff] }
 0x11d   : > { %v16002_v37 = vadd.f32 %v1488_v21, %v1114_v34  ;;  %v1129_v44 = vadd.f32 %v13038_v5, %v15863_v3  ;;  %v1498_v0 = vpop.f32.mrf.mxu0  ;;  %13339 = vmatprep.mubr.msk.f32.mxu1 %vm656_vm2, %v20087_v9  ;;  %13422 = vmatprep.subr.mxu1 %v11238_v28  ;;  %v20091_v21 = vld [vmem:[#allocation11_spill] sm:$0xff]  ;;  %v20092_v34 = vld [vmem:[#allocation13_spill] sm:$0xff] }
 0x11e   : > { %v1123_v31 = vpop.f32.mrf.mxu1  ;;  %13423 = vmatpush3.msra.mxu1 %v11238_v28  ;;  %v20094_v9 = vld [vmem:[#allocation17_spill] sm:$0xff]  ;;  %v20095_v28 = vld [vmem:[#allocation19_spill] sm:$0xff] }
 0x11f   : > { %v16007_v61 = vadd.f32 %v13088_v23, %v1129_v44  ;;  %v1124_v47 = vadd.f32 %v1123_v31, %v15873_v11  ;;  %v13091_v29 = vpop.f32.mrf.mxu0  ;;  %13390 = vmatmul.mubr.msk.f32.gmra.mxu0 %vm656_vm2, %v20062_v48  ;;  %v20093_v44 = vld [vmem:[#allocation15_spill] sm:$0xff] }
 0x120   : > { %v13041_v16 = vpop.f32.mrf.mxu1  ;;  %13340 = vmatmul.mubr.msk.f32.gmra.mxu1 %vm656_vm2, %v20089_v53  ;;  %13392 = vmatprep.mubr.msk.f32.mxu0 %vm656_vm2, %v15427_v45 }
 0x121   : > { %v16019_v3 = vadd.f32 %v1498_v0, %v1124_v47  ;;  %v1139_v33 = vadd.f32 %v13041_v16, %v15881_v18  ;;  %v1508_v11 = vpop.f32.mrf.mxu0  ;;  %13342 = vmatprep.mubr.msk.f32.mxu1 %vm656_vm2, %v20090_v4 }
 0x122   : > { %v1133_v48 = vpop.f32.mrf.mxu1 }
 0x123   : > { %v16024_v46 = vadd.f32 %v13091_v29, %v1139_v33  ;;  %v1134_v14 = vadd.f32 %v1133_v48, %v15891_v51  ;;  %v13094_v1 = vpop.f32.mrf.mxu0  ;;  %13393 = vmatmul.mubr.msk.f32.gmra.mxu0 %vm656_vm2, %v20063_v55  ;;  %v20096_v33 = vld [vmem:[#allocation21_spill] sm:$0xff] }
 0x124   : > { %v13044_v45 = vpop.f32.mrf.mxu1  ;;  %13343 = vmatmul.mubr.msk.f32.gmra.mxu1 %vm656_vm2, %v20091_v21  ;;  %13395 = vmatprep.mubr.msk.f32.mxu0 %vm656_vm2, %v15444_v26  ;;  %v11237_v26 = vld [vmem:[%s20088_s4 + $0x70] sm:$0xff] }
 0x125   : > { %v16033_v18 = vadd.f32 %v1508_v11, %v1134_v14  ;;  %v1149_v10 = vadd.f32 %v13044_v45, %v15904_v50  ;;  %v1518_v2 = vpop.f32.mrf.mxu0  ;;  %13345 = vmatprep.mubr.msk.f32.mxu1 %vm656_vm2, %v20092_v34  ;;  %13424 = vmatprep.subr.mxu1 %v11237_v26  ;;  %v20097_v14 = vld [vmem:[#allocation23_spill] sm:$0xff]  ;;  %v20099_v45 = vld [vmem:[#allocation25_spill] sm:$0xff] }
 0x126   : > { %v1143_v51 = vpop.f32.mrf.mxu1  ;;  %13425 = vmatpush3.msra.mxu1 %v11237_v26 }
 0x127   : > { %v16038_v23 = vadd.f32 %v13094_v1, %v1149_v10  ;;  %v1144_v55 = vadd.f32 %v1143_v51, %v15917_v52  ;;  %v13097_v5 = vpop.f32.mrf.mxu0  ;;  %13396 = vmatmul.mubr.msk.f32.gmra.mxu0 %vm656_vm2, %v20064_v19  ;;  %v20101_v51 = vld [vmem:[#allocation30_spill] sm:$0xff] }
 0x128   : > { %v13047_v60 = vpop.f32.mrf.mxu1  ;;  %13346 = vmatmul.mubr.msk.f32.gmra.mxu1 %vm656_vm2, %v20093_v44  ;;  %13398 = vmatprep.mubr.msk.f32.mxu0 %vm656_vm2, %v15461_v42 }
 0x129   : > { %v16050_v50 = vadd.f32 %v1518_v2, %v1144_v55  ;;  %v1159_v0 = vadd.f32 %v13047_v60, %v15926_v41  ;;  %v1528_v52 = vpop.f32.mrf.mxu0  ;;  %13348 = vmatprep.mubr.msk.f32.mxu1 %vm656_vm2, %v20094_v9  ;;  %v20100_v2 = vld [vmem:[#allocation28_spill] sm:$0xff]  ;;  %v20102_v60 = vld [vmem:[#allocation33_spill] sm:$0xff] }
 0x12a   : > { %v1153_v19 = vpop.f32.mrf.mxu1 }
 0x12b   : > { %v16055_v31 = vadd.f32 %v13097_v5, %v1159_v0  ;;  %v1154_v47 = vadd.f32 %v1153_v19, %v15936_v36  ;;  %v13100_v29 = vpop.f32.mrf.mxu0  ;;  %13399 = vmatmul.mubr.msk.f32.gmra.mxu0 %vm656_vm2, %v20065_v25  ;;  %v20103_v0 = vld [vmem:[#allocation35_spill] sm:$0xff] }
 0x12c   : > { %v13050_v42 = vpop.f32.mrf.mxu1  ;;  %13349 = vmatmul.mubr.msk.f32.gmra.mxu1 %vm656_vm2, %v20095_v28  ;;  %13401 = vmatprep.mubr.msk.f32.mxu0 %vm656_vm2, %v20066_v30  ;;  %v11236_v30 = vld [vmem:[%s20088_s4 + $0x68] sm:$0xff]  ;;  %v2730_v28 = vrot.slane %v15915_v7, 1 }
 0x12d   : > { %v16064_v41 = vadd.f32 %v1528_v52, %v1154_v47  ;;  %v1169_v16 = vadd.f32 %v13050_v42, %v15803_v8  ;;  %v1538_v53 = vpop.f32.mrf.mxu0  ;;  %13351 = vmatprep.mubr.msk.f32.mxu1 %vm656_vm2, %v20096_v33  ;;  %13426 = vmatprep.subr.mxu1 %v11236_v30  ;;  %v3001_v47 = vrot.slane %v15915_v7, 2 }
 0x12e   : > { %v1163_v36 = vpop.f32.mrf.mxu1  ;;  %13427 = vmatpush3.msra.mxu1 %v11236_v30 }
 0x12f   : > { %v16069_v11 = vadd.f32 %v13100_v29, %v1169_v16  ;;  %v1164_v25 = vadd.f32 %v1163_v36, %v15813_v35  ;;  %v13103_v4 = vpop.f32.mrf.mxu0  ;;  %13402 = vmatmul.mubr.msk.f32.gmra.mxu0 %vm656_vm2, %v20068_v24 }
 0x130   : > { %v13053_v48 = vpop.f32.mrf.mxu1  ;;  %13352 = vmatmul.mubr.msk.f32.gmra.mxu1 %vm656_vm2, %v20097_v14  ;;  %13404 = vmatprep.mubr.msk.f32.mxu0 %vm656_vm2, %v20069_v40 }
 0x131   : > { %v16081_v8 = vadd.f32 %v1538_v53, %v1164_v25  ;;  %v1179_v1 = vadd.f32 %v13053_v48, %v15819_v39  ;;  %v16084_v35 = vpop.f32.mrf.mxu0  ;;  %13354 = vmatprep.mubr.msk.f32.mxu1 %vm656_vm2, %v20099_v45  ;;  %v523_v53 = vld [vmem:[%s14915_s17 + $0x1a8] sm:$0x3]  ;;  %v20105_v25 = vld [vmem:[#allocation40_spill] sm:$0xff]  ;;  %v20108_v48 = vld [vmem:[#allocation26_spill] sm:$0xff]  ;;  %s11952_s17 = sshll.u32 %s14863_s25, 7 }
 0x132   : > { %v16088_v24 = vpop.f32.mrf.mxu1  ;;  %v3003_v7 = vrot.slane %v523_v53, 2  ;;  %s19771_s2 = scalar_lea.hbm %s19886_s10, %s11952_s17  ;;  %s19785_s1 = scalar_lea.hbm %s19888_s12, %s11952_s17 }
 0x133   : > { %20098 = vst [vmem:[#allocation46_spill] sm:$0xff] %v16081_v8  ;;  %v16090_v21 = vadd.f32 %v13103_v4, %v1179_v1  ;;  %v13106_v10 = vpop.f32.mrf.mxu0  ;;  %13405 = vmatmul.mubr.msk.f32.gmra.mxu0 %vm656_vm2, %v20071_v22  ;;  %v11235_v22 = vld [vmem:[%s20088_s4 + $0x60] sm:$0xff] }
 0x134   : > { %v13056_v40 = vpop.f32.mrf.mxu1  ;;  %13355 = vmatmul.mubr.msk.f32.gmra.mxu1 %vm656_vm2, %v20100_v2  ;;  %13407 = vmatprep.mubr.msk.f32.mxu0 %vm656_vm2, %v15512_v38  ;;  %v20109_v2 = vld [vmem:[#allocation42_spill] sm:$0xff] }
 0x135   : > { %v1189_v39 = vadd.f32 %v13056_v40, %v15835_v54  ;;  %v16099_v34 = vpop.f32.mrf.mxu0  ;;  %13357 = vmatprep.mubr.msk.f32.mxu1 %vm656_vm2, %v20101_v51  ;;  %13428 = vmatprep.subr.mxu1 %v11235_v22  ;;  %v20110_v51 = vld [vmem:[#allocation31_spill] sm:$0xff] }
 0x136   : > { %v16103_v55 = vpop.f32.mrf.mxu1  ;;  %13429 = vmatpush3.msra.mxu1 %v11235_v22  ;;  %v20111_v22 = vld [vmem:[#allocation41_spill] sm:$0xff] }
 0x137   : > { %v16105_v5 = vadd.f32 %v13106_v10, %v1189_v39  ;;  %v13109_v26 = vpop.f32.mrf.mxu0  ;;  %13408 = vmatmul.mubr.msk.f32.gmra.mxu0 %vm656_vm2, %v15523_v58 }
 0x138   : > { %v13059_v38 = vpop.f32.mrf.mxu1  ;;  %13358 = vmatmul.mubr.msk.f32.gmra.mxu1 %vm656_vm2, %v20102_v60  ;;  %13410 = vmatprep.mubr.msk.f32.mxu0 %vm656_vm2, %v15529_v56  ;;  %v20104_v56 = vld [vmem:[#allocation37_spill] sm:$0xff] }
 0x139   : > { %v1199_v54 = vadd.f32 %v13059_v38, %v15851_v6  ;;  %v16117_v44 = vpop.f32.mrf.mxu0  ;;  %13360 = vmatprep.mubr.msk.f32.mxu1 %vm656_vm2, %v20103_v0  ;;  %v3000_v6 = vrot.slane %v15896_v27, 2 }
 0x13a   : > { %v16121_v58 = vpop.f32.mrf.mxu1 }
 0x13b   : > { %v16123_v52 = vadd.f32 %v13109_v26, %v1199_v54  ;;  %v13112_v9 = vpop.f32.mrf.mxu0  ;;  %13411 = vmatmul.mubr.msk.f32.gmra.mxu0 %vm656_vm2, %v15540_v63  ;;  %v2729_v63 = vrot.slane %v15896_v27, 1  ;;  %v20107_v27 = vld [vmem:[#allocation20_spill] sm:$0xff]  ;;  %v3002_v14 = vsel %vm1242_vm3, %v3000_v6, %v3001_v47  ;;  %v3004_v26 = vsel %vm1242_vm3, %v3001_v47, %v3003_v7 }
 0x13c   : > { %v13062_v19 = vpop.f32.mrf.mxu1  ;;  %13361 = vmatmul.mubr.msk.f32.gmra.mxu1 %vm656_vm2, %v20104_v56  ;;  %13413 = vmatprep.mubr.msk.f32.mxu0 %vm656_vm2, %v15546_v13  ;;  %v11233_v56 = vld [vmem:[%s20088_s4 + $0x50] sm:$0xff] }
 0x13d   : > { %v1209_v29 = vadd.f32 %v13062_v19, %v15867_v32  ;;  %v16134_v42 = vpop.f32.mrf.mxu0  ;;  %13363 = vmatprep.mubr.msk.f32.mxu1 %vm656_vm2, %v15261_v43  ;;  %v11234_v32 = vld [vmem:[%s20088_s4 + $0x58] sm:$0xff]  ;;  %v20106_v43 = vld [vmem:[#allocation27_spill] sm:$0xff]  ;;  %v2731_v45 = vsel %vm573_vm1, %v2729_v63, %v2730_v28  ;;  %v20112_v47 = vld [vmem:[#allocation44_spill] sm:$0xff] }
 0x13e   : > { %v16140_v16 = vpop.f32.mrf.mxu1  ;;  %13430 = vmatprep.subr.mxu1 %v11234_v32  ;;  %v3508_v7 = vld [vmem:[%s20088_s4 + $0x30] sm:$0xff] }
 0x13f   : > { %v16143_v33 = vadd.f32 %v13112_v9, %v1209_v29  ;;  %v13115_v13 = vpop.f32.mrf.mxu0  ;;  %13414 = vmatmul.mubr.msk.f32.gmra.mxu0 %vm656_vm2, %v15555_v15  ;;  %v2732_v15 = vrot.slane %v523_v53, 1  ;;  %13431 = vmatpush3.msra.mxu1 %v11234_v32  ;;  %v3509_v32 = vld [vmem:[%s20088_s4 + $0x38] sm:$0xff] }
 0x140   : > { %v13065_v36 = vpop.f32.mrf.mxu1  ;;  %13364 = vmatmul.mubr.msk.f32.gmra.mxu1 %vm656_vm2, %v20105_v25  ;;  %13416 = vmatprep.mubr.msk.f32.mxu0 %vm656_vm2, %v20106_v43 }
 0x141   : > { %v1219_v4 = vadd.f32 %v13065_v36, %v20107_v27  ;;  %v16155_v30 = vpop.f32.mrf.mxu0  ;;  %13366 = vmatprep.mubr.msk.f32.mxu1 %vm656_vm2, %v20108_v48  ;;  %v2733_v54 = vsel %vm573_vm1, %v2730_v28, %v2732_v15  ;;  %13432 = vmatprep.subr.mxu1 %v11233_v56  ;;  %v3507_v15 = vld [vmem:[%s20088_s4 + $0x28] sm:$0xff] }
 0x142   : > { %v16160_v1 = vpop.f32.mrf.mxu1  ;;  %13433 = vmatpush3.msra.mxu1 %v11233_v56  ;;  %13486 = vmatprep.subr.mxu0 %v3509_v32  ;;  %v3504_v56 = vld [vmem:[%s20088_s4 + $0x10] sm:$0xff] }
 0x143   : > { %v16163_v10 = vadd.f32 %v13115_v13, %v1219_v4  ;;  %v13118_v40 = vpop.f32.mrf.mxu0  ;;  %13417 = vmatmul.mubr.msk.f32.gmra.mxu0 %vm656_vm2, %v20109_v2 }
 0x144   : > { %v13068_v39 = vpop.f32.mrf.mxu1  ;;  %13367 = vmatmul.mubr.msk.f32.gmra.mxu1 %vm656_vm2, %v20110_v51  ;;  %13419 = vmatprep.mubr.msk.f32.mxu0 %vm656_vm2, %v3002_v14 }
 0x145   : > { %v1229_v38 = vadd.f32 %v13068_v39, %v20111_v22  ;;  %v16172_v60 = vpop.f32.mrf.mxu0  ;;  %13369 = vmatprep.mubr.msk.f32.mxu1 %vm656_vm2, %v2731_v45  ;;  %13487 = vmatpush3.msra.mxu0 %v3509_v32  ;;  %v3505_v22 = vld [vmem:[%s20088_s4 + $0x18] sm:$0xff] }
 0x146   : > { %v16176_v0 = vpop.f32.mrf.mxu1  ;;  %13488 = vmatprep.subr.mxu0 %v3508_v7 }
 0x147   : > { %v16178_v9 = vadd.f32 %v13118_v40, %v1229_v38  ;;  %v13121_v19 = vpop.f32.mrf.mxu0  ;;  %13420 = vmatmul.mubr.msk.f32.gmra.mxu0 %vm656_vm2, %v3004_v26  ;;  %v3506_v40 = vld [vmem:[%s20088_s4 + $0x20] sm:$0xff]  ;;  %v14773_v26 = vmov 0.0  }
 0x148   : > { %v13071_v6 = vpop.f32.mrf.mxu1  ;;  %13370 = vmatmul.mubr.msk.f32.gmra.mxu1 %vm656_vm2, %v2733_v54  ;;  %13489 = vmatpush3.msra.mxu0 %v3508_v7  ;;  %3387 = vst.msk [vmem:[#allocation2 + $0x20] sm:$0xff] %vm3381_vm4, %v14773_v26  ;;  %3382 = vst.msk [vmem:[#allocation2] sm:$0xff] %vm3381_vm4, %v14773_v26  ;;  %v11231_v7 = vld [vmem:[%s20088_s4 + $0x40] sm:$0xff] }
 0x149   : > { %v1239_v29 = vadd.f32 %v13071_v6, %v20112_v47  ;;  %v16186_v63 = vpop.f32.mrf.mxu0  ;;  %13490 = vmatprep.subr.mxu0 %v3507_v15  ;;  %3383 = vst.msk [vmem:[#allocation2 + $0x8] sm:$0xff] %vm3381_vm4, %v14773_v26  ;;  %3386 = vst.msk [vmem:[#allocation2 + $0x18] sm:$0xff] %vm3381_vm4, %v14773_v26 }
 0x14a   : > { %20113 = vst [vmem:[#allocation47_spill] sm:$0xff] %v16186_v63  ;;  %v16188_v28 = vpop.f32.mrf.mxu1  ;;  %13491 = vmatpush3.msra.mxu0 %v3507_v15  ;;  %3389 = vst.msk [vmem:[#allocation2 + $0x30] sm:$0xff] %vm3381_vm4, %v14773_v26 }
 0x14b   : > { %v16190_v53 = vadd.f32 %v13121_v19, %v1239_v29  ;;  %v13176_v13 = vpop.f32.mrf.mxu0  ;;  %13492 = vmatprep.subr.mxu0 %v3506_v40  ;;  %3390 = vst.msk [vmem:[#allocation2 + $0x38] sm:$0xff] %vm3381_vm4, %v14773_v26  ;;  %3392 = vst.msk [vmem:[#allocation2 + $0x48] sm:$0xff] %vm3381_vm4, %v14773_v26  ;;  %v11232_v29 = vld [vmem:[%s20088_s4 + $0x48] sm:$0xff] }
 0x14c   : > { %v13126_v36 = vpop.f32.mrf.mxu1  ;;  %3393 = vst.msk [vmem:[#allocation2 + $0x50] sm:$0xff] %vm3381_vm4, %v14773_v26  ;;  %3395 = vst.msk [vmem:[#allocation2 + $0x60] sm:$0xff] %vm3381_vm4, %v14773_v26  ;;  %13493 = vmatpush3.msra.mxu0 %v3506_v40  ;;  %13434 = vmatprep.subr.mxu1 %v11232_v29 }
 0x14d   : > { %v1886_v25 = vadd.f32 %v13126_v36, %v15951_v57  ;;  %v16196_v43 = vpop.f32.mrf.mxu0  ;;  %3396 = vst.msk [vmem:[#allocation2 + $0x68] sm:$0xff] %vm3381_vm4, %v14773_v26  ;;  %3398 = vst.msk [vmem:[#allocation2 + $0x78] sm:$0xff] %vm3381_vm4, %v14773_v26  ;;  %13494 = vmatprep.subr.mxu0 %v3505_v22  ;;  %13435 = vmatpush3.msra.mxu1 %v11232_v29 }
 0x14e   : > { %v16201_v27 = vpop.f32.mrf.mxu1  ;;  %3399 = vst.msk [vmem:[#allocation2 + $0x80] sm:$0xff] %vm3381_vm4, %v14773_v26  ;;  %3401 = vst.msk [vmem:[#allocation2 + $0x90] sm:$0xff] %vm3381_vm4, %v14773_v26  ;;  %13495 = vmatpush3.msra.mxu0 %v3505_v22  ;;  %13436 = vmatprep.subr.mxu1 %v11231_v7 }
 0x14f   : > { %v16203_v4 = vadd.f32 %v13176_v13, %v1886_v25  ;;  %v13179_v48 = vpop.f32.mrf.mxu0  ;;  %3402 = vst.msk [vmem:[#allocation2 + $0x98] sm:$0xff] %vm3381_vm4, %v14773_v26  ;;  %3404 = vst.msk [vmem:[#allocation2 + $0xa8] sm:$0xff] %vm3381_vm4, %v14773_v26  ;;  %13496 = vmatprep.subr.mxu0 %v3504_v56  ;;  %v3503_v13 = vld [vmem:[%s20088_s4 + $0x8] sm:$0xff]  ;;  %13437 = vmatpush3.msra.mxu1 %v11231_v7 }
 0x150   : > { %v13129_v14 = vpop.f32.mrf.mxu1  ;;  %3405 = vst.msk [vmem:[#allocation2 + $0xb0] sm:$0xff] %vm3381_vm4, %v14773_v26  ;;  %3407 = vst.msk [vmem:[#allocation2 + $0xc0] sm:$0xff] %vm3381_vm4, %v14773_v26  ;;  %13497 = vmatpush3.msra.mxu0 %v3504_v56 }
 0x151   : > { %v1888_v57 = vadd.f32 %v13129_v14, %v15965_v20  ;;  %v16209_v45 = vpop.f32.mrf.mxu0  ;;  %3408 = vst.msk [vmem:[#allocation2 + $0xc8] sm:$0xff] %vm3381_vm4, %v14773_v26  ;;  %3410 = vst.msk [vmem:[#allocation2 + $0xd8] sm:$0xff] %vm3381_vm4, %v14773_v26  ;;  %13498 = vmatprep.subr.mxu0 %v3503_v13 }
 0x152   : > { %v16214_v2 = vpop.f32.mrf.mxu1  ;;  %3411 = vst.msk [vmem:[#allocation2 + $0xe0] sm:$0xff] %vm3381_vm4, %v14773_v26  ;;  %3413 = vst.msk [vmem:[#allocation2 + $0xf0] sm:$0xff] %vm3381_vm4, %v14773_v26  ;;  %13499 = vmatpush3.msra.mxu0 %v3503_v13 }
 0x153   : > { %v16216_v39 = vadd.f32 %v13179_v48, %v1888_v57  ;;  %v16218_v51 = vpop.f32.mrf.mxu0  ;;  %3414 = vst.msk [vmem:[#allocation2 + $0xf8] sm:$0xff] %vm3381_vm4, %v14773_v26  ;;  %3416 = vst.msk [vmem:[#allocation2 + $0x108] sm:$0xff] %vm3381_vm4, %v14773_v26  ;;  %v3502_v48 = vld [vmem:[%s20088_s4] sm:$0xff] }
 0x154   : > { %3417 = vst.msk [vmem:[#allocation2 + $0x110] sm:$0xff] %vm3381_vm4, %v14773_v26  ;;  %3419 = vst.msk [vmem:[#allocation2 + $0x120] sm:$0xff] %vm3381_vm4, %v14773_v26  ;;  %v13132_v20 = vpop.f32.mrf.mxu1  ;;  %13500 = vmatprep.subr.mxu0 %v3502_v48  ;;  %v3470_v57 = vld [vmem:[#allocation2] sm:$0xff] }
 0x155   : > { %3420 = vst.msk [vmem:[#allocation2 + $0x128] sm:$0xff] %vm3381_vm4, %v14773_v26  ;;  %3422 = vst.msk [vmem:[#allocation2 + $0x138] sm:$0xff] %vm3381_vm4, %v14773_v26  ;;  %v1890_v38 = vadd.f32 %v13132_v20, %v15979_v59  ;;  %v16278_v54 = vpop.f32.mrf.mxu0  ;;  %13501 = vmatpush3.msra.mxu0 %v3502_v48  ;;  %13502 = vmatprep.mubr.msk.f32.mxu0 %vm3381_vm4, %v3470_v57 }
 0x156   : > { %3423 = vst.msk [vmem:[#allocation2 + $0x140] sm:$0xff] %vm3381_vm4, %v14773_v26  ;;  %3425 = vst.msk [vmem:[#allocation2 + $0x150] sm:$0xff] %vm3381_vm4, %v14773_v26  ;;  %v16280_v19 = vpop.f32.mrf.mxu1 }
 0x157   : > { %3426 = vst.msk [vmem:[#allocation2 + $0x158] sm:$0xff] %vm3381_vm4, %v14773_v26  ;;  %3428 = vst.msk [vmem:[#allocation2 + $0x168] sm:$0xff] %vm3381_vm4, %v14773_v26  ;;  %v16286_v6 = vadd.f32 %v16218_v51, %v1890_v38  ;;  %v13185_v47 = vpop.f32.mrf.mxu0 }
 0x158   : > { %3429 = vst.msk [vmem:[#allocation2 + $0x170] sm:$0xff] %vm3381_vm4, %v14773_v26  ;;  %3431 = vst.msk [vmem:[#allocation2 + $0x180] sm:$0xff] %vm3381_vm4, %v14773_v26  ;;  %v13135_v59 = vpop.f32.mrf.mxu1 }
 0x159   : > { %3432 = vst.msk [vmem:[#allocation2 + $0x188] sm:$0xff] %vm3381_vm4, %v14773_v26  ;;  %3434 = vst.msk [vmem:[#allocation2 + $0x198] sm:$0xff] %vm3381_vm4, %v14773_v26  ;;  %v1892_v32 = vadd.f32 %v13135_v59, %v15993_v17  ;;  %v16295_v36 = vpop.f32.mrf.mxu0  ;;  %v3510_v17 = vld [vmem:[#allocation2 + $0x1] sm:$0xff] }
 0x15a   : > { %3435 = vst.msk [vmem:[#allocation2 + $0x1a0] sm:$0xff] %vm3381_vm4, %v14773_v26  ;;  %v16297_v25 = vpop.f32.mrf.mxu1  ;;  %13438 = vmatprep.mubr.msk.f32.mxu1 %vm3381_vm4, %v3510_v17 }
 0x15b   : > { %3388 = vst.msk [vmem:[#allocation2 + $0x28] sm:$0x3] %vm3384_vm5, %v14773_v26  ;;  %3385 = vst.msk [vmem:[#allocation2 + $0x10] sm:$0x3] %vm3384_vm5, %v14773_v26  ;;  %v16305_v15 = vadd.f32 %v13185_v47, %v1892_v32  ;;  %v13188_v14 = vpop.f32.mrf.mxu0 }
 0x15c   : > { %3391 = vst.msk [vmem:[#allocation2 + $0x40] sm:$0x3] %vm3384_vm5, %v14773_v26  ;;  %3394 = vst.msk [vmem:[#allocation2 + $0x58] sm:$0x3] %vm3384_vm5, %v14773_v26  ;;  %v13138_v40 = vpop.f32.mrf.mxu1 }
 0x15d   : > { %3397 = vst.msk [vmem:[#allocation2 + $0x70] sm:$0x3] %vm3384_vm5, %v14773_v26  ;;  %3400 = vst.msk [vmem:[#allocation2 + $0x88] sm:$0x3] %vm3384_vm5, %v14773_v26  ;;  %v1894_v20 = vadd.f32 %v13138_v40, %v16007_v61  ;;  %v16309_v22 = vpop.f32.mrf.mxu0 }
 0x15e   : > { %3403 = vst.msk [vmem:[#allocation2 + $0xa0] sm:$0x3] %vm3384_vm5, %v14773_v26  ;;  %3406 = vst.msk [vmem:[#allocation2 + $0xb8] sm:$0x3] %vm3384_vm5, %v14773_v26  ;;  %v16312_v38 = vpop.f32.mrf.mxu1 }
 0x15f   : > { %3409 = vst.msk [vmem:[#allocation2 + $0xd0] sm:$0x3] %vm3384_vm5, %v14773_v26  ;;  %3412 = vst.msk [vmem:[#allocation2 + $0xe8] sm:$0x3] %vm3384_vm5, %v14773_v26  ;;  %v16316_v56 = vadd.f32 %v13188_v14, %v1894_v20  ;;  %v13191_v47 = vpop.f32.mrf.mxu0 }
 0x160   : > { %3415 = vst.msk [vmem:[#allocation2 + $0x100] sm:$0x3] %vm3384_vm5, %v14773_v26  ;;  %3418 = vst.msk [vmem:[#allocation2 + $0x118] sm:$0x3] %vm3384_vm5, %v14773_v26  ;;  %v13141_v29 = vpop.f32.mrf.mxu1 }
 0x161   : > { %3421 = vst.msk [vmem:[#allocation2 + $0x130] sm:$0x3] %vm3384_vm5, %v14773_v26  ;;  %3424 = vst.msk [vmem:[#allocation2 + $0x148] sm:$0x3] %vm3384_vm5, %v14773_v26  ;;  %v1896_v59 = vadd.f32 %v13141_v29, %v16024_v46  ;;  %v16319_v13 = vpop.f32.mrf.mxu0  ;;  %v11310_v46 = vld [vmem:[%s20088_s4 + $0xb8] sm:$0xff] }
 0x162   : > { %3427 = vst.msk [vmem:[#allocation2 + $0x160] sm:$0x3] %vm3384_vm5, %v14773_v26  ;;  %3430 = vst.msk [vmem:[#allocation2 + $0x178] sm:$0x3] %vm3384_vm5, %v14773_v26  ;;  %v3511_v51 = vld [vmem:[#allocation2 + $0x9] sm:$0xff]  ;;  %v16321_v61 = vpop.f32.mrf.mxu1  ;;  %13550 = vmatprep.subr.mxu1 %v11310_v46 }
 0x163   : > { %3433 = vst.msk [vmem:[#allocation2 + $0x190] sm:$0x3] %vm3384_vm5, %v14773_v26  ;;  %3436 = vst.msk [vmem:[#allocation2 + $0x1a8] sm:$0x3] %vm3384_vm5, %v14773_v26  ;;  %v3471_v26 = vld [vmem:[#allocation2 + $0x8] sm:$0xff]  ;;  %13439 = vmatmul.mubr.msk.f32.vlgmr.msra.gmra.mxu1 %vm3381_vm4, %v3511_v51  ;;  %v16323_v32 = vadd.f32 %v13191_v47, %v1896_v59  ;;  %v13194_v7 = vpop.f32.mrf.mxu0 }
 0x164   : > { %13503 = vmatmul.mubr.msk.f32.vlgmr.msra.gmra.mxu0 %vm3381_vm4, %v3471_v26  ;;  %20114 = vst [vmem:[#allocation48_spill] sm:$0xff] %v16316_v56  ;;  %v13144_v48 = vpop.f32.mrf.mxu1  ;;  %13551 = vmatpush3.msra.mxu1 %v11310_v46 }
 0x165   : > { %20115 = vst [vmem:[#allocation49_spill] sm:$0xff] %v16323_v32  ;;  %v1898_v17 = vadd.f32 %v13144_v48, %v16038_v23  ;;  %v16326_v57 = vpop.f32.mrf.mxu0 }
 0x166   : > { %v16328_v40 = vpop.f32.mrf.mxu1 }
 0x167   : > { %v16330_v14 = vadd.f32 %v13194_v7, %v1898_v17  ;;  %v13197_v51 = vpop.f32.mrf.mxu0 }
 0x168   : > { %v13147_v26 = vpop.f32.mrf.mxu1 }
 0x169   : > { %20116 = vst [vmem:[#allocation50_spill] sm:$0xff] %v16330_v14  ;;  %v1900_v20 = vadd.f32 %v13147_v26, %v16055_v31  ;;  %v16336_v47 = vpop.f32.mrf.mxu0  ;;  %v11309_v31 = vld [vmem:[%s20088_s4 + $0xb0] sm:$0xff] }
 0x16a   : > { %20117 = vst [vmem:[#allocation51_spill] sm:$0xff] %v16336_v47  ;;  %v16338_v29 = vpop.f32.mrf.mxu1  ;;  %13552 = vmatprep.subr.mxu1 %v11309_v31 }
 0x16b   : > { %v16340_v23 = vadd.f32 %v13197_v51, %v1900_v20  ;;  %v13200_v59 = vpop.f32.mrf.mxu0  ;;  %13553 = vmatpush3.msra.mxu1 %v11309_v31 }
 0x16c   : > { %v13150_v48 = vpop.f32.mrf.mxu1 }
 0x16d   : > { %20118 = vst [vmem:[#allocation24_spill] sm:$0xff] %v16340_v23  ;;  %v1902_v7 = vadd.f32 %v13150_v48, %v16069_v11  ;;  %v16343_v17 = vpop.f32.mrf.mxu0 }
 0x16e   : > { %20119 = vst [vmem:[#allocation29_spill] sm:$0xff] %v16343_v17  ;;  %v16345_v63 = vpop.f32.mrf.mxu1 }
 0x16f   : > { %20120 = vst [vmem:[#allocation32_spill] sm:$0xff] %v16345_v63  ;;  %v16347_v14 = vadd.f32 %v13200_v59, %v1902_v7  ;;  %v13203_v32 = vpop.f32.mrf.mxu0 }
 0x170   : > { %v13153_v46 = vpop.f32.mrf.mxu1 }
 0x171   : > { %20121 = vst [vmem:[#allocation34_spill] sm:$0xff] %v16347_v14  ;;  %v1904_v51 = vadd.f32 %v13153_v46, %v16090_v21  ;;  %v16353_v26 = vpop.f32.mrf.mxu0  ;;  %v11308_v21 = vld [vmem:[%s20088_s4 + $0xa8] sm:$0xff] }
 0x172   : > { %20122 = vst [vmem:[#allocation36_spill] sm:$0xff] %v16353_v26  ;;  %v16355_v20 = vpop.f32.mrf.mxu1  ;;  %13554 = vmatprep.subr.mxu1 %v11308_v21 }
 0x173   : > { %20123 = vst [vmem:[#allocation38_spill] sm:$0xff] %v16355_v20  ;;  %v16357_v11 = vadd.f32 %v13203_v32, %v1904_v51  ;;  %v13206_v48 = vpop.f32.mrf.mxu0  ;;  %13555 = vmatpush3.msra.mxu1 %v11308_v21 }
 0x174   : > { %v13156_v23 = vpop.f32.mrf.mxu1 }
 0x175   : > { %20124 = vst [vmem:[#allocation39_spill] sm:$0xff] %v16357_v11  ;;  %v1906_v59 = vadd.f32 %v13156_v23, %v16105_v5  ;;  %v16360_v7 = vpop.f32.mrf.mxu0 }
 0x176   : > { %20125 = vst [vmem:[#allocation10_spill] sm:$0xff] %v16360_v7  ;;  %v16362_v14 = vpop.f32.mrf.mxu1 }
 0x177   : > { %20126 = vst [vmem:[#allocation11_spill] sm:$0xff] %v16362_v14  ;;  %v16364_v17 = vadd.f32 %v13206_v48, %v1906_v59  ;;  %v13209_v63 = vpop.f32.mrf.mxu0 }
 0x178   : > { %v13159_v31 = vpop.f32.mrf.mxu1 }
 0x179   : > { %20127 = vst [vmem:[#allocation13_spill] sm:$0xff] %v16364_v17  ;;  %v1908_v32 = vadd.f32 %v13159_v31, %v16123_v52  ;;  %v16370_v46 = vpop.f32.mrf.mxu0  ;;  %v11307_v52 = vld [vmem:[%s20088_s4 + $0xa0] sm:$0xff] }
 0x17a   : > { %20128 = vst [vmem:[#allocation15_spill] sm:$0xff] %v16370_v46  ;;  %v16372_v51 = vpop.f32.mrf.mxu1  ;;  %13556 = vmatprep.subr.mxu1 %v11307_v52 }
 0x17b   : > { %20129 = vst [vmem:[#allocation17_spill] sm:$0xff] %v16372_v51  ;;  %v16374_v5 = vadd.f32 %v13209_v63, %v1908_v32  ;;  %v13212_v23 = vpop.f32.mrf.mxu0  ;;  %13557 = vmatpush3.msra.mxu1 %v11307_v52  ;;  %v11345_v51 = vld [vmem:[%s20088_s4 + $0xd0] sm:$0xff] }
 0x17c   : > { %v13162_v7 = vpop.f32.mrf.mxu1 }
 0x17d   : > { %20130 = vst [vmem:[#allocation19_spill] sm:$0xff] %v16374_v5  ;;  %v1910_v48 = vadd.f32 %v13162_v7, %v16143_v33  ;;  %v16377_v59 = vpop.f32.mrf.mxu0 }
 0x17e   : > { %20131 = vst [vmem:[#allocation21_spill] sm:$0xff] %v16377_v59  ;;  %v16379_v17 = vpop.f32.mrf.mxu1 }
 0x17f   : > { %20132 = vst [vmem:[#allocation23_spill] sm:$0xff] %v16379_v17  ;;  %v16381_v11 = vadd.f32 %v13212_v23, %v1910_v48  ;;  %v13215_v14 = vpop.f32.mrf.mxu0 }
 0x180   : > { %v13165_v21 = vpop.f32.mrf.mxu1 }
 0x181   : > { %20133 = vst [vmem:[#allocation25_spill] sm:$0xff] %v16381_v11  ;;  %v1912_v63 = vadd.f32 %v13165_v21, %v16163_v10  ;;  %v16387_v31 = vpop.f32.mrf.mxu0  ;;  %v11306_v10 = vld [vmem:[%s20088_s4 + $0x98] sm:$0xff] }
 0x182   : > { %20134 = vst [vmem:[#allocation28_spill] sm:$0xff] %v16387_v31  ;;  %v16389_v32 = vpop.f32.mrf.mxu1  ;;  %13558 = vmatprep.subr.mxu1 %v11306_v10 }
 0x183   : > { %20135 = vst [vmem:[#allocation30_spill] sm:$0xff] %v16389_v32  ;;  %v16391_v33 = vadd.f32 %v13215_v14, %v1912_v63  ;;  %v13218_v7 = vpop.f32.mrf.mxu0  ;;  %13559 = vmatpush3.msra.mxu1 %v11306_v10 }
 0x184   : > { %v13168_v59 = vpop.f32.mrf.mxu1 }
 0x185   : > { %20136 = vst [vmem:[#allocation33_spill] sm:$0xff] %v16391_v33  ;;  %v1914_v23 = vadd.f32 %v13168_v59, %v16178_v9  ;;  %v16394_v48 = vpop.f32.mrf.mxu0 }
 0x186   : > { %20137 = vst [vmem:[#allocation35_spill] sm:$0xff] %v16394_v48  ;;  %v16396_v11 = vpop.f32.mrf.mxu1 }
 0x187   : > { %20138 = vst [vmem:[#allocation37_spill] sm:$0xff] %v16396_v11  ;;  %v16398_v5 = vadd.f32 %v13218_v7, %v1914_v23  ;;  %v13221_v17 = vpop.f32.mrf.mxu0 }
 0x188   : > { %v13171_v46 = vpop.f32.mrf.mxu1 }
 0x189   : > { %20139 = vst [vmem:[#allocation40_spill] sm:$0xff] %v16398_v5  ;;  %v1916_v52 = vadd.f32 %v13171_v46, %v16190_v53  ;;  %v16404_v14 = vpop.f32.mrf.mxu0  ;;  %v11305_v53 = vld [vmem:[%s20088_s4 + $0x90] sm:$0xff]  ;;  %v11350_v46 = vld [vmem:[%s20088_s4 + $0xf8] sm:$0xff]  ;;  %v11348_v5 = vld [vmem:[%s20088_s4 + $0xe8] sm:$0xff] }
 0x18a   : > { %20140 = vst [vmem:[#allocation27_spill] sm:$0xff] %v16404_v14  ;;  %v16406_v21 = vpop.f32.mrf.mxu1  ;;  %13560 = vmatprep.subr.mxu1 %v11305_v53  ;;  %13614 = vmatprep.subr.mxu0 %v11350_v46 }
 0x18b   : > { %20141 = vst [vmem:[#allocation20_spill] sm:$0xff] %v16406_v21  ;;  %v16408_v9 = vadd.f32 %v13221_v17, %v1916_v52  ;;  %v16410_v59 = vpop.f32.mrf.mxu0  ;;  %13561 = vmatpush3.msra.mxu1 %v11305_v53  ;;  %13615 = vmatpush3.msra.mxu0 %v11350_v46  ;;  %v11349_v52 = vld [vmem:[%s20088_s4 + $0xf0] sm:$0xff]  ;;  %v11304_v53 = vld [vmem:[%s20088_s4 + $0x88] sm:$0xff]  ;;  %v11347_v46 = vld [vmem:[%s20088_s4 + $0xe0] sm:$0xff] }
 0x18c   : > { %v16412_v63 = vpop.f32.mrf.mxu1  ;;  %13616 = vmatprep.subr.mxu0 %v11349_v52  ;;  %13562 = vmatprep.subr.mxu1 %v11304_v53 }
 0x18d   : > { %20142 = vst [vmem:[#allocation26_spill] sm:$0xff] %v16408_v9  ;;  %v16414_v7 = vpop.f32.mrf.mxu0  ;;  %13617 = vmatpush3.msra.mxu0 %v11349_v52  ;;  %v11303_v52 = vld [vmem:[%s20088_s4 + $0x80] sm:$0xff]  ;;  %13563 = vmatpush3.msra.mxu1 %v11304_v53 }
 0x18e   : > { %v16416_v23 = vpop.f32.mrf.mxu1  ;;  %13618 = vmatprep.subr.mxu0 %v11348_v5  ;;  %13564 = vmatprep.subr.mxu1 %v11303_v52 }
 0x18f   : > { %v16418_v48 = vpop.f32.mrf.mxu0  ;;  %13619 = vmatpush3.msra.mxu0 %v11348_v5  ;;  %v11346_v5 = vld [vmem:[%s20088_s4 + $0xd8] sm:$0xff]  ;;  %13565 = vmatpush3.msra.mxu1 %v11303_v52  ;;  %v11343_v52 = vld [vmem:[%s20088_s4 + $0xc0] sm:$0xff] }
 0x190   : > { %v16426_v17 = vpop.f32.mrf.mxu1  ;;  %13620 = vmatprep.subr.mxu0 %v11347_v46 }
 0x191   : > { %v16428_v10 = vpop.f32.mrf.mxu0  ;;  %13621 = vmatpush3.msra.mxu0 %v11347_v46  ;;  %v11344_v46 = vld [vmem:[%s20088_s4 + $0xc8] sm:$0xff] }
 0x192   : > { %v16433_v9 = vpop.f32.mrf.mxu1  ;;  %13622 = vmatprep.subr.mxu0 %v11346_v5 }
 0x193   : > { %v16435_v14 = vpop.f32.mrf.mxu0  ;;  %13623 = vmatpush3.msra.mxu0 %v11346_v5  ;;  %v11390_v5 = vld [vmem:[%s20088_s4 + $0x138] sm:$0xff] }
 0x194   : > { %v16440_v33 = vpop.f32.mrf.mxu1  ;;  %13624 = vmatprep.subr.mxu0 %v11345_v51  ;;  %13678 = vmatprep.subr.mxu1 %v11390_v5 }
 0x195   : > { %v16442_v21 = vpop.f32.mrf.mxu0  ;;  %13625 = vmatpush3.msra.mxu0 %v11345_v51 }
 0x196   : > { %v16453_v11 = vpop.f32.mrf.mxu1  ;;  %13626 = vmatprep.subr.mxu0 %v11344_v46 }
 0x197   : > { %v16455_v31 = vpop.f32.mrf.mxu0  ;;  %13627 = vmatpush3.msra.mxu0 %v11344_v46 }
 0x198   : > { %20143 = vst [vmem:[#allocation42_spill] sm:$0xff] %v16455_v31  ;;  %v16460_v32 = vpop.f32.mrf.mxu1  ;;  %13628 = vmatprep.subr.mxu0 %v11343_v52 }
 0x199   : > { %v16465_v26 = vpop.f32.mrf.mxu0  ;;  %13629 = vmatpush3.msra.mxu0 %v11343_v52 }
 0x19a   : > { %20144 = vst [vmem:[#allocation31_spill] sm:$0xff] %v16465_v26  ;;  %v16467_v20 = vpop.f32.mrf.mxu1 }
 0x19b   : > { %20145 = vst [vmem:[#allocation41_spill] sm:$0xff] %v16467_v20  ;;  %v16469_v53 = vpop.f32.mrf.mxu0 }
 0x19c   : > { %20146 = vst [vmem:[#allocation44_spill] sm:$0xff] %v16469_v53  ;;  %v16474_v8 = vpop.f32.mrf.mxu1 }
 0x19d   : > { %20147 = vst [vmem:[#allocation52_spill] sm:$0xff] %v16474_v8  ;;  %v16476_v56 = vpop.f32.mrf.mxu0 }
 0x19e   : > { %20148 = vst [vmem:[#allocation53_spill] sm:$0xff] %v16476_v56  ;;  %v16484_v53 = vpop.f32.mrf.mxu1 }
 0x19f   : > { %20149 = vst [vmem:[#allocation54_spill] sm:$0xff] %v16484_v53  ;;  %v16486_v51 = vpop.f32.mrf.mxu0 }
 0x1a0   : > { %20150 = vst [vmem:[#allocation55_spill] sm:$0xff] %v16486_v51  ;;  %v16488_v26 = vpop.f32.mrf.mxu1 }
 0x1a1   : > { %20151 = vst [vmem:[#allocation56_spill] sm:$0xff] %v16488_v26  ;;  %v16490_v8 = vpop.f32.mrf.mxu0 }
 0x1a2   : > { %20152 = vst [vmem:[#allocation57_spill] sm:$0xff] %v16490_v8  ;;  %v16492_v46 = vpop.f32.mrf.mxu1 }
 0x1a3   : > { %20153 = vst [vmem:[#allocation58_spill] sm:$0xff] %v16492_v46  ;;  %v16494_v56 = vpop.f32.mrf.mxu0 }
 0x1a4   : > { %20154 = vst [vmem:[#allocation59_spill] sm:$0xff] %v16494_v56  ;;  %v16496_v31 = vpop.f32.mrf.mxu1 }
 0x1a5   : > { %20155 = vst [vmem:[#allocation60_spill] sm:$0xff] %v16496_v31  ;;  %v16498_v47 = vpop.f32.mrf.mxu0 }
 0x1a6   : > { %20156 = vst [vmem:[#allocation61_spill] sm:$0xff] %v16498_v47  ;;  %v16500_v20 = vpop.f32.mrf.mxu1 }
 0x1a7   : > { %20157 = vst [vmem:[#allocation62_spill] sm:$0xff] %v16500_v20  ;;  %v16502_v53 = vpop.f32.mrf.mxu0 }
 0x1a8   : > { %20158 = vst [vmem:[#allocation63_spill] sm:$0xff] %v16502_v53  ;;  %v16504_v5 = vpop.f32.mrf.mxu1 }
 0x1a9   : > { %20159 = vst [vmem:[#allocation64_spill] sm:$0xff] %v16504_v5  ;;  %v16506_v51 = vpop.f32.mrf.mxu0 }
 0x1aa   : > { %20160 = vst [vmem:[#allocation65_spill] sm:$0xff] %v16506_v51  ;;  %v16508_v52 = vpop.f32.mrf.mxu1 }
 0x1ab   : > { %20161 = vst [vmem:[#allocation66_spill] sm:$0xff] %v16508_v52  ;;  %v16510_v26 = vpop.f32.mrf.mxu0 }
 0x1ac   : > { %20162 = vst [vmem:[#allocation67_spill] sm:$0xff] %v16510_v26  ;;  %v16512_v8 = vpop.f32.mrf.mxu1 }
 0x1ad   : > { %20163 = vst [vmem:[#allocation68_spill] sm:$0xff] %v16512_v8  ;;  %v16514_v46 = vpop.f32.mrf.mxu0 }
 0x1ae   : > { %20164 = vst [vmem:[#allocation69_spill] sm:$0xff] %v16514_v46  ;;  %v16516_v56 = vpop.f32.mrf.mxu1 }
 0x1af   : > { %20165 = vst [vmem:[#allocation70_spill] sm:$0xff] %v16516_v56  ;;  %v16518_v31 = vpop.f32.mrf.mxu0 }
 0x1b0   : > { %20166 = vst [vmem:[#allocation71_spill] sm:$0xff] %v16518_v31  ;;  %v16520_v47 = vpop.f32.mrf.mxu1 }
 0x1b1   : > { %20167 = vst [vmem:[#allocation72_spill] sm:$0xff] %v16520_v47  ;;  %v16522_v20 = vpop.f32.mrf.mxu0 }
 0x1b2   : > { %20168 = vst [vmem:[#allocation73_spill] sm:$0xff] %v16522_v20  ;;  %v16524_v53 = vpop.f32.mrf.mxu1 }
 0x1b3   : > { %20169 = vst [vmem:[#allocation74_spill] sm:$0xff] %v16524_v53  ;;  %v16526_v5 = vpop.f32.mrf.mxu0 }
 0x1b4   : > { %20170 = vst [vmem:[#allocation75_spill] sm:$0xff] %v16526_v5  ;;  %v16528_v51 = vpop.f32.mrf.mxu1 }
 0x1b5   : > { %20171 = vst [vmem:[#allocation76_spill] sm:$0xff] %v16528_v51  ;;  %v16530_v52 = vpop.f32.mrf.mxu0 }
 0x1b6   : > { %20172 = vst [vmem:[#allocation77_spill] sm:$0xff] %v16530_v52  ;;  %v16532_v26 = vpop.f32.mrf.mxu1 }
 0x1b7   : > { %20173 = vst [vmem:[#allocation78_spill] sm:$0xff] %v16532_v26  ;;  %v16534_v8 = vpop.f32.mrf.mxu0 }
 0x1b8   : > { %20174 = vst [vmem:[#allocation79_spill] sm:$0xff] %v16534_v8  ;;  %v16536_v46 = vpop.f32.mrf.mxu1 }
 0x1b9   : > { %20175 = vst [vmem:[#allocation80_spill] sm:$0xff] %v16536_v46  ;;  %v16538_v56 = vpop.f32.mrf.mxu0 }
 0x1ba   : > { %20176 = vst [vmem:[#allocation81_spill] sm:$0xff] %v16538_v56  ;;  %v16540_v31 = vpop.f32.mrf.mxu1  ;;  %v1885_v56 = vadd.f32 %v16201_v27, %v15960_v62  ;;  %v20191_v27 = vld [vmem:[#allocation14_spill] sm:$0xff] }
 0x1bb   : > { %20177 = vst [vmem:[#allocation82_spill] sm:$0xff] %v16540_v31  ;;  %v16542_v47 = vpop.f32.mrf.mxu0 }
 0x1bc   : > { %20178 = vst [vmem:[#allocation83_spill] sm:$0xff] %v16542_v47  ;;  %v16544_v20 = vpop.f32.mrf.mxu1 }
 0x1bd   : > { %20179 = vst [vmem:[#allocation84_spill] sm:$0xff] %v16544_v20  ;;  %v16546_v53 = vpop.f32.mrf.mxu0 }
 0x1be   : > { %20180 = vst [vmem:[#allocation85_spill] sm:$0xff] %v16546_v53  ;;  %v16548_v5 = vpop.f32.mrf.mxu1 }
 0x1bf   : > { %20181 = vst [vmem:[#allocation86_spill] sm:$0xff] %v16548_v5  ;;  %v16550_v51 = vpop.f32.mrf.mxu0  ;;  %v20190_v5 = vld [vmem:[#allocation12_spill] sm:$0xff] }
 0x1c0   : > { %20182 = vst [vmem:[#allocation87_spill] sm:$0xff] %v16550_v51  ;;  %v16552_v52 = vpop.f32.mrf.mxu1  ;;  %v1174_v51 = vadd.f32 %v16088_v24, %v20190_v5 }
 0x1c1   : > { %20183 = vst [vmem:[#allocation88_spill] sm:$0xff] %v16552_v52  ;;  %v16554_v26 = vpop.f32.mrf.mxu0  ;;  %v2157_v52 = vadd.f32 %v16196_v43, %v1885_v56  ;;  %v20194_v43 = vld [vmem:[#allocation22_spill] sm:$0xff] }
 0x1c2   : > { %20184 = vst [vmem:[#allocation89_spill] sm:$0xff] %v16554_v26  ;;  %v16556_v8 = vpop.f32.mrf.mxu1  ;;  %v1887_v26 = vadd.f32 %v16214_v2, %v15974_v49  ;;  %v1214_v56 = vadd.f32 %v16160_v1, %v20194_v43  ;;  %v2431_v1 = vadd.f32 %v16426_v17, %v16216_v39 }
 0x1c3   : > { %20185 = vst [vmem:[#allocation90_spill] sm:$0xff] %v16556_v8  ;;  %v16560_v31 = vpop.f32.mrf.mxu0  ;;  %v2429_v8 = vadd.f32 %v16412_v63, %v16203_v4  ;;  %v2428_v49 = vadd.f32 %v16416_v23, %v2157_v52  ;;  %v20195_v4 = vld [vmem:[#allocation43_spill] sm:$0xff] }
 0x1c4   : > { %20186 = vst [vmem:[#allocation91_spill] sm:$0xff] %v16560_v31  ;;  %v16562_v47 = vpop.f32.mrf.mxu1  ;;  %v1184_v31 = vadd.f32 %v16103_v55, %v20191_v27  ;;  %v1224_v63 = vadd.f32 %v16176_v0, %v20195_v4  ;;  %v1889_v55 = vadd.f32 %v16280_v19, %v15988_v12 }
 0x1c5   : > { %20187 = vst [vmem:[#allocation92_spill] sm:$0xff] %v16562_v47  ;;  %v16564_v20 = vpop.f32.mrf.mxu0  ;;  %v20192_v47 = vld [vmem:[#allocation16_spill] sm:$0xff] }
 0x1c6   : > { %20188 = vst [vmem:[#allocation93_spill] sm:$0xff] %v16564_v20  ;;  %v16566_v53 = vpop.f32.mrf.mxu1  ;;  %v1194_v20 = vadd.f32 %v16121_v58, %v20192_v47  ;;  %v16597_v58 = vadd.f32 %v16084_v35, %v1174_v51  ;;  %v2697_v47 = vadd.f32 %v16410_v59, %v2429_v8  ;;  %v1891_v35 = vadd.f32 %v16297_v25, %v16002_v37 }
 0x1c7   : > { %20189 = vst [vmem:[#allocation94_spill] sm:$0xff] %v16566_v53  ;;  %v16575_v62 = vpop.f32.mrf.mxu0  ;;  %v20193_v53 = vld [vmem:[#allocation18_spill] sm:$0xff]  ;;  %v2696_v8 = vadd.f32 %v16414_v7, %v2428_v49  ;;  %v1895_v37 = vadd.f32 %v16321_v61, %v16033_v18  ;;  %v2433_v61 = vadd.f32 %v16440_v33, %v16286_v6  ;;  %v2435_v33 = vadd.f32 %v16460_v32, %v16305_v15 }
 0x1c8   : > { %v1204_v46 = vadd.f32 %v16140_v16, %v20193_v53  ;;  %v16583_v24 = vpop.f32.mrf.mxu1  ;;  %v2159_v16 = vadd.f32 %v16209_v45, %v1887_v26  ;;  %v16604_v53 = vadd.f32 %v16099_v34, %v1184_v31  ;;  %v16607_v0 = vadd.f32 %v16117_v44, %v1194_v20  ;;  %v20197_v20 = vld [vmem:[#allocation45_spill] sm:$0xff] }
 0x1c9   : > { %v16588_v2 = vpop.f32.mrf.mxu0  ;;  %v16615_v45 = vadd.f32 %v16155_v30, %v1214_v56  ;;  %v16620_v31 = vadd.f32 %v16172_v60, %v1224_v63  ;;  %v2161_v44 = vadd.f32 %v16278_v54, %v1889_v55  ;;  %v16630_v30 = vld [vmem:[%s20196_s6] ss:$0 sm:$0xff]  ;;  %v2699_v60 = vadd.f32 %v16418_v48, %v2431_v1  ;;  %v20199_v55 = vld [vmem:[#allocation41_spill] sm:$0xff] }
 0x1ca   : > { %v16594_v5 = vpop.f32.mrf.mxu1  ;;  %v16610_v12 = vadd.f32 %v16134_v42, %v1204_v46  ;;  %v2430_v39 = vadd.f32 %v16433_v9, %v2159_v16  ;;  %v1893_v42 = vadd.f32 %v16312_v38, %v16019_v3  ;;  %v16634_v9 = vadd.f32 %v16188_v28, %v20197_v20  ;;  %v16640_v3 = vld [vmem:[%s20088_s4 + $0x178] sm:$0xff]  ;;  %v16651_v48 = vld [vmem:[%s20198_s7] ss:$0 sm:$0xff] }
 0x1cb   : > { %v13376_v23 = vpop.f32.mrf.mxu0  ;;  %v2163_v18 = vadd.f32 %v16295_v36, %v1891_v35  ;;  %v1897_v38 = vadd.f32 %v16328_v40, %v16050_v50  ;;  %v2432_v28 = vadd.f32 %v16453_v11, %v2161_v44  ;;  %13742 = vmatprep.subr.mxu0 %v16640_v3  ;;  %v2167_v6 = vadd.f32 %v16319_v13, %v1895_v37  ;;  %v20204_v20 = vld [vmem:[#allocation46_spill] sm:$0xff] }
 0x1cc   : > { %v13326_v19 = vpop.f32.mrf.mxu1  ;;  %v2698_v51 = vadd.f32 %v16428_v10, %v2430_v39  ;;  %v2165_v40 = vadd.f32 %v16309_v22, %v1893_v42  ;;  %v1899_v11 = vadd.f32 %v16338_v29, %v16064_v41  ;;  %v2701_v22 = vadd.f32 %v16435_v14, %v2433_v61  ;;  %v20203_v39 = vld [vmem:[#allocation52_spill] sm:$0xff] }
 0x1cd   : > { %v2969_v26 = vadd.f32 %v13326_v19, %v2697_v47  ;;  %v3080_v34 = vpop.f32.mrf.mxu0  ;;  %v16665_v63 = vadd.f32 %v16326_v57, %v1897_v38  ;;  %v2700_v13 = vadd.f32 %v16442_v21, %v2432_v28  ;;  %v2434_v41 = vadd.f32 %v20199_v55, %v2163_v18  ;;  %v20201_v19 = vld [vmem:[#allocation42_spill] sm:$0xff]  ;;  %v20207_v18 = vld [vmem:[#allocation31_spill] sm:$0xff] }
 0x1ce   : > { %v2809_v25 = vpop.f32.mrf.mxu1  ;;  %v2703_v57 = vadd.f32 %v20201_v19, %v2435_v33  ;;  %v20209_v33 = vld [vmem:[#allocation54_spill] sm:$0xff] }
 0x1cf   : > { %v3240_v59 = vadd.f32 %v13376_v23, %v2969_v26  ;;  %v2968_v54 = vadd.f32 %v2809_v25, %v2696_v8  ;;  %v13379_v7 = vpop.f32.mrf.mxu0  ;;  %v20200_v23 = vld [vmem:[#allocation51_spill] sm:$0xff]  ;;  %v20202_v8 = vld [vmem:[#allocation48_spill] sm:$0xff]  ;;  %v2702_v38 = vadd.f32 %v20207_v18, %v2434_v41 }
 0x1d0   : > { %v13329_v17 = vpop.f32.mrf.mxu1  ;;  %v16673_v35 = vadd.f32 %v20200_v23, %v1899_v11  ;;  %v2437_v14 = vadd.f32 %v20203_v39, %v20202_v8 }
 0x1d1   : > { %v3279_v36 = vmul.f32 %v16630_v30, %v3240_v59  ;;  %v3239_v46 = vadd.f32 %v3080_v34, %v2968_v54  ;;  %v2971_v52 = vadd.f32 %v13329_v17, %v2699_v60  ;;  %v3090_v50 = vpop.f32.mrf.mxu0  ;;  %v20205_v60 = vld [vmem:[#allocation32_spill] sm:$0xff]  ;;  %v20206_v54 = vld [vmem:[#allocation38_spill] sm:$0xff] }
 0x1d2   : > { %v2819_v27 = vpop.f32.mrf.mxu1  ;;  %v1901_v59 = vadd.f32 %v20205_v60, %v20204_v20 }
 0x1d3   : > { %v3318_v43 = vadd.f32 %v16651_v48, %v3279_v36  ;;  %v3278_v10 = vmul.f32 %v16630_v30, %v3239_v46  ;;  %v3242_v56 = vadd.f32 %v13379_v7, %v2971_v52  ;;  %v2970_v49 = vadd.f32 %v2819_v27, %v2698_v51  ;;  %v13382_v4 = vpop.f32.mrf.mxu0 }
 0x1d4   : > { %v13332_v29 = vpop.f32.mrf.mxu1  ;;  %v1903_v7 = vadd.f32 %v20206_v54, %v16597_v58  ;;  %v2436_v27 = vadd.f32 %v20209_v33, %v2165_v40  ;;  %v20214_v40 = vld [vmem:[#allocation58_spill] sm:$0xff] }
 0x1d5   : > { %v3350_v16 = vmax.f32 %v3318_v43, 0.0  ;;  %v3317_v15 = vadd.f32 %v16651_v48, %v3278_v10  ;;  %v3281_v32 = vmul.f32 %v16630_v30, %v3242_v56  ;;  %v3241_v47 = vadd.f32 %v3090_v50, %v2970_v49  ;;  %v3100_v1 = vpop.f32.mrf.mxu0  ;;  %v20208_v50 = vld [vmem:[#allocation44_spill] sm:$0xff]  ;;  %v20210_v43 = vld [vmem:[#allocation49_spill] sm:$0xff] }
 0x1d6   : > { %v2973_v26 = vadd.f32 %v13332_v29, %v2701_v22  ;;  %v2829_v21 = vpop.f32.mrf.mxu1  ;;  %v2705_v11 = vadd.f32 %v20208_v50, %v2437_v14  ;;  %v20211_v10 = vld [vmem:[#allocation56_spill] sm:$0xff]  ;;  %v20212_v29 = vld [vmem:[#allocation29_spill] sm:$0xff] }
 0x1d7   : > { %3439 = vst.msk [vmem:[#allocation2 + $0x21] sm:$0xff] %vm3381_vm4, %v3350_v16  ;;  %v3349_v34 = vmax.f32 %v3317_v15, 0.0  ;;  %v3320_v44 = vadd.f32 %v16651_v48, %v3281_v32  ;;  %v3280_v42 = vmul.f32 %v16630_v30, %v3241_v47  ;;  %v2972_v37 = vadd.f32 %v2829_v21, %v2700_v13  ;;  %v13385_v25 = vpop.f32.mrf.mxu0  ;;  %v20213_v15 = vld [vmem:[#allocation36_spill] sm:$0xff] }
 0x1d8   : > { %v3244_v61 = vadd.f32 %v13382_v4, %v2973_v26  ;;  %v13335_v28 = vpop.f32.mrf.mxu1  ;;  %v2439_v56 = vadd.f32 %v20211_v10, %v20210_v43  ;;  %v16696_v16 = vadd.f32 %v20212_v29, %v1901_v59  ;;  %v16699_v32 = vadd.f32 %v20213_v15, %v1903_v7  ;;  %v20215_v26 = vld [vmem:[#allocation53_spill] sm:$0xff] }
 0x1d9   : > { %3438 = vst.msk [vmem:[#allocation2 + $0x19] sm:$0xff] %vm3381_vm4, %v3349_v34  ;;  %v3352_v17 = vmax.f32 %v3320_v44, 0.0  ;;  %v3319_v51 = vadd.f32 %v16651_v48, %v3280_v42  ;;  %v3243_v36 = vadd.f32 %v3100_v1, %v2972_v37  ;;  %v2975_v46 = vadd.f32 %v13335_v28, %v2703_v57  ;;  %v3110_v52 = vpop.f32.mrf.mxu0  ;;  %v20216_v34 = vld [vmem:[#allocation55_spill] sm:$0xff]  ;;  %v20217_v42 = vld [vmem:[#allocation50_spill] sm:$0xff]  ;;  %v20218_v37 = vld [vmem:[#allocation60_spill] sm:$0xff] }
 0x1da   : > { %v3283_v58 = vmul.f32 %v16630_v30, %v3244_v61  ;;  %v2839_v49 = vpop.f32.mrf.mxu1  ;;  %v2438_v47 = vadd.f32 %v20214_v40, %v2167_v6  ;;  %v2704_v21 = vadd.f32 %v20215_v26, %v2436_v27  ;;  %v2707_v44 = vadd.f32 %v20216_v34, %v2439_v56  ;;  %v20220_v28 = vld [vmem:[#allocation57_spill] sm:$0xff] }
 0x1db   : > { %3441 = vst.msk [vmem:[#allocation2 + $0x39] sm:$0xff] %vm3381_vm4, %v3352_v17  ;;  %v3351_v4 = vmax.f32 %v3319_v51, 0.0  ;;  %v3282_v22 = vmul.f32 %v16630_v30, %v3243_v36  ;;  %v3246_v13 = vadd.f32 %v13385_v25, %v2975_v46  ;;  %v2974_v55 = vadd.f32 %v2839_v49, %v2702_v38  ;;  %v13388_v41 = vpop.f32.mrf.mxu0  ;;  %v20219_v38 = vld [vmem:[#allocation11_spill] sm:$0xff]  ;;  %v20221_v51 = vld [vmem:[#allocation62_spill] sm:$0xff] }
 0x1dc   : > { %v3322_v1 = vadd.f32 %v16651_v48, %v3283_v58  ;;  %v13338_v23 = vpop.f32.mrf.mxu1  ;;  %v2441_v25 = vadd.f32 %v20218_v37, %v20217_v42  ;;  %v16714_v61 = vadd.f32 %v20219_v38, %v16604_v53  ;;  %v2706_v17 = vadd.f32 %v20220_v28, %v2438_v47  ;;  %v20222_v58 = vld [vmem:[#allocation59_spill] sm:$0xff] }
 0x1dd   : > { %3440 = vst.msk [vmem:[#allocation2 + $0x31] sm:$0xff] %vm3381_vm4, %v3351_v4  ;;  %v3321_v19 = vadd.f32 %v16651_v48, %v3282_v22  ;;  %v3285_v57 = vmul.f32 %v16630_v30, %v3246_v13  ;;  %v3245_v8 = vadd.f32 %v3110_v52, %v2974_v55  ;;  %v2977_v39 = vadd.f32 %v13338_v23, %v2705_v11  ;;  %v3120_v14 = vpop.f32.mrf.mxu0  ;;  %v20223_v4 = vld [vmem:[#allocation24_spill] sm:$0xff]  ;;  %v20225_v23 = vld [vmem:[#allocation17_spill] sm:$0xff] }
 0x1de   : > { %v3354_v6 = vmax.f32 %v3322_v1, 0.0  ;;  %v2849_v20 = vpop.f32.mrf.mxu1  ;;  %v2440_v36 = vadd.f32 %v20221_v51, %v16665_v63  ;;  %v16733_v56 = vld [vmem:[#allocation2 + $0x21] sm:$0xff]  ;;  %v2709_v49 = vadd.f32 %v20222_v58, %v2441_v25  ;;  %v20224_v22 = vld [vmem:[#allocation64_spill] sm:$0xff] }
 0x1df   : > { %v3353_v60 = vmax.f32 %v3321_v19, 0.0  ;;  %v3324_v59 = vadd.f32 %v16651_v48, %v3285_v57  ;;  %v3284_v54 = vmul.f32 %v16630_v30, %v3245_v8  ;;  %v3248_v7 = vadd.f32 %v13388_v41, %v2977_v39  ;;  %v13391_v18 = vpop.f32.mrf.mxu0  ;;  %v20226_v57 = vld [vmem:[#allocation61_spill] sm:$0xff]  ;;  %v20227_v39 = vld [vmem:[#allocation66_spill] sm:$0xff]  ;;  %v20234_v58 = vld [vmem:[#allocation72_spill] sm:$0xff] }
 0x1e0   : > { %3443 = vst.msk [vmem:[#allocation2 + $0x51] sm:$0xff] %vm3381_vm4, %v3354_v6  ;;  %v2976_v46 = vadd.f32 %v2849_v20, %v2704_v21  ;;  %v13341_v52 = vpop.f32.mrf.mxu1  ;;  %v16720_v50 = vld [vmem:[#allocation2 + $0x19] sm:$0xff]  ;;  %v2443_v13 = vadd.f32 %v20224_v22, %v20223_v4  ;;  %v1907_v19 = vadd.f32 %v20225_v23, %v16607_v0  ;;  %v2708_v8 = vadd.f32 %v20226_v57, %v2440_v36 }
 0x1e1   : > { %v16722_v11 = vld [vmem:[#allocation2 + $0x18] sm:$0xff]  ;;  %v16724_v33 = vld [vmem:[#allocation2 + $0x20] sm:$0xff]  ;;  %3442 = vst.msk [vmem:[#allocation2 + $0x49] sm:$0xff] %vm3381_vm4, %v3353_v60  ;;  %v3356_v27 = vmax.f32 %v3324_v59, 0.0  ;;  %v3323_v53 = vadd.f32 %v16651_v48, %v3284_v54  ;;  %v3287_v43 = vmul.f32 %v16630_v30, %v3248_v7  ;;  %v2979_v10 = vadd.f32 %v13341_v52, %v2707_v44  ;;  %13441 = vmatprep.mubr.msk.f32.mxu1 %vm3381_vm4, %v16720_v50  ;;  %v3130_v63 = vpop.f32.mrf.mxu0  ;;  %v20228_v60 = vld [vmem:[#allocation63_spill] sm:$0xff] }
 0x1e2   : > { %13505 = vmatprep.mubr.msk.f32.mxu0 %vm3381_vm4, %v16722_v11  ;;  %v3247_v55 = vadd.f32 %v3120_v14, %v2976_v46  ;;  %v2859_v41 = vpop.f32.mrf.mxu1  ;;  %13442 = vmatmul.mubr.msk.f32.gmra.mxu1 %vm3381_vm4, %v16733_v56  ;;  %v2442_v14 = vadd.f32 %v20227_v39, %v16673_v35  ;;  %v16762_v20 = vld [vmem:[#allocation2 + $0x39] sm:$0xff]  ;;  %v2711_v59 = vadd.f32 %v20228_v60, %v2443_v13  ;;  %v20230_v7 = vld [vmem:[#allocation68_spill] sm:$0xff] }
 0x1e3   : > { %13506 = vmatmul.mubr.msk.f32.gmra.mxu0 %vm3381_vm4, %v16724_v33  ;;  %3445 = vst.msk [vmem:[#allocation2 + $0x69] sm:$0xff] %vm3381_vm4, %v3356_v27  ;;  %v3355_v29 = vmax.f32 %v3323_v53, 0.0  ;;  %v3326_v15 = vadd.f32 %v16651_v48, %v3287_v43  ;;  %v3250_v40 = vadd.f32 %v13391_v18, %v2979_v10  ;;  %v2978_v47 = vadd.f32 %v2859_v41, %v2706_v17  ;;  %v13394_v1 = vpop.f32.mrf.mxu0  ;;  %v20229_v54 = vld [vmem:[#allocation34_spill] sm:$0xff]  ;;  %v20231_v27 = vld [vmem:[#allocation65_spill] sm:$0xff] }
 0x1e4   : > { %v3286_v26 = vmul.f32 %v16630_v30, %v3247_v55  ;;  %v13344_v21 = vpop.f32.mrf.mxu1  ;;  %v16750_v34 = vld [vmem:[#allocation2 + $0x31] sm:$0xff]  ;;  %v2445_v18 = vadd.f32 %v20230_v7, %v20229_v54  ;;  %v2710_v53 = vadd.f32 %v20231_v27, %v2442_v14  ;;  %v20232_v43 = vld [vmem:[#allocation70_spill] sm:$0xff]  ;;  %v20239_v54 = vld [vmem:[#allocation71_spill] sm:$0xff] }
 0x1e5   : > { %v16752_v44 = vld [vmem:[#allocation2 + $0x30] sm:$0xff]  ;;  %v16754_v42 = vld [vmem:[#allocation2 + $0x38] sm:$0xff]  ;;  %3444 = vst.msk [vmem:[#allocation2 + $0x61] sm:$0xff] %vm3381_vm4, %v3355_v29  ;;  %v3358_v37 = vmax.f32 %v3326_v15, 0.0  ;;  %v3289_v25 = vmul.f32 %v16630_v30, %v3250_v40  ;;  %v3249_v0 = vadd.f32 %v3130_v63, %v2978_v47  ;;  %v2981_v6 = vadd.f32 %v13344_v21, %v2709_v49  ;;  %13444 = vmatprep.mubr.msk.f32.mxu1 %vm3381_vm4, %v16750_v34  ;;  %v3140_v35 = vpop.f32.mrf.mxu0  ;;  %v20233_v63 = vld [vmem:[#allocation39_spill] sm:$0xff] }
 0x1e6   : > { %13508 = vmatprep.mubr.msk.f32.mxu0 %vm3381_vm4, %v16752_v44  ;;  %v3325_v38 = vadd.f32 %v16651_v48, %v3286_v26  ;;  %v2869_v28 = vpop.f32.mrf.mxu1  ;;  %13445 = vmatmul.mubr.msk.f32.gmra.mxu1 %vm3381_vm4, %v16762_v20  ;;  %v2444_v10 = vadd.f32 %v20232_v43, %v16696_v16  ;;  %v2447_v49 = vadd.f32 %v20234_v58, %v20233_v63  ;;  %v20235_v23 = vld [vmem:[#allocation10_spill] sm:$0xff]  ;;  %v20238_v60 = vld [vmem:[#allocation69_spill] sm:$0xff]  ;;  %v20242_v58 = vld [vmem:[#allocation76_spill] sm:$0xff] }
 0x1e7   : > { %13509 = vmatmul.mubr.msk.f32.gmra.mxu0 %vm3381_vm4, %v16754_v42  ;;  %3447 = vst.msk [vmem:[#allocation2 + $0x81] sm:$0xff] %vm3381_vm4, %v3358_v37  ;;  %v3328_v17 = vadd.f32 %v16651_v48, %v3289_v25  ;;  %v3288_v51 = vmul.f32 %v16630_v30, %v3249_v0  ;;  %v3252_v36 = vadd.f32 %v13394_v1, %v2981_v6  ;;  %v13397_v52 = vpop.f32.mrf.mxu0  ;;  %v16792_v1 = vld [vmem:[#allocation2 + $0x51] sm:$0xff]  ;;  %v20237_v6 = vld [vmem:[#allocation15_spill] sm:$0xff]  ;;  %v20240_v43 = vld [vmem:[#allocation74_spill] sm:$0xff] }
 0x1e8   : > { %v2980_v46 = vadd.f32 %v2869_v28, %v2708_v8  ;;  %v3357_v4 = vmax.f32 %v3325_v38, 0.0  ;;  %v13347_v22 = vpop.f32.mrf.mxu1  ;;  %v16780_v13 = vld [vmem:[#allocation2 + $0x49] sm:$0xff]  ;;  %v2177_v57 = vadd.f32 %v20235_v23, %v16714_v61  ;;  %v2715_v7 = vadd.f32 %v20239_v54, %v2447_v49  ;;  %v20241_v63 = vld [vmem:[#allocation13_spill] sm:$0xff] }
 0x1e9   : > { %v16782_v55 = vld [vmem:[#allocation2 + $0x48] sm:$0xff]  ;;  %v16784_v41 = vld [vmem:[#allocation2 + $0x50] sm:$0xff]  ;;  %v3360_v29 = vmax.f32 %v3328_v17, 0.0  ;;  %v3327_v15 = vadd.f32 %v16651_v48, %v3288_v51  ;;  %v3291_v40 = vmul.f32 %v16630_v30, %v3252_v36  ;;  %13447 = vmatprep.mubr.msk.f32.mxu1 %vm3381_vm4, %v16780_v13  ;;  %v3150_v16 = vpop.f32.mrf.mxu0  ;;  %v2983_v14 = vadd.f32 %v13347_v22, %v2711_v59 }
 0x1ea   : > { %v3251_v47 = vadd.f32 %v3140_v35, %v2980_v46  ;;  %13511 = vmatprep.mubr.msk.f32.mxu0 %vm3381_vm4, %v16782_v55  ;;  %v20236_v8 = vld [vmem:[#allocation67_spill] sm:$0xff]  ;;  %3446 = vst.msk [vmem:[#allocation2 + $0x79] sm:$0xff] %vm3381_vm4, %v3357_v4  ;;  %v2879_v26 = vpop.f32.mrf.mxu1  ;;  %13448 = vmatmul.mubr.msk.f32.gmra.mxu1 %vm3381_vm4, %v16792_v1  ;;  %v2179_v35 = vadd.f32 %v20237_v6, %v1907_v19 }
 0x1eb   : > { %v2713_v39 = vadd.f32 %v20236_v8, %v2445_v18  ;;  %13512 = vmatmul.mubr.msk.f32.gmra.mxu0 %vm3381_vm4, %v16784_v41  ;;  %3449 = vst.msk [vmem:[#allocation2 + $0x99] sm:$0xff] %vm3381_vm4, %v3360_v29  ;;  %v3359_v21 = vmax.f32 %v3327_v15, 0.0  ;;  %v3330_v37 = vadd.f32 %v16651_v48, %v3291_v40  ;;  %v2982_v61 = vadd.f32 %v2879_v26, %v2710_v53  ;;  %v13400_v0 = vpop.f32.mrf.mxu0  ;;  %v20244_v8 = vld [vmem:[#allocation30_spill] sm:$0xff] }
 0x1ec   : > { %v3290_v25 = vmul.f32 %v16630_v30, %v3251_v47  ;;  %v2712_v59 = vadd.f32 %v20238_v60, %v2444_v10  ;;  %v3254_v18 = vadd.f32 %v13397_v52, %v2983_v14  ;;  %v13350_v38 = vpop.f32.mrf.mxu1  ;;  %v16808_v28 = vld [vmem:[#allocation2 + $0x61] sm:$0xff]  ;;  %v16820_v52 = vld [vmem:[#allocation2 + $0x69] sm:$0xff]  ;;  %v2446_v10 = vadd.f32 %v20240_v43, %v16699_v32 }
 0x1ed   : > { %v16810_v17 = vld [vmem:[#allocation2 + $0x60] sm:$0xff]  ;;  %v16812_v51 = vld [vmem:[#allocation2 + $0x68] sm:$0xff]  ;;  %3448 = vst.msk [vmem:[#allocation2 + $0x91] sm:$0xff] %vm3381_vm4, %v3359_v21  ;;  %v3362_v36 = vmax.f32 %v3330_v37, 0.0  ;;  %v3253_v27 = vadd.f32 %v3150_v16, %v2982_v61  ;;  %v2985_v53 = vadd.f32 %v13350_v38, %v2713_v39  ;;  %13450 = vmatprep.mubr.msk.f32.mxu1 %vm3381_vm4, %v16808_v28  ;;  %v3160_v19 = vpop.f32.mrf.mxu0  ;;  %v2449_v49 = vadd.f32 %v20242_v58, %v20241_v63 }
 0x1ee   : > { %v3329_v46 = vadd.f32 %v16651_v48, %v3290_v25  ;;  %13514 = vmatprep.mubr.msk.f32.mxu0 %vm3381_vm4, %v16810_v17  ;;  %v3293_v4 = vmul.f32 %v16630_v30, %v3254_v18  ;;  %v2889_v22 = vpop.f32.mrf.mxu1  ;;  %13451 = vmatmul.mubr.msk.f32.gmra.mxu1 %vm3381_vm4, %v16820_v52  ;;  %v20243_v16 = vld [vmem:[#allocation23_spill] sm:$0xff]  ;;  %v1911_v39 = vadd.f32 %v20244_v8, %v16615_v45  ;;  %v20245_v14 = vld [vmem:[#allocation78_spill] sm:$0xff]  ;;  %v20246_v45 = vld [vmem:[#allocation73_spill] sm:$0xff] }
 0x1ef   : > { %13515 = vmatmul.mubr.msk.f32.gmra.mxu0 %vm3381_vm4, %v16812_v51  ;;  %3451 = vst.msk [vmem:[#allocation2 + $0xb1] sm:$0xff] %vm3381_vm4, %v3362_v36  ;;  %v3292_v15 = vmul.f32 %v16630_v30, %v3253_v27  ;;  %v3256_v40 = vadd.f32 %v13400_v0, %v2985_v53  ;;  %v2984_v47 = vadd.f32 %v2889_v22, %v2712_v59  ;;  %v13403_v32 = vpop.f32.mrf.mxu0  ;;  %v20247_v18 = vld [vmem:[#allocation75_spill] sm:$0xff] }
 0x1f0   : > { %v3361_v29 = vmax.f32 %v3329_v46, 0.0  ;;  %v1909_v23 = vadd.f32 %v20243_v16, %v16610_v12  ;;  %v2448_v26 = vadd.f32 %v20245_v14, %v2177_v57  ;;  %v3332_v21 = vadd.f32 %v16651_v48, %v3293_v4  ;;  %v13353_v37 = vpop.f32.mrf.mxu1  ;;  %v20248_v36 = vld [vmem:[#allocation19_spill] sm:$0xff]  ;;  %v20249_v46 = vld [vmem:[#allocation80_spill] sm:$0xff] }
 0x1f1   : > { %v3331_v25 = vadd.f32 %v16651_v48, %v3292_v15  ;;  %v3295_v61 = vmul.f32 %v16630_v30, %v3256_v40  ;;  %v3255_v0 = vadd.f32 %v3160_v19, %v2984_v47  ;;  %v2987_v6 = vadd.f32 %v13353_v37, %v2715_v7  ;;  %v16842_v60 = vld [vmem:[#allocation2 + $0x79] sm:$0xff]  ;;  %v3170_v12 = vpop.f32.mrf.mxu0  ;;  %v16856_v19 = vld [vmem:[#allocation2 + $0x81] sm:$0xff] }
 0x1f2   : > { %3450 = vst.msk [vmem:[#allocation2 + $0xa9] sm:$0xff] %vm3381_vm4, %v3361_v29  ;;  %v16844_v59 = vld [vmem:[#allocation2 + $0x78] sm:$0xff]  ;;  %v16846_v54 = vld [vmem:[#allocation2 + $0x80] sm:$0xff]  ;;  %v2714_v57 = vadd.f32 %v20246_v45, %v2446_v10  ;;  %v2717_v38 = vadd.f32 %v20247_v18, %v2449_v49  ;;  %v2451_v27 = vadd.f32 %v20249_v46, %v20248_v36  ;;  %v3364_v53 = vmax.f32 %v3332_v21, 0.0  ;;  %13453 = vmatprep.mubr.msk.f32.mxu1 %vm3381_vm4, %v16842_v60  ;;  %v2899_v7 = vpop.f32.mrf.mxu1  ;;  %v20250_v4 = vld [vmem:[#allocation47_spill] sm:$0xff] }
 0x1f3   : > { %13517 = vmatprep.mubr.msk.f32.mxu0 %vm3381_vm4, %v16844_v59  ;;  %v3363_v43 = vmax.f32 %v3331_v25, 0.0  ;;  %v3334_v63 = vadd.f32 %v16651_v48, %v3295_v61  ;;  %v3294_v10 = vmul.f32 %v16630_v30, %v3255_v0  ;;  %v3258_v58 = vadd.f32 %v13403_v32, %v2987_v6  ;;  %13454 = vmatmul.mubr.msk.f32.gmra.mxu1 %vm3381_vm4, %v16856_v19  ;;  %v13406_v49 = vpop.f32.mrf.mxu0  ;;  %v20251_v29 = vld [vmem:[#allocation77_spill] sm:$0xff]  ;;  %v20252_v40 = vld [vmem:[#allocation82_spill] sm:$0xff]  ;;  %v20254_v6 = vld [vmem:[#allocation28_spill] sm:$0xff] }
 0x1f4   : > { %13518 = vmatmul.mubr.msk.f32.gmra.mxu0 %vm3381_vm4, %v16846_v54  ;;  %v1647_v22 = vadd.f32 %v20250_v4, %v16634_v9  ;;  %v2716_v15 = vadd.f32 %v20251_v29, %v2448_v26  ;;  %v2450_v47 = vadd.f32 %v20252_v40, %v2179_v35  ;;  %3453 = vst.msk [vmem:[#allocation2 + $0xc9] sm:$0xff] %vm3381_vm4, %v3364_v53  ;;  %v13356_v8 = vpop.f32.mrf.mxu1  ;;  %v16869_v14 = vld [vmem:[#allocation2 + $0x91] sm:$0xff]  ;;  %v16885_v53 = vld [vmem:[#allocation2 + $0x99] sm:$0xff] }
 0x1f5   : > { %v2986_v16 = vadd.f32 %v2899_v7, %v2714_v57  ;;  %v16871_v32 = vld [vmem:[#allocation2 + $0x90] sm:$0xff]  ;;  %v16873_v21 = vld [vmem:[#allocation2 + $0x98] sm:$0xff]  ;;  %3452 = vst.msk [vmem:[#allocation2 + $0xc1] sm:$0xff] %vm3381_vm4, %v3363_v43  ;;  %v3366_v37 = vmax.f32 %v3334_v63, 0.0  ;;  %v3333_v25 = vadd.f32 %v16651_v48, %v3294_v10  ;;  %v3297_v9 = vmul.f32 %v16630_v30, %v3258_v58  ;;  %13456 = vmatprep.mubr.msk.f32.mxu1 %vm3381_vm4, %v16869_v14  ;;  %v3180_v35 = vpop.f32.mrf.mxu0  ;;  %v20255_v57 = vld [vmem:[#allocation79_spill] sm:$0xff] }
 0x1f6   : > { %v2989_v26 = vadd.f32 %v13356_v8, %v2717_v38  ;;  %13520 = vmatprep.mubr.msk.f32.mxu0 %vm3381_vm4, %v16871_v32  ;;  %v20253_v61 = vld [vmem:[#allocation21_spill] sm:$0xff]  ;;  %v2183_v45 = vadd.f32 %v20254_v6, %v1911_v39  ;;  %v2719_v18 = vadd.f32 %v20255_v57, %v2451_v27  ;;  %v2909_v46 = vpop.f32.mrf.mxu1  ;;  %v20258_v10 = vld [vmem:[#allocation84_spill] sm:$0xff]  ;;  %v20259_v4 = vld [vmem:[#allocation86_spill] sm:$0xff] }
 0x1f7   : > { %v2181_v0 = vadd.f32 %v20253_v61, %v1909_v23  ;;  %v3257_v36 = vadd.f32 %v3170_v12, %v2986_v16  ;;  %3455 = vst.msk [vmem:[#allocation2 + $0xe1] sm:$0xff] %vm3381_vm4, %v3366_v37  ;;  %v3365_v38 = vmax.f32 %v3333_v25, 0.0  ;;  %v3336_v7 = vadd.f32 %v16651_v48, %v3297_v9  ;;  %13457 = vmatmul.mubr.msk.f32.gmra.mxu1 %vm3381_vm4, %v16885_v53  ;;  %v13409_v23 = vpop.f32.mrf.mxu0  ;;  %v20256_v39 = vld [vmem:[#allocation81_spill] sm:$0xff]  ;;  %v20261_v6 = vld [vmem:[#allocation20_spill] sm:$0xff] }
 0x1f8   : > { %v3260_v43 = vadd.f32 %v13406_v49, %v2989_v26  ;;  %v2988_v63 = vadd.f32 %v2909_v46, %v2716_v15  ;;  %13521 = vmatmul.mubr.msk.f32.gmra.mxu0 %vm3381_vm4, %v16873_v21  ;;  %v2718_v27 = vadd.f32 %v20256_v39, %v2450_v47  ;;  %v20257_v12 = vld [vmem:[#allocation25_spill] sm:$0xff]  ;;  %v13359_v16 = vpop.f32.mrf.mxu1  ;;  %v1915_v57 = vadd.f32 %v20261_v6, %v1647_v22  ;;  %v20263_v46 = vld [vmem:[#allocation88_spill] sm:$0xff]  ;;  %v20264_v22 = vld [vmem:[#allocation83_spill] sm:$0xff] }
 0x1f9   : > { %v2453_v58 = vadd.f32 %v20258_v10, %v20257_v12  ;;  %v2452_v29 = vadd.f32 %v20259_v4, %v2181_v0  ;;  %v3296_v40 = vmul.f32 %v16630_v30, %v3257_v36  ;;  %v16898_v8 = vld [vmem:[#allocation2 + $0xa9] sm:$0xff]  ;;  %3454 = vst.msk [vmem:[#allocation2 + $0xd9] sm:$0xff] %vm3381_vm4, %v3365_v38  ;;  %v3368_v15 = vmax.f32 %v3336_v7, 0.0  ;;  %v3190_v47 = vpop.f32.mrf.mxu0  ;;  %v20260_v61 = vld [vmem:[#allocation37_spill] sm:$0xff] }
 0x1fa   : > { %v16900_v49 = vld [vmem:[#allocation2 + $0xa8] sm:$0xff]  ;;  %v3299_v37 = vmul.f32 %v16630_v30, %v3260_v43  ;;  %v3259_v25 = vadd.f32 %v3180_v35, %v2988_v63  ;;  %v2991_v9 = vadd.f32 %v13359_v16, %v2719_v18  ;;  %13459 = vmatprep.mubr.msk.f32.mxu1 %vm3381_vm4, %v16898_v8  ;;  %v16908_v26 = vld [vmem:[#allocation2 + $0xb0] sm:$0xff]  ;;  %v1913_v0 = vadd.f32 %v20260_v61, %v16620_v31  ;;  %v20262_v36 = vld [vmem:[#allocation33_spill] sm:$0xff]  ;;  %v2919_v18 = vpop.f32.mrf.mxu1 }
 0x1fb   : > { %13523 = vmatprep.mubr.msk.f32.mxu0 %vm3381_vm4, %v16900_v49  ;;  %v2455_v38 = vadd.f32 %v20263_v46, %v20262_v36  ;;  %v3335_v35 = vadd.f32 %v16651_v48, %v3296_v40  ;;  %v16916_v7 = vld [vmem:[#allocation2 + $0xb1] sm:$0xff]  ;;  %3457 = vst.msk [vmem:[#allocation2 + $0xf9] sm:$0xff] %vm3381_vm4, %v3368_v15  ;;  %v2990_v12 = vadd.f32 %v2919_v18, %v2718_v27  ;;  %v13412_v31 = vpop.f32.mrf.mxu0  ;;  %v20266_v40 = vld [vmem:[#allocation90_spill] sm:$0xff] }
 0x1fc   : > { %v3338_v43 = vadd.f32 %v16651_v48, %v3299_v37  ;;  %v3298_v63 = vmul.f32 %v16630_v30, %v3259_v25  ;;  %v3262_v39 = vadd.f32 %v13409_v23, %v2991_v9  ;;  %13460 = vmatmul.mubr.msk.f32.gmra.mxu1 %vm3381_vm4, %v16916_v7  ;;  %v2721_v10 = vadd.f32 %v20264_v22, %v2453_v58  ;;  %v20265_v4 = vld [vmem:[#allocation85_spill] sm:$0xff]  ;;  %v13362_v15 = vpop.f32.mrf.mxu1  ;;  %v16928_v37 = vld [vmem:[#allocation2 + $0xc1] sm:$0xff]  ;;  %v20270_v18 = vld [vmem:[#allocation92_spill] sm:$0xff] }
 0x1fd   : > { %v2720_v16 = vadd.f32 %v20265_v4, %v2452_v29  ;;  %v2454_v61 = vadd.f32 %v20266_v40, %v2183_v45  ;;  %v3367_v6 = vmax.f32 %v3335_v35, 0.0  ;;  %13524 = vmatmul.mubr.msk.f32.gmra.mxu0 %vm3381_vm4, %v16908_v26  ;;  %20267 = vst [vmem:[#allocation12_spill] sm:$0xff] %v16928_v37  ;;  %v16930_v25 = vld [vmem:[#allocation2 + $0xc0] sm:$0xff]  ;;  %v3261_v36 = vadd.f32 %v3190_v47, %v2990_v12  ;;  %v3200_v45 = vpop.f32.mrf.mxu0  ;;  %v16938_v58 = vld [vmem:[#allocation2 + $0xc8] sm:$0xff]  ;;  %v20269_v35 = vld [vmem:[#allocation40_spill] sm:$0xff] }
 0x1fe   : > { %v3370_v23 = vmax.f32 %v3338_v43, 0.0  ;;  %v3337_v27 = vadd.f32 %v16651_v48, %v3298_v63  ;;  %v3301_v9 = vmul.f32 %v16630_v30, %v3262_v39  ;;  %13462 = vmatprep.mubr.msk.f32.mxu1 %vm3381_vm4, %v16928_v37  ;;  %13526 = vmatprep.mubr.msk.f32.mxu0 %vm3381_vm4, %v16930_v25  ;;  %v20268_v29 = vld [vmem:[#allocation87_spill] sm:$0xff]  ;;  %v2457_v22 = vadd.f32 %v20270_v18, %v20269_v35  ;;  %v2929_v63 = vpop.f32.mrf.mxu1 }
 0x1ff   : > { %v2723_v46 = vadd.f32 %v20268_v29, %v2455_v38  ;;  %3456 = vst.msk [vmem:[#allocation2 + $0xf1] sm:$0xff] %vm3381_vm4, %v3367_v6  ;;  %v2993_v43 = vadd.f32 %v13362_v15, %v2721_v10  ;;  %v16944_v39 = vld [vmem:[#allocation2 + $0xc9] sm:$0xff]  ;;  %v3300_v4 = vmul.f32 %v16630_v30, %v3261_v36  ;;  %v2992_v40 = vadd.f32 %v2929_v63, %v2720_v16  ;;  %v13415_v38 = vpop.f32.mrf.mxu0  ;;  %v20273_v10 = vld [vmem:[#allocation89_spill] sm:$0xff] }
 0x200   : > { %3459 = vst.msk [vmem:[#allocation2 + $0x111] sm:$0xff] %vm3381_vm4, %v3370_v23  ;;  %v3369_v47 = vmax.f32 %v3337_v27, 0.0  ;;  %v3340_v12 = vadd.f32 %v16651_v48, %v3301_v9  ;;  %13463 = vmatmul.mubr.msk.f32.gmra.mxu1 %vm3381_vm4, %v16944_v39  ;;  %v20271_v29 = vld [vmem:[#allocation35_spill] sm:$0xff]  ;;  %v2722_v15 = vadd.f32 %v20273_v10, %v2454_v61  ;;  %v13365_v23 = vpop.f32.mrf.mxu1  ;;  %v16956_v27 = vld [vmem:[#allocation2 + $0xd9] sm:$0xff] }
 0x201   : > { %v2185_v35 = vadd.f32 %v20271_v29, %v1913_v0  ;;  %v20272_v18 = vld [vmem:[#allocation27_spill] sm:$0xff]  ;;  %v3264_v37 = vadd.f32 %v13412_v31, %v2993_v43  ;;  %13527 = vmatmul.mubr.msk.f32.gmra.mxu0 %vm3381_vm4, %v16938_v58  ;;  %20274 = vst [vmem:[#allocation14_spill] sm:$0xff] %v16956_v27  ;;  %v16958_v9 = vld [vmem:[#allocation2 + $0xd8] sm:$0xff]  ;;  %v3339_v36 = vadd.f32 %v16651_v48, %v3300_v4  ;;  %v16966_v31 = vld [vmem:[#allocation2 + $0xe0] sm:$0xff] }
 0x202   : > { %v2187_v6 = vadd.f32 %v20272_v18, %v1915_v57  ;;  %3458 = vst.msk [vmem:[#allocation2 + $0x109] sm:$0xff] %vm3381_vm4, %v3369_v47  ;;  %v3372_v16 = vmax.f32 %v3340_v12, 0.0  ;;  %v3263_v63 = vadd.f32 %v3200_v45, %v2992_v40  ;;  %v2995_v0 = vadd.f32 %v13365_v23, %v2723_v46  ;;  %13465 = vmatprep.mubr.msk.f32.mxu1 %vm3381_vm4, %v16956_v27  ;;  %v3210_v57 = vpop.f32.mrf.mxu0  ;;  %v20275_v61 = vld [vmem:[#allocation91_spill] sm:$0xff]  ;;  %v20276_v29 = vld [vmem:[#allocation94_spill] sm:$0xff]  ;;  %v2939_v45 = vpop.f32.mrf.mxu1 }
 0x203   : > { %13529 = vmatprep.mubr.msk.f32.mxu0 %vm3381_vm4, %v16958_v9  ;;  %v2725_v43 = vadd.f32 %v20275_v61, %v2457_v22  ;;  %v2456_v18 = vadd.f32 %v20276_v29, %v2185_v35  ;;  %v20277_v10 = vld [vmem:[#allocation26_spill] sm:$0xff]  ;;  %v3303_v12 = vmul.f32 %v16630_v30, %v3264_v37  ;;  %v3371_v4 = vmax.f32 %v3339_v36, 0.0 }
 0x204   : > { %v2459_v47 = vadd.f32 %v16583_v24, %v20277_v10  ;;  %v16973_v46 = vld [vmem:[#allocation2 + $0xe1] sm:$0xff]  ;;  %3461 = vst.msk [vmem:[#allocation2 + $0x129] sm:$0xff] %vm3381_vm4, %v3372_v16  ;;  %v3302_v40 = vmul.f32 %v16630_v30, %v3263_v63  ;;  %v3266_v23 = vadd.f32 %v13415_v38, %v2995_v0  ;;  %v2994_v27 = vadd.f32 %v2939_v45, %v2722_v15  ;;  %v13418_v22 = vpop.f32.mrf.mxu0  ;;  %v13368_v37 = vpop.f32.mrf.mxu1 }
 0x205   : > { %13466 = vmatmul.mubr.msk.f32.gmra.mxu1 %vm3381_vm4, %v16973_v46  ;;  %v2458_v35 = vadd.f32 %v16594_v5, %v2187_v6  ;;  %v3342_v24 = vadd.f32 %v16651_v48, %v3303_v12  ;;  %13530 = vmatmul.mubr.msk.f32.gmra.mxu0 %vm3381_vm4, %v16966_v31  ;;  %3460 = vst.msk [vmem:[#allocation2 + $0x121] sm:$0xff] %vm3381_vm4, %v3371_v4  ;;  %v20278_v6 = vld [vmem:[#allocation93_spill] sm:$0xff] }
 0x206   : > { %v3341_v16 = vadd.f32 %v16651_v48, %v3302_v40  ;;  %v3305_v36 = vmul.f32 %v16630_v30, %v3266_v23  ;;  %v3265_v38 = vadd.f32 %v3210_v57, %v2994_v27  ;;  %v2997_v15 = vadd.f32 %v13368_v37, %v2725_v43  ;;  %v16986_v63 = vld [vmem:[#allocation2 + $0xf1] sm:$0xff]  ;;  %v3220_v61 = vpop.f32.mrf.mxu0  ;;  %v2949_v27 = vpop.f32.mrf.mxu1  ;;  %v16998_v57 = vld [vmem:[#allocation2 + $0xf9] sm:$0xff] }
 0x207   : > { %v16988_v0 = vld [vmem:[#allocation2 + $0xf0] sm:$0xff]  ;;  %v16990_v5 = vld [vmem:[#allocation2 + $0xf8] sm:$0xff]  ;;  %v2724_v29 = vadd.f32 %v20278_v6, %v2456_v18  ;;  %v2727_v10 = vadd.f32 %v16575_v62, %v2459_v47  ;;  %v3374_v12 = vmax.f32 %v3342_v24, 0.0  ;;  %13468 = vmatprep.mubr.msk.f32.mxu1 %vm3381_vm4, %v16986_v63  ;;  %v2726_v18 = vadd.f32 %v16588_v2, %v2458_v35 }
 0x208   : > { %13532 = vmatprep.mubr.msk.f32.mxu0 %vm3381_vm4, %v16988_v0  ;;  %v3373_v43 = vmax.f32 %v3341_v16, 0.0  ;;  %v3344_v45 = vadd.f32 %v16651_v48, %v3305_v36  ;;  %v3304_v4 = vmul.f32 %v16630_v30, %v3265_v38  ;;  %v3268_v40 = vadd.f32 %v13418_v22, %v2997_v15  ;;  %v13421_v62 = vpop.f32.mrf.mxu0  ;;  %v13371_v23 = vpop.f32.mrf.mxu1  ;;  %v17021_v6 = vld [vmem:[#allocation2 + $0x111] sm:$0xff] }
 0x209   : > { %13469 = vmatmul.mubr.msk.f32.gmra.mxu1 %vm3381_vm4, %v16998_v57  ;;  %3463 = vst.msk [vmem:[#allocation2 + $0x141] sm:$0xff] %vm3381_vm4, %v3374_v12  ;;  %v2996_v47 = vadd.f32 %v2949_v27, %v2724_v29  ;;  %13533 = vmatmul.mubr.msk.f32.gmra.mxu0 %vm3381_vm4, %v16990_v5  ;;  %v17008_v24 = vld [vmem:[#allocation2 + $0x109] sm:$0xff]  ;;  %v2999_v38 = vadd.f32 %v13371_v23, %v2727_v10 }
 0x20a   : > { %v17010_v37 = vld [vmem:[#allocation2 + $0x108] sm:$0xff]  ;;  %3462 = vst.msk [vmem:[#allocation2 + $0x139] sm:$0xff] %vm3381_vm4, %v3373_v43  ;;  %v3376_v22 = vmax.f32 %v3344_v45, 0.0  ;;  %v3343_v16 = vadd.f32 %v16651_v48, %v3304_v4  ;;  %v3307_v36 = vmul.f32 %v16630_v30, %v3268_v40  ;;  %13471 = vmatprep.mubr.msk.f32.mxu1 %vm3381_vm4, %v17008_v24  ;;  %v17019_v2 = vld [vmem:[#allocation2 + $0x110] sm:$0xff]  ;;  %v2959_v15 = vpop.f32.mrf.mxu1  ;;  %v3230_v29 = vpop.f32.mrf.mxu0 }
 0x20b   : > { %13535 = vmatprep.mubr.msk.f32.mxu0 %vm3381_vm4, %v17010_v37  ;;  %v3267_v35 = vadd.f32 %v3220_v61, %v2996_v47  ;;  %v2998_v43 = vadd.f32 %v2959_v15, %v2726_v18  ;;  %v3270_v10 = vadd.f32 %v13421_v62, %v2999_v38 }
 0x20c   : > { %3465 = vst.msk [vmem:[#allocation2 + $0x159] sm:$0xff] %vm3381_vm4, %v3376_v22  ;;  %v3375_v12 = vmax.f32 %v3343_v16, 0.0  ;;  %v3346_v27 = vadd.f32 %v16651_v48, %v3307_v36  ;;  %v17030_v61 = vld [vmem:[#allocation2 + $0x121] sm:$0xff]  ;;  %v17043_v22 = vld [vmem:[#allocation2 + $0x129] sm:$0xff] }
 0x20d   : > { %13472 = vmatmul.mubr.msk.f32.gmra.mxu1 %vm3381_vm4, %v17021_v6  ;;  %v3306_v45 = vmul.f32 %v16630_v30, %v3267_v35  ;;  %13536 = vmatmul.mubr.msk.f32.gmra.mxu0 %vm3381_vm4, %v17019_v2  ;;  %v17032_v4 = vld [vmem:[#allocation2 + $0x120] sm:$0xff]  ;;  %v3309_v47 = vmul.f32 %v16630_v30, %v3270_v10  ;;  %v3269_v23 = vadd.f32 %v3230_v29, %v2998_v43  ;;  %v17040_v62 = vld [vmem:[#allocation2 + $0x128] sm:$0xff] }
 0x20e   : > { %3464 = vst.msk [vmem:[#allocation2 + $0x151] sm:$0xff] %vm3381_vm4, %v3375_v12  ;;  %v3378_v40 = vmax.f32 %v3346_v27, 0.0  ;;  %13474 = vmatprep.mubr.msk.f32.mxu1 %vm3381_vm4, %v17030_v61  ;;  %13538 = vmatprep.mubr.msk.f32.mxu0 %vm3381_vm4, %v17032_v4 }
 0x20f   : > { %v3345_v18 = vadd.f32 %v16651_v48, %v3306_v45  ;;  %v3348_v16 = vadd.f32 %v16651_v48, %v3309_v47  ;;  %v3308_v36 = vmul.f32 %v16630_v30, %v3269_v23  ;;  %v4193_v47 = vld [vmem:[#allocation2 + $0x2] sm:$0xff] }
 0x210   : > { %3467 = vst.msk [vmem:[#allocation2 + $0x171] sm:$0xff] %vm3381_vm4, %v3378_v40  ;;  %v17064_v27 = vld [vmem:[#allocation2 + $0x141] sm:$0xff] }
 0x211   : > { %13475 = vmatmul.mubr.msk.f32.gmra.mxu1 %vm3381_vm4, %v17043_v22  ;;  %v3377_v38 = vmax.f32 %v3345_v18, 0.0  ;;  %13539 = vmatmul.mubr.msk.f32.gmra.mxu0 %vm3381_vm4, %v17040_v62  ;;  %v17052_v35 = vld [vmem:[#allocation2 + $0x139] sm:$0xff]  ;;  %v3380_v29 = vmax.f32 %v3348_v16, 0.0  ;;  %v3347_v12 = vadd.f32 %v16651_v48, %v3308_v36 }
 0x212   : > { %v17054_v15 = vld [vmem:[#allocation2 + $0x138] sm:$0xff]  ;;  %13477 = vmatprep.mubr.msk.f32.mxu1 %vm3381_vm4, %v17052_v35  ;;  %v17061_v30 = vld [vmem:[#allocation2 + $0x140] sm:$0xff] }
 0x213   : > { %13541 = vmatprep.mubr.msk.f32.mxu0 %vm3381_vm4, %v17054_v15  ;;  %3466 = vst.msk [vmem:[#allocation2 + $0x169] sm:$0xff] %vm3381_vm4, %v3377_v38  ;;  %3469 = vst.msk [vmem:[#allocation2 + $0x189] sm:$0xff] %vm3381_vm4, %v3380_v29  ;;  %v3379_v43 = vmax.f32 %v3347_v12, 0.0  ;;  %v17082_v40 = vld [vmem:[#allocation2 + $0x159] sm:$0xff]  ;;  %v4194_v38 = vld [vmem:[#allocation2 + $0xa] sm:$0xff] }
 0x215   : > { %13478 = vmatmul.mubr.msk.f32.gmra.mxu1 %vm3381_vm4, %v17064_v27  ;;  %13542 = vmatmul.mubr.msk.f32.gmra.mxu0 %vm3381_vm4, %v17061_v30  ;;  %v17071_v48 = vld [vmem:[#allocation2 + $0x151] sm:$0xff]  ;;  %3468 = vst.msk [vmem:[#allocation2 + $0x181] sm:$0xff] %vm3381_vm4, %v3379_v43 }
 0x216   : > { %v17073_v10 = vld [vmem:[#allocation2 + $0x150] sm:$0xff]  ;;  %13480 = vmatprep.mubr.msk.f32.mxu1 %vm3381_vm4, %v17071_v48  ;;  %v17080_v45 = vld [vmem:[#allocation2 + $0x158] sm:$0xff] }
 0x217   : > { %13544 = vmatprep.mubr.msk.f32.mxu0 %vm3381_vm4, %v17073_v10  ;;  %v17098_v36 = vld [vmem:[#allocation2 + $0x171] sm:$0xff] }
 0x218   : > { %20280 = vst [vmem:[#allocation18_spill] sm:$0xff] %v17098_v36  ;;  %v11389_v43 = vld [vmem:[%s20088_s4 + $0x130] sm:$0xff] }
 0x219   : > { %13481 = vmatmul.mubr.msk.f32.gmra.mxu1 %vm3381_vm4, %v17082_v40  ;;  %13545 = vmatmul.mubr.msk.f32.gmra.mxu0 %vm3381_vm4, %v17080_v45 }
 0x21a   : > { %v17088_v23 = vld [vmem:[#allocation2 + $0x169] sm:$0xff] }
 0x21b   : > { %20279 = vst [vmem:[#allocation16_spill] sm:$0xff] %v17088_v23  ;;  %v17090_v18 = vld [vmem:[#allocation2 + $0x168] sm:$0xff]  ;;  %v17092_v16 = vld [vmem:[#allocation2 + $0x170] sm:$0xff]  ;;  %13483 = vmatprep.mubr.msk.f32.mxu1 %vm3381_vm4, %v17088_v23 }
 0x21c   : > { %13547 = vmatprep.mubr.msk.f32.mxu0 %vm3381_vm4, %v17090_v18 }
 0x21d   : > { %13484 = vmatmul.mubr.msk.f32.gmra.mxu1 %vm3381_vm4, %v17098_v36  ;;  %13548 = vmatmul.mubr.msk.f32.gmra.mxu0 %vm3381_vm4, %v17092_v16  ;;  %v17118_v36 = vld [vmem:[#allocation2 + $0x1a] sm:$0xff] }
 0x21e   : > { %13566 = vmatprep.mubr.msk.f32.mxu1 %vm3381_vm4, %v4193_v47  ;;  %13630 = vmatprep.mubr.msk.f32.mxu0 %vm3381_vm4, %v16722_v11  ;;  %v14653_v47 = vld [vmem:[%s20088_s4 + $0x138] sm:$0xff]  ;;  %v11429_v11 = vld [vmem:[%s20088_s4 + $0x170] sm:$0xff] }
 0x221   : > { %13567 = vmatmul.mubr.msk.f32.vlgmr.msra.gmra.mxu1 %vm3381_vm4, %v4194_v38  ;;  %13631 = vmatmul.mubr.msk.f32.vlgmr.msra.gmra.mxu0 %vm3381_vm4, %v16724_v33  ;;  %v17127_v38 = vld [vmem:[#allocation2 + $0x22] sm:$0xff]  ;;  %v17132_v33 = vld [vmem:[#allocation2 + $0x32] sm:$0xff] }
 0x222   : > { %13679 = vmatpush3.msra.mxu1 %v14653_v47  ;;  %13569 = vmatprep.mubr.msk.f32.mxu1 %vm3381_vm4, %v17118_v36  ;;  %v17168_v47 = vld [vmem:[#allocation2 + $0x62] sm:$0xff] }
 0x223   : > { %v13440_v29 = vpop.f32.mrf.mxu1  ;;  %13633 = vmatprep.mubr.msk.f32.mxu0 %vm3381_vm4, %v16752_v44  ;;  %13680 = vmatprep.subr.mxu1 %v11389_v43  ;;  %v17146_v44 = vld [vmem:[#allocation2 + $0x3a] sm:$0xff] }
 0x224   : > { %v13504_v12 = vpop.f32.mrf.mxu0  ;;  %13743 = vmatpush3.msra.mxu0 %v16640_v3  ;;  %v11428_v3 = vld [vmem:[%s20088_s4 + $0x168] sm:$0xff]  ;;  %13681 = vmatpush3.msra.mxu1 %v11389_v43  ;;  %v17164_v43 = vld [vmem:[#allocation2 + $0x52] sm:$0xff] }
 0x225   : > { %v17111_v23 = vadd.f32 %v13504_v12, %v13440_v29  ;;  %13570 = vmatmul.mubr.msk.f32.gmra.mxu1 %vm3381_vm4, %v17127_v38  ;;  %v11388_v29 = vld [vmem:[%s20088_s4 + $0x128] sm:$0xff]  ;;  %13744 = vmatprep.subr.mxu0 %v11429_v11 }
 0x226   : > { %13634 = vmatmul.mubr.msk.f32.gmra.mxu0 %vm3381_vm4, %v16754_v42  ;;  %13572 = vmatprep.mubr.msk.f32.mxu1 %vm3381_vm4, %v17132_v33  ;;  %v17150_v12 = vld [vmem:[#allocation2 + $0x4a] sm:$0xff]  ;;  %v11387_v42 = vld [vmem:[%s20088_s4 + $0x120] sm:$0xff] }
 0x227   : > { %13636 = vmatprep.mubr.msk.f32.mxu0 %vm3381_vm4, %v16782_v55  ;;  %13682 = vmatprep.subr.mxu1 %v11388_v29  ;;  %v11427_v55 = vld [vmem:[%s20088_s4 + $0x160] sm:$0xff] }
 0x228   : > { %13745 = vmatpush3.msra.mxu0 %v11429_v11  ;;  %13683 = vmatpush3.msra.mxu1 %v11388_v29  ;;  %v17182_v11 = vld [vmem:[#allocation2 + $0x6a] sm:$0xff]  ;;  %v17186_v29 = vld [vmem:[#allocation2 + $0x7a] sm:$0xff] }
 0x229   : > { %13573 = vmatmul.mubr.msk.f32.gmra.mxu1 %vm3381_vm4, %v17146_v44  ;;  %13746 = vmatprep.subr.mxu0 %v11428_v3 }
 0x22a   : > { %13637 = vmatmul.mubr.msk.f32.gmra.mxu0 %vm3381_vm4, %v16784_v41  ;;  %13575 = vmatprep.mubr.msk.f32.mxu1 %vm3381_vm4, %v17150_v12  ;;  %v11386_v41 = vld [vmem:[%s20088_s4 + $0x118] sm:$0xff] }
 0x22b   : > { %13639 = vmatprep.mubr.msk.f32.mxu0 %vm3381_vm4, %v16810_v17  ;;  %13684 = vmatprep.subr.mxu1 %v11387_v42  ;;  %v11426_v17 = vld [vmem:[%s20088_s4 + $0x158] sm:$0xff] }
 0x22c   : > { %13747 = vmatpush3.msra.mxu0 %v11428_v3  ;;  %13685 = vmatpush3.msra.mxu1 %v11387_v42  ;;  %v17200_v3 = vld [vmem:[#allocation2 + $0x82] sm:$0xff]  ;;  %v17204_v42 = vld [vmem:[#allocation2 + $0x92] sm:$0xff] }
 0x22d   : > { %13576 = vmatmul.mubr.msk.f32.gmra.mxu1 %vm3381_vm4, %v17164_v43  ;;  %13748 = vmatprep.subr.mxu0 %v11427_v55 }
 0x22e   : > { %13640 = vmatmul.mubr.msk.f32.gmra.mxu0 %vm3381_vm4, %v16812_v51  ;;  %13578 = vmatprep.mubr.msk.f32.mxu1 %vm3381_vm4, %v17168_v47  ;;  %v11385_v51 = vld [vmem:[%s20088_s4 + $0x110] sm:$0xff] }
 0x22f   : > { %13642 = vmatprep.mubr.msk.f32.mxu0 %vm3381_vm4, %v16844_v59  ;;  %13686 = vmatprep.subr.mxu1 %v11386_v41  ;;  %v11425_v59 = vld [vmem:[%s20088_s4 + $0x150] sm:$0xff] }
 0x230   : > { %13749 = vmatpush3.msra.mxu0 %v11427_v55  ;;  %13687 = vmatpush3.msra.mxu1 %v11386_v41  ;;  %v17218_v55 = vld [vmem:[#allocation2 + $0x9a] sm:$0xff]  ;;  %v17222_v41 = vld [vmem:[#allocation2 + $0xaa] sm:$0xff] }
 0x231   : > { %13579 = vmatmul.mubr.msk.f32.gmra.mxu1 %vm3381_vm4, %v17182_v11  ;;  %13750 = vmatprep.subr.mxu0 %v11426_v17 }
 0x232   : > { %13643 = vmatmul.mubr.msk.f32.gmra.mxu0 %vm3381_vm4, %v16846_v54  ;;  %13581 = vmatprep.mubr.msk.f32.mxu1 %vm3381_vm4, %v17186_v29  ;;  %v11384_v54 = vld [vmem:[%s20088_s4 + $0x108] sm:$0xff] }
 0x233   : > { %13645 = vmatprep.mubr.msk.f32.mxu0 %vm3381_vm4, %v16871_v32  ;;  %13688 = vmatprep.subr.mxu1 %v11385_v51  ;;  %v11424_v32 = vld [vmem:[%s20088_s4 + $0x148] sm:$0xff] }
 0x234   : > { %13751 = vmatpush3.msra.mxu0 %v11426_v17  ;;  %13689 = vmatpush3.msra.mxu1 %v11385_v51  ;;  %v17236_v17 = vld [vmem:[#allocation2 + $0xb2] sm:$0xff]  ;;  %v17240_v51 = vld [vmem:[#allocation2 + $0xc2] sm:$0xff] }
 0x235   : > { %13582 = vmatmul.mubr.msk.f32.gmra.mxu1 %vm3381_vm4, %v17200_v3  ;;  %13752 = vmatprep.subr.mxu0 %v11425_v59 }
 0x236   : > { %13646 = vmatmul.mubr.msk.f32.gmra.mxu0 %vm3381_vm4, %v16873_v21  ;;  %13584 = vmatprep.mubr.msk.f32.mxu1 %vm3381_vm4, %v17204_v42  ;;  %v11383_v21 = vld [vmem:[%s20088_s4 + $0x100] sm:$0xff] }
 0x237   : > { %13648 = vmatprep.mubr.msk.f32.mxu0 %vm3381_vm4, %v16900_v49  ;;  %13690 = vmatprep.subr.mxu1 %v11384_v54  ;;  %v11423_v49 = vld [vmem:[%s20088_s4 + $0x140] sm:$0xff] }
 0x238   : > { %13753 = vmatpush3.msra.mxu0 %v11425_v59  ;;  %13691 = vmatpush3.msra.mxu1 %v11384_v54  ;;  %v17254_v59 = vld [vmem:[#allocation2 + $0xca] sm:$0xff]  ;;  %v17258_v54 = vld [vmem:[#allocation2 + $0xda] sm:$0xff] }
 0x239   : > { %13585 = vmatmul.mubr.msk.f32.gmra.mxu1 %vm3381_vm4, %v17218_v55  ;;  %13754 = vmatprep.subr.mxu0 %v11424_v32 }
 0x23a   : > { %13649 = vmatmul.mubr.msk.f32.gmra.mxu0 %vm3381_vm4, %v16908_v26  ;;  %13587 = vmatprep.mubr.msk.f32.mxu1 %vm3381_vm4, %v17222_v41  ;;  %v11470_v26 = vld [vmem:[%s20088_s4 + $0x1b8] sm:$0xff] }
 0x23b   : > { %13651 = vmatprep.mubr.msk.f32.mxu0 %vm3381_vm4, %v16930_v25  ;;  %13692 = vmatprep.subr.mxu1 %v11383_v21  ;;  %v11510_v25 = vld [vmem:[%s20088_s4 + $0x1f8] sm:$0xff] }
 0x23c   : > { %13755 = vmatpush3.msra.mxu0 %v11424_v32  ;;  %13693 = vmatpush3.msra.mxu1 %v11383_v21  ;;  %v17340_v32 = vld [vmem:[#allocation2 + $0x172] sm:$0xff] }
 0x23d   : > { %13588 = vmatmul.mubr.msk.f32.gmra.mxu1 %vm3381_vm4, %v17236_v17  ;;  %13756 = vmatprep.subr.mxu0 %v11423_v49  ;;  %v11509_v21 = vld [vmem:[%s20088_s4 + $0x1f0] sm:$0xff] }
 0x23e   : > { %13652 = vmatmul.mubr.msk.f32.gmra.mxu0 %vm3381_vm4, %v16938_v58  ;;  %13590 = vmatprep.mubr.msk.f32.mxu1 %vm3381_vm4, %v17240_v51  ;;  %v17266_v58 = vld [vmem:[#allocation2 + $0xe2] sm:$0xff] }
 0x23f   : > { %13654 = vmatprep.mubr.msk.f32.mxu0 %vm3381_vm4, %v16958_v9  ;;  %13757 = vmatpush3.msra.mxu0 %v11423_v49  ;;  %v17270_v9 = vld [vmem:[#allocation2 + $0xf2] sm:$0xff] }
 0x240   : > { %13806 = vmatprep.subr.mxu1 %v11470_v26  ;;  %13870 = vmatprep.subr.mxu0 %v11510_v25 }
 0x241   : > { %13591 = vmatmul.mubr.msk.f32.gmra.mxu1 %vm3381_vm4, %v17254_v59 }
 0x242   : > { %13655 = vmatmul.mubr.msk.f32.gmra.mxu0 %vm3381_vm4, %v16966_v31  ;;  %13593 = vmatprep.mubr.msk.f32.mxu1 %vm3381_vm4, %v17258_v54  ;;  %v17278_v31 = vld [vmem:[#allocation2 + $0xfa] sm:$0xff] }
 0x243   : > { %13657 = vmatprep.mubr.msk.f32.mxu0 %vm3381_vm4, %v16988_v0  ;;  %v17282_v0 = vld [vmem:[#allocation2 + $0x10a] sm:$0xff] }
 0x245   : > { %13594 = vmatmul.mubr.msk.f32.gmra.mxu1 %vm3381_vm4, %v17266_v58 }
 0x246   : > { %13658 = vmatmul.mubr.msk.f32.gmra.mxu0 %vm3381_vm4, %v16990_v5  ;;  %13596 = vmatprep.mubr.msk.f32.mxu1 %vm3381_vm4, %v17270_v9  ;;  %v17290_v5 = vld [vmem:[#allocation2 + $0x112] sm:$0xff] }
 0x247   : > { %13660 = vmatprep.mubr.msk.f32.mxu0 %vm3381_vm4, %v17010_v37  ;;  %v17294_v37 = vld [vmem:[#allocation2 + $0x122] sm:$0xff] }
 0x249   : > { %13597 = vmatmul.mubr.msk.f32.gmra.mxu1 %vm3381_vm4, %v17278_v31 }
 0x24a   : > { %13661 = vmatmul.mubr.msk.f32.gmra.mxu0 %vm3381_vm4, %v17019_v2  ;;  %13599 = vmatprep.mubr.msk.f32.mxu1 %vm3381_vm4, %v17282_v0  ;;  %v17302_v2 = vld [vmem:[#allocation2 + $0x12a] sm:$0xff] }
 0x24b   : > { %13663 = vmatprep.mubr.msk.f32.mxu0 %vm3381_vm4, %v17032_v4  ;;  %v17306_v4 = vld [vmem:[#allocation2 + $0x13a] sm:$0xff] }
 0x24d   : > { %13600 = vmatmul.mubr.msk.f32.gmra.mxu1 %vm3381_vm4, %v17290_v5 }
 0x24e   : > { %13664 = vmatmul.mubr.msk.f32.gmra.mxu0 %vm3381_vm4, %v17040_v62  ;;  %13602 = vmatprep.mubr.msk.f32.mxu1 %vm3381_vm4, %v17294_v37  ;;  %v17314_v62 = vld [vmem:[#allocation2 + $0x142] sm:$0xff] }
 0x24f   : > { %13666 = vmatprep.mubr.msk.f32.mxu0 %vm3381_vm4, %v17054_v15  ;;  %v17318_v15 = vld [vmem:[#allocation2 + $0x152] sm:$0xff] }
 0x251   : > { %13603 = vmatmul.mubr.msk.f32.gmra.mxu1 %vm3381_vm4, %v17302_v2 }
 0x252   : > { %13667 = vmatmul.mubr.msk.f32.gmra.mxu0 %vm3381_vm4, %v17061_v30  ;;  %13605 = vmatprep.mubr.msk.f32.mxu1 %vm3381_vm4, %v17306_v4  ;;  %v17326_v30 = vld [vmem:[#allocation2 + $0x15a] sm:$0xff] }
 0x253   : > { %13669 = vmatprep.mubr.msk.f32.mxu0 %vm3381_vm4, %v17073_v10  ;;  %v17330_v10 = vld [vmem:[#allocation2 + $0x16a] sm:$0xff] }
 0x255   : > { %13606 = vmatmul.mubr.msk.f32.gmra.mxu1 %vm3381_vm4, %v17314_v62 }
 0x256   : > { %13670 = vmatmul.mubr.msk.f32.gmra.mxu0 %vm3381_vm4, %v17080_v45  ;;  %13608 = vmatprep.mubr.msk.f32.mxu1 %vm3381_vm4, %v17318_v15  ;;  %v17336_v45 = vld [vmem:[#allocation2 + $0x180] sm:$0xff] }
 0x257   : > { %13672 = vmatprep.mubr.msk.f32.mxu0 %vm3381_vm4, %v17090_v18  ;;  %v17344_v18 = vld [vmem:[#allocation2 + $0x188] sm:$0xff] }
 0x259   : > { %13609 = vmatmul.mubr.msk.f32.gmra.mxu1 %vm3381_vm4, %v17326_v30 }
 0x25a   : > { %13673 = vmatmul.mubr.msk.f32.gmra.mxu0 %vm3381_vm4, %v17092_v16  ;;  %13611 = vmatprep.mubr.msk.f32.mxu1 %vm3381_vm4, %v17330_v10  ;;  %v11469_v16 = vld [vmem:[%s20088_s4 + $0x1b0] sm:$0xff] }
 0x25b   : > { %13675 = vmatprep.mubr.msk.f32.mxu0 %vm3381_vm4, %v17336_v45 }
 0x25d   : > { %13612 = vmatmul.mubr.msk.f32.gmra.mxu1 %vm3381_vm4, %v17340_v32 }
 0x25e   : > { %13676 = vmatmul.mubr.msk.f32.gmra.mxu0 %vm3381_vm4, %v17344_v18  ;;  %13694 = vmatprep.mubr.msk.f32.mxu1 %vm3381_vm4, %v16720_v50  ;;  %v11468_v50 = vld [vmem:[%s20088_s4 + $0x1a8] sm:$0xff] }
 0x25f   : > { %13758 = vmatprep.mubr.msk.f32.mxu0 %vm3381_vm4, %v17118_v36  ;;  %v20282_v36 = vld [vmem:[#allocation14_spill] sm:$0xff] }
 0x261   : > { %13695 = vmatmul.mubr.msk.f32.vlgmr.msra.gmra.mxu1 %vm3381_vm4, %v16733_v56  ;;  %v11508_v56 = vld [vmem:[%s20088_s4 + $0x1e8] sm:$0xff] }
 0x262   : > { %13759 = vmatmul.mubr.msk.f32.vlgmr.msra.gmra.mxu0 %vm3381_vm4, %v17127_v38  ;;  %13807 = vmatpush3.msra.mxu1 %v11470_v26  ;;  %v17537_v38 = vpop.f32.mrf.mxu0 }
 0x263   : > { %13697 = vmatprep.mubr.msk.f32.mxu1 %vm3381_vm4, %v16750_v34  ;;  %13761 = vmatprep.mubr.msk.f32.mxu0 %vm3381_vm4, %v17132_v33  ;;  %v11467_v34 = vld [vmem:[%s20088_s4 + $0x1a0] sm:$0xff]  ;;  %v5772_v33 = vld [vmem:[#allocation2 + $0x48] sm:$0xff] }
 0x264   : > { %13808 = vmatprep.subr.mxu1 %v11469_v16  ;;  %13871 = vmatpush3.msra.mxu0 %v11510_v25  ;;  %v5775_v25 = vld [vmem:[#allocation2 + $0x68] sm:$0xff] }
 0x265   : > { %13698 = vmatmul.mubr.msk.f32.gmra.mxu1 %vm3381_vm4, %v16762_v20  ;;  %13872 = vmatprep.subr.mxu0 %v11509_v21  ;;  %v11507_v20 = vld [vmem:[%s20088_s4 + $0x1e0] sm:$0xff] }
 0x266   : > { %13762 = vmatmul.mubr.msk.f32.gmra.mxu0 %vm3381_vm4, %v17146_v44  ;;  %13700 = vmatprep.mubr.msk.f32.mxu1 %vm3381_vm4, %v16780_v13  ;;  %v11466_v13 = vld [vmem:[%s20088_s4 + $0x198] sm:$0xff]  ;;  %v6166_v44 = vld [vmem:[#allocation2 + $0x49] sm:$0xff] }
 0x267   : > { %13764 = vmatprep.mubr.msk.f32.mxu0 %vm3381_vm4, %v17150_v12  ;;  %13809 = vmatpush3.msra.mxu1 %v11469_v16  ;;  %v6172_v16 = vld [vmem:[#allocation2 + $0x91] sm:$0xff] }
 0x268   : > { %13810 = vmatprep.subr.mxu1 %v11468_v50  ;;  %13873 = vmatpush3.msra.mxu0 %v11509_v21 }
 0x269   : > { %13701 = vmatmul.mubr.msk.f32.gmra.mxu1 %vm3381_vm4, %v16792_v1  ;;  %13874 = vmatprep.subr.mxu0 %v11508_v56  ;;  %v11506_v1 = vld [vmem:[%s20088_s4 + $0x1d8] sm:$0xff] }
 0x26a   : > { %13765 = vmatmul.mubr.msk.f32.gmra.mxu0 %vm3381_vm4, %v17164_v43  ;;  %13703 = vmatprep.mubr.msk.f32.mxu1 %vm3381_vm4, %v16808_v28  ;;  %v11465_v28 = vld [vmem:[%s20088_s4 + $0x190] sm:$0xff] }
 0x26b   : > { %13767 = vmatprep.mubr.msk.f32.mxu0 %vm3381_vm4, %v17168_v47  ;;  %13811 = vmatpush3.msra.mxu1 %v11468_v50  ;;  %v5773_v47 = vld [vmem:[#allocation2 + $0x50] sm:$0xff] }
 0x26c   : > { %13812 = vmatprep.subr.mxu1 %v11467_v34  ;;  %13875 = vmatpush3.msra.mxu0 %v11508_v56 }
 0x26d   : > { %13704 = vmatmul.mubr.msk.f32.gmra.mxu1 %vm3381_vm4, %v16820_v52  ;;  %13876 = vmatprep.subr.mxu0 %v11507_v20  ;;  %v11505_v52 = vld [vmem:[%s20088_s4 + $0x1d0] sm:$0xff] }
 0x26e   : > { %13768 = vmatmul.mubr.msk.f32.gmra.mxu0 %vm3381_vm4, %v17182_v11  ;;  %13706 = vmatprep.mubr.msk.f32.mxu1 %vm3381_vm4, %v16842_v60  ;;  %v11464_v60 = vld [vmem:[%s20088_s4 + $0x188] sm:$0xff] }
 0x26f   : > { %13770 = vmatprep.mubr.msk.f32.mxu0 %vm3381_vm4, %v17186_v29  ;;  %13813 = vmatpush3.msra.mxu1 %v11467_v34  ;;  %v6167_v29 = vld [vmem:[#allocation2 + $0x51] sm:$0xff] }
 0x270   : > { %13814 = vmatprep.subr.mxu1 %v11466_v13  ;;  %13877 = vmatpush3.msra.mxu0 %v11507_v20 }
 0x271   : > { %13707 = vmatmul.mubr.msk.f32.gmra.mxu1 %vm3381_vm4, %v16856_v19  ;;  %13878 = vmatprep.subr.mxu0 %v11506_v1  ;;  %v11504_v19 = vld [vmem:[%s20088_s4 + $0x1c8] sm:$0xff] }
 0x272   : > { %13771 = vmatmul.mubr.msk.f32.gmra.mxu0 %vm3381_vm4, %v17200_v3  ;;  %13709 = vmatprep.mubr.msk.f32.mxu1 %vm3381_vm4, %v16869_v14  ;;  %v11463_v14 = vld [vmem:[%s20088_s4 + $0x180] sm:$0xff] }
 0x273   : > { %13773 = vmatprep.mubr.msk.f32.mxu0 %vm3381_vm4, %v17204_v42  ;;  %13815 = vmatpush3.msra.mxu1 %v11466_v13  ;;  %v5774_v3 = vld [vmem:[#allocation2 + $0x60] sm:$0xff]  ;;  %v11548_v42 = vld [vmem:[%s20088_s4 + $0x228] sm:$0xff]  ;;  %v5779_v13 = vld [vmem:[#allocation2 + $0x98] sm:$0xff] }
 0x274   : > { %13816 = vmatprep.subr.mxu1 %v11465_v28  ;;  %13879 = vmatpush3.msra.mxu0 %v11506_v1 }
 0x275   : > { %13710 = vmatmul.mubr.msk.f32.gmra.mxu1 %vm3381_vm4, %v16885_v53  ;;  %13880 = vmatprep.subr.mxu0 %v11505_v52  ;;  %v20281_v53 = vld [vmem:[#allocation12_spill] sm:$0xff] }
 0x276   : > { %13774 = vmatmul.mubr.msk.f32.gmra.mxu0 %vm3381_vm4, %v17218_v55  ;;  %13712 = vmatprep.mubr.msk.f32.mxu1 %vm3381_vm4, %v16898_v8  ;;  %v11503_v8 = vld [vmem:[%s20088_s4 + $0x1c0] sm:$0xff] }
 0x277   : > { %13776 = vmatprep.mubr.msk.f32.mxu0 %vm3381_vm4, %v17222_v41  ;;  %13817 = vmatpush3.msra.mxu1 %v11465_v28  ;;  %v6168_v55 = vld [vmem:[#allocation2 + $0x61] sm:$0xff]  ;;  %v6173_v28 = vld [vmem:[#allocation2 + $0x99] sm:$0xff] }
 0x278   : > { %13818 = vmatprep.subr.mxu1 %v11464_v60  ;;  %13881 = vmatpush3.msra.mxu0 %v11505_v52  ;;  %v5780_v52 = vld [vmem:[#allocation2 + $0xa8] sm:$0xff] }
 0x279   : > { %13713 = vmatmul.mubr.msk.f32.gmra.mxu1 %vm3381_vm4, %v16916_v7  ;;  %13882 = vmatprep.subr.mxu0 %v11504_v19  ;;  %v11550_v7 = vld [vmem:[%s20088_s4 + $0x238] sm:$0xff] }
 0x27a   : > { %13777 = vmatmul.mubr.msk.f32.gmra.mxu0 %vm3381_vm4, %v17236_v17  ;;  %13715 = vmatprep.mubr.msk.f32.mxu1 %vm3381_vm4, %v20281_v53 }
 0x27b   : > { %13779 = vmatprep.mubr.msk.f32.mxu0 %vm3381_vm4, %v17240_v51  ;;  %13819 = vmatpush3.msra.mxu1 %v11464_v60  ;;  %v11545_v60 = vld [vmem:[%s20088_s4 + $0x210] sm:$0xff] }
 0x27c   : > { %13820 = vmatprep.subr.mxu1 %v11463_v14  ;;  %13883 = vmatpush3.msra.mxu0 %v11504_v19  ;;  %v6174_v19 = vld [vmem:[#allocation2 + $0xa9] sm:$0xff] }
 0x27d   : > { %13716 = vmatmul.mubr.msk.f32.gmra.mxu1 %vm3381_vm4, %v16944_v39  ;;  %13884 = vmatprep.subr.mxu0 %v11503_v8  ;;  %v20283_v39 = vld [vmem:[#allocation16_spill] sm:$0xff] }
 0x27e   : > { %13780 = vmatmul.mubr.msk.f32.gmra.mxu0 %vm3381_vm4, %v17254_v59  ;;  %13718 = vmatprep.mubr.msk.f32.mxu1 %vm3381_vm4, %v20282_v36 }
 0x27f   : > { %13782 = vmatprep.mubr.msk.f32.mxu0 %vm3381_vm4, %v17258_v54  ;;  %13821 = vmatpush3.msra.mxu1 %v11463_v14  ;;  %v6169_v54 = vld [vmem:[#allocation2 + $0x69] sm:$0xff] }
 0x280   : > { %13885 = vmatpush3.msra.mxu0 %v11503_v8  ;;  %13934 = vmatprep.subr.mxu1 %v11550_v7 }
 0x281   : > { %13719 = vmatmul.mubr.msk.f32.gmra.mxu1 %vm3381_vm4, %v16973_v46  ;;  %v20284_v46 = vld [vmem:[#allocation18_spill] sm:$0xff] }
 0x282   : > { %13783 = vmatmul.mubr.msk.f32.gmra.mxu0 %vm3381_vm4, %v17266_v58  ;;  %13721 = vmatprep.mubr.msk.f32.mxu1 %vm3381_vm4, %v16986_v63  ;;  %v17511_v63 = vld [vmem:[#allocation2 + $0x181] sm:$0xff]  ;;  %v5776_v58 = vld [vmem:[#allocation2 + $0x78] sm:$0xff] }
 0x283   : > { %13785 = vmatprep.mubr.msk.f32.mxu0 %vm3381_vm4, %v17270_v9  ;;  %v11547_v9 = vld [vmem:[%s20088_s4 + $0x220] sm:$0xff] }
 0x285   : > { %13722 = vmatmul.mubr.msk.f32.gmra.mxu1 %vm3381_vm4, %v16998_v57  ;;  %v17517_v57 = vld [vmem:[#allocation2 + $0x182] sm:$0xff] }
 0x286   : > { %13786 = vmatmul.mubr.msk.f32.gmra.mxu0 %vm3381_vm4, %v17278_v31  ;;  %13724 = vmatprep.mubr.msk.f32.mxu1 %vm3381_vm4, %v17008_v24  ;;  %v17521_v24 = vld [vmem:[#allocation2 + $0x189] sm:$0xff]  ;;  %v6170_v31 = vld [vmem:[#allocation2 + $0x79] sm:$0xff] }
 0x287   : > { %13788 = vmatprep.mubr.msk.f32.mxu0 %vm3381_vm4, %v17282_v0 }
 0x289   : > { %13725 = vmatmul.mubr.msk.f32.gmra.mxu1 %vm3381_vm4, %v17021_v6  ;;  %v17525_v6 = vld [vmem:[#allocation2 + $0x18a] sm:$0xff] }
 0x28a   : > { %13789 = vmatmul.mubr.msk.f32.gmra.mxu0 %vm3381_vm4, %v17290_v5  ;;  %13727 = vmatprep.mubr.msk.f32.mxu1 %vm3381_vm4, %v17030_v61  ;;  %v5770_v61 = vld [vmem:[#allocation2 + $0x30] sm:$0xff] }
 0x28b   : > { %13791 = vmatprep.mubr.msk.f32.mxu0 %vm3381_vm4, %v17294_v37 }
 0x28d   : > { %13728 = vmatmul.mubr.msk.f32.gmra.mxu1 %vm3381_vm4, %v17043_v22  ;;  %v6164_v22 = vld [vmem:[#allocation2 + $0x31] sm:$0xff] }
 0x28e   : > { %13792 = vmatmul.mubr.msk.f32.gmra.mxu0 %vm3381_vm4, %v17302_v2  ;;  %13730 = vmatprep.mubr.msk.f32.mxu1 %vm3381_vm4, %v17052_v35  ;;  %v5771_v35 = vld [vmem:[#allocation2 + $0x38] sm:$0xff] }
 0x28f   : > { %13794 = vmatprep.mubr.msk.f32.mxu0 %vm3381_vm4, %v17306_v4 }
 0x291   : > { %13731 = vmatmul.mubr.msk.f32.gmra.mxu1 %vm3381_vm4, %v17064_v27  ;;  %v6165_v27 = vld [vmem:[#allocation2 + $0x39] sm:$0xff] }
 0x292   : > { %13795 = vmatmul.mubr.msk.f32.gmra.mxu0 %vm3381_vm4, %v17314_v62  ;;  %13733 = vmatprep.mubr.msk.f32.mxu1 %vm3381_vm4, %v17071_v48  ;;  %v11549_v48 = vld [vmem:[%s20088_s4 + $0x230] sm:$0xff]  ;;  %v5777_v62 = vld [vmem:[#allocation2 + $0x80] sm:$0xff] }
 0x293   : > { %13797 = vmatprep.mubr.msk.f32.mxu0 %vm3381_vm4, %v17318_v15 }
 0x295   : > { %13734 = vmatmul.mubr.msk.f32.gmra.mxu1 %vm3381_vm4, %v17082_v40  ;;  %v17535_v40 = vpop.f32.mrf.mxu1 }
 0x296   : > { %13798 = vmatmul.mubr.msk.f32.gmra.mxu0 %vm3381_vm4, %v17326_v30  ;;  %13736 = vmatprep.mubr.msk.f32.mxu1 %vm3381_vm4, %v20283_v39  ;;  %v6171_v30 = vld [vmem:[#allocation2 + $0x81] sm:$0xff] }
 0x297   : > { %13800 = vmatprep.mubr.msk.f32.mxu0 %vm3381_vm4, %v17330_v10  ;;  %v5778_v10 = vld [vmem:[#allocation2 + $0x90] sm:$0xff] }
 0x299   : > { %13737 = vmatmul.mubr.msk.f32.gmra.mxu1 %vm3381_vm4, %v20284_v46  ;;  %v6175_v46 = vld [vmem:[#allocation2 + $0xb1] sm:$0xff] }
 0x29a   : > { %13801 = vmatmul.mubr.msk.f32.gmra.mxu0 %vm3381_vm4, %v17340_v32  ;;  %13739 = vmatprep.mubr.msk.f32.mxu1 %vm3381_vm4, %v17511_v63  ;;  %v11546_v32 = vld [vmem:[%s20088_s4 + $0x218] sm:$0xff] }
 0x29b   : > { %13803 = vmatprep.mubr.msk.f32.mxu0 %vm3381_vm4, %v17517_v57 }
 0x29d   : > { %13740 = vmatmul.mubr.msk.f32.gmra.mxu1 %vm3381_vm4, %v17521_v24 }
 0x29e   : > { %13804 = vmatmul.mubr.msk.f32.gmra.mxu0 %vm3381_vm4, %v17525_v6  ;;  %13822 = vmatprep.mubr.msk.f32.mxu1 %vm3381_vm4, %v5770_v61  ;;  %v5782_v61 = vld [vmem:[#allocation2 + $0xc0] sm:$0xff] }
 0x29f   : > { %13886 = vmatprep.mubr.msk.f32.mxu0 %vm3381_vm4, %v6164_v22  ;;  %v11544_v22 = vld [vmem:[%s20088_s4 + $0x208] sm:$0xff] }
 0x2a1   : > { %13823 = vmatmul.mubr.msk.f32.vlgmr.msra.gmra.mxu1 %vm3381_vm4, %v5771_v35 }
 0x2a2   : > { %13887 = vmatmul.mubr.msk.f32.vlgmr.msra.gmra.mxu0 %vm3381_vm4, %v6165_v27  ;;  %13935 = vmatpush3.msra.mxu1 %v11550_v7  ;;  %v13443_v12 = vpop.f32.mrf.mxu1  ;;  %v5781_v7 = vld [vmem:[#allocation2 + $0xb0] sm:$0xff]  ;;  %v6176_v27 = vld [vmem:[#allocation2 + $0xc1] sm:$0xff] }
 0x2a3   : > { %13825 = vmatprep.mubr.msk.f32.mxu1 %vm3381_vm4, %v5772_v33  ;;  %13889 = vmatprep.mubr.msk.f32.mxu0 %vm3381_vm4, %v6166_v44  ;;  %v13507_v43 = vpop.f32.mrf.mxu0 }
 0x2a4   : > { %13936 = vmatprep.subr.mxu1 %v11549_v48  ;;  %v17542_v11 = vadd.f32 %v13507_v43, %v13443_v12  ;;  %v3723_v41 = vpop.f32.mrf.mxu1  ;;  %v5783_v12 = vld [vmem:[#allocation2 + $0xc8] sm:$0xff] }
 0x2a5   : > { %13826 = vmatmul.mubr.msk.f32.gmra.mxu1 %vm3381_vm4, %v5773_v47  ;;  %v4044_v49 = vpop.f32.mrf.mxu0 }
 0x2a6   : > { %13890 = vmatmul.mubr.msk.f32.gmra.mxu0 %vm3381_vm4, %v6167_v29  ;;  %13828 = vmatprep.mubr.msk.f32.mxu1 %vm3381_vm4, %v5774_v3  ;;  %v17551_v17 = vadd.f32 %v4044_v49, %v3723_v41  ;;  %v13446_v51 = vpop.f32.mrf.mxu1  ;;  %v6177_v29 = vld [vmem:[#allocation2 + $0xc9] sm:$0xff]  ;;  %v5784_v3 = vld [vmem:[#allocation2 + $0xd8] sm:$0xff] }
 0x2a7   : > { %13892 = vmatprep.mubr.msk.f32.mxu0 %vm3381_vm4, %v6168_v55  ;;  %13937 = vmatpush3.msra.mxu1 %v11549_v48  ;;  %v13510_v26 = vpop.f32.mrf.mxu0  ;;  %v6178_v41 = vld [vmem:[#allocation2 + $0xd9] sm:$0xff] }
 0x2a8   : > { %13938 = vmatprep.subr.mxu1 %v11548_v42  ;;  %v17553_v59 = vadd.f32 %v13510_v26, %v13446_v51  ;;  %v3733_v0 = vpop.f32.mrf.mxu1 }
 0x2a9   : > { %13829 = vmatmul.mubr.msk.f32.gmra.mxu1 %vm3381_vm4, %v5775_v25  ;;  %v4054_v5 = vpop.f32.mrf.mxu0  ;;  %v5785_v25 = vld [vmem:[#allocation2 + $0xe0] sm:$0xff] }
 0x2aa   : > { %13893 = vmatmul.mubr.msk.f32.gmra.mxu0 %vm3381_vm4, %v6169_v54  ;;  %13831 = vmatprep.mubr.msk.f32.mxu1 %vm3381_vm4, %v5776_v58  ;;  %v17562_v37 = vadd.f32 %v4054_v5, %v3733_v0  ;;  %v13449_v2 = vpop.f32.mrf.mxu1  ;;  %v6179_v58 = vld [vmem:[#allocation2 + $0xe1] sm:$0xff]  ;;  %v6180_v0 = vld [vmem:[#allocation2 + $0xf1] sm:$0xff] }
 0x2ab   : > { %13895 = vmatprep.mubr.msk.f32.mxu0 %vm3381_vm4, %v6170_v31  ;;  %13939 = vmatpush3.msra.mxu1 %v11548_v42  ;;  %v13513_v4 = vpop.f32.mrf.mxu0  ;;  %v11543_v42 = vld [vmem:[%s20088_s4 + $0x200] sm:$0xff]  ;;  %s19778_s4 = scalar_lea.hbm %s19887_s11, %s11952_s17 }
 0x2ac   : > { %13940 = vmatprep.subr.mxu1 %v11547_v9  ;;  %v17564_v15 = vadd.f32 %v13513_v4, %v13449_v2  ;;  %v3743_v21 = vpop.f32.mrf.mxu1 }
 0x2ad   : > { %13832 = vmatmul.mubr.msk.f32.gmra.mxu1 %vm3381_vm4, %v5777_v62  ;;  %v4064_v50 = vpop.f32.mrf.mxu0  ;;  %v5787_v62 = vld [vmem:[#allocation2 + $0xf8] sm:$0xff] }
 0x2ae   : > { %13896 = vmatmul.mubr.msk.f32.gmra.mxu0 %vm3381_vm4, %v6171_v30  ;;  %13834 = vmatprep.mubr.msk.f32.mxu1 %vm3381_vm4, %v5778_v10  ;;  %v17573_v56 = vadd.f32 %v4064_v50, %v3743_v21  ;;  %v13452_v34 = vpop.f32.mrf.mxu1  ;;  %v6182_v50 = vld [vmem:[#allocation2 + $0x109] sm:$0xff] }
 0x2af   : > { %13898 = vmatprep.mubr.msk.f32.mxu0 %vm3381_vm4, %v6172_v16  ;;  %13941 = vmatpush3.msra.mxu1 %v11547_v9  ;;  %v13516_v20 = vpop.f32.mrf.mxu0  ;;  %v5786_v9 = vld [vmem:[#allocation2 + $0xf0] sm:$0xff]  ;;  %v5788_v16 = vld [vmem:[#allocation2 + $0x108] sm:$0xff] }
 0x2b0   : > { %13942 = vmatprep.subr.mxu1 %v11546_v32  ;;  %v17575_v1 = vadd.f32 %v13516_v20, %v13452_v34  ;;  %v3753_v14 = vpop.f32.mrf.mxu1 }
 0x2b1   : > { %13835 = vmatmul.mubr.msk.f32.gmra.mxu1 %vm3381_vm4, %v5779_v13  ;;  %v4074_v53 = vpop.f32.mrf.mxu0 }
 0x2b2   : > { %13899 = vmatmul.mubr.msk.f32.gmra.mxu0 %vm3381_vm4, %v6173_v28  ;;  %13837 = vmatprep.mubr.msk.f32.mxu1 %vm3381_vm4, %v5780_v52  ;;  %v17584_v8 = vadd.f32 %v4074_v53, %v3753_v14  ;;  %v5789_v28 = vld [vmem:[#allocation2 + $0x110] sm:$0xff]  ;;  %v6184_v53 = vld [vmem:[#allocation2 + $0x121] sm:$0xff] }
 0x2b3   : > { %13901 = vmatprep.mubr.msk.f32.mxu0 %vm3381_vm4, %v6174_v19  ;;  %13943 = vmatpush3.msra.mxu1 %v11546_v32  ;;  %v13455_v36 = vpop.f32.mrf.mxu1  ;;  %v6181_v32 = vld [vmem:[#allocation2 + $0xf9] sm:$0xff] }
 0x2b4   : > { %13944 = vmatprep.subr.mxu1 %v11545_v60  ;;  %v13519_v39 = vpop.f32.mrf.mxu0  ;;  %v5790_v19 = vld [vmem:[#allocation2 + $0x120] sm:$0xff] }
 0x2b5   : > { %13838 = vmatmul.mubr.msk.f32.gmra.mxu1 %vm3381_vm4, %v5781_v7  ;;  %v17590_v35 = vadd.f32 %v13519_v39, %v13455_v36  ;;  %v3763_v48 = vpop.f32.mrf.mxu1 }
 0x2b6   : > { %13902 = vmatmul.mubr.msk.f32.gmra.mxu0 %vm3381_vm4, %v6175_v46  ;;  %13840 = vmatprep.mubr.msk.f32.mxu1 %vm3381_vm4, %v5782_v61  ;;  %v4084_v33 = vpop.f32.mrf.mxu0  ;;  %v5791_v46 = vld [vmem:[#allocation2 + $0x128] sm:$0xff] }
 0x2b7   : > { %13904 = vmatprep.mubr.msk.f32.mxu0 %vm3381_vm4, %v6176_v27  ;;  %13945 = vmatpush3.msra.mxu1 %v11545_v60  ;;  %v17595_v44 = vadd.f32 %v4084_v33, %v3763_v48  ;;  %v13458_v43 = vpop.f32.mrf.mxu1  ;;  %v6183_v60 = vld [vmem:[#allocation2 + $0x111] sm:$0xff]  ;;  %v6186_v33 = vld [vmem:[#allocation2 + $0x139] sm:$0xff] }
 0x2b8   : > { %13946 = vmatprep.subr.mxu1 %v11544_v22  ;;  %v13522_v47 = vpop.f32.mrf.mxu0  ;;  %v5792_v27 = vld [vmem:[#allocation2 + $0x138] sm:$0xff] }
 0x2b9   : > { %13841 = vmatmul.mubr.msk.f32.gmra.mxu1 %vm3381_vm4, %v5783_v12  ;;  %v17601_v55 = vadd.f32 %v13522_v47, %v13458_v43  ;;  %v3773_v49 = vpop.f32.mrf.mxu1 }
 0x2ba   : > { %13905 = vmatmul.mubr.msk.f32.gmra.mxu0 %vm3381_vm4, %v6177_v29  ;;  %13843 = vmatprep.mubr.msk.f32.mxu1 %vm3381_vm4, %v5784_v3  ;;  %v4094_v51 = vpop.f32.mrf.mxu0  ;;  %v5793_v29 = vld [vmem:[#allocation2 + $0x140] sm:$0xff] }
 0x2bb   : > { %13907 = vmatprep.mubr.msk.f32.mxu0 %vm3381_vm4, %v6178_v41  ;;  %13947 = vmatpush3.msra.mxu1 %v11544_v22  ;;  %v17606_v26 = vadd.f32 %v4094_v51, %v3773_v49  ;;  %v6185_v22 = vld [vmem:[#allocation2 + $0x129] sm:$0xff]  ;;  %v6188_v51 = vld [vmem:[#allocation2 + $0x151] sm:$0xff] }
 0x2bc   : > { %13948 = vmatprep.subr.mxu1 %v11543_v42  ;;  %v13461_v54 = vpop.f32.mrf.mxu1  ;;  %v5794_v41 = vld [vmem:[#allocation2 + $0x150] sm:$0xff] }
 0x2bd   : > { %13844 = vmatmul.mubr.msk.f32.gmra.mxu1 %vm3381_vm4, %v5785_v25  ;;  %v13525_v31 = vpop.f32.mrf.mxu0 }
 0x2be   : > { %13908 = vmatmul.mubr.msk.f32.gmra.mxu0 %vm3381_vm4, %v6179_v58  ;;  %13846 = vmatprep.mubr.msk.f32.mxu1 %vm3381_vm4, %v5786_v9  ;;  %v17611_v5 = vadd.f32 %v13525_v31, %v13461_v54  ;;  %v3783_v2 = vpop.f32.mrf.mxu1  ;;  %v5795_v9 = vld [vmem:[#allocation2 + $0x158] sm:$0xff] }
 0x2bf   : > { %13910 = vmatprep.mubr.msk.f32.mxu0 %vm3381_vm4, %v6180_v0  ;;  %13949 = vmatpush3.msra.mxu1 %v11543_v42  ;;  %v4104_v4 = vpop.f32.mrf.mxu0  ;;  %v6187_v42 = vld [vmem:[#allocation2 + $0x141] sm:$0xff]  ;;  %v6189_v0 = vld [vmem:[#allocation2 + $0x159] sm:$0xff] }
 0x2c0   : > { %v17614_v30 = vadd.f32 %v4104_v4, %v3783_v2  ;;  %v13464_v10 = vpop.f32.mrf.mxu1  ;;  %v5796_v2 = vld [vmem:[#allocation2 + $0x168] sm:$0xff] }
 0x2c1   : > { %13847 = vmatmul.mubr.msk.f32.gmra.mxu1 %vm3381_vm4, %v5787_v62  ;;  %v13528_v21 = vpop.f32.mrf.mxu0  ;;  %v6190_v62 = vld [vmem:[#allocation2 + $0x169] sm:$0xff] }
 0x2c2   : > { %13911 = vmatmul.mubr.msk.f32.gmra.mxu0 %vm3381_vm4, %v6181_v32  ;;  %13849 = vmatprep.mubr.msk.f32.mxu1 %vm3381_vm4, %v5788_v16  ;;  %v17619_v34 = vadd.f32 %v13528_v21, %v13464_v10  ;;  %v17622_v20 = vpop.f32.mrf.mxu1  ;;  %v5797_v21 = vld [vmem:[#allocation2 + $0x170] sm:$0xff] }
 0x2c3   : > { %13913 = vmatprep.mubr.msk.f32.mxu0 %vm3381_vm4, %v6182_v50  ;;  %v17624_v13 = vpop.f32.mrf.mxu0 }
 0x2c5   : > { %v13467_v52 = vpop.f32.mrf.mxu1  ;;  %13850 = vmatmul.mubr.msk.f32.gmra.mxu1 %vm3381_vm4, %v5789_v28  ;;  %v13531_v14 = vpop.f32.mrf.mxu0  ;;  %v6191_v28 = vld [vmem:[#allocation2 + $0x171] sm:$0xff] }
 0x2c6   : > { %13914 = vmatmul.mubr.msk.f32.gmra.mxu0 %vm3381_vm4, %v6183_v60  ;;  %13852 = vmatprep.mubr.msk.f32.mxu1 %vm3381_vm4, %v5790_v19  ;;  %v17629_v7 = vadd.f32 %v13531_v14, %v13467_v52  ;;  %v5800_v14 = vld [vmem:[#allocation2 + $0x198] sm:$0xff] }
 0x2c7   : > { %13916 = vmatprep.mubr.msk.f32.mxu0 %vm3381_vm4, %v6184_v53  ;;  %v17632_v36 = vpop.f32.mrf.mxu1  ;;  %v17634_v39 = vpop.f32.mrf.mxu0 }
 0x2c9   : > { %v13470_v61 = vpop.f32.mrf.mxu1  ;;  %13853 = vmatmul.mubr.msk.f32.gmra.mxu1 %vm3381_vm4, %v5791_v46  ;;  %v13534_v48 = vpop.f32.mrf.mxu0  ;;  %v6194_v46 = vld [vmem:[#allocation2 + $0x199] sm:$0xff] }
 0x2ca   : > { %13917 = vmatmul.mubr.msk.f32.gmra.mxu0 %vm3381_vm4, %v6185_v22  ;;  %13855 = vmatprep.mubr.msk.f32.mxu1 %vm3381_vm4, %v5792_v27  ;;  %v17639_v12 = vadd.f32 %v13534_v48, %v13470_v61  ;;  %v6195_v48 = vld [vmem:[#allocation2 + $0x1a1] sm:$0xff] }
 0x2cb   : > { %13919 = vmatprep.mubr.msk.f32.mxu0 %vm3381_vm4, %v6186_v33  ;;  %v17642_v43 = vpop.f32.mrf.mxu1  ;;  %v17644_v47 = vpop.f32.mrf.mxu0 }
 0x2cd   : > { %v13473_v3 = vpop.f32.mrf.mxu1  ;;  %13856 = vmatmul.mubr.msk.f32.gmra.mxu1 %vm3381_vm4, %v5793_v29  ;;  %v13537_v49 = vpop.f32.mrf.mxu0 }
 0x2ce   : > { %13920 = vmatmul.mubr.msk.f32.gmra.mxu0 %vm3381_vm4, %v6187_v42  ;;  %13858 = vmatprep.mubr.msk.f32.mxu1 %vm3381_vm4, %v5794_v41  ;;  %v17649_v25 = vadd.f32 %v13537_v49, %v13473_v3  ;;  %v6559_v49 = vld [vmem:[#allocation2 + $0x3a] sm:$0xff] }
 0x2cf   : > { %13922 = vmatprep.mubr.msk.f32.mxu0 %vm3381_vm4, %v6188_v51  ;;  %v17652_v54 = vpop.f32.mrf.mxu1  ;;  %v17654_v58 = vpop.f32.mrf.mxu0 }
 0x2d1   : > { %v13476_v31 = vpop.f32.mrf.mxu1  ;;  %13859 = vmatmul.mubr.msk.f32.gmra.mxu1 %vm3381_vm4, %v5795_v9  ;;  %v13540_v4 = vpop.f32.mrf.mxu0  ;;  %v6560_v9 = vld [vmem:[#allocation2 + $0x4a] sm:$0xff] }
 0x2d2   : > { %13923 = vmatmul.mubr.msk.f32.gmra.mxu0 %vm3381_vm4, %v6189_v0  ;;  %13861 = vmatprep.mubr.msk.f32.mxu1 %vm3381_vm4, %v5796_v2  ;;  %v17659_v10 = vadd.f32 %v13540_v4, %v13476_v31 }
 0x2d3   : > { %13925 = vmatprep.mubr.msk.f32.mxu0 %vm3381_vm4, %v6190_v62  ;;  %v17662_v32 = vpop.f32.mrf.mxu1  ;;  %v17664_v16 = vpop.f32.mrf.mxu0 }
 0x2d5   : > { %v13479_v50 = vpop.f32.mrf.mxu1  ;;  %13862 = vmatmul.mubr.msk.f32.gmra.mxu1 %vm3381_vm4, %v5797_v21  ;;  %v13543_v52 = vpop.f32.mrf.mxu0  ;;  %v6561_v21 = vld [vmem:[#allocation2 + $0x52] sm:$0xff] }
 0x2d6   : > { %13926 = vmatmul.mubr.msk.f32.gmra.mxu0 %vm3381_vm4, %v6191_v28  ;;  %13864 = vmatprep.mubr.msk.f32.mxu1 %vm3381_vm4, %v17336_v45  ;;  %v17670_v60 = vadd.f32 %v13543_v52, %v13479_v50  ;;  %v5801_v45 = vld [vmem:[#allocation2 + $0x1a0] sm:$0xff] }
 0x2d7   : > { %13928 = vmatprep.mubr.msk.f32.mxu0 %vm3381_vm4, %v17511_v63  ;;  %v17674_v19 = vpop.f32.mrf.mxu1  ;;  %v17676_v53 = vpop.f32.mrf.mxu0  ;;  %v6562_v28 = vld [vmem:[#allocation2 + $0x62] sm:$0xff] }
 0x2d9   : > { %v13482_v61 = vpop.f32.mrf.mxu1  ;;  %13865 = vmatmul.mubr.msk.f32.gmra.mxu1 %vm3381_vm4, %v17344_v18  ;;  %v13546_v22 = vpop.f32.mrf.mxu0  ;;  %v6558_v18 = vld [vmem:[#allocation2 + $0x32] sm:$0xff] }
 0x2da   : > { %13929 = vmatmul.mubr.msk.f32.gmra.mxu0 %vm3381_vm4, %v17521_v24  ;;  %13867 = vmatprep.mubr.msk.f32.mxu1 %vm3381_vm4, %v5800_v14  ;;  %v17683_v27 = vadd.f32 %v13546_v22, %v13482_v61 }
 0x2db   : > { %v17685_v63 = vpop.f32.mrf.mxu1  ;;  %13931 = vmatprep.mubr.msk.f32.mxu0 %vm3381_vm4, %v6194_v46  ;;  %v17688_v33 = vpop.f32.mrf.mxu0 }
 0x2dd   : > { %v13485_v29 = vpop.f32.mrf.mxu1  ;;  %13868 = vmatmul.mubr.msk.f32.gmra.mxu1 %vm3381_vm4, %v5801_v45  ;;  %v13549_v3 = vpop.f32.mrf.mxu0  ;;  %v6563_v45 = vld [vmem:[#allocation2 + $0x6a] sm:$0xff] }
 0x2de   : > { %13950 = vmatprep.mubr.msk.f32.mxu1 %vm3381_vm4, %v6558_v18  ;;  %13932 = vmatmul.mubr.msk.f32.gmra.mxu0 %vm3381_vm4, %v6195_v48  ;;  %v17693_v24 = vadd.f32 %v13549_v3, %v13485_v29  ;;  %v6564_v29 = vld [vmem:[#allocation2 + $0x7a] sm:$0xff] }
 0x2df   : > { %v17695_v42 = vpop.f32.mrf.mxu1  ;;  %v17697_v41 = vpop.f32.mrf.mxu0 }
 0x2e1   : > { %v13568_v51 = vpop.f32.mrf.mxu1  ;;  %13951 = vmatmul.mubr.msk.f32.vlgmr.msra.gmra.mxu1 %vm3381_vm4, %v6559_v49  ;;  %v13632_v0 = vpop.f32.mrf.mxu0 }
 0x2e2   : > { %v4556_v31 = vadd.f32 %v13568_v51, %v17111_v23  ;;  %13953 = vmatprep.mubr.msk.f32.mxu1 %vm3381_vm4, %v6560_v9  ;;  %v6565_v9 = vld [vmem:[#allocation2 + $0x82] sm:$0xff] }
 0x2e3   : > { %v17702_v2 = vpop.f32.mrf.mxu1  ;;  %v17706_v62 = vpop.f32.mrf.mxu0 }
 0x2e4   : > { %v17704_v4 = vadd.f32 %v13632_v0, %v4556_v31  ;;  %v6566_v0 = vld [vmem:[#allocation2 + $0x92] sm:$0xff] }
 0x2e5   : > { %v13571_v50 = vpop.f32.mrf.mxu1  ;;  %13954 = vmatmul.mubr.msk.f32.gmra.mxu1 %vm3381_vm4, %v6561_v21 }
 0x2e6   : > { %v4558_v52 = vadd.f32 %v13571_v50, %v17542_v11  ;;  %v13635_v14 = vpop.f32.mrf.mxu0  ;;  %13956 = vmatprep.mubr.msk.f32.mxu1 %vm3381_vm4, %v6562_v28 }
 0x2e7   : > { %v4406_v23 = vpop.f32.mrf.mxu1 }
 0x2e8   : > { %v17711_v46 = vadd.f32 %v13635_v14, %v4558_v52  ;;  %v17714_v61 = vadd.f32 %v4406_v23, %v17551_v17  ;;  %v17716_v22 = vpop.f32.mrf.mxu0  ;;  %v6567_v14 = vld [vmem:[#allocation2 + $0x9a] sm:$0xff] }
 0x2e9   : > { %v13574_v48 = vpop.f32.mrf.mxu1  ;;  %13957 = vmatmul.mubr.msk.f32.gmra.mxu1 %vm3381_vm4, %v6563_v45  ;;  %v6568_v45 = vld [vmem:[#allocation2 + $0xaa] sm:$0xff] }
 0x2ea   : > { %v4560_v18 = vadd.f32 %v13574_v48, %v17553_v59  ;;  %v13638_v3 = vpop.f32.mrf.mxu0  ;;  %13959 = vmatprep.mubr.msk.f32.mxu1 %vm3381_vm4, %v6564_v29 }
 0x2eb   : > { %v4416_v11 = vpop.f32.mrf.mxu1 }
 0x2ec   : > { %v17721_v49 = vadd.f32 %v13638_v3, %v4560_v18  ;;  %v17724_v51 = vadd.f32 %v4416_v11, %v17562_v37  ;;  %v17726_v17 = vpop.f32.mrf.mxu0 }
 0x2ed   : > { %v13577_v31 = vpop.f32.mrf.mxu1  ;;  %13960 = vmatmul.mubr.msk.f32.gmra.mxu1 %vm3381_vm4, %v6565_v9  ;;  %v6569_v9 = vld [vmem:[#allocation2 + $0xb2] sm:$0xff] }
 0x2ee   : > { %v4562_v21 = vadd.f32 %v13577_v31, %v17564_v15  ;;  %v13641_v50 = vpop.f32.mrf.mxu0  ;;  %13962 = vmatprep.mubr.msk.f32.mxu1 %vm3381_vm4, %v6566_v0  ;;  %v11592_v15 = vld [vmem:[%s20285_s5 + $0x78] sm:$0xff] }
 0x2ef   : > { %v4426_v59 = vpop.f32.mrf.mxu1  ;;  %13998 = vmatprep.subr.mxu0 %v11592_v15 }
 0x2f0   : > { %v17731_v28 = vadd.f32 %v13641_v50, %v4562_v21  ;;  %v17734_v52 = vadd.f32 %v4426_v59, %v17573_v56  ;;  %v17736_v37 = vpop.f32.mrf.mxu0  ;;  %13999 = vmatpush3.msra.mxu0 %v11592_v15 }
 0x2f1   : > { %v13580_v23 = vpop.f32.mrf.mxu1  ;;  %13963 = vmatmul.mubr.msk.f32.gmra.mxu1 %vm3381_vm4, %v6567_v14 }
 0x2f2   : > { %v4564_v48 = vadd.f32 %v13580_v23, %v17575_v1  ;;  %v13644_v29 = vpop.f32.mrf.mxu0  ;;  %13965 = vmatprep.mubr.msk.f32.mxu1 %vm3381_vm4, %v6568_v45  ;;  %v6570_v1 = vld [vmem:[#allocation2 + $0xc2] sm:$0xff]  ;;  %v6571_v23 = vld [vmem:[#allocation2 + $0xca] sm:$0xff] }
 0x2f3   : > { %v4436_v18 = vpop.f32.mrf.mxu1 }
 0x2f4   : > { %v17744_v56 = vadd.f32 %v13644_v29, %v4564_v48  ;;  %v17747_v3 = vadd.f32 %v4436_v18, %v17584_v8  ;;  %v17749_v11 = vpop.f32.mrf.mxu0  ;;  %v6572_v48 = vld [vmem:[#allocation2 + $0xda] sm:$0xff] }
 0x2f5   : > { %v13583_v31 = vpop.f32.mrf.mxu1  ;;  %13966 = vmatmul.mubr.msk.f32.gmra.mxu1 %vm3381_vm4, %v6569_v9 }
 0x2f6   : > { %v4566_v0 = vadd.f32 %v13583_v31, %v17590_v35  ;;  %v13647_v21 = vpop.f32.mrf.mxu0  ;;  %13968 = vmatprep.mubr.msk.f32.mxu1 %vm3381_vm4, %v6570_v1  ;;  %v11591_v35 = vld [vmem:[%s20285_s5 + $0x70] sm:$0xff]  ;;  %v6573_v1 = vld [vmem:[#allocation2 + $0xe2] sm:$0xff] }
 0x2f7   : > { %v4446_v50 = vpop.f32.mrf.mxu1  ;;  %14000 = vmatprep.subr.mxu0 %v11591_v35 }
 0x2f8   : > { %v17754_v59 = vadd.f32 %v13647_v21, %v4566_v0  ;;  %v17757_v14 = vadd.f32 %v4446_v50, %v17595_v44  ;;  %v17759_v8 = vpop.f32.mrf.mxu0  ;;  %14001 = vmatpush3.msra.mxu0 %v11591_v35  ;;  %v6576_v35 = vld [vmem:[#allocation2 + $0x10a] sm:$0xff] }
 0x2f9   : > { %v13586_v45 = vpop.f32.mrf.mxu1  ;;  %13969 = vmatmul.mubr.msk.f32.gmra.mxu1 %vm3381_vm4, %v6571_v23 }
 0x2fa   : > { %v4568_v29 = vadd.f32 %v13586_v45, %v17601_v55  ;;  %v13650_v15 = vpop.f32.mrf.mxu0  ;;  %13971 = vmatprep.mubr.msk.f32.mxu1 %vm3381_vm4, %v6572_v48  ;;  %v6574_v55 = vld [vmem:[#allocation2 + $0xf2] sm:$0xff] }
 0x2fb   : > { %v4456_v18 = vpop.f32.mrf.mxu1 }
 0x2fc   : > { %v17767_v44 = vadd.f32 %v13650_v15, %v4568_v29  ;;  %v17770_v9 = vadd.f32 %v4456_v18, %v17606_v26  ;;  %v17772_v31 = vpop.f32.mrf.mxu0  ;;  %v6575_v29 = vld [vmem:[#allocation2 + $0xfa] sm:$0xff]  ;;  %v4115_v18 = vadd.f32 %v17624_v13, %v17622_v20 }
 0x2fd   : > { %v13589_v0 = vpop.f32.mrf.mxu1  ;;  %13972 = vmatmul.mubr.msk.f32.gmra.mxu1 %vm3381_vm4, %v6573_v1 }
 0x2fe   : > { %v4570_v21 = vadd.f32 %v13589_v0, %v17611_v5  ;;  %v13653_v50 = vpop.f32.mrf.mxu0  ;;  %13974 = vmatprep.mubr.msk.f32.mxu1 %vm3381_vm4, %v6574_v55 }
 0x2ff   : > { %v4466_v23 = vpop.f32.mrf.mxu1 }
 0x300   : > { %v17777_v45 = vadd.f32 %v13653_v50, %v4570_v21  ;;  %v17780_v48 = vadd.f32 %v4466_v23, %v17614_v30  ;;  %v17782_v26 = vpop.f32.mrf.mxu0  ;;  %v11590_v30 = vld [vmem:[%s20285_s5 + $0x68] sm:$0xff]  ;;  %v6577_v23 = vld [vmem:[#allocation2 + $0x112] sm:$0xff] }
 0x301   : > { %v13592_v15 = vpop.f32.mrf.mxu1  ;;  %13975 = vmatmul.mubr.msk.f32.gmra.mxu1 %vm3381_vm4, %v6575_v29  ;;  %14002 = vmatprep.subr.mxu0 %v11590_v30 }
 0x302   : > { %v4572_v5 = vadd.f32 %v13592_v15, %v17619_v34  ;;  %v13656_v1 = vpop.f32.mrf.mxu0  ;;  %13977 = vmatprep.mubr.msk.f32.mxu1 %vm3381_vm4, %v6576_v35  ;;  %14003 = vmatpush3.msra.mxu0 %v11590_v30  ;;  %v6578_v34 = vld [vmem:[#allocation2 + $0x122] sm:$0xff]  ;;  %v6580_v30 = vld [vmem:[#allocation2 + $0x13a] sm:$0xff] }
 0x303   : > { %v4476_v0 = vpop.f32.mrf.mxu1 }
 0x304   : > { %v17792_v55 = vadd.f32 %v13656_v1, %v4572_v5  ;;  %v17794_v21 = vadd.f32 %v4476_v0, %v4115_v18  ;;  %v17796_v50 = vpop.f32.mrf.mxu0  ;;  %v6579_v18 = vld [vmem:[#allocation2 + $0x12a] sm:$0xff] }
 0x305   : > { %20287 = vst [vmem:[#allocation43_spill] sm:$0xff] %v17796_v50  ;;  %v13595_v20 = vpop.f32.mrf.mxu1  ;;  %13978 = vmatmul.mubr.msk.f32.gmra.mxu1 %vm3381_vm4, %v6577_v23 }
 0x306   : > { %20286 = vst [vmem:[#allocation22_spill] sm:$0xff] %v17794_v21  ;;  %v4574_v13 = vadd.f32 %v13595_v20, %v17629_v7  ;;  %v13659_v29 = vpop.f32.mrf.mxu0  ;;  %13980 = vmatprep.mubr.msk.f32.mxu1 %vm3381_vm4, %v6578_v34  ;;  %v11589_v7 = vld [vmem:[%s20285_s5 + $0x60] sm:$0xff] }
 0x307   : > { %v17801_v15 = vpop.f32.mrf.mxu1  ;;  %14004 = vmatprep.subr.mxu0 %v11589_v7 }
 0x308   : > { %v17803_v35 = vadd.f32 %v13659_v29, %v4574_v13  ;;  %v17805_v5 = vpop.f32.mrf.mxu0  ;;  %v6581_v29 = vld [vmem:[#allocation2 + $0x142] sm:$0xff]  ;;  %14005 = vmatpush3.msra.mxu0 %v11589_v7  ;;  %v6584_v7 = vld [vmem:[#allocation2 + $0x16a] sm:$0xff] }
 0x309   : > { %20288 = vst [vmem:[#allocation45_spill] sm:$0xff] %v17805_v5  ;;  %v13598_v1 = vpop.f32.mrf.mxu1  ;;  %13981 = vmatmul.mubr.msk.f32.gmra.mxu1 %vm3381_vm4, %v6579_v18 }
 0x30a   : > { %v4576_v0 = vadd.f32 %v13598_v1, %v17639_v12  ;;  %v13662_v23 = vpop.f32.mrf.mxu0  ;;  %13983 = vmatprep.mubr.msk.f32.mxu1 %vm3381_vm4, %v6580_v30  ;;  %v6582_v12 = vld [vmem:[#allocation2 + $0x152] sm:$0xff] }
 0x30b   : > { %v17813_v20 = vpop.f32.mrf.mxu1 }
 0x30c   : > { %v17815_v34 = vadd.f32 %v13662_v23, %v4576_v0  ;;  %v17817_v13 = vpop.f32.mrf.mxu0  ;;  %v6583_v0 = vld [vmem:[#allocation2 + $0x15a] sm:$0xff] }
 0x30d   : > { %20289 = vst [vmem:[#allocation41_spill] sm:$0xff] %v17817_v13  ;;  %v13601_v18 = vpop.f32.mrf.mxu1  ;;  %13984 = vmatmul.mubr.msk.f32.gmra.mxu1 %vm3381_vm4, %v6581_v29 }
 0x30e   : > { %v4578_v1 = vadd.f32 %v13601_v18, %v17649_v25  ;;  %v13665_v30 = vpop.f32.mrf.mxu0  ;;  %13986 = vmatprep.mubr.msk.f32.mxu1 %vm3381_vm4, %v6582_v12  ;;  %v11588_v25 = vld [vmem:[%s20285_s5 + $0x58] sm:$0xff] }
 0x30f   : > { %v17822_v5 = vpop.f32.mrf.mxu1  ;;  %14006 = vmatprep.subr.mxu0 %v11588_v25 }
 0x310   : > { %v17824_v50 = vadd.f32 %v13665_v30, %v4578_v1  ;;  %v17826_v21 = vpop.f32.mrf.mxu0  ;;  %v6585_v30 = vld [vmem:[#allocation2 + $0x172] sm:$0xff]  ;;  %14007 = vmatpush3.msra.mxu0 %v11588_v25 }
 0x311   : > { %20290 = vst [vmem:[#allocation51_spill] sm:$0xff] %v17826_v21  ;;  %v13604_v23 = vpop.f32.mrf.mxu1  ;;  %13987 = vmatmul.mubr.msk.f32.gmra.mxu1 %vm3381_vm4, %v6583_v0  ;;  %v6588_v21 = vld [vmem:[#allocation2 + $0x19a] sm:$0xff] }
 0x312   : > { %v4580_v13 = vadd.f32 %v13604_v23, %v17659_v10  ;;  %v13668_v29 = vpop.f32.mrf.mxu0  ;;  %13989 = vmatprep.mubr.msk.f32.mxu1 %vm3381_vm4, %v6584_v7 }
 0x313   : > { %v17834_v18 = vpop.f32.mrf.mxu1 }
 0x314   : > { %20291 = vst [vmem:[#allocation42_spill] sm:$0xff] %v17834_v18  ;;  %v17836_v12 = vadd.f32 %v13668_v29, %v4580_v13  ;;  %v17838_v1 = vpop.f32.mrf.mxu0 }
 0x315   : > { %20292 = vst [vmem:[#allocation48_spill] sm:$0xff] %v17838_v1  ;;  %v13607_v0 = vpop.f32.mrf.mxu1  ;;  %13990 = vmatmul.mubr.msk.f32.gmra.mxu1 %vm3381_vm4, %v6585_v30 }
 0x316   : > { %v4582_v10 = vadd.f32 %v13607_v0, %v17670_v60  ;;  %v13671_v23 = vpop.f32.mrf.mxu0  ;;  %13992 = vmatprep.mubr.msk.f32.mxu1 %vm3381_vm4, %v17517_v57  ;;  %v6589_v60 = vld [vmem:[#allocation2 + $0x1a2] sm:$0xff]  ;;  %v11587_v57 = vld [vmem:[%s20285_s5 + $0x50] sm:$0xff] }
 0x317   : > { %v17844_v7 = vpop.f32.mrf.mxu1  ;;  %14008 = vmatprep.subr.mxu0 %v11587_v57 }
 0x318   : > { %20293 = vst [vmem:[#allocation52_spill] sm:$0xff] %v17844_v7  ;;  %v17846_v18 = vadd.f32 %v13671_v23, %v4582_v10  ;;  %v17848_v13 = vpop.f32.mrf.mxu0  ;;  %14009 = vmatpush3.msra.mxu0 %v11587_v57 }
 0x319   : > { %20294 = vst [vmem:[#allocation46_spill] sm:$0xff] %v17848_v13  ;;  %v13610_v29 = vpop.f32.mrf.mxu1  ;;  %13993 = vmatmul.mubr.msk.f32.gmra.mxu1 %vm3381_vm4, %v17525_v6 }
 0x31a   : > { %v4584_v25 = vadd.f32 %v13610_v29, %v17683_v27  ;;  %v13674_v30 = vpop.f32.mrf.mxu0  ;;  %13995 = vmatprep.mubr.msk.f32.mxu1 %vm3381_vm4, %v6588_v21 }
 0x31b   : > { %v17857_v0 = vpop.f32.mrf.mxu1 }
 0x31c   : > { %20295 = vst [vmem:[#allocation32_spill] sm:$0xff] %v17857_v0  ;;  %v17859_v10 = vadd.f32 %v13674_v30, %v4584_v25  ;;  %v17861_v23 = vpop.f32.mrf.mxu0  ;;  %v7133_v25 = vld [vmem:[%s20285_s5 + $0x38] sm:$0xff]  ;;  %v11586_v30 = vld [vmem:[%s20285_s5 + $0x48] sm:$0xff] }
 0x31d   : > { %20296 = vst [vmem:[#allocation38_spill] sm:$0xff] %v17861_v23  ;;  %v13613_v13 = vpop.f32.mrf.mxu1  ;;  %13996 = vmatmul.mubr.msk.f32.gmra.mxu1 %vm3381_vm4, %v6589_v60  ;;  %14062 = vmatprep.subr.mxu1 %v7133_v25 }
 0x31e   : > { %v4586_v6 = vadd.f32 %v13613_v13, %v17693_v24  ;;  %v13677_v27 = vpop.f32.mrf.mxu0  ;;  %14010 = vmatprep.subr.mxu0 %v11586_v30  ;;  %14063 = vmatpush3.msra.mxu1 %v7133_v25 }
 0x31f   : > { %v17865_v21 = vpop.f32.mrf.mxu1  ;;  %14011 = vmatpush3.msra.mxu0 %v11586_v30  ;;  %v7132_v30 = vld [vmem:[%s20285_s5 + $0x30] sm:$0xff] }
 0x320   : > { %20297 = vst [vmem:[#allocation31_spill] sm:$0xff] %v17865_v21  ;;  %v17867_v29 = vadd.f32 %v13677_v27, %v4586_v6  ;;  %v17869_v1 = vpop.f32.mrf.mxu0  ;;  %14064 = vmatprep.subr.mxu1 %v7132_v30 }
 0x321   : > { %20298 = vst [vmem:[#allocation44_spill] sm:$0xff] %v17869_v1  ;;  %v13696_v57 = vpop.f32.mrf.mxu1  ;;  %14065 = vmatpush3.msra.mxu1 %v7132_v30 }
 0x322   : > { %v17878_v24 = vadd.f32 %v13696_v57, %v17704_v4  ;;  %v17880_v13 = vpop.f32.mrf.mxu0 }
 0x323   : > { %v17882_v60 = vpop.f32.mrf.mxu1 }
 0x324   : > { %v17884_v6 = vpop.f32.mrf.mxu0 }
 0x325   : > { %v13699_v27 = vpop.f32.mrf.mxu1 }
 0x326   : > { %v17887_v1 = vadd.f32 %v13699_v27, %v17711_v46  ;;  %v17889_v21 = vpop.f32.mrf.mxu0  ;;  %v7131_v27 = vld [vmem:[%s20285_s5 + $0x28] sm:$0xff] }
 0x327   : > { %v17891_v23 = vpop.f32.mrf.mxu1  ;;  %14066 = vmatprep.subr.mxu1 %v7131_v27 }
 0x328   : > { %v17893_v0 = vpop.f32.mrf.mxu0  ;;  %14067 = vmatpush3.msra.mxu1 %v7131_v27 }
 0x329   : > { %20299 = vst [vmem:[#allocation54_spill] sm:$0xff] %v17893_v0  ;;  %v13702_v4 = vpop.f32.mrf.mxu1 }
 0x32a   : > { %v17896_v57 = vadd.f32 %v13702_v4, %v17721_v49  ;;  %v17898_v25 = vpop.f32.mrf.mxu0 }
 0x32b   : > { %20301 = vst [vmem:[#allocation56_spill] sm:$0xff] %v17898_v25  ;;  %v17903_v7 = vpop.f32.mrf.mxu1  ;;  %v7130_v25 = vld [vmem:[%s20285_s5 + $0x20] sm:$0xff] }
 0x32c   : > { %20300 = vst [vmem:[#allocation49_spill] sm:$0xff] %v17896_v57  ;;  %v17905_v46 = vpop.f32.mrf.mxu0  ;;  %14068 = vmatprep.subr.mxu1 %v7130_v25 }
 0x32d   : > { %20302 = vst [vmem:[#allocation29_spill] sm:$0xff] %v17905_v46  ;;  %v13705_v0 = vpop.f32.mrf.mxu1  ;;  %14069 = vmatpush3.msra.mxu1 %v7130_v25  ;;  %v7129_v46 = vld [vmem:[%s20285_s5 + $0x18] sm:$0xff]  ;;  %v7128_v25 = vld [vmem:[%s20285_s5 + $0x10] sm:$0xff] }
 0x32e   : > { %v17911_v49 = vadd.f32 %v13705_v0, %v17731_v28  ;;  %v17913_v4 = vpop.f32.mrf.mxu0  ;;  %v11585_v28 = vld [vmem:[%s20285_s5 + $0x40] sm:$0xff]  ;;  %14070 = vmatprep.subr.mxu1 %v7129_v46 }
 0x32f   : > { %20304 = vst [vmem:[#allocation58_spill] sm:$0xff] %v17913_v4  ;;  %v17918_v57 = vpop.f32.mrf.mxu1  ;;  %14012 = vmatprep.subr.mxu0 %v11585_v28  ;;  %14071 = vmatpush3.msra.mxu1 %v7129_v46 }
 0x330   : > { %20303 = vst [vmem:[#allocation36_spill] sm:$0xff] %v17911_v49  ;;  %20305 = vst [vmem:[#allocation53_spill] sm:$0xff] %v17918_v57  ;;  %v17920_v30 = vpop.f32.mrf.mxu0  ;;  %14013 = vmatpush3.msra.mxu0 %v11585_v28  ;;  %14072 = vmatprep.subr.mxu1 %v7128_v25  ;;  %v7127_v57 = vld [vmem:[%s20285_s5 + $0x8] sm:$0xff]  ;;  %v7126_v28 = vld [vmem:[%s20285_s5] sm:$0xff] }
 0x331   : > { %20306 = vst [vmem:[#allocation55_spill] sm:$0xff] %v17920_v30  ;;  %v13708_v0 = vpop.f32.mrf.mxu1  ;;  %14073 = vmatpush3.msra.mxu1 %v7128_v25 }
 0x332   : > { %v17929_v27 = vadd.f32 %v13708_v0, %v17744_v56  ;;  %v17931_v4 = vpop.f32.mrf.mxu0  ;;  %14074 = vmatprep.subr.mxu1 %v7127_v57 }
 0x333   : > { %20308 = vst [vmem:[#allocation60_spill] sm:$0xff] %v17931_v4  ;;  %v17936_v30 = vpop.f32.mrf.mxu1  ;;  %14075 = vmatpush3.msra.mxu1 %v7127_v57  ;;  %v7134_v4 = vld [vmem:[#allocation2 + $0x1] sm:$0xff]  ;;  %v11664_v57 = vld [vmem:[%s20285_s5 + $0xb8] sm:$0xff] }
 0x334   : > { %20307 = vst [vmem:[#allocation50_spill] sm:$0xff] %v17929_v27  ;;  %20309 = vst [vmem:[#allocation11_spill] sm:$0xff] %v17936_v30  ;;  %v17938_v49 = vpop.f32.mrf.mxu0  ;;  %v7094_v27 = vld [vmem:[#allocation2] sm:$0xff]  ;;  %14076 = vmatprep.subr.mxu1 %v7126_v28  ;;  %14014 = vmatprep.mubr.msk.f32.mxu0 %vm3381_vm4, %v7134_v4 }
 0x335   : > { %20310 = vst [vmem:[#allocation57_spill] sm:$0xff] %v17938_v49  ;;  %v13711_v56 = vpop.f32.mrf.mxu1  ;;  %14077 = vmatpush3.msra.mxu1 %v7126_v28  ;;  %14078 = vmatprep.mubr.msk.f32.mxu1 %vm3381_vm4, %v7094_v27 }
 0x336   : > { %v17944_v0 = vadd.f32 %v13711_v56, %v17754_v59  ;;  %v17946_v46 = vpop.f32.mrf.mxu0  ;;  %v7135_v59 = vld [vmem:[#allocation2 + $0x9] sm:$0xff]  ;;  %14126 = vmatprep.subr.mxu0 %v11664_v57 }
 0x337   : > { %20312 = vst [vmem:[#allocation59_spill] sm:$0xff] %v17946_v46  ;;  %v17951_v49 = vpop.f32.mrf.mxu1  ;;  %v7095_v56 = vld [vmem:[#allocation2 + $0x8] sm:$0xff]  ;;  %14015 = vmatmul.mubr.msk.f32.vlgmr.msra.gmra.mxu0 %vm3381_vm4, %v7135_v59 }
 0x338   : > { %20311 = vst [vmem:[#allocation62_spill] sm:$0xff] %v17944_v0  ;;  %20313 = vst [vmem:[#allocation24_spill] sm:$0xff] %v17951_v49  ;;  %v17954_v25 = vpop.f32.mrf.mxu0  ;;  %14079 = vmatmul.mubr.msk.f32.vlgmr.msra.gmra.mxu1 %vm3381_vm4, %v7095_v56  ;;  %14127 = vmatpush3.msra.mxu0 %v11664_v57 }
 0x339   : > { %20314 = vst [vmem:[#allocation64_spill] sm:$0xff] %v17954_v25  ;;  %v13714_v46 = vpop.f32.mrf.mxu1 }
 0x33a   : > { %v17963_v0 = vadd.f32 %v13714_v46, %v17767_v44  ;;  %v17965_v4 = vpop.f32.mrf.mxu0  ;;  %v11663_v44 = vld [vmem:[%s20285_s5 + $0xb0] sm:$0xff] }
 0x33b   : > { %20316 = vst [vmem:[#allocation61_spill] sm:$0xff] %v17965_v4  ;;  %v17967_v28 = vpop.f32.mrf.mxu1  ;;  %14128 = vmatprep.subr.mxu0 %v11663_v44 }
 0x33c   : > { %20315 = vst [vmem:[#allocation17_spill] sm:$0xff] %v17963_v0  ;;  %20317 = vst [vmem:[#allocation66_spill] sm:$0xff] %v17967_v28  ;;  %v17969_v27 = vpop.f32.mrf.mxu0  ;;  %14129 = vmatpush3.msra.mxu0 %v11663_v44 }
 0x33d   : > { %20318 = vst [vmem:[#allocation63_spill] sm:$0xff] %v17969_v27  ;;  %v13717_v25 = vpop.f32.mrf.mxu1 }
 0x33e   : > { %v17972_v49 = vadd.f32 %v13717_v25, %v17777_v45  ;;  %v17974_v30 = vpop.f32.mrf.mxu0 }
 0x33f   : > { %20320 = vst [vmem:[#allocation68_spill] sm:$0xff] %v17974_v30  ;;  %v17976_v59 = vpop.f32.mrf.mxu1 }
 0x340   : > { %20319 = vst [vmem:[#allocation34_spill] sm:$0xff] %v17972_v49  ;;  %20321 = vst [vmem:[#allocation65_spill] sm:$0xff] %v17976_v59  ;;  %v17978_v56 = vpop.f32.mrf.mxu0 }
 0x341   : > { %20322 = vst [vmem:[#allocation70_spill] sm:$0xff] %v17978_v56  ;;  %v13720_v46 = vpop.f32.mrf.mxu1 }
 0x342   : > { %v17984_v57 = vadd.f32 %v13720_v46, %v17792_v55  ;;  %v17986_v27 = vpop.f32.mrf.mxu0  ;;  %v11662_v55 = vld [vmem:[%s20285_s5 + $0xa8] sm:$0xff] }
 0x343   : > { %20324 = vst [vmem:[#allocation72_spill] sm:$0xff] %v17986_v27  ;;  %v17988_v45 = vpop.f32.mrf.mxu1  ;;  %14130 = vmatprep.subr.mxu0 %v11662_v55 }
 0x344   : > { %20323 = vst [vmem:[#allocation39_spill] sm:$0xff] %v17984_v57  ;;  %20325 = vst [vmem:[#allocation10_spill] sm:$0xff] %v17988_v45  ;;  %v17990_v25 = vpop.f32.mrf.mxu0  ;;  %14131 = vmatpush3.msra.mxu0 %v11662_v55  ;;  %v11698_v45 = vld [vmem:[%s20285_s5 + $0xc8] sm:$0xff] }
 0x345   : > { %20326 = vst [vmem:[#allocation67_spill] sm:$0xff] %v17990_v25  ;;  %v13723_v30 = vpop.f32.mrf.mxu1 }
 0x346   : > { %v17993_v49 = vadd.f32 %v13723_v30, %v17803_v35  ;;  %v17995_v56 = vpop.f32.mrf.mxu0 }
 0x347   : > { %20328 = vst [vmem:[#allocation69_spill] sm:$0xff] %v17995_v56  ;;  %v17997_v59 = vpop.f32.mrf.mxu1 }
 0x348   : > { %20327 = vst [vmem:[#allocation15_spill] sm:$0xff] %v17993_v49  ;;  %20329 = vst [vmem:[#allocation71_spill] sm:$0xff] %v17997_v59  ;;  %v17999_v4 = vpop.f32.mrf.mxu0 }
 0x349   : > { %20330 = vst [vmem:[#allocation74_spill] sm:$0xff] %v17999_v4  ;;  %v13726_v46 = vpop.f32.mrf.mxu1 }
 0x34a   : > { %v18005_v44 = vadd.f32 %v13726_v46, %v17815_v34  ;;  %v18007_v25 = vpop.f32.mrf.mxu0  ;;  %v11661_v34 = vld [vmem:[%s20285_s5 + $0xa0] sm:$0xff] }
 0x34b   : > { %20332 = vst [vmem:[#allocation76_spill] sm:$0xff] %v18007_v25  ;;  %v18009_v35 = vpop.f32.mrf.mxu1  ;;  %14132 = vmatprep.subr.mxu0 %v11661_v34 }
 0x34c   : > { %20331 = vst [vmem:[#allocation13_spill] sm:$0xff] %v18005_v44  ;;  %20333 = vst [vmem:[#allocation23_spill] sm:$0xff] %v18009_v35  ;;  %v18011_v30 = vpop.f32.mrf.mxu0  ;;  %14133 = vmatpush3.msra.mxu0 %v11661_v34  ;;  %v11701_v44 = vld [vmem:[%s20285_s5 + $0xe0] sm:$0xff] }
 0x34d   : > { %20334 = vst [vmem:[#allocation30_spill] sm:$0xff] %v18011_v30  ;;  %v13729_v56 = vpop.f32.mrf.mxu1 }
 0x34e   : > { %v18014_v49 = vadd.f32 %v13729_v56, %v17824_v50  ;;  %v18016_v4 = vpop.f32.mrf.mxu0 }
 0x34f   : > { %20336 = vst [vmem:[#allocation73_spill] sm:$0xff] %v18016_v4  ;;  %v18018_v59 = vpop.f32.mrf.mxu1 }
 0x350   : > { %20335 = vst [vmem:[#allocation78_spill] sm:$0xff] %v18014_v49  ;;  %20337 = vst [vmem:[#allocation75_spill] sm:$0xff] %v18018_v59  ;;  %v18020_v27 = vpop.f32.mrf.mxu0 }
 0x351   : > { %20338 = vst [vmem:[#allocation19_spill] sm:$0xff] %v18020_v27  ;;  %v13732_v46 = vpop.f32.mrf.mxu1 }
 0x352   : > { %v18026_v55 = vadd.f32 %v13732_v46, %v17836_v12  ;;  %v18028_v30 = vpop.f32.mrf.mxu0  ;;  %v11660_v12 = vld [vmem:[%s20285_s5 + $0x98] sm:$0xff] }
 0x353   : > { %20340 = vst [vmem:[#allocation47_spill] sm:$0xff] %v18028_v30  ;;  %v18030_v50 = vpop.f32.mrf.mxu1  ;;  %14134 = vmatprep.subr.mxu0 %v11660_v12 }
 0x354   : > { %20339 = vst [vmem:[#allocation80_spill] sm:$0xff] %v18026_v55  ;;  %20341 = vst [vmem:[#allocation77_spill] sm:$0xff] %v18030_v50  ;;  %v18032_v56 = vpop.f32.mrf.mxu0  ;;  %14135 = vmatpush3.msra.mxu0 %v11660_v12 }
 0x355   : > { %20342 = vst [vmem:[#allocation82_spill] sm:$0xff] %v18032_v56  ;;  %v13735_v4 = vpop.f32.mrf.mxu1 }
 0x356   : > { %v18035_v49 = vadd.f32 %v13735_v4, %v17846_v18  ;;  %v18037_v27 = vpop.f32.mrf.mxu0 }
 0x357   : > { %20344 = vst [vmem:[#allocation28_spill] sm:$0xff] %v18037_v27  ;;  %v18039_v59 = vpop.f32.mrf.mxu1 }
 0x358   : > { %20343 = vst [vmem:[#allocation21_spill] sm:$0xff] %v18035_v49  ;;  %20345 = vst [vmem:[#allocation79_spill] sm:$0xff] %v18039_v59  ;;  %v18041_v25 = vpop.f32.mrf.mxu0 }
 0x359   : > { %20346 = vst [vmem:[#allocation81_spill] sm:$0xff] %v18041_v25  ;;  %v13738_v46 = vpop.f32.mrf.mxu1 }
 0x35a   : > { %v18047_v34 = vadd.f32 %v13738_v46, %v17859_v10  ;;  %v18049_v56 = vpop.f32.mrf.mxu0  ;;  %v11659_v10 = vld [vmem:[%s20285_s5 + $0x90] sm:$0xff] }
 0x35b   : > { %20348 = vst [vmem:[#allocation84_spill] sm:$0xff] %v18049_v56  ;;  %v18051_v18 = vpop.f32.mrf.mxu1  ;;  %14136 = vmatprep.subr.mxu0 %v11659_v10 }
 0x35c   : > { %20347 = vst [vmem:[#allocation25_spill] sm:$0xff] %v18047_v34  ;;  %20349 = vst [vmem:[#allocation86_spill] sm:$0xff] %v18051_v18  ;;  %v18053_v4 = vpop.f32.mrf.mxu0  ;;  %14137 = vmatpush3.msra.mxu0 %v11659_v10  ;;  %v11703_v10 = vld [vmem:[%s20285_s5 + $0xf0] sm:$0xff]  ;;  %v11657_v34 = vld [vmem:[%s20285_s5 + $0x80] sm:$0xff] }
 0x35d   : > { %20350 = vst [vmem:[#allocation37_spill] sm:$0xff] %v18053_v4  ;;  %v13741_v27 = vpop.f32.mrf.mxu1  ;;  %v11702_v18 = vld [vmem:[%s20285_s5 + $0xe8] sm:$0xff] }
 0x35e   : > { %v18056_v49 = vadd.f32 %v13741_v27, %v17867_v29  ;;  %v18058_v25 = vpop.f32.mrf.mxu0 }
 0x35f   : > { %20352 = vst [vmem:[#allocation33_spill] sm:$0xff] %v18058_v25  ;;  %v18060_v59 = vpop.f32.mrf.mxu1 }
 0x360   : > { %20351 = vst [vmem:[#allocation20_spill] sm:$0xff] %v18056_v49  ;;  %20353 = vst [vmem:[#allocation88_spill] sm:$0xff] %v18060_v59  ;;  %v18062_v30 = vpop.f32.mrf.mxu0  ;;  %v11704_v59 = vld [vmem:[%s20285_s5 + $0xf8] sm:$0xff] }
 0x361   : > { %20354 = vst [vmem:[#allocation83_spill] sm:$0xff] %v18062_v30  ;;  %v18067_v46 = vpop.f32.mrf.mxu1  ;;  %v11658_v30 = vld [vmem:[%s20285_s5 + $0x88] sm:$0xff]  ;;  %14190 = vmatprep.subr.mxu1 %v11704_v59 }
 0x362   : > { %v18069_v12 = vpop.f32.mrf.mxu0  ;;  %14138 = vmatprep.subr.mxu0 %v11658_v30  ;;  %14191 = vmatpush3.msra.mxu1 %v11704_v59  ;;  %v11700_v59 = vld [vmem:[%s20285_s5 + $0xd8] sm:$0xff] }
 0x363   : > { %v18071_v4 = vpop.f32.mrf.mxu1  ;;  %14139 = vmatpush3.msra.mxu0 %v11658_v30  ;;  %14192 = vmatprep.subr.mxu1 %v11703_v10  ;;  %v11744_v30 = vld [vmem:[%s20285_s5 + $0x138] sm:$0xff] }
 0x364   : > { %v18073_v29 = vpop.f32.mrf.mxu0  ;;  %14140 = vmatprep.subr.mxu0 %v11657_v34  ;;  %14193 = vmatpush3.msra.mxu1 %v11703_v10 }
 0x365   : > { %v18075_v27 = vpop.f32.mrf.mxu1  ;;  %14141 = vmatpush3.msra.mxu0 %v11657_v34  ;;  %14194 = vmatprep.subr.mxu1 %v11702_v18  ;;  %v11699_v34 = vld [vmem:[%s20285_s5 + $0xd0] sm:$0xff] }
 0x366   : > { %v18079_v49 = vpop.f32.mrf.mxu0  ;;  %14195 = vmatpush3.msra.mxu1 %v11702_v18  ;;  %14254 = vmatprep.subr.mxu0 %v11744_v30 }
 0x367   : > { %v18077_v25 = vpop.f32.mrf.mxu1  ;;  %14196 = vmatprep.subr.mxu1 %v11701_v44 }
 0x368   : > { %v18100_v50 = vpop.f32.mrf.mxu0  ;;  %14197 = vmatpush3.msra.mxu1 %v11701_v44  ;;  %v11697_v44 = vld [vmem:[%s20285_s5 + $0xc0] sm:$0xff] }
 0x369   : > { %v18090_v56 = vpop.f32.mrf.mxu1  ;;  %14198 = vmatprep.subr.mxu1 %v11700_v59 }
 0x36a   : > { %v18115_v10 = vpop.f32.mrf.mxu0  ;;  %14199 = vmatpush3.msra.mxu1 %v11700_v59 }
 0x36b   : > { %v18098_v55 = vpop.f32.mrf.mxu1  ;;  %20357 = vst [vmem:[#allocation87_spill] sm:$0xff] %v18115_v10  ;;  %14200 = vmatprep.subr.mxu1 %v11699_v34 }
 0x36c   : > { %v18127_v28 = vpop.f32.mrf.mxu0  ;;  %14201 = vmatpush3.msra.mxu1 %v11699_v34 }
 0x36d   : > { %v18105_v35 = vpop.f32.mrf.mxu1  ;;  %20360 = vst [vmem:[#allocation35_spill] sm:$0xff] %v18127_v28  ;;  %14202 = vmatprep.subr.mxu1 %v11698_v45 }
 0x36e   : > { %20355 = vst [vmem:[#allocation85_spill] sm:$0xff] %v18105_v35  ;;  %14203 = vmatpush3.msra.mxu1 %v11698_v45  ;;  %v18136_v59 = vpop.f32.mrf.mxu0 }
 0x36f   : > { %v18113_v57 = vpop.f32.mrf.mxu1  ;;  %14204 = vmatprep.subr.mxu1 %v11697_v44  ;;  %20363 = vst [vmem:[#allocation91_spill] sm:$0xff] %v18136_v59 }
 0x370   : > { %20356 = vst [vmem:[#allocation90_spill] sm:$0xff] %v18113_v57  ;;  %14205 = vmatpush3.msra.mxu1 %v11697_v44  ;;  %v18142_v28 = vpop.f32.mrf.mxu0 }
 0x371   : > { %v18120_v18 = vpop.f32.mrf.mxu1  ;;  %20366 = vst [vmem:[#allocation93_spill] sm:$0xff] %v18142_v28 }
 0x372   : > { %20358 = vst [vmem:[#allocation40_spill] sm:$0xff] %v18120_v18  ;;  %v18148_v10 = vpop.f32.mrf.mxu0 }
 0x373   : > { %v18125_v0 = vpop.f32.mrf.mxu1  ;;  %20369 = vst [vmem:[#allocation16_spill] sm:$0xff] %v18148_v10 }
 0x374   : > { %20359 = vst [vmem:[#allocation92_spill] sm:$0xff] %v18125_v0 }
 0x375   : > { %v18132_v30 = vpop.f32.mrf.mxu1 }
 0x376   : > { %20361 = vst [vmem:[#allocation27_spill] sm:$0xff] %v18132_v30 }
 0x377   : > { %v18134_v18 = vpop.f32.mrf.mxu1 }
 0x378   : > { %20362 = vst [vmem:[#allocation89_spill] sm:$0xff] %v18134_v18  ;;  %v18154_v18 = vpop.f32.mrf.mxu0 }
 0x379   : > { %v18138_v57 = vpop.f32.mrf.mxu1  ;;  %20372 = vst [vmem:[#allocation96_spill] sm:$0xff] %v18154_v18 }
 0x37a   : > { %20364 = vst [vmem:[#allocation94_spill] sm:$0xff] %v18138_v57  ;;  %v18160_v57 = vpop.f32.mrf.mxu0 }
 0x37b   : > { %v18140_v0 = vpop.f32.mrf.mxu1  ;;  %20375 = vst [vmem:[#allocation99_spill] sm:$0xff] %v18160_v57 }
 0x37c   : > { %20365 = vst [vmem:[#allocation26_spill] sm:$0xff] %v18140_v0 }
 0x37d   : > { %v18144_v34 = vpop.f32.mrf.mxu1 }
 0x37e   : > { %20367 = vst [vmem:[#allocation12_spill] sm:$0xff] %v18144_v34  ;;  %v18166_v34 = vpop.f32.mrf.mxu0 }
 0x37f   : > { %v18146_v35 = vpop.f32.mrf.mxu1  ;;  %20378 = vst [vmem:[#allocation102_spill] sm:$0xff] %v18166_v34 }
 0x380   : > { %20368 = vst [vmem:[#allocation14_spill] sm:$0xff] %v18146_v35 }
 0x381   : > { %v18150_v30 = vpop.f32.mrf.mxu1 }
 0x382   : > { %20370 = vst [vmem:[#allocation18_spill] sm:$0xff] %v18150_v30  ;;  %v18174_v30 = vpop.f32.mrf.mxu0 }
 0x383   : > { %v18152_v45 = vpop.f32.mrf.mxu1 }
 0x384   : > { %20371 = vst [vmem:[#allocation95_spill] sm:$0xff] %v18152_v45  ;;  %v4035_v45 = vadd.f32 %v17537_v38, %v17535_v40  ;;  %v4125_v38 = vadd.f32 %v17634_v39, %v17632_v36  ;;  %v4175_v36 = vadd.f32 %v17688_v33, %v17685_v63  ;;  %v18231_v33 = vadd.f32 %v17759_v8, %v17757_v14  ;;  %v20382_v8 = vld [vmem:[#allocation54_spill] sm:$0xff] }
 0x385   : > { %v18156_v59 = vpop.f32.mrf.mxu1 }
 0x386   : > { %20373 = vst [vmem:[#allocation97_spill] sm:$0xff] %v18156_v59 }
 0x387   : > { %v18158_v44 = vpop.f32.mrf.mxu1 }
 0x388   : > { %20374 = vst [vmem:[#allocation98_spill] sm:$0xff] %v18158_v44  ;;  %v4555_v44 = vadd.f32 %v17702_v2, %v4035_v45  ;;  %v4135_v2 = vadd.f32 %v17644_v47, %v17642_v43  ;;  %v4951_v45 = vadd.f32 %v17716_v22, %v17714_v61  ;;  %v18213_v43 = vadd.f32 %v17697_v41, %v17695_v42 }
 0x389   : > { %v18162_v0 = vpop.f32.mrf.mxu1  ;;  %v5740_v41 = vadd.f32 %v17889_v21, %v17887_v1 }
 0x38a   : > { %20376 = vst [vmem:[#allocation100_spill] sm:$0xff] %v18162_v0  ;;  %v18181_v0 = vpop.f32.mrf.mxu0  ;;  %v4949_v34 = vadd.f32 %v17706_v62, %v4555_v44  ;;  %v5738_v62 = vadd.f32 %v17880_v13, %v17878_v24  ;;  %v4145_v44 = vadd.f32 %v17654_v58, %v17652_v54  ;;  %v5345_v61 = vadd.f32 %v17891_v23, %v4951_v45  ;;  %v20384_v23 = vld [vmem:[#allocation43_spill] sm:$0xff]  ;;  %v20387_v24 = vld [vmem:[#allocation49_spill] sm:$0xff]  ;;  %v20388_v13 = vld [vmem:[#allocation56_spill] sm:$0xff] }
 0x38b   : > { %v18164_v28 = vpop.f32.mrf.mxu1  ;;  %v4575_v42 = vadd.f32 %v17813_v20, %v4135_v2  ;;  %v6135_v1 = vadd.f32 %v18075_v27, %v5740_v41  ;;  %v20389_v27 = vld [vmem:[#allocation41_spill] sm:$0xff] }
 0x38c   : > { %20377 = vst [vmem:[#allocation101_spill] sm:$0xff] %v18164_v28  ;;  %v18189_v18 = vpop.f32.mrf.mxu0  ;;  %v6133_v54 = vadd.f32 %v18067_v46, %v5738_v62  ;;  %v18268_v46 = vld [vmem:[%s19884_s8] ss:$0 sm:$0xff]  ;;  %v20390_v62 = vld [vmem:[#allocation51_spill] sm:$0xff] }
 0x38d   : > { %v18168_v35 = vpop.f32.mrf.mxu1 }
 0x38e   : > { %20379 = vst [vmem:[#allocation103_spill] sm:$0xff] %v18168_v35  ;;  %v18218_v58 = vpop.f32.mrf.mxu0  ;;  %v6527_v20 = vadd.f32 %v18069_v12, %v6133_v54  ;;  %v18273_v12 = vld [vmem:[%s20285_s5 + $0x178] sm:$0xff] }
 0x38f   : > { %v18170_v10 = vpop.f32.mrf.mxu1  ;;  %14318 = vmatprep.subr.mxu1 %v18273_v12 }
 0x390   : > { %20380 = vst [vmem:[#allocation104_spill] sm:$0xff] %v18170_v10  ;;  %v5343_v10 = vadd.f32 %v17882_v60, %v4949_v34  ;;  %v4155_v60 = vadd.f32 %v17664_v16, %v17662_v32  ;;  %v4165_v34 = vadd.f32 %v17676_v53, %v17674_v19  ;;  %v4953_v32 = vadd.f32 %v17726_v17, %v17724_v51 }
 0x391   : > { %v18176_v59 = vpop.f32.mrf.mxu1  ;;  %v4955_v16 = vadd.f32 %v17736_v37, %v17734_v52  ;;  %v4957_v19 = vadd.f32 %v17749_v11, %v17747_v3  ;;  %v4573_v53 = vadd.f32 %v17801_v15, %v4125_v38  ;;  %v18239_v51 = vadd.f32 %v17772_v31, %v17770_v9  ;;  %v20381_v11 = vld [vmem:[#allocation42_spill] sm:$0xff]  ;;  %v18253_v9 = vpop.f32.mrf.mxu0 }
 0x392   : > { %v5737_v47 = vadd.f32 %v17884_v6, %v5343_v10  ;;  %v18243_v17 = vadd.f32 %v17782_v26, %v17780_v48  ;;  %v4577_v52 = vadd.f32 %v17822_v5, %v4145_v44  ;;  %v5347_v37 = vadd.f32 %v17903_v7, %v4953_v32  ;;  %v20383_v31 = vld [vmem:[#allocation22_spill] sm:$0xff]  ;;  %v20385_v26 = vld [vmem:[#allocation45_spill] sm:$0xff]  ;;  %v20386_v7 = vld [vmem:[#allocation52_spill] sm:$0xff] }
 0x393   : > { %v18179_v57 = vpop.f32.mrf.mxu1  ;;  %v4579_v14 = vadd.f32 %v20381_v11, %v4155_v60  ;;  %v5739_v15 = vadd.f32 %v20382_v8, %v5345_v61  ;;  %v18257_v48 = vadd.f32 %v20384_v23, %v20383_v31  ;;  %v18260_v5 = vadd.f32 %v20385_v26, %v4573_v53  ;;  %v20391_v60 = vld [vmem:[#allocation29_spill] sm:$0xff]  ;;  %v18290_v32 = vld [vmem:[%s19885_s9] ss:$0 sm:$0xff]  ;;  %v20393_v53 = vld [vmem:[#allocation48_spill] sm:$0xff]  ;;  %v18296_v41 = vpop.f32.mrf.mxu0 }
 0x394   : > { %v6132_v22 = vadd.f32 %v18071_v4, %v5737_v47  ;;  %v4581_v21 = vadd.f32 %v20386_v7, %v4165_v34  ;;  %v5742_v6 = vadd.f32 %v20388_v13, %v20387_v24  ;;  %v18276_v10 = vadd.f32 %v20389_v27, %v4575_v42  ;;  %v20392_v47 = vld [vmem:[#allocation53_spill] sm:$0xff]  ;;  %v20396_v8 = vld [vmem:[#allocation36_spill] sm:$0xff]  ;;  %v20398_v7 = vld [vmem:[#allocation55_spill] sm:$0xff] }
 0x395   : > { %v18183_v28 = vpop.f32.mrf.mxu1  ;;  %v6134_v2 = vadd.f32 %v18077_v25, %v5739_v15  ;;  %v18282_v44 = vadd.f32 %v20390_v62, %v4577_v52  ;;  %v5741_v34 = vadd.f32 %v20391_v60, %v5347_v37  ;;  %v5349_v61 = vadd.f32 %v20392_v47, %v4955_v16  ;;  %v20394_v37 = vld [vmem:[#allocation46_spill] sm:$0xff]  ;;  %v20399_v13 = vld [vmem:[#allocation11_spill] sm:$0xff] }
 0x396   : > { %v6526_v38 = vadd.f32 %v18073_v29, %v6132_v22  ;;  %v6137_v54 = vadd.f32 %v18090_v56, %v5742_v6  ;;  %v18293_v25 = vadd.f32 %v20393_v53, %v4579_v14  ;;  %v6529_v42 = vadd.f32 %v18079_v49, %v6135_v1  ;;  %v20395_v56 = vld [vmem:[#allocation32_spill] sm:$0xff]  ;;  %v20397_v15 = vld [vmem:[#allocation58_spill] sm:$0xff]  ;;  %v20400_v6 = vld [vmem:[#allocation87_spill] sm:$0xff] }
 0x397   : > { %v18186_v35 = vpop.f32.mrf.mxu1  ;;  %v18300_v16 = vadd.f32 %v20394_v37, %v4581_v21  ;;  %v4583_v11 = vadd.f32 %v20395_v56, %v4175_v36  ;;  %v6136_v31 = vadd.f32 %v18098_v55, %v5741_v34  ;;  %v6528_v14 = vadd.f32 %v18100_v50, %v6134_v2  ;;  %v20401_v36 = vld [vmem:[#allocation85_spill] sm:$0xff]  ;;  %v20402_v60 = vld [vmem:[#allocation38_spill] sm:$0xff] }
 0x398   : > { %v5743_v24 = vadd.f32 %v20398_v7, %v5349_v61  ;;  %v5351_v21 = vadd.f32 %v20399_v13, %v4957_v19  ;;  %v20403_v47 = vld [vmem:[#allocation50_spill] sm:$0xff]  ;;  %v20404_v61 = vld [vmem:[#allocation60_spill] sm:$0xff]  ;;  %v20405_v19 = vld [vmem:[#allocation35_spill] sm:$0xff] }
 0x399   : > { %v18191_v40 = vpop.f32.mrf.mxu1  ;;  %v18318_v34 = vadd.f32 %v20402_v60, %v4583_v11  ;;  %v6530_v53 = vadd.f32 %v20405_v19, %v6136_v31  ;;  %v20408_v11 = vld [vmem:[#allocation24_spill] sm:$0xff] }
 0x39b   : > { %v18209_v39 = vpop.f32.mrf.mxu1 }
 0x39d   : > { %v18227_v63 = vpop.f32.mrf.mxu1 }
 0x39f   : > { %v18247_v3 = vpop.f32.mrf.mxu1 }
 0x3a1   : > { %v13952_v4 = vpop.f32.mrf.mxu1 }
 0x3a2   : > { %v6921_v45 = vadd.f32 %v13952_v4, %v6527_v20  ;;  %v5744_v20 = vadd.f32 %v20397_v15, %v20396_v8  ;;  %v6531_v4 = vadd.f32 %v20400_v6, %v6137_v54  ;;  %v20406_v54 = vld [vmem:[#allocation90_spill] sm:$0xff]  ;;  %v20407_v15 = vld [vmem:[#allocation57_spill] sm:$0xff] }
 0x3a3   : > { %v6761_v29 = vpop.f32.mrf.mxu1 }
 0x3a4   : > { %v6960_v22 = vmul.f32 %v18268_v46, %v6921_v45  ;;  %v6920_v52 = vadd.f32 %v6761_v29, %v6526_v38  ;;  %v6139_v27 = vadd.f32 %v20401_v36, %v5744_v20  ;;  %v18313_v45 = vpop.f32.mrf.mxu0  ;;  %v5746_v29 = vadd.f32 %v20404_v61, %v20403_v47 }
 0x3a5   : > { %v13955_v23 = vpop.f32.mrf.mxu1  ;;  %v5745_v20 = vadd.f32 %v20407_v15, %v5351_v21  ;;  %v20411_v21 = vld [vmem:[#allocation31_spill] sm:$0xff] }
 0x3a6   : > { %v6999_v49 = vadd.f32 %v18290_v32, %v6960_v22  ;;  %v6959_v1 = vmul.f32 %v18268_v46, %v6920_v52  ;;  %v6923_v26 = vadd.f32 %v13955_v23, %v6529_v42  ;;  %v6138_v42 = vadd.f32 %v20406_v54, %v5743_v24  ;;  %v18332_v7 = vpop.f32.mrf.mxu0 }
 0x3a7   : > { %v6771_v38 = vpop.f32.mrf.mxu1  ;;  %v5353_v23 = vadd.f32 %v20408_v11, %v18231_v33  ;;  %v4585_v36 = vadd.f32 %v20411_v21, %v18213_v43  ;;  %v20413_v33 = vld [vmem:[#allocation59_spill] sm:$0xff]  ;;  %v20417_v43 = vld [vmem:[#allocation66_spill] sm:$0xff] }
 0x3a8   : > { %v7031_v55 = vmax.f32 %v6999_v49, 0.0  ;;  %v6998_v62 = vadd.f32 %v18290_v32, %v6959_v1  ;;  %v6962_v50 = vmul.f32 %v18268_v46, %v6923_v26  ;;  %v6922_v2 = vadd.f32 %v6771_v38, %v6528_v14  ;;  %v20409_v14 = vld [vmem:[#allocation91_spill] sm:$0xff]  ;;  %v20410_v1 = vld [vmem:[#allocation40_spill] sm:$0xff]  ;;  %v20412_v38 = vld [vmem:[#allocation62_spill] sm:$0xff]  ;;  %v18351_v15 = vpop.f32.mrf.mxu0 }
 0x3a9   : > { %v13958_v22 = vpop.f32.mrf.mxu1  ;;  %v6533_v49 = vadd.f32 %v20409_v14, %v6139_v27  ;;  %v6141_v31 = vadd.f32 %v20410_v1, %v5746_v29  ;;  %v20414_v27 = vld [vmem:[#allocation93_spill] sm:$0xff]  ;;  %v20420_v1 = vld [vmem:[#allocation44_spill] sm:$0xff] }
 0x3aa   : > { %7063 = vst.msk [vmem:[#allocation2 + $0x21] sm:$0xff] %vm3381_vm4, %v7031_v55  ;;  %v7030_v52 = vmax.f32 %v6998_v62, 0.0  ;;  %v7001_v37 = vadd.f32 %v18290_v32, %v6962_v50  ;;  %v6961_v56 = vmul.f32 %v18268_v46, %v6922_v2  ;;  %v6925_v8 = vadd.f32 %v13958_v22, %v6531_v4  ;;  %v20415_v50 = vld [vmem:[#allocation92_spill] sm:$0xff] }
 0x3ab   : > { %v6781_v26 = vpop.f32.mrf.mxu1  ;;  %v5748_v55 = vadd.f32 %v20413_v33, %v20412_v38  ;;  %v6532_v62 = vadd.f32 %v20414_v27, %v6138_v42  ;;  %v6140_v2 = vadd.f32 %v20415_v50, %v5745_v20  ;;  %v5355_v22 = vadd.f32 %v20417_v43, %v18239_v51  ;;  %v20422_v51 = vld [vmem:[#allocation61_spill] sm:$0xff] }
 0x3ac   : > { %7062 = vst.msk [vmem:[#allocation2 + $0x19] sm:$0xff] %vm3381_vm4, %v7030_v52  ;;  %v7033_v24 = vmax.f32 %v7001_v37, 0.0  ;;  %v7000_v13 = vadd.f32 %v18290_v32, %v6961_v56  ;;  %v6964_v6 = vmul.f32 %v18268_v46, %v6925_v8  ;;  %v6924_v4 = vadd.f32 %v6781_v26, %v6530_v53  ;;  %v20416_v53 = vld [vmem:[#allocation64_spill] sm:$0xff]  ;;  %v20419_v56 = vld [vmem:[#allocation27_spill] sm:$0xff]  ;;  %v20421_v26 = vld [vmem:[#allocation17_spill] sm:$0xff] }
 0x3ad   : > { %v13961_v60 = vpop.f32.mrf.mxu1  ;;  %v5747_v54 = vadd.f32 %v20416_v53, %v5353_v23  ;;  %v20418_v52 = vld [vmem:[#allocation16_spill] sm:$0xff]  ;;  %v6143_v42 = vadd.f32 %v20419_v56, %v5748_v55  ;;  %v18357_v23 = vadd.f32 %v20420_v1, %v4585_v36  ;;  %v20426_v36 = vld [vmem:[#allocation65_spill] sm:$0xff]  ;;  %v20432_v1 = vld [vmem:[#allocation26_spill] sm:$0xff] }
 0x3ae   : > { %7065 = vst.msk [vmem:[#allocation2 + $0x39] sm:$0xff] %vm3381_vm4, %v7033_v24  ;;  %v7032_v47 = vmax.f32 %v7000_v13, 0.0  ;;  %v7003_v61 = vadd.f32 %v18290_v32, %v6964_v6  ;;  %v6963_v29 = vmul.f32 %v18268_v46, %v6924_v4  ;;  %v6927_v19 = vadd.f32 %v13961_v60, %v6533_v49  ;;  %v20424_v6 = vld [vmem:[#allocation89_spill] sm:$0xff] }
 0x3af   : > { %v6535_v37 = vadd.f32 %v20418_v52, %v6141_v31  ;;  %v6791_v8 = vpop.f32.mrf.mxu1  ;;  %v5750_v24 = vadd.f32 %v20422_v51, %v20421_v26  ;;  %v20423_v31 = vld [vmem:[#allocation96_spill] sm:$0xff]  ;;  %v6142_v4 = vadd.f32 %v20424_v6, %v5747_v54  ;;  %v5357_v60 = vadd.f32 %v20426_v36, %v18243_v17  ;;  %v18377_v52 = vpop.f32.mrf.mxu0 }
 0x3b0   : > { %7064 = vst.msk [vmem:[#allocation2 + $0x31] sm:$0xff] %vm3381_vm4, %v7032_v47  ;;  %v7035_v20 = vmax.f32 %v7003_v61, 0.0  ;;  %v7002_v11 = vadd.f32 %v18290_v32, %v6963_v29  ;;  %v6966_v14 = vmul.f32 %v18268_v46, %v6927_v19  ;;  %v6926_v49 = vadd.f32 %v6791_v8, %v6532_v62  ;;  %v20425_v62 = vld [vmem:[#allocation63_spill] sm:$0xff]  ;;  %v20428_v29 = vld [vmem:[#allocation94_spill] sm:$0xff] }
 0x3b1   : > { %v6534_v13 = vadd.f32 %v20423_v31, %v6140_v2  ;;  %v13964_v21 = vpop.f32.mrf.mxu1  ;;  %v5749_v50 = vadd.f32 %v20425_v62, %v5355_v22  ;;  %v20427_v47 = vld [vmem:[#allocation99_spill] sm:$0xff]  ;;  %v6145_v2 = vadd.f32 %v20428_v29, %v5750_v24  ;;  %v20429_v8 = vld [vmem:[#allocation34_spill] sm:$0xff] }
 0x3b2   : > { %7067 = vst.msk [vmem:[#allocation2 + $0x51] sm:$0xff] %vm3381_vm4, %v7035_v20  ;;  %v7034_v38 = vmax.f32 %v7002_v11, 0.0  ;;  %v7005_v33 = vadd.f32 %v18290_v32, %v6966_v14  ;;  %v6965_v55 = vmul.f32 %v18268_v46, %v6926_v49  ;;  %v6929_v27 = vadd.f32 %v13964_v21, %v6535_v37  ;;  %v20430_v20 = vld [vmem:[#allocation68_spill] sm:$0xff]  ;;  %v20431_v14 = vld [vmem:[#allocation102_spill] sm:$0xff] }
 0x3b3   : > { %v6537_v61 = vadd.f32 %v20427_v47, %v6143_v42  ;;  %v6801_v19 = vpop.f32.mrf.mxu1  ;;  %v18371_v53 = vld [vmem:[#allocation2 + $0x19] sm:$0xff]  ;;  %v18386_v42 = vld [vmem:[#allocation2 + $0x21] sm:$0xff]  ;;  %v5752_v11 = vadd.f32 %v20430_v20, %v20429_v8  ;;  %v6536_v49 = vadd.f32 %v20431_v14, %v6142_v4  ;;  %v6144_v26 = vadd.f32 %v20432_v1, %v5749_v50 }
 0x3b4   : > { %v18373_v54 = vld [vmem:[#allocation2 + $0x18] sm:$0xff]  ;;  %v18375_v43 = vld [vmem:[#allocation2 + $0x20] sm:$0xff]  ;;  %7066 = vst.msk [vmem:[#allocation2 + $0x49] sm:$0xff] %vm3381_vm4, %v7034_v38  ;;  %v7037_v37 = vmax.f32 %v7005_v33, 0.0  ;;  %v7004_v22 = vadd.f32 %v18290_v32, %v6965_v55  ;;  %v6968_v17 = vmul.f32 %v18268_v46, %v6929_v27  ;;  %v6928_v56 = vadd.f32 %v6801_v19, %v6534_v13  ;;  %14017 = vmatprep.mubr.msk.f32.mxu0 %vm3381_vm4, %v18371_v53  ;;  %v20435_v27 = vld [vmem:[#allocation12_spill] sm:$0xff]  ;;  %v18410_v19 = vpop.f32.mrf.mxu0 }
 0x3b5   : > { %14081 = vmatprep.mubr.msk.f32.mxu1 %vm3381_vm4, %v18373_v54  ;;  %v13967_v51 = vpop.f32.mrf.mxu1  ;;  %14018 = vmatmul.mubr.msk.f32.gmra.mxu0 %vm3381_vm4, %v18386_v42  ;;  %v20433_v21 = vld [vmem:[#allocation70_spill] sm:$0xff]  ;;  %v6539_v55 = vadd.f32 %v18174_v30, %v6145_v2  ;;  %v6147_v62 = vadd.f32 %v20435_v27, %v5752_v11  ;;  %v20436_v2 = vld [vmem:[#allocation39_spill] sm:$0xff] }
 0x3b6   : > { %14082 = vmatmul.mubr.msk.f32.gmra.mxu1 %vm3381_vm4, %v18375_v43  ;;  %7069 = vst.msk [vmem:[#allocation2 + $0x69] sm:$0xff] %vm3381_vm4, %v7037_v37  ;;  %v7036_v24 = vmax.f32 %v7004_v22, 0.0  ;;  %v7007_v31 = vadd.f32 %v18290_v32, %v6968_v17  ;;  %v6967_v13 = vmul.f32 %v18268_v46, %v6928_v56  ;;  %v6931_v6 = vadd.f32 %v13967_v51, %v6537_v61  ;;  %v20434_v4 = vld [vmem:[#allocation10_spill] sm:$0xff]  ;;  %v20437_v22 = vld [vmem:[#allocation72_spill] sm:$0xff] }
 0x3b7   : > { %v5751_v38 = vadd.f32 %v20433_v21, %v5357_v60  ;;  %v5359_v33 = vadd.f32 %v20434_v4, %v18257_v48  ;;  %v6811_v50 = vpop.f32.mrf.mxu1  ;;  %v18404_v36 = vld [vmem:[#allocation2 + $0x31] sm:$0xff]  ;;  %v18419_v30 = vld [vmem:[#allocation2 + $0x39] sm:$0xff]  ;;  %v5754_v17 = vadd.f32 %v20437_v22, %v20436_v2  ;;  %v6538_v56 = vadd.f32 %v18181_v0, %v6144_v26  ;;  %v20440_v0 = vld [vmem:[#allocation71_spill] sm:$0xff] }
 0x3b8   : > { %v18406_v47 = vld [vmem:[#allocation2 + $0x30] sm:$0xff]  ;;  %v18408_v29 = vld [vmem:[#allocation2 + $0x38] sm:$0xff]  ;;  %7068 = vst.msk [vmem:[#allocation2 + $0x61] sm:$0xff] %vm3381_vm4, %v7036_v24  ;;  %v7039_v61 = vmax.f32 %v7007_v31, 0.0  ;;  %v7006_v60 = vadd.f32 %v18290_v32, %v6967_v13  ;;  %v6970_v48 = vmul.f32 %v18268_v46, %v6931_v6  ;;  %v6930_v37 = vadd.f32 %v6811_v50, %v6536_v49  ;;  %14020 = vmatprep.mubr.msk.f32.mxu0 %vm3381_vm4, %v18404_v36  ;;  %v20438_v8 = vld [vmem:[#allocation14_spill] sm:$0xff] }
 0x3b9   : > { %14084 = vmatprep.mubr.msk.f32.mxu1 %vm3381_vm4, %v18406_v47  ;;  %v6146_v20 = vadd.f32 %v20438_v8, %v5751_v38  ;;  %v13970_v11 = vpop.f32.mrf.mxu1  ;;  %14021 = vmatmul.mubr.msk.f32.gmra.mxu0 %vm3381_vm4, %v18419_v30  ;;  %v20439_v24 = vld [vmem:[#allocation67_spill] sm:$0xff]  ;;  %v5361_v26 = vadd.f32 %v20440_v0, %v18260_v5  ;;  %v6541_v13 = vadd.f32 %v18189_v18, %v6147_v62  ;;  %v20441_v6 = vld [vmem:[#allocation18_spill] sm:$0xff]  ;;  %v18452_v18 = vld [vmem:[#allocation2 + $0x51] sm:$0xff] }
 0x3ba   : > { %14085 = vmatmul.mubr.msk.f32.gmra.mxu1 %vm3381_vm4, %v18408_v29  ;;  %7071 = vst.msk [vmem:[#allocation2 + $0x81] sm:$0xff] %vm3381_vm4, %v7039_v61  ;;  %v7038_v14 = vmax.f32 %v7006_v60, 0.0  ;;  %v7009_v49 = vadd.f32 %v18290_v32, %v6970_v48  ;;  %v6969_v1 = vmul.f32 %v18268_v46, %v6930_v37  ;;  %v6933_v51 = vadd.f32 %v13970_v11, %v6539_v55  ;;  %v18443_v61 = vpop.f32.mrf.mxu0  ;;  %v20442_v62 = vld [vmem:[#allocation15_spill] sm:$0xff]  ;;  %v20443_v48 = vld [vmem:[#allocation69_spill] sm:$0xff] }
 0x3bb   : > { %v5753_v31 = vadd.f32 %v20439_v24, %v5359_v33  ;;  %v6149_v21 = vadd.f32 %v20441_v6, %v5754_v17  ;;  %v6821_v38 = vpop.f32.mrf.mxu1  ;;  %v18437_v4 = vld [vmem:[#allocation2 + $0x49] sm:$0xff]  ;;  %v5756_v37 = vadd.f32 %v20443_v48, %v20442_v62  ;;  %v6540_v2 = vadd.f32 %v18218_v58, %v6146_v20 }
 0x3bc   : > { %v18439_v27 = vld [vmem:[#allocation2 + $0x48] sm:$0xff]  ;;  %v18441_v50 = vld [vmem:[#allocation2 + $0x50] sm:$0xff]  ;;  %7070 = vst.msk [vmem:[#allocation2 + $0x79] sm:$0xff] %vm3381_vm4, %v7038_v14  ;;  %v7041_v55 = vmax.f32 %v7009_v49, 0.0  ;;  %v7008_v33 = vadd.f32 %v18290_v32, %v6969_v1  ;;  %v6972_v5 = vmul.f32 %v18268_v46, %v6933_v51  ;;  %v6932_v60 = vadd.f32 %v6821_v38, %v6538_v56  ;;  %14023 = vmatprep.mubr.msk.f32.mxu0 %vm3381_vm4, %v18437_v4  ;;  %v20445_v1 = vld [vmem:[#allocation74_spill] sm:$0xff] }
 0x3bd   : > { %14087 = vmatprep.mubr.msk.f32.mxu1 %vm3381_vm4, %v18439_v27  ;;  %v20444_v22 = vld [vmem:[#allocation95_spill] sm:$0xff]  ;;  %v13973_v8 = vpop.f32.mrf.mxu1  ;;  %14024 = vmatmul.mubr.msk.f32.gmra.mxu0 %vm3381_vm4, %v18452_v18  ;;  %v5755_v51 = vadd.f32 %v20445_v1, %v5361_v26  ;;  %v6543_v24 = vadd.f32 %v18253_v9, %v6149_v21  ;;  %v20448_v21 = vld [vmem:[#allocation13_spill] sm:$0xff]  ;;  %v20451_v1 = vld [vmem:[#allocation30_spill] sm:$0xff] }
 0x3be   : > { %v6148_v17 = vadd.f32 %v20444_v22, %v5753_v31  ;;  %14088 = vmatmul.mubr.msk.f32.gmra.mxu1 %vm3381_vm4, %v18441_v50  ;;  %7073 = vst.msk [vmem:[#allocation2 + $0x99] sm:$0xff] %vm3381_vm4, %v7041_v55  ;;  %v7040_v56 = vmax.f32 %v7008_v33, 0.0  ;;  %v7011_v11 = vadd.f32 %v18290_v32, %v6972_v5  ;;  %v6971_v14 = vmul.f32 %v18268_v46, %v6932_v60  ;;  %v20446_v58 = vld [vmem:[#allocation23_spill] sm:$0xff]  ;;  %v20447_v31 = vld [vmem:[#allocation97_spill] sm:$0xff]  ;;  %v18476_v33 = vpop.f32.mrf.mxu0  ;;  %v20449_v60 = vld [vmem:[#allocation76_spill] sm:$0xff] }
 0x3bf   : > { %v6935_v49 = vadd.f32 %v13973_v8, %v6541_v13  ;;  %v5363_v20 = vadd.f32 %v20446_v58, %v18276_v10  ;;  %v6151_v0 = vadd.f32 %v20447_v31, %v5756_v37  ;;  %v6831_v6 = vpop.f32.mrf.mxu1  ;;  %v18470_v38 = vld [vmem:[#allocation2 + $0x61] sm:$0xff]  ;;  %v18485_v9 = vld [vmem:[#allocation2 + $0x69] sm:$0xff]  ;;  %v5758_v48 = vadd.f32 %v20449_v60, %v20448_v21 }
 0x3c0   : > { %v18472_v62 = vld [vmem:[#allocation2 + $0x60] sm:$0xff]  ;;  %v18474_v55 = vld [vmem:[#allocation2 + $0x68] sm:$0xff]  ;;  %7072 = vst.msk [vmem:[#allocation2 + $0x91] sm:$0xff] %vm3381_vm4, %v7040_v56  ;;  %v7043_v13 = vmax.f32 %v7011_v11, 0.0  ;;  %v7010_v26 = vadd.f32 %v18290_v32, %v6971_v14  ;;  %v6934_v5 = vadd.f32 %v6831_v6, %v6540_v2  ;;  %14026 = vmatprep.mubr.msk.f32.mxu0 %vm3381_vm4, %v18470_v38  ;;  %v6542_v37 = vadd.f32 %v18296_v41, %v6148_v17  ;;  %v20453_v31 = vld [vmem:[#allocation100_spill] sm:$0xff] }
 0x3c1   : > { %v6974_v10 = vmul.f32 %v18268_v46, %v6935_v49  ;;  %14090 = vmatprep.mubr.msk.f32.mxu1 %vm3381_vm4, %v18472_v62  ;;  %v20450_v22 = vld [vmem:[#allocation98_spill] sm:$0xff]  ;;  %v13976_v56 = vpop.f32.mrf.mxu1  ;;  %14027 = vmatmul.mubr.msk.f32.gmra.mxu0 %vm3381_vm4, %v18485_v9  ;;  %v5757_v58 = vadd.f32 %v20451_v1, %v5363_v20  ;;  %v20452_v41 = vld [vmem:[#allocation75_spill] sm:$0xff]  ;;  %v6153_v6 = vadd.f32 %v20453_v31, %v5758_v48 }
 0x3c2   : > { %v6150_v8 = vadd.f32 %v20450_v22, %v5755_v51  ;;  %14091 = vmatmul.mubr.msk.f32.gmra.mxu1 %vm3381_vm4, %v18474_v55  ;;  %7075 = vst.msk [vmem:[#allocation2 + $0xb1] sm:$0xff] %vm3381_vm4, %v7043_v13  ;;  %v7042_v2 = vmax.f32 %v7010_v26, 0.0  ;;  %v6973_v14 = vmul.f32 %v18268_v46, %v6934_v5  ;;  %v6937_v49 = vadd.f32 %v13976_v56, %v6543_v24  ;;  %v18509_v26 = vpop.f32.mrf.mxu0  ;;  %v20457_v5 = vld [vmem:[#allocation73_spill] sm:$0xff]  ;;  %v20459_v31 = vld [vmem:[#allocation19_spill] sm:$0xff] }
 0x3c3   : > { %v7013_v11 = vadd.f32 %v18290_v32, %v6974_v10  ;;  %v5365_v17 = vadd.f32 %v20452_v41, %v18282_v44  ;;  %v6545_v51 = vadd.f32 %v18313_v45, %v6151_v0  ;;  %v6841_v21 = vpop.f32.mrf.mxu1  ;;  %v18503_v60 = vld [vmem:[#allocation2 + $0x79] sm:$0xff]  ;;  %v18518_v45 = vld [vmem:[#allocation2 + $0x81] sm:$0xff] }
 0x3c4   : > { %20454 = vst [vmem:[#allocation42_spill] sm:$0xff] %v18503_v60  ;;  %v18505_v22 = vld [vmem:[#allocation2 + $0x78] sm:$0xff]  ;;  %v18507_v13 = vld [vmem:[#allocation2 + $0x80] sm:$0xff]  ;;  %7074 = vst.msk [vmem:[#allocation2 + $0xa9] sm:$0xff] %vm3381_vm4, %v7042_v2  ;;  %v7012_v20 = vadd.f32 %v18290_v32, %v6973_v14  ;;  %v6976_v44 = vmul.f32 %v18268_v46, %v6937_v49  ;;  %v6936_v10 = vadd.f32 %v6841_v21, %v6542_v37  ;;  %14029 = vmatprep.mubr.msk.f32.mxu0 %vm3381_vm4, %v18503_v60 }
 0x3c5   : > { %v7045_v24 = vmax.f32 %v7013_v11, 0.0  ;;  %14093 = vmatprep.mubr.msk.f32.mxu1 %vm3381_vm4, %v18505_v22  ;;  %20455 = vst [vmem:[#allocation54_spill] sm:$0xff] %v18518_v45  ;;  %v20456_v0 = vld [vmem:[#allocation78_spill] sm:$0xff]  ;;  %v6544_v56 = vadd.f32 %v18332_v7, %v6150_v8  ;;  %v20458_v2 = vld [vmem:[#allocation101_spill] sm:$0xff]  ;;  %v13979_v1 = vpop.f32.mrf.mxu1  ;;  %14030 = vmatmul.mubr.msk.f32.gmra.mxu0 %vm3381_vm4, %v18518_v45  ;;  %v5759_v21 = vadd.f32 %v20459_v31, %v5365_v17 }
 0x3c6   : > { %v5760_v48 = vadd.f32 %v20457_v5, %v20456_v0  ;;  %v6152_v11 = vadd.f32 %v20458_v2, %v5757_v58  ;;  %14094 = vmatmul.mubr.msk.f32.gmra.mxu1 %vm3381_vm4, %v18507_v13  ;;  %v7044_v37 = vmax.f32 %v7012_v20, 0.0  ;;  %v7015_v14 = vadd.f32 %v18290_v32, %v6976_v44  ;;  %v20460_v7 = vld [vmem:[#allocation77_spill] sm:$0xff]  ;;  %v20461_v0 = vld [vmem:[#allocation103_spill] sm:$0xff]  ;;  %v18542_v20 = vpop.f32.mrf.mxu0 }
 0x3c7   : > { %7077 = vst.msk [vmem:[#allocation2 + $0xc9] sm:$0xff] %vm3381_vm4, %v7045_v24  ;;  %v6975_v49 = vmul.f32 %v18268_v46, %v6936_v10  ;;  %v6939_v41 = vadd.f32 %v13979_v1, %v6545_v51  ;;  %v5367_v8 = vadd.f32 %v20460_v7, %v18293_v25  ;;  %v6547_v58 = vadd.f32 %v18351_v15, %v6153_v6  ;;  %v6851_v2 = vpop.f32.mrf.mxu1  ;;  %v18536_v45 = vld [vmem:[#allocation2 + $0x91] sm:$0xff]  ;;  %v18551_v15 = vld [vmem:[#allocation2 + $0x99] sm:$0xff]  ;;  %v20464_v10 = vld [vmem:[#allocation47_spill] sm:$0xff] }
 0x3c8   : > { %v6155_v5 = vadd.f32 %v20461_v0, %v5760_v48  ;;  %v18538_v60 = vld [vmem:[#allocation2 + $0x90] sm:$0xff]  ;;  %v18540_v24 = vld [vmem:[#allocation2 + $0x98] sm:$0xff]  ;;  %7076 = vst.msk [vmem:[#allocation2 + $0xc1] sm:$0xff] %vm3381_vm4, %v7044_v37  ;;  %v7047_v51 = vmax.f32 %v7015_v14, 0.0  ;;  %v6938_v44 = vadd.f32 %v6851_v2, %v6544_v56  ;;  %14032 = vmatprep.mubr.msk.f32.mxu0 %vm3381_vm4, %v18536_v45  ;;  %20462 = vst [vmem:[#allocation22_spill] sm:$0xff] %v18551_v15 }
 0x3c9   : > { %v7014_v17 = vadd.f32 %v18290_v32, %v6975_v49  ;;  %v6978_v25 = vmul.f32 %v18268_v46, %v6939_v41  ;;  %14096 = vmatprep.mubr.msk.f32.mxu1 %vm3381_vm4, %v18538_v60  ;;  %v20463_v6 = vld [vmem:[#allocation80_spill] sm:$0xff]  ;;  %v6546_v1 = vadd.f32 %v18377_v52, %v6152_v11  ;;  %v13982_v31 = vpop.f32.mrf.mxu1  ;;  %14033 = vmatmul.mubr.msk.f32.gmra.mxu0 %vm3381_vm4, %v18551_v15  ;;  %v20466_v0 = vld [vmem:[#allocation82_spill] sm:$0xff]  ;;  %v20467_v52 = vld [vmem:[#allocation79_spill] sm:$0xff] }
 0x3ca   : > { %v5762_v48 = vadd.f32 %v20464_v10, %v20463_v6  ;;  %v20465_v37 = vld [vmem:[#allocation104_spill] sm:$0xff]  ;;  %14097 = vmatmul.mubr.msk.f32.gmra.mxu1 %vm3381_vm4, %v18540_v24  ;;  %7079 = vst.msk [vmem:[#allocation2 + $0xe1] sm:$0xff] %vm3381_vm4, %v7047_v51  ;;  %v6977_v41 = vmul.f32 %v18268_v46, %v6938_v44  ;;  %v6941_v7 = vadd.f32 %v13982_v31, %v6547_v58 }
 0x3cb   : > { %v6154_v14 = vadd.f32 %v20465_v37, %v5759_v21  ;;  %v7046_v56 = vmax.f32 %v7014_v17, 0.0  ;;  %v7017_v49 = vadd.f32 %v18290_v32, %v6978_v25  ;;  %v5761_v2 = vadd.f32 %v20466_v0, %v5367_v8  ;;  %v6861_v10 = vpop.f32.mrf.mxu1  ;;  %v18569_v37 = vld [vmem:[#allocation2 + $0xa9] sm:$0xff]  ;;  %v18575_v17 = vpop.f32.mrf.mxu0  ;;  %v20470_v0 = vld [vmem:[#allocation81_spill] sm:$0xff] }
 0x3cc   : > { %v5369_v11 = vadd.f32 %v20467_v52, %v18300_v16  ;;  %v6549_v21 = vadd.f32 %v18410_v19, %v6155_v5  ;;  %v6157_v6 = vadd.f32 %v18176_v59, %v5762_v48  ;;  %v18571_v15 = vld [vmem:[#allocation2 + $0xa8] sm:$0xff]  ;;  %v18573_v51 = vld [vmem:[#allocation2 + $0xb0] sm:$0xff]  ;;  %v7016_v8 = vadd.f32 %v18290_v32, %v6977_v41  ;;  %14035 = vmatprep.mubr.msk.f32.mxu0 %vm3381_vm4, %v18569_v37  ;;  %v20468_v19 = vld [vmem:[#allocation21_spill] sm:$0xff] }
 0x3cd   : > { %7078 = vst.msk [vmem:[#allocation2 + $0xd9] sm:$0xff] %vm3381_vm4, %v7046_v56  ;;  %v7049_v58 = vmax.f32 %v7017_v49, 0.0  ;;  %v6980_v16 = vmul.f32 %v18268_v46, %v6941_v7  ;;  %v6940_v25 = vadd.f32 %v6861_v10, %v6546_v1  ;;  %14099 = vmatprep.mubr.msk.f32.mxu1 %vm3381_vm4, %v18571_v15  ;;  %v18584_v59 = vld [vmem:[#allocation2 + $0xb1] sm:$0xff]  ;;  %v6548_v48 = vadd.f32 %v18443_v61, %v6154_v14  ;;  %v13985_v56 = vpop.f32.mrf.mxu1  ;;  %v20471_v61 = vld [vmem:[#allocation86_spill] sm:$0xff] }
 0x3ce   : > { %v20469_v5 = vld [vmem:[#allocation28_spill] sm:$0xff]  ;;  %v6156_v31 = vadd.f32 %v18179_v57, %v5761_v2  ;;  %14036 = vmatmul.mubr.msk.f32.gmra.mxu0 %vm3381_vm4, %v18584_v59  ;;  %14100 = vmatmul.mubr.msk.f32.gmra.mxu1 %vm3381_vm4, %v18573_v51  ;;  %v7048_v1 = vmax.f32 %v7016_v8, 0.0  ;;  %v6943_v7 = vadd.f32 %v13985_v56, %v6549_v21  ;;  %v5763_v52 = vadd.f32 %v20470_v0, %v5369_v11  ;;  %v13930_v8 = vpop.f32.mrf.mxu0  ;;  %v20474_v0 = vld [vmem:[#allocation37_spill] sm:$0xff] }
 0x3cf   : > { %v5764_v44 = vadd.f32 %v20469_v5, %v20468_v19  ;;  %7081 = vst.msk [vmem:[#allocation2 + $0xf9] sm:$0xff] %vm3381_vm4, %v7049_v58  ;;  %v7019_v49 = vadd.f32 %v18290_v32, %v6980_v16  ;;  %v6979_v41 = vmul.f32 %v18268_v46, %v6940_v25  ;;  %v5371_v57 = vadd.f32 %v20471_v61, %v18318_v34  ;;  %v6871_v10 = vpop.f32.mrf.mxu1  ;;  %v18602_v19 = vld [vmem:[#allocation2 + $0xc1] sm:$0xff] }
 0x3d0   : > { %v6551_v14 = vadd.f32 %v18476_v33, %v6157_v6  ;;  %v18604_v5 = vld [vmem:[#allocation2 + $0xc0] sm:$0xff]  ;;  %v18606_v58 = vld [vmem:[#allocation2 + $0xc8] sm:$0xff]  ;;  %7080 = vst.msk [vmem:[#allocation2 + $0xf1] sm:$0xff] %vm3381_vm4, %v7048_v1  ;;  %v6982_v16 = vmul.f32 %v18268_v46, %v6943_v7  ;;  %v6942_v34 = vadd.f32 %v6871_v10, %v6548_v48  ;;  %14038 = vmatprep.mubr.msk.f32.mxu0 %vm3381_vm4, %v18602_v19  ;;  %v20472_v33 = vld [vmem:[#allocation25_spill] sm:$0xff] }
 0x3d1   : > { %v6159_v2 = vadd.f32 %v18183_v28, %v5764_v44  ;;  %v7051_v21 = vmax.f32 %v7019_v49, 0.0  ;;  %v7018_v11 = vadd.f32 %v18290_v32, %v6979_v41  ;;  %14102 = vmatprep.mubr.msk.f32.mxu1 %vm3381_vm4, %v18604_v5  ;;  %v18615_v28 = vld [vmem:[#allocation2 + $0xc9] sm:$0xff]  ;;  %v6550_v44 = vadd.f32 %v18509_v26, %v6156_v31  ;;  %v13988_v1 = vpop.f32.mrf.mxu1 }
 0x3d2   : > { %v20473_v6 = vld [vmem:[#allocation84_spill] sm:$0xff]  ;;  %v6158_v56 = vadd.f32 %v18186_v35, %v5763_v52  ;;  %14039 = vmatmul.mubr.msk.f32.gmra.mxu0 %vm3381_vm4, %v18615_v28  ;;  %14103 = vmatmul.mubr.msk.f32.gmra.mxu1 %vm3381_vm4, %v18606_v58  ;;  %v7021_v49 = vadd.f32 %v18290_v32, %v6982_v16  ;;  %v6981_v41 = vmul.f32 %v18268_v46, %v6942_v34 }
 0x3d3   : > { %v5766_v25 = vadd.f32 %v20473_v6, %v20472_v33  ;;  %7083 = vst.msk [vmem:[#allocation2 + $0x111] sm:$0xff] %vm3381_vm4, %v7051_v21  ;;  %v7050_v48 = vmax.f32 %v7018_v11, 0.0  ;;  %v6945_v7 = vadd.f32 %v13988_v1, %v6551_v14  ;;  %v5765_v61 = vadd.f32 %v20474_v0, %v5371_v57  ;;  %v20475_v26 = vld [vmem:[#allocation88_spill] sm:$0xff]  ;;  %v6881_v10 = vpop.f32.mrf.mxu1  ;;  %v6507_v11 = vpop.f32.mrf.mxu0 }
 0x3d4   : > { %v5373_v35 = vadd.f32 %v20475_v26, %v18357_v23  ;;  %v6553_v31 = vadd.f32 %v18542_v20, %v6159_v2  ;;  %v18633_v33 = vld [vmem:[#allocation2 + $0xd9] sm:$0xff]  ;;  %v7053_v14 = vmax.f32 %v7021_v49, 0.0  ;;  %v7020_v57 = vadd.f32 %v18290_v32, %v6981_v41  ;;  %v20476_v20 = vld [vmem:[#allocation20_spill] sm:$0xff]  ;;  %v20478_v26 = vld [vmem:[#allocation83_spill] sm:$0xff] }
 0x3d5   : > { %v6161_v52 = vadd.f32 %v18191_v40, %v5766_v25  ;;  %v18635_v6 = vld [vmem:[#allocation2 + $0xd8] sm:$0xff]  ;;  %v18637_v21 = vld [vmem:[#allocation2 + $0xe0] sm:$0xff]  ;;  %7082 = vst.msk [vmem:[#allocation2 + $0x109] sm:$0xff] %vm3381_vm4, %v7050_v48  ;;  %v6984_v16 = vmul.f32 %v18268_v46, %v6945_v7  ;;  %v6944_v23 = vadd.f32 %v6881_v10, %v6550_v44  ;;  %14041 = vmatprep.mubr.msk.f32.mxu0 %vm3381_vm4, %v18633_v33  ;;  %v13991_v48 = vpop.f32.mrf.mxu1  ;;  %v13933_v44 = vpop.f32.mrf.mxu0 }
 0x3d6   : > { %14105 = vmatprep.mubr.msk.f32.mxu1 %vm3381_vm4, %v18635_v6  ;;  %v18646_v40 = vld [vmem:[#allocation2 + $0xe1] sm:$0xff]  ;;  %v20477_v2 = vld [vmem:[#allocation33_spill] sm:$0xff]  ;;  %v6552_v25 = vadd.f32 %v18575_v17, %v6158_v56  ;;  %v6160_v1 = vadd.f32 %v18209_v39, %v5765_v61  ;;  %7085 = vst.msk [vmem:[#allocation2 + $0x129] sm:$0xff] %vm3381_vm4, %v7053_v14  ;;  %v7052_v49 = vmax.f32 %v7020_v57, 0.0  ;;  %v6947_v0 = vadd.f32 %v13991_v48, %v6553_v31 }
 0x3d7   : > { %v5768_v34 = vadd.f32 %v20477_v2, %v20476_v20  ;;  %14042 = vmatmul.mubr.msk.f32.gmra.mxu0 %vm3381_vm4, %v18646_v40  ;;  %14106 = vmatmul.mubr.msk.f32.gmra.mxu1 %vm3381_vm4, %v18637_v21  ;;  %v7023_v41 = vadd.f32 %v18290_v32, %v6984_v16  ;;  %v6983_v7 = vmul.f32 %v18268_v46, %v6944_v23  ;;  %v6891_v61 = vpop.f32.mrf.mxu1  ;;  %v18661_v10 = vld [vmem:[#allocation2 + $0xf1] sm:$0xff]  ;;  %v6517_v23 = vpop.f32.mrf.mxu0 }
 0x3d8   : > { %v5767_v17 = vadd.f32 %v20478_v26, %v5373_v35  ;;  %v6555_v56 = vadd.f32 %v13930_v8, %v6161_v52  ;;  %v18663_v20 = vld [vmem:[#allocation2 + $0xf0] sm:$0xff]  ;;  %v18665_v2 = vld [vmem:[#allocation2 + $0xf8] sm:$0xff]  ;;  %7084 = vst.msk [vmem:[#allocation2 + $0x121] sm:$0xff] %vm3381_vm4, %v7052_v49  ;;  %v6986_v16 = vmul.f32 %v18268_v46, %v6947_v0  ;;  %v6946_v31 = vadd.f32 %v6891_v61, %v6552_v25 }
 0x3d9   : > { %v6163_v39 = vadd.f32 %v18227_v63, %v5768_v34  ;;  %v7055_v14 = vmax.f32 %v7023_v41, 0.0  ;;  %v7022_v57 = vadd.f32 %v18290_v32, %v6983_v7  ;;  %14044 = vmatprep.mubr.msk.f32.mxu0 %vm3381_vm4, %v18661_v10  ;;  %14108 = vmatprep.mubr.msk.f32.mxu1 %vm3381_vm4, %v18663_v20  ;;  %v18674_v63 = vld [vmem:[#allocation2 + $0xf9] sm:$0xff]  ;;  %v6554_v8 = vadd.f32 %v6507_v11, %v6160_v1  ;;  %v13994_v52 = vpop.f32.mrf.mxu1 }
 0x3da   : > { %v6162_v35 = vadd.f32 %v18247_v3, %v5767_v17  ;;  %v7025_v25 = vadd.f32 %v18290_v32, %v6986_v16  ;;  %v6985_v48 = vmul.f32 %v18268_v46, %v6946_v31  ;;  %v6949_v49 = vadd.f32 %v13994_v52, %v6555_v56 }
 0x3db   : > { %14045 = vmatmul.mubr.msk.f32.gmra.mxu0 %vm3381_vm4, %v18674_v63  ;;  %14109 = vmatmul.mubr.msk.f32.gmra.mxu1 %vm3381_vm4, %v18665_v2  ;;  %7087 = vst.msk [vmem:[#allocation2 + $0x141] sm:$0xff] %vm3381_vm4, %v7055_v14  ;;  %v7054_v34 = vmax.f32 %v7022_v57, 0.0  ;;  %v6557_v41 = vadd.f32 %v13933_v44, %v6163_v39  ;;  %v6901_v11 = vpop.f32.mrf.mxu1  ;;  %v18697_v44 = vld [vmem:[#allocation2 + $0x111] sm:$0xff] }
 0x3dc   : > { %v18684_v1 = vld [vmem:[#allocation2 + $0x109] sm:$0xff]  ;;  %v7057_v0 = vmax.f32 %v7025_v25, 0.0  ;;  %v7024_v26 = vadd.f32 %v18290_v32, %v6985_v48  ;;  %v6988_v17 = vmul.f32 %v18268_v46, %v6949_v49  ;;  %v6948_v61 = vadd.f32 %v6901_v11, %v6554_v8 }
 0x3dd   : > { %v18686_v3 = vld [vmem:[#allocation2 + $0x108] sm:$0xff]  ;;  %v18688_v7 = vld [vmem:[#allocation2 + $0x110] sm:$0xff]  ;;  %7086 = vst.msk [vmem:[#allocation2 + $0x139] sm:$0xff] %vm3381_vm4, %v7054_v34  ;;  %14047 = vmatprep.mubr.msk.f32.mxu0 %vm3381_vm4, %v18684_v1  ;;  %v6556_v56 = vadd.f32 %v6517_v23, %v6162_v35  ;;  %v13997_v39 = vpop.f32.mrf.mxu1 }
 0x3de   : > { %14111 = vmatprep.mubr.msk.f32.mxu1 %vm3381_vm4, %v18686_v3  ;;  %7089 = vst.msk [vmem:[#allocation2 + $0x159] sm:$0xff] %vm3381_vm4, %v7057_v0  ;;  %v7056_v14 = vmax.f32 %v7024_v26, 0.0  ;;  %v7027_v57 = vadd.f32 %v18290_v32, %v6988_v17  ;;  %v6987_v16 = vmul.f32 %v18268_v46, %v6948_v61  ;;  %v6951_v31 = vadd.f32 %v13997_v39, %v6557_v41  ;;  %v18719_v41 = vld [vmem:[#allocation2 + $0x129] sm:$0xff] }
 0x3df   : > { %14048 = vmatmul.mubr.msk.f32.gmra.mxu0 %vm3381_vm4, %v18697_v44  ;;  %14112 = vmatmul.mubr.msk.f32.gmra.mxu1 %vm3381_vm4, %v18688_v7  ;;  %v6911_v8 = vpop.f32.mrf.mxu1  ;;  %v18706_v52 = vld [vmem:[#allocation2 + $0x121] sm:$0xff] }
 0x3e0   : > { %v18708_v34 = vld [vmem:[#allocation2 + $0x120] sm:$0xff]  ;;  %v18710_v35 = vld [vmem:[#allocation2 + $0x128] sm:$0xff]  ;;  %7088 = vst.msk [vmem:[#allocation2 + $0x151] sm:$0xff] %vm3381_vm4, %v7056_v14  ;;  %v7059_v23 = vmax.f32 %v7027_v57, 0.0  ;;  %v7026_v25 = vadd.f32 %v18290_v32, %v6987_v16  ;;  %v6990_v48 = vmul.f32 %v18268_v46, %v6951_v31  ;;  %v6950_v49 = vadd.f32 %v6911_v8, %v6556_v56  ;;  %14050 = vmatprep.mubr.msk.f32.mxu0 %vm3381_vm4, %v18706_v52 }
 0x3e1   : > { %14114 = vmatprep.mubr.msk.f32.mxu1 %vm3381_vm4, %v18708_v34 }
 0x3e2   : > { %7091 = vst.msk [vmem:[#allocation2 + $0x171] sm:$0xff] %vm3381_vm4, %v7059_v23  ;;  %v7058_v11 = vmax.f32 %v7026_v25, 0.0  ;;  %v7029_v0 = vadd.f32 %v18290_v32, %v6990_v48  ;;  %v6989_v26 = vmul.f32 %v18268_v46, %v6950_v49  ;;  %v18740_v57 = vld [vmem:[#allocation2 + $0x141] sm:$0xff] }
 0x3e3   : > { %14051 = vmatmul.mubr.msk.f32.gmra.mxu0 %vm3381_vm4, %v18719_v41  ;;  %14115 = vmatmul.mubr.msk.f32.gmra.mxu1 %vm3381_vm4, %v18710_v35  ;;  %v7817_v23 = vld [vmem:[#allocation2 + $0x2] sm:$0xff] }
 0x3e4   : > { %v18728_v17 = vld [vmem:[#allocation2 + $0x139] sm:$0xff]  ;;  %7090 = vst.msk [vmem:[#allocation2 + $0x169] sm:$0xff] %vm3381_vm4, %v7058_v11  ;;  %v7061_v39 = vmax.f32 %v7029_v0, 0.0  ;;  %v7028_v14 = vadd.f32 %v18290_v32, %v6989_v26  ;;  %v7818_v0 = vld [vmem:[#allocation2 + $0xa] sm:$0xff] }
 0x3e5   : > { %v18730_v61 = vld [vmem:[#allocation2 + $0x138] sm:$0xff]  ;;  %v18732_v56 = vld [vmem:[#allocation2 + $0x140] sm:$0xff]  ;;  %14053 = vmatprep.mubr.msk.f32.mxu0 %vm3381_vm4, %v18728_v17  ;;  %v11743_v26 = vld [vmem:[%s20285_s5 + $0x130] sm:$0xff] }
 0x3e6   : > { %14117 = vmatprep.mubr.msk.f32.mxu1 %vm3381_vm4, %v18730_v61  ;;  %7093 = vst.msk [vmem:[#allocation2 + $0x189] sm:$0xff] %vm3381_vm4, %v7061_v39  ;;  %v7060_v46 = vmax.f32 %v7028_v14, 0.0  ;;  %v18758_v8 = vld [vmem:[#allocation2 + $0x159] sm:$0xff] }
 0x3e7   : > { %14054 = vmatmul.mubr.msk.f32.gmra.mxu0 %vm3381_vm4, %v18740_v57  ;;  %14118 = vmatmul.mubr.msk.f32.gmra.mxu1 %vm3381_vm4, %v18732_v56  ;;  %v18747_v16 = vld [vmem:[#allocation2 + $0x151] sm:$0xff]  ;;  %v18789_v39 = vld [vmem:[#allocation2 + $0x1a] sm:$0xff] }
 0x3e8   : > { %v18749_v32 = vld [vmem:[#allocation2 + $0x150] sm:$0xff]  ;;  %v18751_v31 = vld [vmem:[#allocation2 + $0x158] sm:$0xff]  ;;  %7092 = vst.msk [vmem:[#allocation2 + $0x181] sm:$0xff] %vm3381_vm4, %v7060_v46  ;;  %14056 = vmatprep.mubr.msk.f32.mxu0 %vm3381_vm4, %v18747_v16 }
 0x3e9   : > { %14120 = vmatprep.mubr.msk.f32.mxu1 %vm3381_vm4, %v18749_v32  ;;  %v18774_v11 = vld [vmem:[#allocation2 + $0x171] sm:$0xff] }
 0x3ea   : > { %v14654_v14 = vld [vmem:[%s20285_s5 + $0x138] sm:$0xff]  ;;  %v11783_v46 = vld [vmem:[%s20285_s5 + $0x170] sm:$0xff] }
 0x3eb   : > { %14057 = vmatmul.mubr.msk.f32.gmra.mxu0 %vm3381_vm4, %v18758_v8  ;;  %14121 = vmatmul.mubr.msk.f32.gmra.mxu1 %vm3381_vm4, %v18751_v31  ;;  %v18764_v25 = vld [vmem:[#allocation2 + $0x169] sm:$0xff] }
 0x3ec   : > { %v18766_v48 = vld [vmem:[#allocation2 + $0x168] sm:$0xff]  ;;  %v18768_v49 = vld [vmem:[#allocation2 + $0x170] sm:$0xff]  ;;  %14059 = vmatprep.mubr.msk.f32.mxu0 %vm3381_vm4, %v18764_v25 }
 0x3ed   : > { %14123 = vmatprep.mubr.msk.f32.mxu1 %vm3381_vm4, %v18766_v48 }
 0x3ef   : > { %14060 = vmatmul.mubr.msk.f32.gmra.mxu0 %vm3381_vm4, %v18774_v11  ;;  %14124 = vmatmul.mubr.msk.f32.gmra.mxu1 %vm3381_vm4, %v18768_v49 }
 0x3f0   : > { %14206 = vmatprep.mubr.msk.f32.mxu1 %vm3381_vm4, %v18373_v54  ;;  %14142 = vmatprep.mubr.msk.f32.mxu0 %vm3381_vm4, %v7817_v23  ;;  %v18798_v54 = vld [vmem:[#allocation2 + $0x22] sm:$0xff] }
 0x3f1   : > { %v11741_v23 = vld [vmem:[%s20285_s5 + $0x120] sm:$0xff] }
 0x3f3   : > { %14143 = vmatmul.mubr.msk.f32.vlgmr.msra.gmra.mxu0 %vm3381_vm4, %v7818_v0  ;;  %14207 = vmatmul.mubr.msk.f32.vlgmr.msra.gmra.mxu1 %vm3381_vm4, %v18375_v43  ;;  %v11742_v43 = vld [vmem:[%s20285_s5 + $0x128] sm:$0xff] }
 0x3f4   : > { %14255 = vmatpush3.msra.mxu0 %v14654_v14  ;;  %14145 = vmatprep.mubr.msk.f32.mxu0 %vm3381_vm4, %v18789_v39 }
 0x3f5   : > { %14209 = vmatprep.mubr.msk.f32.mxu1 %vm3381_vm4, %v18406_v47  ;;  %14256 = vmatprep.subr.mxu0 %v11743_v26  ;;  %v18811_v47 = vld [vmem:[#allocation2 + $0x32] sm:$0xff] }
 0x3f6   : > { %14257 = vmatpush3.msra.mxu0 %v11743_v26  ;;  %14319 = vmatpush3.msra.mxu1 %v18273_v12  ;;  %v18817_v12 = vld [vmem:[#allocation2 + $0x3a] sm:$0xff] }
 0x3f7   : > { %14146 = vmatmul.mubr.msk.f32.gmra.mxu0 %vm3381_vm4, %v18798_v54  ;;  %14210 = vmatmul.mubr.msk.f32.gmra.mxu1 %vm3381_vm4, %v18408_v29  ;;  %v11782_v29 = vld [vmem:[%s20285_s5 + $0x168] sm:$0xff]  ;;  %v14016_v0 = vpop.f32.mrf.mxu0 }
 0x3f8   : > { %14148 = vmatprep.mubr.msk.f32.mxu0 %vm3381_vm4, %v18811_v47  ;;  %14212 = vmatprep.mubr.msk.f32.mxu1 %vm3381_vm4, %v18439_v27  ;;  %v18829_v27 = vld [vmem:[#allocation2 + $0x4a] sm:$0xff]  ;;  %v14080_v26 = vpop.f32.mrf.mxu1 }
 0x3f9   : > { %14258 = vmatprep.subr.mxu0 %v11742_v43  ;;  %14320 = vmatprep.subr.mxu1 %v11783_v46  ;;  %v18835_v14 = vadd.f32 %v14080_v26, %v14016_v0  ;;  %v18873_v0 = vld [vmem:[#allocation2 + $0x82] sm:$0xff] }
 0x3fa   : > { %14259 = vmatpush3.msra.mxu0 %v11742_v43  ;;  %14321 = vmatpush3.msra.mxu1 %v11783_v46  ;;  %v18837_v43 = vld [vmem:[#allocation2 + $0x52] sm:$0xff]  ;;  %v11781_v46 = vld [vmem:[%s20285_s5 + $0x160] sm:$0xff]  ;;  %v11738_v26 = vld [vmem:[%s20285_s5 + $0x108] sm:$0xff] }
 0x3fb   : > { %14149 = vmatmul.mubr.msk.f32.gmra.mxu0 %vm3381_vm4, %v18817_v12  ;;  %14213 = vmatmul.mubr.msk.f32.gmra.mxu1 %vm3381_vm4, %v18441_v50  ;;  %v11740_v50 = vld [vmem:[%s20285_s5 + $0x118] sm:$0xff] }
 0x3fc   : > { %14151 = vmatprep.mubr.msk.f32.mxu0 %vm3381_vm4, %v18829_v27  ;;  %14215 = vmatprep.mubr.msk.f32.mxu1 %vm3381_vm4, %v18472_v62  ;;  %v18849_v62 = vld [vmem:[#allocation2 + $0x62] sm:$0xff] }
 0x3fd   : > { %14260 = vmatprep.subr.mxu0 %v11741_v23  ;;  %14322 = vmatprep.subr.mxu1 %v11782_v29 }
 0x3fe   : > { %14261 = vmatpush3.msra.mxu0 %v11741_v23  ;;  %14323 = vmatpush3.msra.mxu1 %v11782_v29  ;;  %v18855_v23 = vld [vmem:[#allocation2 + $0x6a] sm:$0xff] }
 0x3ff   : > { %14152 = vmatmul.mubr.msk.f32.gmra.mxu0 %vm3381_vm4, %v18837_v43  ;;  %14216 = vmatmul.mubr.msk.f32.gmra.mxu1 %vm3381_vm4, %v18474_v55  ;;  %v11739_v29 = vld [vmem:[%s20285_s5 + $0x110] sm:$0xff]  ;;  %v11780_v55 = vld [vmem:[%s20285_s5 + $0x158] sm:$0xff] }
 0x400   : > { %14154 = vmatprep.mubr.msk.f32.mxu0 %vm3381_vm4, %v18849_v62  ;;  %14218 = vmatprep.mubr.msk.f32.mxu1 %vm3381_vm4, %v18505_v22  ;;  %v18867_v22 = vld [vmem:[#allocation2 + $0x7a] sm:$0xff] }
 0x401   : > { %14262 = vmatprep.subr.mxu0 %v11740_v50  ;;  %14324 = vmatprep.subr.mxu1 %v11781_v46 }
 0x402   : > { %14263 = vmatpush3.msra.mxu0 %v11740_v50  ;;  %14325 = vmatpush3.msra.mxu1 %v11781_v46  ;;  %v18891_v50 = vld [vmem:[#allocation2 + $0x9a] sm:$0xff] }
 0x403   : > { %14155 = vmatmul.mubr.msk.f32.gmra.mxu0 %vm3381_vm4, %v18855_v23  ;;  %14219 = vmatmul.mubr.msk.f32.gmra.mxu1 %vm3381_vm4, %v18507_v13  ;;  %v11779_v13 = vld [vmem:[%s20285_s5 + $0x150] sm:$0xff]  ;;  %v11737_v46 = vld [vmem:[%s20285_s5 + $0x100] sm:$0xff] }
 0x404   : > { %14157 = vmatprep.mubr.msk.f32.mxu0 %vm3381_vm4, %v18867_v22  ;;  %14221 = vmatprep.mubr.msk.f32.mxu1 %vm3381_vm4, %v18538_v60  ;;  %v18885_v60 = vld [vmem:[#allocation2 + $0x92] sm:$0xff] }
 0x405   : > { %14264 = vmatprep.subr.mxu0 %v11739_v29  ;;  %14326 = vmatprep.subr.mxu1 %v11780_v55 }
 0x406   : > { %14265 = vmatpush3.msra.mxu0 %v11739_v29  ;;  %14327 = vmatpush3.msra.mxu1 %v11780_v55  ;;  %v18909_v29 = vld [vmem:[#allocation2 + $0xb2] sm:$0xff]  ;;  %v11777_v55 = vld [vmem:[%s20285_s5 + $0x140] sm:$0xff] }
 0x407   : > { %14158 = vmatmul.mubr.msk.f32.gmra.mxu0 %vm3381_vm4, %v18873_v0  ;;  %14222 = vmatmul.mubr.msk.f32.gmra.mxu1 %vm3381_vm4, %v18540_v24  ;;  %v11778_v24 = vld [vmem:[%s20285_s5 + $0x148] sm:$0xff] }
 0x408   : > { %14160 = vmatprep.mubr.msk.f32.mxu0 %vm3381_vm4, %v18885_v60  ;;  %14224 = vmatprep.mubr.msk.f32.mxu1 %vm3381_vm4, %v18571_v15  ;;  %v18903_v15 = vld [vmem:[#allocation2 + $0xaa] sm:$0xff] }
 0x409   : > { %14266 = vmatprep.subr.mxu0 %v11738_v26  ;;  %14328 = vmatprep.subr.mxu1 %v11779_v13 }
 0x40a   : > { %14267 = vmatpush3.msra.mxu0 %v11738_v26  ;;  %14329 = vmatpush3.msra.mxu1 %v11779_v13  ;;  %v18930_v26 = vld [vmem:[#allocation2 + $0xca] sm:$0xff]  ;;  %v11864_v13 = vld [vmem:[%s20285_s5 + $0x1f8] sm:$0xff] }
 0x40b   : > { %14161 = vmatmul.mubr.msk.f32.gmra.mxu0 %vm3381_vm4, %v18891_v50  ;;  %14225 = vmatmul.mubr.msk.f32.gmra.mxu1 %vm3381_vm4, %v18573_v51  ;;  %v18917_v51 = vld [vmem:[%s20285_s5 + $0x1b8] sm:$0xff] }
 0x40c   : > { %14163 = vmatprep.mubr.msk.f32.mxu0 %vm3381_vm4, %v18903_v15  ;;  %14227 = vmatprep.mubr.msk.f32.mxu1 %vm3381_vm4, %v18604_v5  ;;  %v18923_v5 = vld [vmem:[#allocation2 + $0xc2] sm:$0xff] }
 0x40d   : > { %14268 = vmatprep.subr.mxu0 %v11737_v46  ;;  %14330 = vmatprep.subr.mxu1 %v11778_v24 }
 0x40e   : > { %14269 = vmatpush3.msra.mxu0 %v11737_v46  ;;  %14331 = vmatpush3.msra.mxu1 %v11778_v24  ;;  %v18951_v46 = vld [vmem:[#allocation2 + $0xf2] sm:$0xff]  ;;  %v19013_v24 = vld [vmem:[#allocation2 + $0x180] sm:$0xff] }
 0x40f   : > { %14164 = vmatmul.mubr.msk.f32.gmra.mxu0 %vm3381_vm4, %v18909_v29  ;;  %14228 = vmatmul.mubr.msk.f32.gmra.mxu1 %vm3381_vm4, %v18606_v58  ;;  %v18939_v58 = vld [vmem:[#allocation2 + $0xda] sm:$0xff] }
 0x410   : > { %14166 = vmatprep.mubr.msk.f32.mxu0 %vm3381_vm4, %v18923_v5  ;;  %14230 = vmatprep.mubr.msk.f32.mxu1 %vm3381_vm4, %v18635_v6  ;;  %v18945_v6 = vld [vmem:[#allocation2 + $0xe2] sm:$0xff] }
 0x411   : > { %14332 = vmatprep.subr.mxu1 %v11777_v55  ;;  %14382 = vmatprep.subr.mxu0 %v18917_v51 }
 0x412   : > { %14333 = vmatpush3.msra.mxu1 %v11777_v55  ;;  %v9398_v55 = vld [vmem:[#allocation2 + $0x68] sm:$0xff] }
 0x413   : > { %14167 = vmatmul.mubr.msk.f32.gmra.mxu0 %vm3381_vm4, %v18930_v26  ;;  %14231 = vmatmul.mubr.msk.f32.gmra.mxu1 %vm3381_vm4, %v18637_v21  ;;  %v18957_v21 = vld [vmem:[#allocation2 + $0xfa] sm:$0xff] }
 0x414   : > { %14169 = vmatprep.mubr.msk.f32.mxu0 %vm3381_vm4, %v18939_v58  ;;  %14233 = vmatprep.mubr.msk.f32.mxu1 %vm3381_vm4, %v18663_v20  ;;  %v18963_v20 = vld [vmem:[#allocation2 + $0x10a] sm:$0xff] }
 0x415   : > { %14446 = vmatprep.subr.mxu1 %v11864_v13 }
 0x417   : > { %14170 = vmatmul.mubr.msk.f32.gmra.mxu0 %vm3381_vm4, %v18945_v6  ;;  %14234 = vmatmul.mubr.msk.f32.gmra.mxu1 %vm3381_vm4, %v18665_v2  ;;  %v18969_v2 = vld [vmem:[#allocation2 + $0x112] sm:$0xff] }
 0x418   : > { %14172 = vmatprep.mubr.msk.f32.mxu0 %vm3381_vm4, %v18951_v46  ;;  %14236 = vmatprep.mubr.msk.f32.mxu1 %vm3381_vm4, %v18686_v3  ;;  %v18975_v3 = vld [vmem:[#allocation2 + $0x122] sm:$0xff] }
 0x41b   : > { %14173 = vmatmul.mubr.msk.f32.gmra.mxu0 %vm3381_vm4, %v18957_v21  ;;  %14237 = vmatmul.mubr.msk.f32.gmra.mxu1 %vm3381_vm4, %v18688_v7  ;;  %v18981_v7 = vld [vmem:[#allocation2 + $0x12a] sm:$0xff] }
 0x41c   : > { %14175 = vmatprep.mubr.msk.f32.mxu0 %vm3381_vm4, %v18963_v20  ;;  %14239 = vmatprep.mubr.msk.f32.mxu1 %vm3381_vm4, %v18708_v34  ;;  %v18987_v34 = vld [vmem:[#allocation2 + $0x13a] sm:$0xff] }
 0x41f   : > { %14176 = vmatmul.mubr.msk.f32.gmra.mxu0 %vm3381_vm4, %v18969_v2  ;;  %14240 = vmatmul.mubr.msk.f32.gmra.mxu1 %vm3381_vm4, %v18710_v35  ;;  %v18993_v35 = vld [vmem:[#allocation2 + $0x142] sm:$0xff] }
 0x420   : > { %14178 = vmatprep.mubr.msk.f32.mxu0 %vm3381_vm4, %v18975_v3  ;;  %14242 = vmatprep.mubr.msk.f32.mxu1 %vm3381_vm4, %v18730_v61  ;;  %v18999_v61 = vld [vmem:[#allocation2 + $0x152] sm:$0xff] }
 0x423   : > { %14179 = vmatmul.mubr.msk.f32.gmra.mxu0 %vm3381_vm4, %v18981_v7  ;;  %14243 = vmatmul.mubr.msk.f32.gmra.mxu1 %vm3381_vm4, %v18732_v56  ;;  %v19005_v56 = vld [vmem:[#allocation2 + $0x15a] sm:$0xff] }
 0x424   : > { %14181 = vmatprep.mubr.msk.f32.mxu0 %vm3381_vm4, %v18987_v34  ;;  %14245 = vmatprep.mubr.msk.f32.mxu1 %vm3381_vm4, %v18749_v32  ;;  %v19011_v32 = vld [vmem:[#allocation2 + $0x16a] sm:$0xff] }
 0x427   : > { %14182 = vmatmul.mubr.msk.f32.gmra.mxu0 %vm3381_vm4, %v18993_v35  ;;  %14246 = vmatmul.mubr.msk.f32.gmra.mxu1 %vm3381_vm4, %v18751_v31  ;;  %v19019_v31 = vld [vmem:[#allocation2 + $0x172] sm:$0xff] }
 0x428   : > { %14184 = vmatprep.mubr.msk.f32.mxu0 %vm3381_vm4, %v18999_v61  ;;  %14248 = vmatprep.mubr.msk.f32.mxu1 %vm3381_vm4, %v18766_v48  ;;  %v19021_v48 = vld [vmem:[#allocation2 + $0x188] sm:$0xff] }
 0x42b   : > { %14185 = vmatmul.mubr.msk.f32.gmra.mxu0 %vm3381_vm4, %v19005_v56  ;;  %14249 = vmatmul.mubr.msk.f32.gmra.mxu1 %vm3381_vm4, %v18768_v49  ;;  %v11823_v49 = vld [vmem:[%s20285_s5 + $0x1b0] sm:$0xff] }
 0x42c   : > { %14187 = vmatprep.mubr.msk.f32.mxu0 %vm3381_vm4, %v19011_v32  ;;  %14251 = vmatprep.mubr.msk.f32.mxu1 %vm3381_vm4, %v19013_v24 }
 0x42f   : > { %14188 = vmatmul.mubr.msk.f32.gmra.mxu0 %vm3381_vm4, %v19019_v31  ;;  %14252 = vmatmul.mubr.msk.f32.gmra.mxu1 %vm3381_vm4, %v19021_v48 }
 0x430   : > { %14270 = vmatprep.mubr.msk.f32.mxu0 %vm3381_vm4, %v18371_v53  ;;  %14334 = vmatprep.mubr.msk.f32.mxu1 %vm3381_vm4, %v18789_v39  ;;  %v11822_v53 = vld [vmem:[%s20285_s5 + $0x1a8] sm:$0xff]  ;;  %v11819_v39 = vld [vmem:[%s20285_s5 + $0x190] sm:$0xff] }
 0x433   : > { %14271 = vmatmul.mubr.msk.f32.vlgmr.msra.gmra.mxu0 %vm3381_vm4, %v18386_v42  ;;  %14335 = vmatmul.mubr.msk.f32.vlgmr.msra.gmra.mxu1 %vm3381_vm4, %v18798_v54  ;;  %v11863_v42 = vld [vmem:[%s20285_s5 + $0x1f0] sm:$0xff]  ;;  %v20480_v54 = vld [vmem:[#allocation54_spill] sm:$0xff] }
 0x434   : > { %14383 = vmatpush3.msra.mxu0 %v18917_v51  ;;  %14273 = vmatprep.mubr.msk.f32.mxu0 %vm3381_vm4, %v18404_v36  ;;  %v11821_v36 = vld [vmem:[%s20285_s5 + $0x1a0] sm:$0xff]  ;;  %v9792_v51 = vld [vmem:[#allocation2 + $0x69] sm:$0xff] }
 0x435   : > { %14337 = vmatprep.mubr.msk.f32.mxu1 %vm3381_vm4, %v18811_v47  ;;  %14384 = vmatprep.subr.mxu0 %v11823_v49  ;;  %v11818_v47 = vld [vmem:[%s20285_s5 + $0x188] sm:$0xff] }
 0x436   : > { %14385 = vmatpush3.msra.mxu0 %v11823_v49  ;;  %14447 = vmatpush3.msra.mxu1 %v11864_v13 }
 0x437   : > { %14274 = vmatmul.mubr.msk.f32.gmra.mxu0 %vm3381_vm4, %v18419_v30  ;;  %14338 = vmatmul.mubr.msk.f32.gmra.mxu1 %vm3381_vm4, %v18817_v12  ;;  %v11862_v30 = vld [vmem:[%s20285_s5 + $0x1e8] sm:$0xff]  ;;  %v11859_v12 = vld [vmem:[%s20285_s5 + $0x1d0] sm:$0xff] }
 0x438   : > { %14276 = vmatprep.mubr.msk.f32.mxu0 %vm3381_vm4, %v18437_v4  ;;  %14340 = vmatprep.mubr.msk.f32.mxu1 %vm3381_vm4, %v18829_v27  ;;  %v11820_v4 = vld [vmem:[%s20285_s5 + $0x198] sm:$0xff]  ;;  %v20481_v27 = vld [vmem:[#allocation22_spill] sm:$0xff] }
 0x439   : > { %14386 = vmatprep.subr.mxu0 %v11822_v53  ;;  %14448 = vmatprep.subr.mxu1 %v11863_v42 }
 0x43a   : > { %14387 = vmatpush3.msra.mxu0 %v11822_v53  ;;  %14449 = vmatpush3.msra.mxu1 %v11863_v42 }
 0x43b   : > { %14277 = vmatmul.mubr.msk.f32.gmra.mxu0 %vm3381_vm4, %v18452_v18  ;;  %14341 = vmatmul.mubr.msk.f32.gmra.mxu1 %vm3381_vm4, %v18837_v43  ;;  %v11861_v18 = vld [vmem:[%s20285_s5 + $0x1e0] sm:$0xff]  ;;  %v11858_v43 = vld [vmem:[%s20285_s5 + $0x1c8] sm:$0xff] }
 0x43c   : > { %14279 = vmatprep.mubr.msk.f32.mxu0 %vm3381_vm4, %v18470_v38  ;;  %14343 = vmatprep.mubr.msk.f32.mxu1 %vm3381_vm4, %v18849_v62  ;;  %v20479_v38 = vld [vmem:[#allocation42_spill] sm:$0xff] }
 0x43d   : > { %14388 = vmatprep.subr.mxu0 %v11821_v36  ;;  %14450 = vmatprep.subr.mxu1 %v11862_v30 }
 0x43e   : > { %14389 = vmatpush3.msra.mxu0 %v11821_v36  ;;  %14451 = vmatpush3.msra.mxu1 %v11862_v30  ;;  %v9402_v36 = vld [vmem:[#allocation2 + $0x98] sm:$0xff] }
 0x43f   : > { %14280 = vmatmul.mubr.msk.f32.gmra.mxu0 %vm3381_vm4, %v18485_v9  ;;  %14344 = vmatmul.mubr.msk.f32.gmra.mxu1 %vm3381_vm4, %v18855_v23  ;;  %v11860_v9 = vld [vmem:[%s20285_s5 + $0x1d8] sm:$0xff] }
 0x440   : > { %14282 = vmatprep.mubr.msk.f32.mxu0 %vm3381_vm4, %v20479_v38  ;;  %14346 = vmatprep.mubr.msk.f32.mxu1 %vm3381_vm4, %v18867_v22  ;;  %v9397_v22 = vld [vmem:[#allocation2 + $0x60] sm:$0xff] }
 0x441   : > { %14390 = vmatprep.subr.mxu0 %v11820_v4  ;;  %14452 = vmatprep.subr.mxu1 %v11861_v18  ;;  %v9796_v30 = vld [vmem:[#allocation2 + $0x99] sm:$0xff] }
 0x442   : > { %14391 = vmatpush3.msra.mxu0 %v11820_v4  ;;  %14453 = vmatpush3.msra.mxu1 %v11861_v18  ;;  %v11899_v4 = vld [vmem:[%s20285_s5 + $0x210] sm:$0xff] }
 0x443   : > { %14283 = vmatmul.mubr.msk.f32.gmra.mxu0 %vm3381_vm4, %v20480_v54  ;;  %14347 = vmatmul.mubr.msk.f32.gmra.mxu1 %vm3381_vm4, %v18873_v0  ;;  %v9791_v0 = vld [vmem:[#allocation2 + $0x61] sm:$0xff] }
 0x444   : > { %14285 = vmatprep.mubr.msk.f32.mxu0 %vm3381_vm4, %v18536_v45  ;;  %14349 = vmatprep.mubr.msk.f32.mxu1 %vm3381_vm4, %v18885_v60  ;;  %v11817_v45 = vld [vmem:[%s20285_s5 + $0x180] sm:$0xff] }
 0x445   : > { %14392 = vmatprep.subr.mxu0 %v11819_v39  ;;  %14454 = vmatprep.subr.mxu1 %v11860_v9 }
 0x446   : > { %14393 = vmatpush3.msra.mxu0 %v11819_v39  ;;  %14455 = vmatpush3.msra.mxu1 %v11860_v9  ;;  %v9403_v39 = vld [vmem:[#allocation2 + $0xa8] sm:$0xff] }
 0x447   : > { %14286 = vmatmul.mubr.msk.f32.gmra.mxu0 %vm3381_vm4, %v20481_v27  ;;  %14350 = vmatmul.mubr.msk.f32.gmra.mxu1 %vm3381_vm4, %v18891_v50  ;;  %v9797_v9 = vld [vmem:[#allocation2 + $0xa9] sm:$0xff] }
 0x448   : > { %14288 = vmatprep.mubr.msk.f32.mxu0 %vm3381_vm4, %v18569_v37  ;;  %14352 = vmatprep.mubr.msk.f32.mxu1 %vm3381_vm4, %v18903_v15  ;;  %v11857_v37 = vld [vmem:[%s20285_s5 + $0x1c0] sm:$0xff] }
 0x449   : > { %14394 = vmatprep.subr.mxu0 %v11818_v47  ;;  %14456 = vmatprep.subr.mxu1 %v11859_v12 }
 0x44a   : > { %14395 = vmatpush3.msra.mxu0 %v11818_v47  ;;  %14457 = vmatpush3.msra.mxu1 %v11859_v12 }
 0x44b   : > { %14289 = vmatmul.mubr.msk.f32.gmra.mxu0 %vm3381_vm4, %v18584_v59  ;;  %14353 = vmatmul.mubr.msk.f32.gmra.mxu1 %vm3381_vm4, %v18909_v29  ;;  %v11904_v59 = vld [vmem:[%s20285_s5 + $0x238] sm:$0xff] }
 0x44c   : > { %14291 = vmatprep.mubr.msk.f32.mxu0 %vm3381_vm4, %v18602_v19  ;;  %14355 = vmatprep.mubr.msk.f32.mxu1 %vm3381_vm4, %v18923_v5  ;;  %v19193_v19 = vld [vmem:[#allocation2 + $0x181] sm:$0xff] }
 0x44d   : > { %14396 = vmatprep.subr.mxu0 %v11817_v45  ;;  %14458 = vmatprep.subr.mxu1 %v11858_v43  ;;  %v11901_v5 = vld [vmem:[%s20285_s5 + $0x220] sm:$0xff] }
 0x44e   : > { %14397 = vmatpush3.msra.mxu0 %v11817_v45  ;;  %14459 = vmatpush3.msra.mxu1 %v11858_v43  ;;  %v9404_v45 = vld [vmem:[#allocation2 + $0xb0] sm:$0xff] }
 0x44f   : > { %14292 = vmatmul.mubr.msk.f32.gmra.mxu0 %vm3381_vm4, %v18615_v28  ;;  %14356 = vmatmul.mubr.msk.f32.gmra.mxu1 %vm3381_vm4, %v18930_v26  ;;  %v19195_v28 = vld [vmem:[#allocation2 + $0x182] sm:$0xff]  ;;  %v9798_v43 = vld [vmem:[#allocation2 + $0xb1] sm:$0xff] }
 0x450   : > { %14294 = vmatprep.mubr.msk.f32.mxu0 %vm3381_vm4, %v18633_v33  ;;  %14358 = vmatprep.mubr.msk.f32.mxu1 %vm3381_vm4, %v18939_v58  ;;  %v19201_v33 = vld [vmem:[#allocation2 + $0x189] sm:$0xff]  ;;  %v9399_v58 = vld [vmem:[#allocation2 + $0x78] sm:$0xff] }
 0x451   : > { %14460 = vmatprep.subr.mxu1 %v11857_v37  ;;  %14510 = vmatprep.subr.mxu0 %v11904_v59 }
 0x452   : > { %14461 = vmatpush3.msra.mxu1 %v11857_v37  ;;  %v11898_v37 = vld [vmem:[%s20285_s5 + $0x208] sm:$0xff] }
 0x453   : > { %14295 = vmatmul.mubr.msk.f32.gmra.mxu0 %vm3381_vm4, %v18646_v40  ;;  %14359 = vmatmul.mubr.msk.f32.gmra.mxu1 %vm3381_vm4, %v18945_v6  ;;  %v19203_v40 = vld [vmem:[#allocation2 + $0x18a] sm:$0xff]  ;;  %v9793_v6 = vld [vmem:[#allocation2 + $0x79] sm:$0xff] }
 0x454   : > { %14297 = vmatprep.mubr.msk.f32.mxu0 %vm3381_vm4, %v18661_v10  ;;  %14361 = vmatprep.mubr.msk.f32.mxu1 %vm3381_vm4, %v18951_v46  ;;  %v9393_v10 = vld [vmem:[#allocation2 + $0x30] sm:$0xff] }
 0x457   : > { %14298 = vmatmul.mubr.msk.f32.gmra.mxu0 %vm3381_vm4, %v18674_v63  ;;  %14362 = vmatmul.mubr.msk.f32.gmra.mxu1 %vm3381_vm4, %v18957_v21  ;;  %v9787_v63 = vld [vmem:[#allocation2 + $0x31] sm:$0xff] }
 0x458   : > { %14300 = vmatprep.mubr.msk.f32.mxu0 %vm3381_vm4, %v18684_v1  ;;  %14364 = vmatprep.mubr.msk.f32.mxu1 %vm3381_vm4, %v18963_v20  ;;  %v9394_v1 = vld [vmem:[#allocation2 + $0x38] sm:$0xff] }
 0x45b   : > { %14301 = vmatmul.mubr.msk.f32.gmra.mxu0 %vm3381_vm4, %v18697_v44  ;;  %14365 = vmatmul.mubr.msk.f32.gmra.mxu1 %vm3381_vm4, %v18969_v2  ;;  %v9788_v44 = vld [vmem:[#allocation2 + $0x39] sm:$0xff] }
 0x45c   : > { %14303 = vmatprep.mubr.msk.f32.mxu0 %vm3381_vm4, %v18706_v52  ;;  %14367 = vmatprep.mubr.msk.f32.mxu1 %vm3381_vm4, %v18975_v3  ;;  %v11903_v52 = vld [vmem:[%s20285_s5 + $0x230] sm:$0xff]  ;;  %v9400_v3 = vld [vmem:[#allocation2 + $0x80] sm:$0xff] }
 0x45f   : > { %14304 = vmatmul.mubr.msk.f32.gmra.mxu0 %vm3381_vm4, %v18719_v41  ;;  %14368 = vmatmul.mubr.msk.f32.gmra.mxu1 %vm3381_vm4, %v18981_v7  ;;  %v9395_v41 = vld [vmem:[#allocation2 + $0x48] sm:$0xff] }
 0x460   : > { %14306 = vmatprep.mubr.msk.f32.mxu0 %vm3381_vm4, %v18728_v17  ;;  %14370 = vmatprep.mubr.msk.f32.mxu1 %vm3381_vm4, %v18987_v34  ;;  %v9789_v17 = vld [vmem:[#allocation2 + $0x49] sm:$0xff]  ;;  %v9794_v7 = vld [vmem:[#allocation2 + $0x81] sm:$0xff]  ;;  %v11900_v34 = vld [vmem:[%s20285_s5 + $0x218] sm:$0xff] }
 0x463   : > { %14307 = vmatmul.mubr.msk.f32.gmra.mxu0 %vm3381_vm4, %v18740_v57  ;;  %14371 = vmatmul.mubr.msk.f32.gmra.mxu1 %vm3381_vm4, %v18993_v35  ;;  %v19217_v57 = vpop.f32.mrf.mxu0 }
 0x464   : > { %14309 = vmatprep.mubr.msk.f32.mxu0 %vm3381_vm4, %v18747_v16  ;;  %14373 = vmatprep.mubr.msk.f32.mxu1 %vm3381_vm4, %v18999_v61  ;;  %v19219_v16 = vpop.f32.mrf.mxu1 }
 0x467   : > { %14310 = vmatmul.mubr.msk.f32.gmra.mxu0 %vm3381_vm4, %v18758_v8  ;;  %14374 = vmatmul.mubr.msk.f32.gmra.mxu1 %vm3381_vm4, %v19005_v56  ;;  %v9396_v8 = vld [vmem:[#allocation2 + $0x50] sm:$0xff] }
 0x468   : > { %14312 = vmatprep.mubr.msk.f32.mxu0 %vm3381_vm4, %v18764_v25  ;;  %14376 = vmatprep.mubr.msk.f32.mxu1 %vm3381_vm4, %v19011_v32  ;;  %v9790_v25 = vld [vmem:[#allocation2 + $0x51] sm:$0xff] }
 0x469   : > { %v9401_v56 = vld [vmem:[#allocation2 + $0x90] sm:$0xff] }
 0x46a   : > { %v9795_v32 = vld [vmem:[#allocation2 + $0x91] sm:$0xff] }
 0x46b   : > { %14313 = vmatmul.mubr.msk.f32.gmra.mxu0 %vm3381_vm4, %v18774_v11  ;;  %14377 = vmatmul.mubr.msk.f32.gmra.mxu1 %vm3381_vm4, %v19019_v31  ;;  %v11902_v11 = vld [vmem:[%s20285_s5 + $0x228] sm:$0xff] }
 0x46c   : > { %14315 = vmatprep.mubr.msk.f32.mxu0 %vm3381_vm4, %v19193_v19  ;;  %14379 = vmatprep.mubr.msk.f32.mxu1 %vm3381_vm4, %v19195_v28 }
 0x46f   : > { %14316 = vmatmul.mubr.msk.f32.gmra.mxu0 %vm3381_vm4, %v19201_v33  ;;  %14380 = vmatmul.mubr.msk.f32.gmra.mxu1 %vm3381_vm4, %v19203_v40 }
 0x470   : > { %14398 = vmatprep.mubr.msk.f32.mxu0 %vm3381_vm4, %v9393_v10  ;;  %14462 = vmatprep.mubr.msk.f32.mxu1 %vm3381_vm4, %v9787_v63  ;;  %v9405_v63 = vld [vmem:[#allocation2 + $0xc0] sm:$0xff] }
 0x473   : > { %14399 = vmatmul.mubr.msk.f32.vlgmr.msra.gmra.mxu0 %vm3381_vm4, %v9394_v1  ;;  %14463 = vmatmul.mubr.msk.f32.vlgmr.msra.gmra.mxu1 %vm3381_vm4, %v9788_v44  ;;  %v9799_v1 = vld [vmem:[#allocation2 + $0xc1] sm:$0xff] }
 0x474   : > { %14511 = vmatpush3.msra.mxu0 %v11904_v59  ;;  %14401 = vmatprep.mubr.msk.f32.mxu0 %vm3381_vm4, %v9395_v41 }
 0x475   : > { %14465 = vmatprep.mubr.msk.f32.mxu1 %vm3381_vm4, %v9789_v17  ;;  %14512 = vmatprep.subr.mxu0 %v11903_v52  ;;  %v14019_v62 = vpop.f32.mrf.mxu0 }
 0x476   : > { %14513 = vmatpush3.msra.mxu0 %v11903_v52  ;;  %v14083_v23 = vpop.f32.mrf.mxu1 }
 0x477   : > { %14402 = vmatmul.mubr.msk.f32.gmra.mxu0 %vm3381_vm4, %v9396_v8  ;;  %14466 = vmatmul.mubr.msk.f32.gmra.mxu1 %vm3381_vm4, %v9790_v25  ;;  %v19227_v60 = vadd.f32 %v14083_v23, %v14019_v62  ;;  %v7347_v50 = vpop.f32.mrf.mxu0  ;;  %v9406_v8 = vld [vmem:[#allocation2 + $0xc8] sm:$0xff] }
 0x478   : > { %14404 = vmatprep.mubr.msk.f32.mxu0 %vm3381_vm4, %v9397_v22  ;;  %14468 = vmatprep.mubr.msk.f32.mxu1 %vm3381_vm4, %v9791_v0  ;;  %v7668_v15 = vpop.f32.mrf.mxu1  ;;  %v9800_v25 = vld [vmem:[#allocation2 + $0xc9] sm:$0xff]  ;;  %v9407_v22 = vld [vmem:[#allocation2 + $0xd8] sm:$0xff] }
 0x479   : > { %14514 = vmatprep.subr.mxu0 %v11902_v11  ;;  %v19231_v29 = vadd.f32 %v7668_v15, %v7347_v50  ;;  %v14022_v26 = vpop.f32.mrf.mxu0  ;;  %v9801_v0 = vld [vmem:[#allocation2 + $0xd9] sm:$0xff] }
 0x47a   : > { %14515 = vmatpush3.msra.mxu0 %v11902_v11  ;;  %v14086_v13 = vpop.f32.mrf.mxu1  ;;  %v11897_v11 = vld [vmem:[%s20285_s5 + $0x200] sm:$0xff] }
 0x47b   : > { %14405 = vmatmul.mubr.msk.f32.gmra.mxu0 %vm3381_vm4, %v9398_v55  ;;  %14469 = vmatmul.mubr.msk.f32.gmra.mxu1 %vm3381_vm4, %v9792_v51  ;;  %v19238_v46 = vadd.f32 %v14086_v13, %v14022_v26  ;;  %v7357_v21 = vpop.f32.mrf.mxu0  ;;  %v9802_v26 = vld [vmem:[#allocation2 + $0xe1] sm:$0xff] }
 0x47c   : > { %14407 = vmatprep.mubr.msk.f32.mxu0 %vm3381_vm4, %v9399_v58  ;;  %14471 = vmatprep.mubr.msk.f32.mxu1 %vm3381_vm4, %v9793_v6  ;;  %v7678_v20 = vpop.f32.mrf.mxu1  ;;  %v9409_v6 = vld [vmem:[#allocation2 + $0xf0] sm:$0xff] }
 0x47d   : > { %14516 = vmatprep.subr.mxu0 %v11901_v5  ;;  %v19242_v2 = vadd.f32 %v7678_v20, %v7357_v21  ;;  %v14025_v35 = vpop.f32.mrf.mxu0  ;;  %v9803_v21 = vld [vmem:[#allocation2 + $0xf1] sm:$0xff] }
 0x47e   : > { %14517 = vmatpush3.msra.mxu0 %v11901_v5  ;;  %v14089_v61 = vpop.f32.mrf.mxu1  ;;  %v9408_v5 = vld [vmem:[#allocation2 + $0xe0] sm:$0xff] }
 0x47f   : > { %14408 = vmatmul.mubr.msk.f32.gmra.mxu0 %vm3381_vm4, %v9400_v3  ;;  %14472 = vmatmul.mubr.msk.f32.gmra.mxu1 %vm3381_vm4, %v9794_v7  ;;  %v19249_v31 = vadd.f32 %v14089_v61, %v14025_v35  ;;  %v7367_v49 = vpop.f32.mrf.mxu0  ;;  %v9410_v35 = vld [vmem:[#allocation2 + $0xf8] sm:$0xff] }
 0x480   : > { %14410 = vmatprep.mubr.msk.f32.mxu0 %vm3381_vm4, %v9401_v56  ;;  %14474 = vmatprep.mubr.msk.f32.mxu1 %vm3381_vm4, %v9795_v32  ;;  %v7688_v53 = vpop.f32.mrf.mxu1  ;;  %v9804_v61 = vld [vmem:[#allocation2 + $0xf9] sm:$0xff] }
 0x481   : > { %14518 = vmatprep.subr.mxu0 %v11900_v34  ;;  %v19253_v42 = vadd.f32 %v7688_v53, %v7367_v49  ;;  %v14028_v18 = vpop.f32.mrf.mxu0  ;;  %v9411_v49 = vld [vmem:[#allocation2 + $0x108] sm:$0xff] }
 0x482   : > { %14519 = vmatpush3.msra.mxu0 %v11900_v34  ;;  %v14092_v38 = vpop.f32.mrf.mxu1  ;;  %v9805_v53 = vld [vmem:[#allocation2 + $0x109] sm:$0xff] }
 0x483   : > { %14411 = vmatmul.mubr.msk.f32.gmra.mxu0 %vm3381_vm4, %v9402_v36  ;;  %14475 = vmatmul.mubr.msk.f32.gmra.mxu1 %vm3381_vm4, %v9796_v30  ;;  %v19260_v54 = vadd.f32 %v14092_v38, %v14028_v18  ;;  %v7377_v47 = vpop.f32.mrf.mxu0  ;;  %v9412_v38 = vld [vmem:[#allocation2 + $0x110] sm:$0xff] }
 0x484   : > { %14413 = vmatprep.mubr.msk.f32.mxu0 %vm3381_vm4, %v9403_v39  ;;  %14477 = vmatprep.mubr.msk.f32.mxu1 %vm3381_vm4, %v9797_v9  ;;  %v7698_v12 = vpop.f32.mrf.mxu1  ;;  %v9806_v39 = vld [vmem:[#allocation2 + $0x111] sm:$0xff] }
 0x485   : > { %14520 = vmatprep.subr.mxu0 %v11899_v4  ;;  %v19264_v27 = vadd.f32 %v7698_v12, %v7377_v47  ;;  %v14031_v59 = vpop.f32.mrf.mxu0  ;;  %v9413_v12 = vld [vmem:[#allocation2 + $0x120] sm:$0xff] }
 0x486   : > { %14521 = vmatpush3.msra.mxu0 %v11899_v4  ;;  %v14095_v10 = vpop.f32.mrf.mxu1 }
 0x487   : > { %14414 = vmatmul.mubr.msk.f32.gmra.mxu0 %vm3381_vm4, %v9404_v45  ;;  %14478 = vmatmul.mubr.msk.f32.gmra.mxu1 %vm3381_vm4, %v9798_v43  ;;  %v19271_v44 = vadd.f32 %v14095_v10, %v14031_v59  ;;  %v7387_v52 = vpop.f32.mrf.mxu0  ;;  %v9807_v45 = vld [vmem:[#allocation2 + $0x121] sm:$0xff] }
 0x488   : > { %14416 = vmatprep.mubr.msk.f32.mxu0 %vm3381_vm4, %v9405_v63  ;;  %14480 = vmatprep.mubr.msk.f32.mxu1 %vm3381_vm4, %v9799_v1  ;;  %v7708_v41 = vpop.f32.mrf.mxu1  ;;  %v9414_v63 = vld [vmem:[#allocation2 + $0x128] sm:$0xff] }
 0x489   : > { %14522 = vmatprep.subr.mxu0 %v11898_v37  ;;  %v19275_v17 = vadd.f32 %v7708_v41, %v7387_v52  ;;  %v14034_v62 = vpop.f32.mrf.mxu0  ;;  %v9808_v1 = vld [vmem:[#allocation2 + $0x129] sm:$0xff] }
 0x48a   : > { %14523 = vmatpush3.msra.mxu0 %v11898_v37  ;;  %v14098_v23 = vpop.f32.mrf.mxu1 }
 0x48b   : > { %14417 = vmatmul.mubr.msk.f32.gmra.mxu0 %vm3381_vm4, %v9406_v8  ;;  %14481 = vmatmul.mubr.msk.f32.gmra.mxu1 %vm3381_vm4, %v9800_v25  ;;  %v19282_v50 = vadd.f32 %v14098_v23, %v14034_v62  ;;  %v7397_v15 = vpop.f32.mrf.mxu0  ;;  %v9415_v8 = vld [vmem:[#allocation2 + $0x138] sm:$0xff] }
 0x48c   : > { %14419 = vmatprep.mubr.msk.f32.mxu0 %vm3381_vm4, %v9407_v22  ;;  %14483 = vmatprep.mubr.msk.f32.mxu1 %vm3381_vm4, %v9801_v0  ;;  %v7718_v55 = vpop.f32.mrf.mxu1  ;;  %v9809_v25 = vld [vmem:[#allocation2 + $0x139] sm:$0xff] }
 0x48d   : > { %14524 = vmatprep.subr.mxu0 %v11897_v11  ;;  %v19286_v51 = vadd.f32 %v7718_v55, %v7397_v15  ;;  %v9416_v0 = vld [vmem:[#allocation2 + $0x140] sm:$0xff] }
 0x48e   : > { %14525 = vmatpush3.msra.mxu0 %v11897_v11  ;;  %v14037_v13 = vpop.f32.mrf.mxu0  ;;  %v14101_v58 = vpop.f32.mrf.mxu1  ;;  %v9810_v15 = vld [vmem:[#allocation2 + $0x141] sm:$0xff] }
 0x48f   : > { %14420 = vmatmul.mubr.msk.f32.gmra.mxu0 %vm3381_vm4, %v9408_v5  ;;  %14484 = vmatmul.mubr.msk.f32.gmra.mxu1 %vm3381_vm4, %v9802_v26  ;;  %v19290_v20 = vadd.f32 %v14101_v58, %v14037_v13  ;;  %v9417_v26 = vld [vmem:[#allocation2 + $0x150] sm:$0xff] }
 0x490   : > { %14422 = vmatprep.mubr.msk.f32.mxu0 %vm3381_vm4, %v9409_v6  ;;  %14486 = vmatprep.mubr.msk.f32.mxu1 %vm3381_vm4, %v9803_v21  ;;  %v7407_v3 = vpop.f32.mrf.mxu0  ;;  %v7728_v7 = vpop.f32.mrf.mxu1  ;;  %v9811_v13 = vld [vmem:[#allocation2 + $0x151] sm:$0xff] }
 0x491   : > { %v19294_v34 = vadd.f32 %v7728_v7, %v7407_v3  ;;  %v9418_v7 = vld [vmem:[#allocation2 + $0x158] sm:$0xff] }
 0x492   : > { %v14040_v56 = vpop.f32.mrf.mxu0  ;;  %v14104_v32 = vpop.f32.mrf.mxu1 }
 0x493   : > { %14423 = vmatmul.mubr.msk.f32.gmra.mxu0 %vm3381_vm4, %v9410_v35  ;;  %14487 = vmatmul.mubr.msk.f32.gmra.mxu1 %vm3381_vm4, %v9804_v61  ;;  %v19298_v36 = vadd.f32 %v14104_v32, %v14040_v56  ;;  %v9812_v35 = vld [vmem:[#allocation2 + $0x159] sm:$0xff]  ;;  %v9419_v32 = vld [vmem:[#allocation2 + $0x168] sm:$0xff] }
 0x494   : > { %14425 = vmatprep.mubr.msk.f32.mxu0 %vm3381_vm4, %v9411_v49  ;;  %14489 = vmatprep.mubr.msk.f32.mxu1 %vm3381_vm4, %v9805_v53  ;;  %v7417_v30 = vpop.f32.mrf.mxu0  ;;  %v7738_v4 = vpop.f32.mrf.mxu1  ;;  %v9813_v49 = vld [vmem:[#allocation2 + $0x169] sm:$0xff] }
 0x495   : > { %v19302_v18 = vadd.f32 %v7738_v4, %v7417_v30 }
 0x497   : > { %v14043_v9 = vpop.f32.mrf.mxu0  ;;  %v14107_v47 = vpop.f32.mrf.mxu1  ;;  %14426 = vmatmul.mubr.msk.f32.gmra.mxu0 %vm3381_vm4, %v9412_v38  ;;  %14490 = vmatmul.mubr.msk.f32.gmra.mxu1 %vm3381_vm4, %v9806_v39  ;;  %v9420_v39 = vld [vmem:[#allocation2 + $0x170] sm:$0xff] }
 0x498   : > { %v19306_v43 = vadd.f32 %v14107_v47, %v14043_v9  ;;  %14428 = vmatprep.mubr.msk.f32.mxu0 %vm3381_vm4, %v9413_v12  ;;  %14492 = vmatprep.mubr.msk.f32.mxu1 %vm3381_vm4, %v9807_v45  ;;  %v9814_v9 = vld [vmem:[#allocation2 + $0x171] sm:$0xff] }
 0x499   : > { %v7427_v37 = vpop.f32.mrf.mxu0  ;;  %v7748_v59 = vpop.f32.mrf.mxu1 }
 0x49a   : > { %v19310_v10 = vadd.f32 %v7748_v59, %v7427_v37 }
 0x49b   : > { %v14046_v52 = vpop.f32.mrf.mxu0  ;;  %v14110_v41 = vpop.f32.mrf.mxu1  ;;  %14429 = vmatmul.mubr.msk.f32.gmra.mxu0 %vm3381_vm4, %v9414_v63  ;;  %14493 = vmatmul.mubr.msk.f32.gmra.mxu1 %vm3381_vm4, %v9808_v1  ;;  %v9423_v63 = vld [vmem:[#allocation2 + $0x198] sm:$0xff] }
 0x49c   : > { %v19314_v11 = vadd.f32 %v14110_v41, %v14046_v52  ;;  %14431 = vmatprep.mubr.msk.f32.mxu0 %vm3381_vm4, %v9415_v8  ;;  %14495 = vmatprep.mubr.msk.f32.mxu1 %vm3381_vm4, %v9809_v25  ;;  %v9817_v1 = vld [vmem:[#allocation2 + $0x199] sm:$0xff] }
 0x49d   : > { %v7437_v62 = vpop.f32.mrf.mxu0  ;;  %v7758_v23 = vpop.f32.mrf.mxu1 }
 0x49e   : > { %v19318_v22 = vadd.f32 %v7758_v23, %v7437_v62 }
 0x49f   : > { %v14049_v55 = vpop.f32.mrf.mxu0  ;;  %v14113_v5 = vpop.f32.mrf.mxu1  ;;  %14432 = vmatmul.mubr.msk.f32.gmra.mxu0 %vm3381_vm4, %v9416_v0  ;;  %14496 = vmatmul.mubr.msk.f32.gmra.mxu1 %vm3381_vm4, %v9810_v15 }
 0x4a0   : > { %v19322_v58 = vadd.f32 %v14113_v5, %v14049_v55  ;;  %14434 = vmatprep.mubr.msk.f32.mxu0 %vm3381_vm4, %v9417_v26  ;;  %14498 = vmatprep.mubr.msk.f32.mxu1 %vm3381_vm4, %v9811_v13 }
 0x4a1   : > { %v7447_v6 = vpop.f32.mrf.mxu0  ;;  %v7768_v21 = vpop.f32.mrf.mxu1 }
 0x4a2   : > { %v19326_v3 = vadd.f32 %v7768_v21, %v7447_v6  ;;  %v10182_v6 = vld [vmem:[#allocation2 + $0x3a] sm:$0xff] }
 0x4a3   : > { %v14052_v61 = vpop.f32.mrf.mxu0  ;;  %v14116_v56 = vpop.f32.mrf.mxu1  ;;  %14435 = vmatmul.mubr.msk.f32.gmra.mxu0 %vm3381_vm4, %v9418_v7  ;;  %14499 = vmatmul.mubr.msk.f32.gmra.mxu1 %vm3381_vm4, %v9812_v35  ;;  %v10183_v35 = vld [vmem:[#allocation2 + $0x4a] sm:$0xff] }
 0x4a4   : > { %v19330_v53 = vadd.f32 %v14116_v56, %v14052_v61  ;;  %14437 = vmatprep.mubr.msk.f32.mxu0 %vm3381_vm4, %v9419_v32  ;;  %14501 = vmatprep.mubr.msk.f32.mxu1 %vm3381_vm4, %v9813_v49  ;;  %v7659_v61 = vadd.f32 %v19219_v16, %v19217_v57 }
 0x4a5   : > { %v7457_v30 = vpop.f32.mrf.mxu0  ;;  %v7778_v4 = vpop.f32.mrf.mxu1 }
 0x4a6   : > { %v19334_v38 = vadd.f32 %v7778_v4, %v7457_v30 }
 0x4a7   : > { %v14055_v47 = vpop.f32.mrf.mxu0  ;;  %v14119_v12 = vpop.f32.mrf.mxu1  ;;  %14438 = vmatmul.mubr.msk.f32.gmra.mxu0 %vm3381_vm4, %v9420_v39  ;;  %14502 = vmatmul.mubr.msk.f32.gmra.mxu1 %vm3381_vm4, %v9814_v9  ;;  %v10184_v39 = vld [vmem:[#allocation2 + $0x52] sm:$0xff] }
 0x4a8   : > { %v19338_v45 = vadd.f32 %v14119_v12, %v14055_v47  ;;  %14440 = vmatprep.mubr.msk.f32.mxu0 %vm3381_vm4, %v19013_v24  ;;  %14504 = vmatprep.mubr.msk.f32.mxu1 %vm3381_vm4, %v19193_v19  ;;  %v9424_v24 = vld [vmem:[#allocation2 + $0x1a0] sm:$0xff] }
 0x4a9   : > { %v7467_v37 = vpop.f32.mrf.mxu0  ;;  %v7788_v59 = vpop.f32.mrf.mxu1  ;;  %v9818_v19 = vld [vmem:[#allocation2 + $0x1a1] sm:$0xff] }
 0x4aa   : > { %v19344_v52 = vadd.f32 %v7788_v59, %v7467_v37  ;;  %v10185_v12 = vld [vmem:[#allocation2 + $0x62] sm:$0xff] }
 0x4ab   : > { %v14058_v41 = vpop.f32.mrf.mxu0  ;;  %v14122_v8 = vpop.f32.mrf.mxu1  ;;  %14441 = vmatmul.mubr.msk.f32.gmra.mxu0 %vm3381_vm4, %v19021_v48  ;;  %14505 = vmatmul.mubr.msk.f32.gmra.mxu1 %vm3381_vm4, %v19201_v33  ;;  %v10181_v48 = vld [vmem:[#allocation2 + $0x32] sm:$0xff] }
 0x4ac   : > { %v19350_v25 = vadd.f32 %v14122_v8, %v14058_v41  ;;  %14443 = vmatprep.mubr.msk.f32.mxu0 %vm3381_vm4, %v9423_v63  ;;  %14507 = vmatprep.mubr.msk.f32.mxu1 %vm3381_vm4, %v9817_v1  ;;  %v10186_v1 = vld [vmem:[#allocation2 + $0x6a] sm:$0xff] }
 0x4ad   : > { %v7477_v62 = vpop.f32.mrf.mxu0  ;;  %v7798_v23 = vpop.f32.mrf.mxu1 }
 0x4ae   : > { %v19354_v0 = vadd.f32 %v7798_v23, %v7477_v62 }
 0x4af   : > { %v14061_v15 = vpop.f32.mrf.mxu0  ;;  %v14125_v55 = vpop.f32.mrf.mxu1  ;;  %14444 = vmatmul.mubr.msk.f32.gmra.mxu0 %vm3381_vm4, %v9424_v24  ;;  %14508 = vmatmul.mubr.msk.f32.gmra.mxu1 %vm3381_vm4, %v9818_v19  ;;  %v10187_v24 = vld [vmem:[#allocation2 + $0x7a] sm:$0xff] }
 0x4b0   : > { %v19358_v33 = vadd.f32 %v14125_v55, %v14061_v15  ;;  %14526 = vmatprep.mubr.msk.f32.mxu0 %vm3381_vm4, %v10181_v48  ;;  %v10188_v48 = vld [vmem:[#allocation2 + $0x82] sm:$0xff] }
 0x4b1   : > { %v7487_v5 = vpop.f32.mrf.mxu0  ;;  %v7808_v26 = vpop.f32.mrf.mxu1 }
 0x4b2   : > { %v19361_v13 = vadd.f32 %v7808_v26, %v7487_v5  ;;  %v10189_v26 = vld [vmem:[#allocation2 + $0x92] sm:$0xff] }
 0x4b3   : > { %v14144_v21 = vpop.f32.mrf.mxu0  ;;  %v14208_v7 = vpop.f32.mrf.mxu1  ;;  %14527 = vmatmul.mubr.msk.f32.vlgmr.msra.gmra.mxu0 %vm3381_vm4, %v10182_v6 }
 0x4b4   : > { %v8180_v56 = vadd.f32 %v14144_v21, %v18835_v14  ;;  %14529 = vmatprep.mubr.msk.f32.mxu0 %vm3381_vm4, %v10183_v35 }
 0x4b5   : > { %v8020_v32 = vpop.f32.mrf.mxu0  ;;  %v8414_v49 = vpop.f32.mrf.mxu1 }
 0x4b6   : > { %v19368_v30 = vadd.f32 %v14208_v7, %v8180_v56  ;;  %v8179_v4 = vadd.f32 %v8020_v32, %v7659_v61  ;;  %v10190_v56 = vld [vmem:[#allocation2 + $0x9a] sm:$0xff] }
 0x4b7   : > { %v14147_v9 = vpop.f32.mrf.mxu0  ;;  %v14211_v47 = vpop.f32.mrf.mxu1  ;;  %14530 = vmatmul.mubr.msk.f32.gmra.mxu0 %vm3381_vm4, %v10184_v39 }
 0x4b8   : > { %v19371_v37 = vadd.f32 %v8414_v49, %v8179_v4  ;;  %v8182_v59 = vadd.f32 %v14147_v9, %v19227_v60  ;;  %14532 = vmatprep.mubr.msk.f32.mxu0 %vm3381_vm4, %v10185_v12  ;;  %v10191_v49 = vld [vmem:[#allocation2 + $0xaa] sm:$0xff] }
 0x4b9   : > { %v8030_v14 = vpop.f32.mrf.mxu0  ;;  %v8424_v57 = vpop.f32.mrf.mxu1 }
 0x4ba   : > { %v19375_v16 = vadd.f32 %v14211_v47, %v8182_v59  ;;  %v8181_v63 = vadd.f32 %v8030_v14, %v19231_v29  ;;  %v10192_v59 = vld [vmem:[#allocation2 + $0xb2] sm:$0xff] }
 0x4bb   : > { %v14150_v41 = vpop.f32.mrf.mxu0  ;;  %v14214_v8 = vpop.f32.mrf.mxu1  ;;  %14533 = vmatmul.mubr.msk.f32.gmra.mxu0 %vm3381_vm4, %v10186_v1 }
 0x4bc   : > { %v19379_v19 = vadd.f32 %v8424_v57, %v8181_v63  ;;  %v8184_v62 = vadd.f32 %v14150_v41, %v19238_v46  ;;  %14535 = vmatprep.mubr.msk.f32.mxu0 %vm3381_vm4, %v10187_v24  ;;  %v10193_v57 = vld [vmem:[#allocation2 + $0xc2] sm:$0xff] }
 0x4bd   : > { %v8040_v60 = vpop.f32.mrf.mxu0  ;;  %v8434_v23 = vpop.f32.mrf.mxu1 }
 0x4be   : > { %v19383_v15 = vadd.f32 %v14214_v8, %v8184_v62  ;;  %v8183_v55 = vadd.f32 %v8040_v60, %v19242_v2  ;;  %v10194_v62 = vld [vmem:[#allocation2 + $0xca] sm:$0xff] }
 0x4bf   : > { %v14153_v29 = vpop.f32.mrf.mxu0  ;;  %v14217_v5 = vpop.f32.mrf.mxu1  ;;  %14536 = vmatmul.mubr.msk.f32.gmra.mxu0 %vm3381_vm4, %v10188_v48 }
 0x4c0   : > { %v19387_v6 = vadd.f32 %v8434_v23, %v8183_v55  ;;  %v8186_v21 = vadd.f32 %v14153_v29, %v19249_v31  ;;  %14538 = vmatprep.mubr.msk.f32.mxu0 %vm3381_vm4, %v10189_v26  ;;  %v10195_v23 = vld [vmem:[#allocation2 + $0xda] sm:$0xff] }
 0x4c1   : > { %v8050_v46 = vpop.f32.mrf.mxu0  ;;  %v8444_v7 = vpop.f32.mrf.mxu1 }
 0x4c2   : > { %v19391_v35 = vadd.f32 %v14217_v5, %v8186_v21  ;;  %v8185_v61 = vadd.f32 %v8050_v46, %v19253_v42  ;;  %v10196_v21 = vld [vmem:[#allocation2 + $0xe2] sm:$0xff] }
 0x4c3   : > { %v14156_v2 = vpop.f32.mrf.mxu0  ;;  %v14220_v32 = vpop.f32.mrf.mxu1  ;;  %14539 = vmatmul.mubr.msk.f32.gmra.mxu0 %vm3381_vm4, %v10190_v56 }
 0x4c4   : > { %v19395_v4 = vadd.f32 %v8444_v7, %v8185_v61  ;;  %v8188_v39 = vadd.f32 %v14156_v2, %v19260_v54  ;;  %14541 = vmatprep.mubr.msk.f32.mxu0 %vm3381_vm4, %v10191_v49  ;;  %v10197_v7 = vld [vmem:[#allocation2 + $0xf2] sm:$0xff] }
 0x4c5   : > { %v8060_v31 = vpop.f32.mrf.mxu0  ;;  %v8454_v9 = vpop.f32.mrf.mxu1 }
 0x4c6   : > { %v19399_v47 = vadd.f32 %v14220_v32, %v8188_v39  ;;  %v8187_v12 = vadd.f32 %v8060_v31, %v19264_v27  ;;  %v10198_v39 = vld [vmem:[#allocation2 + $0xfa] sm:$0xff] }
 0x4c7   : > { %v14159_v42 = vpop.f32.mrf.mxu0  ;;  %v14223_v14 = vpop.f32.mrf.mxu1  ;;  %14542 = vmatmul.mubr.msk.f32.gmra.mxu0 %vm3381_vm4, %v10192_v59 }
 0x4c8   : > { %v19403_v63 = vadd.f32 %v8454_v9, %v8187_v12  ;;  %v8190_v1 = vadd.f32 %v14159_v42, %v19271_v44  ;;  %14544 = vmatprep.mubr.msk.f32.mxu0 %vm3381_vm4, %v10193_v57  ;;  %v10199_v9 = vld [vmem:[#allocation2 + $0x10a] sm:$0xff] }
 0x4c9   : > { %v8070_v54 = vpop.f32.mrf.mxu0  ;;  %v8464_v41 = vpop.f32.mrf.mxu1 }
 0x4ca   : > { %v19407_v8 = vadd.f32 %v14223_v14, %v8190_v1  ;;  %v8189_v24 = vadd.f32 %v8070_v54, %v19275_v17  ;;  %v10200_v1 = vld [vmem:[#allocation2 + $0x112] sm:$0xff] }
 0x4cb   : > { %v14162_v27 = vpop.f32.mrf.mxu0  ;;  %v14226_v60 = vpop.f32.mrf.mxu1  ;;  %14545 = vmatmul.mubr.msk.f32.gmra.mxu0 %vm3381_vm4, %v10194_v62 }
 0x4cc   : > { %v19411_v55 = vadd.f32 %v8464_v41, %v8189_v24  ;;  %v8192_v48 = vadd.f32 %v14162_v27, %v19282_v50  ;;  %14547 = vmatprep.mubr.msk.f32.mxu0 %vm3381_vm4, %v10195_v23  ;;  %v10201_v41 = vld [vmem:[#allocation2 + $0x122] sm:$0xff] }
 0x4cd   : > { %v8080_v44 = vpop.f32.mrf.mxu0  ;;  %v8474_v29 = vpop.f32.mrf.mxu1 }
 0x4ce   : > { %v19415_v5 = vadd.f32 %v14226_v60, %v8192_v48  ;;  %v8191_v26 = vadd.f32 %v8080_v44, %v19286_v51  ;;  %v10202_v48 = vld [vmem:[#allocation2 + $0x12a] sm:$0xff] }
 0x4cf   : > { %v14165_v17 = vpop.f32.mrf.mxu0  ;;  %v14229_v46 = vpop.f32.mrf.mxu1  ;;  %14548 = vmatmul.mubr.msk.f32.gmra.mxu0 %vm3381_vm4, %v10196_v21 }
 0x4d0   : > { %v19419_v61 = vadd.f32 %v8474_v29, %v8191_v26  ;;  %v8194_v56 = vadd.f32 %v14165_v17, %v19290_v20  ;;  %14550 = vmatprep.mubr.msk.f32.mxu0 %vm3381_vm4, %v10197_v7  ;;  %v10203_v29 = vld [vmem:[#allocation2 + $0x13a] sm:$0xff] }
 0x4d1   : > { %v8090_v50 = vpop.f32.mrf.mxu0  ;;  %v8484_v2 = vpop.f32.mrf.mxu1 }
 0x4d2   : > { %v19423_v32 = vadd.f32 %v14229_v46, %v8194_v56  ;;  %v8193_v49 = vadd.f32 %v8090_v50, %v19294_v34  ;;  %v10204_v56 = vld [vmem:[#allocation2 + $0x142] sm:$0xff] }
 0x4d3   : > { %v14168_v51 = vpop.f32.mrf.mxu0  ;;  %v14232_v31 = vpop.f32.mrf.mxu1  ;;  %14551 = vmatmul.mubr.msk.f32.gmra.mxu0 %vm3381_vm4, %v10198_v39 }
 0x4d4   : > { %v19427_v12 = vadd.f32 %v8484_v2, %v8193_v49  ;;  %v8196_v59 = vadd.f32 %v14168_v51, %v19298_v36  ;;  %14553 = vmatprep.mubr.msk.f32.mxu0 %vm3381_vm4, %v10199_v9  ;;  %v10205_v2 = vld [vmem:[#allocation2 + $0x152] sm:$0xff] }
 0x4d5   : > { %v8100_v20 = vpop.f32.mrf.mxu0  ;;  %v8494_v42 = vpop.f32.mrf.mxu1 }
 0x4d6   : > { %v19431_v14 = vadd.f32 %v14232_v31, %v8196_v59  ;;  %v8195_v57 = vadd.f32 %v8100_v20, %v19302_v18  ;;  %v10206_v59 = vld [vmem:[#allocation2 + $0x15a] sm:$0xff] }
 0x4d7   : > { %v14171_v34 = vpop.f32.mrf.mxu0  ;;  %v14235_v54 = vpop.f32.mrf.mxu1  ;;  %14554 = vmatmul.mubr.msk.f32.gmra.mxu0 %vm3381_vm4, %v10200_v1 }
 0x4d8   : > { %v19435_v24 = vadd.f32 %v8494_v42, %v8195_v57  ;;  %v8198_v62 = vadd.f32 %v14171_v34, %v19306_v43  ;;  %14556 = vmatprep.mubr.msk.f32.mxu0 %vm3381_vm4, %v10201_v41  ;;  %v10207_v42 = vld [vmem:[#allocation2 + $0x16a] sm:$0xff] }
 0x4d9   : > { %v8110_v36 = vpop.f32.mrf.mxu0  ;;  %v8504_v27 = vpop.f32.mrf.mxu1 }
 0x4da   : > { %v19439_v60 = vadd.f32 %v14235_v54, %v8198_v62  ;;  %v8197_v23 = vadd.f32 %v8110_v36, %v19310_v10  ;;  %v10208_v62 = vld [vmem:[#allocation2 + $0x172] sm:$0xff] }
 0x4db   : > { %v14174_v18 = vpop.f32.mrf.mxu0  ;;  %v14238_v44 = vpop.f32.mrf.mxu1  ;;  %14557 = vmatmul.mubr.msk.f32.gmra.mxu0 %vm3381_vm4, %v10202_v48 }
 0x4dc   : > { %v19443_v26 = vadd.f32 %v8504_v27, %v8197_v23  ;;  %v8200_v21 = vadd.f32 %v14174_v18, %v19314_v11  ;;  %14559 = vmatprep.mubr.msk.f32.mxu0 %vm3381_vm4, %v10203_v29  ;;  %v10211_v18 = vld [vmem:[#allocation2 + $0x19a] sm:$0xff] }
 0x4dd   : > { %v8120_v43 = vpop.f32.mrf.mxu0  ;;  %v8514_v17 = vpop.f32.mrf.mxu1 }
 0x4de   : > { %v19447_v46 = vadd.f32 %v14238_v44, %v8200_v21  ;;  %v8199_v7 = vadd.f32 %v8120_v43, %v19318_v22 }
 0x4df   : > { %v14177_v10 = vpop.f32.mrf.mxu0  ;;  %v14241_v50 = vpop.f32.mrf.mxu1  ;;  %14560 = vmatmul.mubr.msk.f32.gmra.mxu0 %vm3381_vm4, %v10204_v56 }
 0x4e0   : > { %v19451_v49 = vadd.f32 %v8514_v17, %v8199_v7  ;;  %v8202_v39 = vadd.f32 %v14177_v10, %v19322_v58  ;;  %14562 = vmatprep.mubr.msk.f32.mxu0 %vm3381_vm4, %v10205_v2 }
 0x4e1   : > { %v8130_v11 = vpop.f32.mrf.mxu0  ;;  %v8524_v51 = vpop.f32.mrf.mxu1 }
 0x4e2   : > { %v19455_v31 = vadd.f32 %v14241_v50, %v8202_v39  ;;  %v8201_v9 = vadd.f32 %v8130_v11, %v19326_v3 }
 0x4e3   : > { %v14180_v22 = vpop.f32.mrf.mxu0  ;;  %v14244_v20 = vpop.f32.mrf.mxu1  ;;  %14563 = vmatmul.mubr.msk.f32.gmra.mxu0 %vm3381_vm4, %v10206_v59 }
 0x4e4   : > { %v19459_v57 = vadd.f32 %v8524_v51, %v8201_v9  ;;  %v8204_v1 = vadd.f32 %v14180_v22, %v19330_v53  ;;  %14565 = vmatprep.mubr.msk.f32.mxu0 %vm3381_vm4, %v10207_v42 }
 0x4e5   : > { %v8140_v58 = vpop.f32.mrf.mxu0  ;;  %v8534_v34 = vpop.f32.mrf.mxu1 }
 0x4e6   : > { %v19463_v54 = vadd.f32 %v14244_v20, %v8204_v1  ;;  %v8203_v41 = vadd.f32 %v8140_v58, %v19334_v38 }
 0x4e7   : > { %v14183_v3 = vpop.f32.mrf.mxu0  ;;  %v14247_v36 = vpop.f32.mrf.mxu1  ;;  %14566 = vmatmul.mubr.msk.f32.gmra.mxu0 %vm3381_vm4, %v10208_v62 }
 0x4e8   : > { %v19467_v27 = vadd.f32 %v8534_v34, %v8203_v41  ;;  %v8206_v23 = vadd.f32 %v14183_v3, %v19338_v45  ;;  %14568 = vmatprep.mubr.msk.f32.mxu0 %vm3381_vm4, %v19195_v28  ;;  %v10212_v45 = vld [vmem:[#allocation2 + $0x1a2] sm:$0xff] }
 0x4e9   : > { %v8150_v53 = vpop.f32.mrf.mxu0  ;;  %v8544_v48 = vpop.f32.mrf.mxu1 }
 0x4ea   : > { %v19472_v44 = vadd.f32 %v14247_v36, %v8206_v23  ;;  %v8205_v29 = vadd.f32 %v8150_v53, %v19344_v52 }
 0x4eb   : > { %v14186_v38 = vpop.f32.mrf.mxu0  ;;  %v14250_v21 = vpop.f32.mrf.mxu1  ;;  %14569 = vmatmul.mubr.msk.f32.gmra.mxu0 %vm3381_vm4, %v19203_v40 }
 0x4ec   : > { %v19477_v43 = vadd.f32 %v8544_v48, %v8205_v29  ;;  %v8208_v17 = vadd.f32 %v14186_v38, %v19350_v25  ;;  %14571 = vmatprep.mubr.msk.f32.mxu0 %vm3381_vm4, %v10211_v18 }
 0x4ed   : > { %v8160_v28 = vpop.f32.mrf.mxu0  ;;  %v8554_v7 = vpop.f32.mrf.mxu1 }
 0x4ee   : > { %v19481_v56 = vadd.f32 %v14250_v21, %v8208_v17  ;;  %v8207_v10 = vadd.f32 %v8160_v28, %v19354_v0 }
 0x4ef   : > { %v14189_v50 = vpop.f32.mrf.mxu0  ;;  %v14253_v52 = vpop.f32.mrf.mxu1  ;;  %14572 = vmatmul.mubr.msk.f32.gmra.mxu0 %vm3381_vm4, %v10212_v45 }
 0x4f0   : > { %v19485_v2 = vadd.f32 %v8554_v7, %v8207_v10  ;;  %v8210_v40 = vadd.f32 %v14189_v50, %v19358_v33 }
 0x4f1   : > { %v8170_v39 = vpop.f32.mrf.mxu0  ;;  %v8564_v11 = vpop.f32.mrf.mxu1 }
 0x4f2   : > { %v19488_v25 = vadd.f32 %v14253_v52, %v8210_v40  ;;  %v8209_v51 = vadd.f32 %v8170_v39, %v19361_v13 }
 0x4f3   : > { %v14272_v9 = vpop.f32.mrf.mxu0  ;;  %v14336_v59 = vpop.f32.mrf.mxu1 }
 0x4f4   : > { %v19491_v22 = vadd.f32 %v8564_v11, %v8209_v51  ;;  %v8968_v0 = vadd.f32 %v14272_v9, %v19368_v30 }
 0x4f5   : > { %v8808_v20 = vpop.f32.mrf.mxu0  ;;  %v19494_v42 = vpop.f32.mrf.mxu1 }
 0x4f6   : > { %v19496_v1 = vadd.f32 %v14336_v59, %v8968_v0  ;;  %v19499_v58 = vadd.f32 %v8808_v20, %v19371_v37 }
 0x4f7   : > { %v14275_v33 = vpop.f32.mrf.mxu0  ;;  %v14339_v34 = vpop.f32.mrf.mxu1 }
 0x4f8   : > { %v8970_v41 = vadd.f32 %v14275_v33, %v19375_v16 }
 0x4f9   : > { %v8818_v62 = vpop.f32.mrf.mxu0  ;;  %v9212_v13 = vpop.f32.mrf.mxu1 }
 0x4fa   : > { %v19502_v3 = vadd.f32 %v14339_v34, %v8970_v41  ;;  %v8969_v36 = vadd.f32 %v8818_v62, %v19379_v19 }
 0x4fb   : > { %v14278_v23 = vpop.f32.mrf.mxu0  ;;  %v14342_v30 = vpop.f32.mrf.mxu1 }
 0x4fc   : > { %v19505_v53 = vadd.f32 %v9212_v13, %v8969_v36  ;;  %v8972_v48 = vadd.f32 %v14278_v23, %v19383_v15 }
 0x4fd   : > { %v8828_v18 = vpop.f32.mrf.mxu0  ;;  %v9222_v29 = vpop.f32.mrf.mxu1 }
 0x4fe   : > { %v19508_v37 = vadd.f32 %v14342_v30, %v8972_v48  ;;  %v8971_v38 = vadd.f32 %v8828_v18, %v19387_v6 }
 0x4ff   : > { %v14281_v21 = vpop.f32.mrf.mxu0  ;;  %v14345_v16 = vpop.f32.mrf.mxu1 }
 0x500   : > { %v19511_v17 = vadd.f32 %v9222_v29, %v8971_v38  ;;  %v8974_v45 = vadd.f32 %v14281_v21, %v19391_v35 }
 0x501   : > { %v8838_v28 = vpop.f32.mrf.mxu0  ;;  %v9232_v19 = vpop.f32.mrf.mxu1 }
 0x502   : > { %v19514_v7 = vadd.f32 %v14345_v16, %v8974_v45  ;;  %v8973_v10 = vadd.f32 %v8838_v28, %v19395_v4 }
 0x503   : > { %v14284_v50 = vpop.f32.mrf.mxu0  ;;  %v14348_v15 = vpop.f32.mrf.mxu1 }
 0x504   : > { %v19517_v52 = vadd.f32 %v9232_v19, %v8973_v10  ;;  %v8976_v40 = vadd.f32 %v14284_v50, %v19399_v47 }
 0x505   : > { %v8848_v39 = vpop.f32.mrf.mxu0  ;;  %v9242_v6 = vpop.f32.mrf.mxu1 }
 0x506   : > { %v19520_v11 = vadd.f32 %v14348_v15, %v8976_v40  ;;  %v8975_v51 = vadd.f32 %v8848_v39, %v19403_v63 }
 0x507   : > { %v14287_v9 = vpop.f32.mrf.mxu0  ;;  %v14351_v35 = vpop.f32.mrf.mxu1 }
 0x508   : > { %v19523_v59 = vadd.f32 %v9242_v6, %v8975_v51  ;;  %v8978_v0 = vadd.f32 %v14287_v9, %v19407_v8 }
 0x509   : > { %v8858_v20 = vpop.f32.mrf.mxu0  ;;  %v9252_v4 = vpop.f32.mrf.mxu1 }
 0x50a   : > { %v19526_v33 = vadd.f32 %v14351_v35, %v8978_v0  ;;  %v8977_v34 = vadd.f32 %v8858_v20, %v19411_v55 }
 0x50b   : > { %v14290_v41 = vpop.f32.mrf.mxu0  ;;  %v14354_v47 = vpop.f32.mrf.mxu1 }
 0x50c   : > { %v19529_v62 = vadd.f32 %v9252_v4, %v8977_v34  ;;  %v8980_v13 = vadd.f32 %v14290_v41, %v19415_v5 }
 0x50d   : > { %v8868_v36 = vpop.f32.mrf.mxu0  ;;  %v9262_v63 = vpop.f32.mrf.mxu1 }
 0x50e   : > { %v19532_v23 = vadd.f32 %v14354_v47, %v8980_v13  ;;  %v8979_v30 = vadd.f32 %v8868_v36, %v19419_v61 }
 0x50f   : > { %v14293_v48 = vpop.f32.mrf.mxu0  ;;  %v14357_v8 = vpop.f32.mrf.mxu1 }
 0x510   : > { %v19535_v18 = vadd.f32 %v9262_v63, %v8979_v30  ;;  %v8982_v29 = vadd.f32 %v14293_v48, %v19423_v32 }
 0x511   : > { %v8878_v38 = vpop.f32.mrf.mxu0  ;;  %v9272_v55 = vpop.f32.mrf.mxu1 }
 0x512   : > { %v19538_v21 = vadd.f32 %v14357_v8, %v8982_v29  ;;  %v8981_v16 = vadd.f32 %v8878_v38, %v19427_v12 }
 0x513   : > { %v14296_v45 = vpop.f32.mrf.mxu0  ;;  %v14360_v5 = vpop.f32.mrf.mxu1 }
 0x514   : > { %v19541_v28 = vadd.f32 %v9272_v55, %v8981_v16  ;;  %v8984_v19 = vadd.f32 %v14296_v45, %v19431_v14 }
 0x515   : > { %v8888_v10 = vpop.f32.mrf.mxu0  ;;  %v19544_v61 = vpop.f32.mrf.mxu1 }
 0x516   : > { %v19546_v50 = vadd.f32 %v14360_v5, %v8984_v19  ;;  %v19549_v15 = vadd.f32 %v8888_v10, %v19435_v24 }
 0x517   : > { %v14299_v32 = vpop.f32.mrf.mxu0  ;;  %v14363_v40 = vpop.f32.mrf.mxu1 }
 0x518   : > { %v8986_v39 = vadd.f32 %v14299_v32, %v19439_v60 }
 0x519   : > { %v8898_v6 = vpop.f32.mrf.mxu0  ;;  %v9292_v12 = vpop.f32.mrf.mxu1 }
 0x51a   : > { %v19552_v51 = vadd.f32 %v14363_v40, %v8986_v39  ;;  %v8985_v9 = vadd.f32 %v8898_v6, %v19443_v26 }
 0x51b   : > { %v14302_v35 = vpop.f32.mrf.mxu0  ;;  %v14366_v14 = vpop.f32.mrf.mxu1 }
 0x51c   : > { %v19555_v0 = vadd.f32 %v9292_v12, %v8985_v9  ;;  %v8988_v20 = vadd.f32 %v14302_v35, %v19447_v46 }
 0x51d   : > { %v8908_v4 = vpop.f32.mrf.mxu0  ;;  %v9302_v34 = vpop.f32.mrf.mxu1 }
 0x51e   : > { %v19558_v24 = vadd.f32 %v14366_v14, %v8988_v20  ;;  %v8987_v41 = vadd.f32 %v8908_v4, %v19451_v49 }
 0x51f   : > { %v14305_v47 = vpop.f32.mrf.mxu0  ;;  %v14369_v60 = vpop.f32.mrf.mxu1 }
 0x520   : > { %v19561_v13 = vadd.f32 %v9302_v34, %v8987_v41  ;;  %v8990_v36 = vadd.f32 %v14305_v47, %v19455_v31 }
 0x521   : > { %v8918_v63 = vpop.f32.mrf.mxu0  ;;  %v9312_v26 = vpop.f32.mrf.mxu1 }
 0x522   : > { %v19564_v30 = vadd.f32 %v14369_v60, %v8990_v36  ;;  %v8989_v48 = vadd.f32 %v8918_v63, %v19459_v57 }
 0x523   : > { %v14308_v8 = vpop.f32.mrf.mxu0  ;;  %v14372_v46 = vpop.f32.mrf.mxu1 }
 0x524   : > { %v19567_v29 = vadd.f32 %v9312_v26, %v8989_v48  ;;  %v8992_v38 = vadd.f32 %v14308_v8, %v19463_v54 }
 0x525   : > { %v8928_v55 = vpop.f32.mrf.mxu0  ;;  %v9322_v49 = vpop.f32.mrf.mxu1 }
 0x526   : > { %v19570_v16 = vadd.f32 %v14372_v46, %v8992_v38  ;;  %v8991_v45 = vadd.f32 %v8928_v55, %v19467_v27 }
 0x527   : > { %v14311_v5 = vpop.f32.mrf.mxu0  ;;  %v14375_v31 = vpop.f32.mrf.mxu1 }
 0x528   : > { %v19573_v19 = vadd.f32 %v9322_v49, %v8991_v45  ;;  %v8994_v10 = vadd.f32 %v14311_v5, %v19472_v44 }
 0x529   : > { %v8938_v32 = vpop.f32.mrf.mxu0  ;;  %v9332_v57 = vpop.f32.mrf.mxu1 }
 0x52a   : > { %v19576_v40 = vadd.f32 %v14375_v31, %v8994_v10  ;;  %v8993_v39 = vadd.f32 %v8938_v32, %v19477_v43 }
 0x52b   : > { %v14314_v6 = vpop.f32.mrf.mxu0  ;;  %v14378_v54 = vpop.f32.mrf.mxu1 }
 0x52c   : > { %v19579_v12 = vadd.f32 %v9332_v57, %v8993_v39  ;;  %v8996_v9 = vadd.f32 %v14314_v6, %v19481_v56 }
 0x52d   : > { %v8948_v35 = vpop.f32.mrf.mxu0  ;;  %v9342_v27 = vpop.f32.mrf.mxu1 }
 0x52e   : > { %v19582_v14 = vadd.f32 %v14378_v54, %v8996_v9  ;;  %v8995_v20 = vadd.f32 %v8948_v35, %v19485_v2 }
 0x52f   : > { %v14317_v4 = vpop.f32.mrf.mxu0  ;;  %v14381_v44 = vpop.f32.mrf.mxu1 }
 0x530   : > { %v19585_v34 = vadd.f32 %v9342_v27, %v8995_v20  ;;  %v8998_v41 = vadd.f32 %v14317_v4, %v19488_v25 }
 0x531   : > { %v8958_v47 = vpop.f32.mrf.mxu0  ;;  %v9352_v36 = vpop.f32.mrf.mxu1 }
 0x532   : > { %v19588_v43 = vadd.f32 %v14381_v44, %v8998_v41  ;;  %v8997_v60 = vadd.f32 %v8958_v47, %v19491_v22 }
 0x533   : > { %v14400_v63 = vpop.f32.mrf.mxu0  ;;  %v14464_v54 = vpop.f32.mrf.mxu1 }
 0x534   : > { %v19591_v56 = vadd.f32 %v9352_v36, %v8997_v60  ;;  %v19594_v26 = vadd.f32 %v14400_v63, %v19496_v1 }
 0x535   : > { %v19596_v48 = vpop.f32.mrf.mxu0  ;;  %v9990_v27 = vpop.f32.mrf.mxu1 }
 0x537   : > { %v14403_v2 = vpop.f32.mrf.mxu0  ;;  %v14467_v4 = vpop.f32.mrf.mxu1 }
 0x538   : > { %v19599_v8 = vadd.f32 %v14403_v2, %v19502_v3 }
 0x539   : > { %v9606_v46 = vpop.f32.mrf.mxu0  ;;  %v10000_v47 = vpop.f32.mrf.mxu1 }
 0x53a   : > { %v19602_v25 = vadd.f32 %v9606_v46, %v19505_v53 }
 0x53b   : > { %v14406_v38 = vpop.f32.mrf.mxu0  ;;  %v14470_v63 = vpop.f32.mrf.mxu1 }
 0x53c   : > { %v19605_v22 = vadd.f32 %v14406_v38, %v19508_v37 }
 0x53d   : > { %v9616_v55 = vpop.f32.mrf.mxu0 }
 0x53e   : > { %v19608_v49 = vadd.f32 %v9616_v55, %v19511_v17 }
 0x53f   : > { %v14409_v1 = vpop.f32.mrf.mxu0 }
 0x540   : > { %v19611_v45 = vadd.f32 %v14409_v1, %v19514_v7 }
 0x541   : > { %v9626_v5 = vpop.f32.mrf.mxu0 }
 0x542   : > { %v19614_v3 = vadd.f32 %v9626_v5, %v19517_v52 }
 0x543   : > { %v14412_v31 = vpop.f32.mrf.mxu0 }
 0x544   : > { %v19617_v53 = vadd.f32 %v14412_v31, %v19520_v11 }
 0x545   : > { %v9636_v10 = vpop.f32.mrf.mxu0 }
 0x546   : > { %v19620_v37 = vadd.f32 %v9636_v10, %v19523_v59 }
 0x547   : > { %v14415_v32 = vpop.f32.mrf.mxu0 }
 0x548   : > { %v19623_v17 = vadd.f32 %v14415_v32, %v19526_v33 }
 0x549   : > { %v9646_v57 = vpop.f32.mrf.mxu0 }
 0x54a   : > { %v19626_v7 = vadd.f32 %v9646_v57, %v19529_v62 }
 0x54b   : > { %v14418_v39 = vpop.f32.mrf.mxu0 }
 0x54c   : > { %v19629_v52 = vadd.f32 %v14418_v39, %v19532_v23 }
 0x54d   : > { %v9656_v6 = vpop.f32.mrf.mxu0 }
 0x54e   : > { %v19632_v11 = vadd.f32 %v9656_v6, %v19535_v18  ;;  %v9361_v6 = vadd.f32 %v19494_v42, %v19499_v58 }
 0x54f   : > { %v14421_v9 = vpop.f32.mrf.mxu0 }
 0x550   : > { %v19635_v59 = vadd.f32 %v14421_v9, %v19538_v21 }
 0x551   : > { %v9666_v35 = vpop.f32.mrf.mxu0 }
 0x552   : > { %v19638_v33 = vadd.f32 %v9666_v35, %v19541_v28  ;;  %v9755_v35 = vadd.f32 %v19596_v48, %v9361_v6 }
 0x553   : > { %v14424_v62 = vpop.f32.mrf.mxu0 }
 0x554   : > { %v19641_v20 = vadd.f32 %v14424_v62, %v19546_v50 }
 0x555   : > { %v19643_v23 = vpop.f32.mrf.mxu0 }
 0x557   : > { %v14427_v44 = vpop.f32.mrf.mxu0 }
 0x558   : > { %v19646_v18 = vadd.f32 %v14427_v44, %v19552_v51 }
 0x559   : > { %v9686_v41 = vpop.f32.mrf.mxu0 }
 0x55a   : > { %v19649_v21 = vadd.f32 %v9686_v41, %v19555_v0  ;;  %v10010_v0 = vpop.f32.mrf.mxu1 }
 0x55b   : > { %v14430_v60 = vpop.f32.mrf.mxu0 }
 0x55c   : > { %v19652_v28 = vadd.f32 %v14430_v60, %v19558_v24  ;;  %v10149_v60 = vadd.f32 %v9990_v27, %v9755_v35 }
 0x55d   : > { %v9696_v36 = vpop.f32.mrf.mxu0 }
 0x55e   : > { %v19655_v50 = vadd.f32 %v9696_v36, %v19561_v13  ;;  %v14473_v13 = vpop.f32.mrf.mxu1 }
 0x55f   : > { %v14433_v2 = vpop.f32.mrf.mxu0 }
 0x560   : > { %v19658_v46 = vadd.f32 %v14433_v2, %v19564_v30  ;;  %v10150_v2 = vadd.f32 %v14464_v54, %v19594_v26  ;;  %v10153_v54 = vadd.f32 %v10010_v0, %v19608_v49  ;;  %v9377_v49 = vadd.f32 %v19544_v61, %v19549_v15 }
 0x561   : > { %v9706_v51 = vpop.f32.mrf.mxu0 }
 0x562   : > { %v19661_v38 = vadd.f32 %v9706_v51, %v19567_v29  ;;  %v10020_v29 = vpop.f32.mrf.mxu1 }
 0x563   : > { %v14436_v55 = vpop.f32.mrf.mxu0 }
 0x564   : > { %v19664_v1 = vadd.f32 %v14436_v55, %v19570_v16  ;;  %v19683_v9 = vpop.f32.mrf.mxu1 }
 0x565   : > { %v9716_v24 = vpop.f32.mrf.mxu0 }
 0x566   : > { %v19667_v5 = vadd.f32 %v9716_v24, %v19573_v19  ;;  %v10151_v24 = vadd.f32 %v10000_v47, %v19602_v25  ;;  %v10154_v47 = vadd.f32 %v14470_v63, %v19605_v22  ;;  %v9771_v22 = vadd.f32 %v19643_v23, %v9377_v49 }
 0x567   : > { %v14439_v31 = vpop.f32.mrf.mxu0 }
 0x568   : > { %v19670_v10 = vadd.f32 %v14439_v31, %v19576_v40 }
 0x569   : > { %v9726_v30 = vpop.f32.mrf.mxu0 }
 0x56a   : > { %v19673_v32 = vadd.f32 %v9726_v30, %v19579_v12 }
 0x56b   : > { %v14442_v57 = vpop.f32.mrf.mxu0 }
 0x56c   : > { %v19676_v39 = vadd.f32 %v14442_v57, %v19582_v14  ;;  %v10030_v14 = vpop.f32.mrf.mxu1  ;;  %v10152_v57 = vadd.f32 %v14467_v4, %v19599_v8  ;;  %v10155_v4 = vadd.f32 %v10020_v29, %v19614_v3 }
 0x56d   : > { %v9736_v16 = vpop.f32.mrf.mxu0  ;;  %v10157_v3 = vadd.f32 %v10030_v14, %v19620_v37 }
 0x56e   : > { %v19681_v19 = vadd.f32 %v9736_v16, %v19585_v34  ;;  %v19692_v58 = vpop.f32.mrf.mxu1 }
 0x56f   : > { %v14445_v40 = vpop.f32.mrf.mxu0 }
 0x570   : > { %v19687_v12 = vadd.f32 %v14445_v40, %v19588_v43  ;;  %v10040_v55 = vpop.f32.mrf.mxu1 }
 0x571   : > { %v9746_v62 = vpop.f32.mrf.mxu0  ;;  %v10159_v37 = vadd.f32 %v10040_v55, %v19626_v7 }
 0x572   : > { %v19690_v44 = vadd.f32 %v9746_v62, %v19591_v56  ;;  %v19696_v30 = vpop.f32.mrf.mxu1 }
 0x573   : > { %v14528_v41 = vpop.f32.mrf.mxu0 }
 0x574   : > { %v10544_v48 = vadd.f32 %v14528_v41, %v10150_v2  ;;  %v10050_v40 = vpop.f32.mrf.mxu1 }
 0x575   : > { %v10384_v36 = vpop.f32.mrf.mxu0  ;;  %v10161_v7 = vadd.f32 %v10050_v40, %v19632_v11 }
 0x576   : > { %v10543_v42 = vadd.f32 %v10384_v36, %v10149_v60  ;;  %v19700_v41 = vpop.f32.mrf.mxu1 }
 0x577   : > { %v14531_v34 = vpop.f32.mrf.mxu0 }
 0x578   : > { %10575 = vxpose.xlu0.b32.start [1/16] (narrow) %v10543_v42, 8  ;;  %v10546_v6 = vadd.f32 %v14531_v34, %v10152_v57  ;;  %v19703_v42 = vpop.f32.mrf.mxu1 }
 0x579   : > { %v10394_v51 = vpop.f32.mrf.mxu0  ;;  %v10163_v11 = vadd.f32 %v19703_v42, %v19638_v33 }
 0x57a   : > { %v10545_v31 = vadd.f32 %v10394_v51, %v10151_v24  ;;  %v14488_v2 = vpop.f32.mrf.mxu1 }
 0x57b   : > { %v14534_v43 = vpop.f32.mrf.mxu0 }
 0x57c   : > { %10576 = vxpose.xlu0.b32.cont [2/16] (narrow) %v10544_v48, 8  ;;  %v10548_v36 = vadd.f32 %v14534_v43, %v10154_v47  ;;  %v10156_v48 = vadd.f32 %v14473_v13, %v19611_v45  ;;  %v10070_v24 = vpop.f32.mrf.mxu1  ;;  %v10166_v45 = vadd.f32 %v14488_v2, %v19641_v20 }
 0x57d   : > { %v10404_v56 = vpop.f32.mrf.mxu0  ;;  %v10165_v29 = vadd.f32 %v10070_v24, %v9771_v22 }
 0x57e   : > { %v10547_v62 = vadd.f32 %v10404_v56, %v10153_v54  ;;  %v14491_v15 = vpop.f32.mrf.mxu1 }
 0x57f   : > { %v14537_v27 = vpop.f32.mrf.mxu0  ;;  %v10168_v20 = vadd.f32 %v14491_v15, %v19646_v18 }
 0x580   : > { %10577 = vxpose.xlu0.b32.cont [3/16] (narrow) %v10545_v31, 8  ;;  %v10550_v43 = vadd.f32 %v14537_v27, %v10156_v48  ;;  %v10080_v27 = vpop.f32.mrf.mxu1 }
 0x581   : > { %v10414_v16 = vpop.f32.mrf.mxu0  ;;  %v10167_v14 = vadd.f32 %v10080_v27, %v19649_v21 }
 0x582   : > { %v10549_v0 = vadd.f32 %v10414_v16, %v10155_v4  ;;  %v14494_v47 = vpop.f32.mrf.mxu1 }
 0x583   : > { %v14540_v26 = vpop.f32.mrf.mxu0  ;;  %v10170_v18 = vadd.f32 %v14494_v47, %v19652_v28 }
 0x584   : > { %10578 = vxpose.xlu0.b32.cont [4/16] (narrow) %v10546_v6, 8  ;;  %v10158_v6 = vadd.f32 %v19683_v9, %v19617_v53  ;;  %v10160_v53 = vadd.f32 %v19692_v58, %v19623_v17  ;;  %v10090_v4 = vpop.f32.mrf.mxu1  ;;  %v10162_v17 = vadd.f32 %v19696_v30, %v19629_v52  ;;  %v10164_v52 = vadd.f32 %v19700_v41, %v19635_v59 }
 0x585   : > { %v10424_v35 = vpop.f32.mrf.mxu0  ;;  %v10169_v21 = vadd.f32 %v10090_v4, %v19655_v50 }
 0x586   : > { %v10551_v57 = vadd.f32 %v10424_v35, %v10157_v3  ;;  %v10552_v23 = vadd.f32 %v14540_v26, %v10158_v6 }
 0x587   : > { %v14543_v25 = vpop.f32.mrf.mxu0 }
 0x588   : > { %10579 = vxpose.xlu0.b32.cont [5/16] (narrow) %v10547_v62, 8  ;;  %v10554_v9 = vadd.f32 %v14543_v25, %v10160_v53 }
 0x589   : > { %v10434_v60 = vpop.f32.mrf.mxu0 }
 0x58a   : > { %v10553_v35 = vadd.f32 %v10434_v60, %v10159_v37 }
 0x58b   : > { %v14546_v8 = vpop.f32.mrf.mxu0 }
 0x58c   : > { %10580 = vxpose.xlu0.b32.cont [6/16] (narrow) %v10548_v36, 8  ;;  %v10556_v58 = vadd.f32 %v14546_v8, %v10162_v17 }
 0x58d   : > { %v10444_v34 = vpop.f32.mrf.mxu0 }
 0x58e   : > { %v10555_v55 = vadd.f32 %v10444_v34, %v10161_v7 }
 0x58f   : > { %v19708_v51 = vpop.f32.mrf.mxu0 }
 0x590   : > { %10581 = vxpose.xlu0.b32.cont [7/16] (narrow) %v10549_v0, 8  ;;  %v14497_v0 = vpop.f32.mrf.mxu1  ;;  %v10558_v30 = vadd.f32 %v19708_v51, %v10164_v52 }
 0x591   : > { %v10454_v63 = vpop.f32.mrf.mxu0  ;;  %v10172_v28 = vadd.f32 %v14497_v0, %v19658_v46 }
 0x592   : > { %v10100_v48 = vpop.f32.mrf.mxu1  ;;  %v10557_v40 = vadd.f32 %v10454_v63, %v10163_v11 }
 0x593   : > { %v14552_v56 = vpop.f32.mrf.mxu0  ;;  %v10171_v50 = vadd.f32 %v10100_v48, %v19661_v38 }
 0x594   : > { %10582 = vxpose.xlu0.b32.cont [8/16] (narrow) %v10550_v43, 8  ;;  %v10560_v13 = vadd.f32 %v14552_v56, %v10166_v45  ;;  %v14500_v43 = vpop.f32.mrf.mxu1 }
 0x595   : > { %v10464_v31 = vpop.f32.mrf.mxu0 }
 0x596   : > { %v10559_v61 = vadd.f32 %v10464_v31, %v10165_v29  ;;  %v10110_v56 = vpop.f32.mrf.mxu1  ;;  %v10174_v29 = vadd.f32 %v14500_v43, %v19664_v1 }
 0x597   : > { %v14555_v16 = vpop.f32.mrf.mxu0  ;;  %v10173_v38 = vadd.f32 %v10110_v56, %v19667_v5 }
 0x598   : > { %10583 = vxpose.xlu0.b32.cont [9/16] (narrow) %v10551_v57, 8  ;;  %10607 = vxpose.xlu1.b32.start [1/16] (narrow) %v10559_v61, 8  ;;  %v10562_v26 = vadd.f32 %v14555_v16, %v10168_v20  ;;  %v14503_v63 = vpop.f32.mrf.mxu1 }
 0x599   : > { %v10474_v54 = vpop.f32.mrf.mxu0  ;;  %v10176_v15 = vadd.f32 %v14503_v63, %v19670_v10 }
 0x59a   : > { %v10561_v62 = vadd.f32 %v10474_v54, %v10167_v14  ;;  %v10120_v41 = vpop.f32.mrf.mxu1 }
 0x59b   : > { %v14558_v36 = vpop.f32.mrf.mxu0  ;;  %v10175_v31 = vadd.f32 %v10120_v41, %v19673_v32 }
 0x59c   : > { %10584 = vxpose.xlu0.b32.cont [10/16] (narrow) %v10552_v23, 8  ;;  %10608 = vxpose.xlu1.b32.cont [2/16] (narrow) %v10560_v13, 8  ;;  %v10564_v25 = vadd.f32 %v14558_v36, %v10170_v18  ;;  %v14506_v57 = vpop.f32.mrf.mxu1 }
 0x59d   : > { %v10484_v49 = vpop.f32.mrf.mxu0  ;;  %v10178_v27 = vadd.f32 %v14506_v57, %v19676_v39 }
 0x59e   : > { %v10563_v60 = vadd.f32 %v10484_v49, %v10169_v21  ;;  %v10130_v16 = vpop.f32.mrf.mxu1 }
 0x59f   : > { %v14561_v2 = vpop.f32.mrf.mxu0  ;;  %v10177_v45 = vadd.f32 %v10130_v16, %v19681_v19 }
 0x5a0   : > { %10585 = vxpose.xlu0.b32.cont [11/16] (narrow) %v10553_v35, 8  ;;  %10609 = vxpose.xlu1.b32.cont [3/16] (narrow) %v10561_v62, 8  ;;  %v10566_v8 = vadd.f32 %v14561_v2, %v10172_v28  ;;  %v14509_v1 = vpop.f32.mrf.mxu1 }
 0x5a1   : > { %v10494_v22 = vpop.f32.mrf.mxu0  ;;  %v10180_v35 = vadd.f32 %v14509_v1, %v19687_v12 }
 0x5a2   : > { %v10565_v34 = vadd.f32 %v10494_v22, %v10171_v50  ;;  %v10140_v32 = vpop.f32.mrf.mxu1  ;;  %v10673_v50 = vld [vmem:[%s469_s20] sm:$0xff]  ;;  %s454_s20 = scalar_lea.vmem [#allocation7], %s19755_s29 }
 0x5a3   : > { %v14564_v24 = vpop.f32.mrf.mxu0  ;;  %v10179_v14 = vadd.f32 %v10140_v32, %v19690_v44  ;;  %s10768_s0 = sshll.u32 %s454_s20, 4  ;;  %s19787_s0 = int_to_ptr.vmem [resolvable:$true] %s10768_s0 }
 0x5a4   : > { %10586 = vxpose.xlu0.b32.cont [12/16] (narrow) %v10554_v9, 8  ;;  %10610 = vxpose.xlu1.b32.cont [4/16] (narrow) %v10562_v26, 8  ;;  %v10568_v59 = vadd.f32 %v14564_v24, %v10174_v29 }
 0x5a5   : > { %v10504_v33 = vpop.f32.mrf.mxu0 }
 0x5a6   : > { %v10567_v42 = vadd.f32 %v10504_v33, %v10173_v38  ;;  %v10675_v33 = vcombine.high %v10673_v50, %v10673_v50 }
 0x5a7   : > { %v14567_v3 = vpop.f32.mrf.mxu0 }
 0x5a8   : > { %10587 = vxpose.xlu0.b32.cont [13/16] (narrow) %v10555_v55, 8  ;;  %10611 = vxpose.xlu1.b32.cont [5/16] (narrow) %v10563_v60, 8  ;;  %v10570_v5 = vadd.f32 %v14567_v3, %v10176_v15 }
 0x5a9   : > { %v10514_v46 = vpop.f32.mrf.mxu0 }
 0x5aa   : > { %v10569_v51 = vadd.f32 %v10514_v46, %v10175_v31 }
 0x5ab   : > { %v14570_v61 = vpop.f32.mrf.mxu0 }
 0x5ac   : > { %10588 = vxpose.xlu0.b32.cont [14/16] (narrow) %v10556_v58, 8  ;;  %10612 = vxpose.xlu1.b32.cont [6/16] (narrow) %v10564_v25, 8  ;;  %v10572_v54 = vadd.f32 %v14570_v61, %v10178_v27  ;;  %v10667_v58 = vld [vmem:[%s464_s16] sm:$0xff]  ;;  %s10740_s16 = sshll.u32 %s440_s15, 4  ;;  %s19773_s16 = int_to_ptr.vmem [resolvable:$true] %s10740_s16 }
 0x5ad   : > { %v10524_v6 = vpop.f32.mrf.mxu0  ;;  %s14655_s7 = scalar_lea.vmem %s19773_s16, 128  ;;  %p14662_p0 = scmp.lt.s32.totalorder %s19773_s16, %s14660_s18 }
 0x5ae   : > { %v10571_v23 = vadd.f32 %v10524_v6, %v10177_v45  ;;  %p14656_p11 = scmp.ne.s32.totalorder %s19773_s16, %s14655_s7 }
 0x5af   : > { %v14573_v13 = vpop.f32.mrf.mxu0 }
 0x5b0   : > { %10589 = vxpose.xlu0.b32.cont [15/16] (narrow) %v10557_v40, 8  ;;  %10613 = vxpose.xlu1.b32.cont [7/16] (narrow) %v10565_v34, 8  ;;  %v10574_v62 = vadd.f32 %v14573_v13, %v10180_v35  ;;  %p14657_p12 = pnand %p14656_p11, %p14882_p5 }
 0x5b1   : > { %v10534_v37 = vpop.f32.mrf.mxu0 }
 0x5b2   : > { %v10573_v10 = vadd.f32 %v10534_v37, %v10179_v14  ;;  %p14658_p13 = pneg %p14657_p12 }
 0x5b4   : > { %10590 = vxpose.xlu0.b32.end [16/16] (narrow) %v10558_v30, 8  ;;  %10614 = vxpose.xlu1.b32.cont [8/16] (narrow) %v10566_v8, 8  ;;  %v10669_v30 = vcombine.high %v10667_v58, %v10667_v58 }
 0x5b8   : > { %10615 = vxpose.xlu1.b32.cont [9/16] (narrow) %v10567_v42, 8 }
 0x5bc   : > { %10616 = vxpose.xlu1.b32.cont [10/16] (narrow) %v10568_v59, 8 }
 0x5c0   : > { %10617 = vxpose.xlu1.b32.cont [11/16] (narrow) %v10569_v51, 8 }
 0x5c4   : > { %10618 = vxpose.xlu1.b32.cont [12/16] (narrow) %v10570_v5, 8 }
 0x5c8   : > { %10619 = vxpose.xlu1.b32.cont [13/16] (narrow) %v10571_v23, 8 }
 0x5cc   : > { %10620 = vxpose.xlu1.b32.cont [14/16] (narrow) %v10572_v54, 8 }
 0x5d0   : > { %10621 = vxpose.xlu1.b32.cont [15/16] (narrow) %v10573_v10, 8 }
 0x5d4   : > { %10622 = vxpose.xlu1.b32.end [16/16] (narrow) %v10574_v62, 8 }
 0x5f4   : > { %v19741_v19 = vpop.trf.xlu0 }
 0x5f5   : > { %v10639_v47 = vsub.f32 0.0, %v19741_v19 }
 0x5f7   : > { %v10641_v36 = vmul.f32 1.442695, %v10639_v47 }
 0x5f9   : > { %14629 = vpow2.f32 %v10641_v36 }
 0x606   : > { %v14630_v39 = vpop.eup %14629 }
 0x607   : > { %v10645_v53 = vadd.f32 1.0, %v14630_v39 }
 0x609   : > { %14631 = vrcp.f32 %v10645_v53 }
 0x614   : > { %v19744_v20 = vpop.trf.xlu1 }
 0x615   : > { %v10640_v44 = vsub.f32 0.0, %v19744_v20 }
 0x616   : > { %v14632_v9 = vpop.eup %14631 }
 0x617   : > { %v10643_v26 = vmul.f32 1.442695, %v10640_v44  ;;  %v10657_v12 = vsub.f32 1.0, %v14632_v9  ;;  %v10651_v4 = vadd.f32 1e-08, %v14632_v9 }
 0x619   : > { %14633 = vpow2.f32 %v10643_v26  ;;  %v10659_v49 = vadd.f32 1e-08, %v10657_v12 }
 0x61a   : > { %14635 = vlog2.f32 %v10651_v4 }
 0x61b   : > { %14637 = vlog2.f32 %v10659_v49 }
 0x626   : > { %v14634_v7 = vpop.eup %14633 }
 0x627   : > { %v10646_v21 = vadd.f32 1.0, %v14634_v7  ;;  %v14636_v55 = vpop.eup %14635 }
 0x628   : > { %v14638_v60 = vpop.eup %14637  ;;  %v10654_v0 = vmul.f32 0.6931472, %v14636_v55 }
 0x629   : > { %14639 = vrcp.f32 %v10646_v21  ;;  %v10662_v2 = vmul.f32 0.6931472, %v14638_v60 }
 0x62b   : > { %v10665_v17 = vsub.f32 %v10654_v0, %v10662_v2 }
 0x62d   : > { %v10671_v22 = vadd.f32 %v10667_v58, %v10665_v17 }
 0x62f   : > { %v10677_v40 = vsub.f32 %v10671_v22, %v10673_v50 }
 0x631   : > { %v10680_v34 = vmul.f32 9.999999, %v10677_v40 }
 0x633   : > { %v11937_v43 = vclamps-f32 %v10680_v34, 30.0 }
 0x635   : > { %v10686_v28 = vsub.f32 0.0, %v11937_v43 }
 0x636   : > { %v14640_v18 = vpop.eup %14639 }
 0x637   : > { %v10652_v25 = vadd.f32 1e-08, %v14640_v18  ;;  %v10658_v48 = vsub.f32 1.0, %v14640_v18  ;;  %v10688_v42 = vmul.f32 1.442695, %v10686_v28 }
 0x639   : > { %14641 = vlog2.f32 %v10652_v25  ;;  %v10660_v11 = vadd.f32 1e-08, %v10658_v48 }
 0x63b   : > { %14643 = vlog2.f32 %v10660_v11 }
 0x63c   : > { %14645 = vpow2.f32 %v10688_v42 }
 0x646   : > { %v14642_v24 = vpop.eup %14641 }
 0x647   : > { %v10656_v8 = vmul.f32 0.6931472, %v14642_v24 }
 0x648   : > { %v14644_v52 = vpop.eup %14643 }
 0x649   : > { %v10664_v56 = vmul.f32 0.6931472, %v14644_v52  ;;  %v14646_v31 = vpop.eup %14645 }
 0x64a   : > { %v10692_v51 = vadd.f32 1.0, %v14646_v31 }
 0x64b   : > { %v10666_v38 = vsub.f32 %v10656_v8, %v10664_v56 }
 0x64d   : > { %v10672_v63 = vadd.f32 %v10669_v30, %v10666_v38 }
 0x64f   : > { %v10678_v3 = vsub.f32 %v10672_v63, %v10675_v33 }
 0x651   : > { %v10681_v29 = vmul.f32 9.999999, %v10678_v3 }
 0x653   : > { %v11938_v59 = vclamps-f32 %v10681_v29, 30.0 }
 0x655   : > { %v10687_v41 = vsub.f32 0.0, %v11938_v59 }
 0x657   : > { %v10690_v46 = vmul.f32 1.442695, %v10687_v41 }
 0x659   : > { %14647 = vpow2.f32 %v10690_v46 }
 0x65a   : > { %14649 = vrcp.f32 %v10692_v51 }
 0x666   : > { %v14648_v57 = vpop.eup %14647 }
 0x667   : > { %v10693_v61 = vadd.f32 1.0, %v14648_v57  ;;  %v14650_v15 = vpop.eup %14649 }
 0x668   : > { %v10696_v5 = vmul.f32 %v14650_v15, %v19741_v19 }
 0x669   : > { %14651 = vrcp.f32 %v10693_v61 }
 0x66a   : > { %v10703_v1 = vsub.f32 %v19741_v19, %v10696_v5 }
 0x676   : > { %v14652_v16 = vpop.eup %14651 }
 0x677   : > { %v10697_v6 = vmul.f32 %v14652_v16, %v19744_v20  ;;  %v10712_v45 = vcombine.low %v14650_v15, %v14652_v16 }
 0x679   : > { %v10700_v23 = vcombine.low %v10696_v5, %v10697_v6  ;;  %v10704_v13 = vsub.f32 %v19744_v20, %v10697_v6  ;;  %10714 = vst [vmem:[%s454_s20] sm:$0xff] %v10712_v45  ;;  %s14661_s20 = scalar_lea.vmem %s14660_s18, 256 }
 0x67a   : > { %p14663_p1 = scmp.lt.s32.totalorder %s14661_s20, %s14655_s7 }
 0x67b   : > { %v10707_v27 = vcombine.low %v10703_v1, %v10704_v13  ;;  %10702 = vst [vmem:[%s440_s15] sm:$0xff] %v10700_v23 }
 0x67c   : > { %p14664_p2 = por %p14663_p1, %p14662_p0 }
 0x67e   : > { %p14665_p3 = pnand %p14664_p2, %p14658_p13 }
 0x680   : > { %14668 = shalt.err (!%p14665_p3)
}
 0x681   : > { %s14669_s5 = scalar_lea.hbm %s19771_s2, 128  ;;  %s14673_s17 = scalar_lea.hbm %s19886_s10, 256 }
 0x682   : > { %p14670_p4 = scmp.ne.s32.totalorder %s19771_s2, %s14669_s5  ;;  %p14674_p9 = scmp.lt.s32.totalorder %s19771_s2, %s19886_s10 }
 0x683   : > { %p14675_p10 = scmp.lt.s32.totalorder %s14673_s17, %s14669_s5 }
 0x684   : > { %p14671_p7 = pnand %p14670_p4, %p14882_p5 }
 0x685   : > { %p14676_p11 = por %p14675_p10, %p14674_p9 }
 0x686   : > { %p14672_p8 = pneg %p14671_p7 }
 0x688   : > { %p14677_p12 = pnand %p14676_p11, %p14672_p8 }
 0x68a   : > { %14680 = shalt.err (!%p14677_p12)
}
 0x68b   : > { %14577 = dma.vmem_to_hbm [thread:$0]  (%p14882_p5), %s19773_s16, 128, %s19771_s2, %s10716_s26  }
 0x68c   : > { %s20484_s7 = scalar_lea.vmem [#allocation5], %s19755_s29  ;;  %s20485_s18 = sand.u32 1, %s14863_s25  }
 0x68d   : > { %10709 = vst [vmem:[%s20484_s7] sm:$0xff] %v10707_v27  ;;  %s19813_s20 = scalar_lea.sflag [#allocation6], %s20485_s18  ;;  %s14681_s5 = scalar_lea.vmem %s19780_s19, 128 }
 0x68e   : > { %p14682_p13 = scmp.ne.s32.totalorder %s19780_s19, %s14681_s5  ;;  %s14775_s6 = smov [#allocation5]  }
 0x68f   : > { %s14685_s28 = sshll.u32 %s14775_s6, 4  ;;  %s14686_s28 = int_to_ptr.vmem [resolvable:$false] %s14685_s28 }
 0x690   : > { %p14683_p0 = pnand %p14682_p13, %p14882_p5  ;;  %s14687_s17 = scalar_lea.vmem %s14686_s28, 256 }
 0x691   : > { %p14688_p2 = scmp.lt.s32.totalorder %s19780_s19, %s14686_s28  ;;  %p14689_p3 = scmp.lt.s32.totalorder %s14687_s17, %s14681_s5 }
 0x692   : > { %p14684_p1 = pneg %p14683_p0 }
 0x693   : > { %p14690_p4 = por %p14689_p3, %p14688_p2 }
 0x695   : > { %p14691_p7 = pnand %p14690_p4, %p14684_p1 }
 0x697   : > { %14694 = shalt.err (!%p14691_p7)
}
 0x698   : > { %s14695_s2 = scalar_lea.hbm %s19778_s4, 128  ;;  %s14699_s16 = scalar_lea.hbm %s19887_s11, 256 }
 0x699   : > { %p14696_p8 = scmp.ne.s32.totalorder %s19778_s4, %s14695_s2  ;;  %p14700_p11 = scmp.lt.s32.totalorder %s19778_s4, %s19887_s11 }
 0x69a   : > { %p14701_p12 = scmp.lt.s32.totalorder %s14699_s16, %s14695_s2 }
 0x69b   : > { %p14697_p9 = pnand %p14696_p8, %p14882_p5 }
 0x69c   : > { %p14702_p13 = por %p14701_p12, %p14700_p11 }
 0x69d   : > { %p14698_p10 = pneg %p14697_p9 }
 0x69f   : > { %p14703_p0 = pnand %p14702_p13, %p14698_p10 }
 0x6a1   : > { %14706 = shalt.err (!%p14703_p0)
}
 0x6a2   : > { %14578 = dma.vmem_to_hbm [thread:$0]  (%p14882_p5), %s19780_s19, 128, %s19778_s4, %s19813_s20  }
 0x6a3   : > { %s14707_s3 = scalar_lea.vmem %s19787_s0, 128  ;;  %s14776_s7 = smov [#allocation7]  }
 0x6a4   : > { %p14708_p1 = scmp.ne.s32.totalorder %s19787_s0, %s14707_s3  ;;  %s14711_s18 = sshll.u32 %s14776_s7, 4  ;;  %s14712_s18 = int_to_ptr.vmem [resolvable:$false] %s14711_s18 }
 0x6a5   : > { %s14713_s5 = scalar_lea.vmem %s14712_s18, 256  ;;  %p14714_p4 = scmp.lt.s32.totalorder %s19787_s0, %s14712_s18 }
 0x6a6   : > { %p14709_p2 = pnand %p14708_p1, %p14882_p5  ;;  %p14715_p7 = scmp.lt.s32.totalorder %s14713_s5, %s14707_s3 }
 0x6a8   : > { %p14710_p3 = pneg %p14709_p2  ;;  %p14716_p8 = por %p14715_p7, %p14714_p4 }
 0x6aa   : > { %p14717_p9 = pnand %p14716_p8, %p14710_p3 }
 0x6ac   : > { %14720 = shalt.err (!%p14717_p9)
}
 0x6ad   : > { %s14721_s6 = scalar_lea.hbm %s19785_s1, 128  ;;  %s14725_s28 = scalar_lea.hbm %s19888_s12, 256 }
 0x6ae   : > { %p14722_p10 = scmp.ne.s32.totalorder %s19785_s1, %s14721_s6  ;;  %p14726_p13 = scmp.lt.s32.totalorder %s19785_s1, %s19888_s12 }
 0x6af   : > { %p14727_p0 = scmp.lt.s32.totalorder %s14725_s28, %s14721_s6 }
 0x6b0   : > { %p14723_p11 = pnand %p14722_p10, %p14882_p5 }
 0x6b1   : > { %p14728_p1 = por %p14727_p0, %p14726_p13 }
 0x6b2   : > { %p14724_p12 = pneg %p14723_p11 }
 0x6b4   : > { %p14729_p2 = pnand %p14728_p1, %p14724_p12 }
 0x6b6   : > { %14732 = shalt.err (!%p14729_p2)
}
 0x6b7   : > { %14579 = dma.vmem_to_hbm [thread:$0]  (%p14882_p5), %s19787_s0, 128, %s19785_s1, %s19813_s20  }
 0x6b8 PF: > { %p14593_p3 = scmp.ge.s32.totalorder %s14771_s24, 2  ;;  %s10780_s25 = sand.u32 1, %s14759_s21  }
 0x6b9   : > { %s10781_s29 = scalar_lea.sflag [#allocation4], %s10780_s25 }
 0x6ba   : > { %p14584_p4 = pnand %p14593_p3, %p14886_p6 }
 0x6bc   : > { %p14585_p7 = pneg %p14584_p4 }
 0x6be   : > { %14750 = dma.done.wait (%p14585_p7), %s10781_s29, 128  }
 0x6bf   : > { %14752 = vsyncadd (%p14585_p7), %s10781_s29, 4294967168  ;;  %s20486_s16 = sadd.s32 4294967294, %s14771_s24  }
 0x6c0   : > { %s10789_s26 = sand.u32 1, %s20486_s16  }
 0x6c1   : > { %s10790_s13 = scalar_lea.sflag [#allocation6], %s10789_s26 }
 0x6c2   : > { %14754 = dma.done.wait (%p14585_p7), %s10790_s13, 256  }
 0x6c3   : > { %14756 = vsyncadd (%p14585_p7), %s10790_s13, 4294967040  ;;  %p26_p5 = scmp.ge.s32.totalorder %s14867_s27, 4   ;;  %s20487_s21 = smov %s14763_s22 }
 0x6c4   : > { %s20488_s22 = smov %s14767_s23  ;;  %s20489_s23 = smov %s14880_s30 }
 0x6c5   : > { %s20490_s24 = smov %s14867_s27  ;;  %28 = sbr.rel (!%p26_p5) target bundleno = 14 (0xe), region = 159 }
 0x6ca   :  { %10804 = vsyncpa [#allocation4], 1 }
 0x6cb   :  { %10806 = vsyncpa [#allocation4 + $0x1], 1 }
 0x6cc   :  { %10807 = vsyncpa [#allocation6], 1 }
 0x6cd   :  { %10809 = vsyncpa [#allocation6 + $0x1], 1 }

</bundles_post_ra>
